<compile_context>
chip_gen: v6e
topology: v6e:2x2x1
jax: 0.10.0
libtpu: 0.0.40
codegen_flags: <defaults>
</compile_context>

<pallas_src>
import jax
import jax.numpy as jnp
from jax import lax
from jax.experimental import pallas as pl
from jax.experimental.pallas import tpu as pltpu

# ---------------- hyperparameters (the torch module's globals, small) ----------------
HIDDEN_SIZE = 32
FEATURE_MAP_DIM = 4
NUM_PIXELS = FEATURE_MAP_DIM * FEATURE_MAP_DIM
EMBEDDING_SIZE = 16
ATTENTION_DIM = 16
NUM_SENTS = 2                      # also num_pics
MAX_SENT_LEN = 8
ENCODER_DIM = 32                   # stand-in for resnet152's 2048-dim features
VOCAB_SIZE = 20
VOCAB_PAD = 128                    # lane-dense padded vocab for fused out_layer
BATCH = 2
IMG = 16
HALF_HIDDEN = HIDDEN_SIZE // 2     # bidirectional encoder -> HIDDEN_SIZE // 2 per dir
F32 = jnp.float32


def _vmem():
    return pl.BlockSpec(memory_space=pltpu.MemorySpace.VMEM)


def _mm_t(x, w):
    # x (N, In) contracted with w (Out, In) over the last dims -> (N, Out)
    return lax.dot_general(x, w, (((1,), (1,)), ((), ())),
                           preferred_element_type=jnp.float32)


# ------------------------------- encoder kernel -------------------------------
def encoder_bilstm_kernel(fv_ref, wih_f_ref, whh_f_ref, bf_ref,
                          wih_b_ref, whh_b_ref, bb_ref,
                          hf_ref, hb_ref, cf_ref, cb_ref):
    # Fused single-layer bidirectional LSTM over num_pics steps.  Input-side
    # projections for ALL steps are computed as one matmul per direction before
    # the recurrence; only h @ w_hh stays inside the serial loop.
    num_t, bsz, edim = fv_ref.shape
    hh = whh_f_ref.shape[1]
    fv2 = fv_ref[...].reshape(num_t * bsz, edim)
    xg_f = (_mm_t(fv2, wih_f_ref[...]) + bf_ref[...]).reshape(num_t, bsz, 4 * hh)
    xg_b = (_mm_t(fv2, wih_b_ref[...]) + bb_ref[...]).reshape(num_t, bsz, 4 * hh)
    whh_f = whh_f_ref[...]
    whh_b = whh_b_ref[...]

    def cell(xg, h, c, whh):
        g = xg + _mm_t(h, whh)
        i = jax.nn.sigmoid(g[:, 0 * hh:1 * hh])
        f = jax.nn.sigmoid(g[:, 1 * hh:2 * hh])
        gg = jnp.tanh(g[:, 2 * hh:3 * hh])
        o = jax.nn.sigmoid(g[:, 3 * hh:4 * hh])
        c_new = f * c + i * gg
        return o * jnp.tanh(c_new), c_new

    h = jnp.zeros((bsz, hh), F32)
    c = jnp.zeros((bsz, hh), F32)
    for t in range(num_t):                           # static, num_t == NUM_SENTS
        h, c = cell(xg_f[t], h, c, whh_f)
    hf_ref[...] = h
    cf_ref[...] = c

    h = jnp.zeros((bsz, hh), F32)
    c = jnp.zeros((bsz, hh), F32)
    for t in range(num_t - 1, -1, -1):
        h, c = cell(xg_b[t], h, c, whh_b)
    hb_ref[...] = h
    cb_ref[...] = c


def pallas_encoder_bilstm(fv, p):
    bsz = fv.shape[1]
    outs = tuple(jax.ShapeDtypeStruct((bsz, HALF_HIDDEN), F32) for _ in range(4))
    return pl.pallas_call(
        encoder_bilstm_kernel,
        out_shape=outs,
        in_specs=[_vmem()] * 7,
        out_specs=tuple(_vmem() for _ in range(4)),
    )(fv, p['enc_w_ih_f'], p['enc_w_hh_f'], p['enc_b_f'],
      p['enc_w_ih_b'], p['enc_w_hh_b'], p['enc_b_b'])


# ------------------------------- decoder kernel -------------------------------
def decoder_seq_kernel(feat_ref, emb_ref, mask_ref, h0_ref, c0_ref,
                       wenc_ref, wdec_ref, batt_ref, wfull_ref,
                       wbeta_ref, bbeta_ref,
                       wih_e_ref, wih_c_ref, whh_ref, blstm_ref,
                       wout_ref, bout_ref,
                       score_ref, alpha_ref, h_sc):
    # grid = (sentence,).  One kernel invocation runs the full attention-LSTM
    # recurrence for one sentence, then applies out_layer + logSoftmax to the
    # masked hidden states as a single lane-dense (B*T, 128) epilogue matmul.
    feat = feat_ref[...]                               # (B, P, E)
    bsz, npix, edim = feat.shape
    tmax = emb_ref.shape[1]
    hdim = h0_ref.shape[1]
    adim = wenc_ref.shape[0]

    # ---- hoisted, t-invariant work (once per sentence) ----
    att1 = _mm_t(feat.reshape(bsz * npix, edim), wenc_ref[...]) + batt_ref[...]
    att1 = att1.reshape(bsz, npix, adim)               # (B, P, A)
    emb = emb_ref[...]                                 # (B, T, Emb)
    emb_proj = (_mm_t(emb.reshape(bsz * tmax, emb.shape[2]), wih_e_ref[...])
                + blstm_ref[...]).reshape(bsz, tmax, 4 * hdim)   # (B, T, 4H)

    wdec = wdec_ref[...]
    wfull = wfull_ref[...]                             # (1, A)
    wbeta = wbeta_ref[...]
    bbeta = bbeta_ref[...]
    wih_c = wih_c_ref[...]
    whh = whh_ref[...]

    h = h0_ref[...]                                    # (B, H)
    c = c0_ref[...]
    # ---- serial recurrence over time, fully inside one grid step ----
    for t in range(tmax):                              # static unroll, tmax == MAX_SENT_LEN
        # Attention (show-attend-tell); full_att bias omitted: it adds the same
        # constant to every pixel score, which the softmax cancels.
        att2 = _mm_t(h, wdec)                                      # (B, A)
        e = jnp.maximum(att1 + att2[:, None, :], 0.0)              # relu, (B, P, A)
        scores = jnp.sum(e * wfull, axis=2)                        # (B, P)
        m = jnp.max(scores, axis=1, keepdims=True)
        ex = jnp.exp(scores - m)
        alpha = ex * pl.reciprocal(jnp.sum(ex, axis=1, keepdims=True), approx=True)
        context = jnp.sum(feat * alpha[:, :, None], axis=1)        # (B, E)

        gate = jax.nn.sigmoid(_mm_t(h, wbeta) + bbeta)
        gated = gate * context

        # LSTMCell on cat([embedded, gated_context]); the embedding half was
        # projected for all steps above, so only h/context matmuls stay serial.
        gates = emb_proj[:, t, :] + _mm_t(gated, wih_c) + _mm_t(h, whh)
        i_g = jax.nn.sigmoid(gates[:, 0 * hdim:1 * hdim])
        f_g = jax.nn.sigmoid(gates[:, 1 * hdim:2 * hdim])
        g_g = jnp.tanh(gates[:, 2 * hdim:3 * hdim])
        o_g = jax.nn.sigmoid(gates[:, 3 * hdim:4 * hdim])
        c = f_g * c + i_g * g_g
        h = o_g * jnp.tanh(c)

        mask_t = mask_ref[:, t, :]                     # (B, 1), 1.0 while t < len
        h_sc[:, t, :] = h * mask_t                     # masked copy; h/c keep evolving
        alpha_ref[:, t, :] = alpha * mask_t

    # ---- fused out_layer + logSoftmax epilogue (128-lane dense) ----
    h_all = h_sc[...]                                  # (B, T, H), masked
    logits = _mm_t(h_all.reshape(bsz * tmax, hdim), wout_ref[...]) + bout_ref[...]
    mx = jnp.max(logits, axis=-1, keepdims=True)
    z = logits - mx
    lse = jnp.log(jnp.sum(jnp.exp(z), axis=-1, keepdims=True))
    score_ref[...] = (z - lse).reshape(bsz, tmax, logits.shape[1])


def pallas_decoder_all(feat_s, emb_s, mask_s, h0_s, c0_s, params):
    dp = params['decoders']
    nsent, bsz, npix, edim = feat_s.shape
    tmax = emb_s.shape[2]
    hdim = HIDDEN_SIZE

    def per_sent(dims):
        # one block per sentence, resident in VMEM for the whole grid step
        return pl.BlockSpec((None,) + dims, lambda s: (s,) + (0,) * len(dims))

    def shared(dims):
        return pl.BlockSpec(dims, lambda s: (0,) * len(dims))

    # combined attention bias; b_full_att is softmax-invariant and omitted
    b_att = dp['b_enc_att'] + dp['b_dec_att']

    in_specs = [
        per_sent((bsz, npix, edim)),             # feat
        per_sent((bsz, tmax, EMBEDDING_SIZE)),   # embedded words (all steps)
        per_sent((bsz, tmax, 1)),                # active mask (all steps)
        per_sent((bsz, hdim)),                   # h0
        per_sent((bsz, hdim)),                   # c0
        per_sent((ATTENTION_DIM, edim)),         # w_enc_att
        per_sent((ATTENTION_DIM, hdim)),         # w_dec_att
        per_sent((1, ATTENTION_DIM)),            # b_att (= b_enc_att + b_dec_att)
        per_sent((1, ATTENTION_DIM)),            # w_full_att
        per_sent((edim, hdim)),                  # w_f_beta
        per_sent((1, edim)),                     # b_f_beta
        per_sent((4 * hdim, EMBEDDING_SIZE)),    # w_ih (embedding half)
        per_sent((4 * hdim, edim)),              # w_ih (context half)
        per_sent((4 * hdim, hdim)),              # w_hh
        per_sent((1, 4 * hdim)),                 # b_lstm
        shared((VOCAB_PAD, hdim)),               # w_out_pad (shared)
        shared((1, VOCAB_PAD)),                  # b_out_pad (shared)
    ]
    out_specs = (per_sent((bsz, tmax, VOCAB_PAD)),   # log-softmax scores
                 per_sent((bsz, tmax, npix)))        # attention alphas

    return pl.pallas_call(
        decoder_seq_kernel,
        out_shape=(jax.ShapeDtypeStruct((nsent, bsz, tmax, VOCAB_PAD), F32),
                   jax.ShapeDtypeStruct((nsent, bsz, tmax, npix), F32)),
        grid_spec=pltpu.PrefetchScalarGridSpec(
            num_scalar_prefetch=0,
            grid=(nsent,),
            in_specs=in_specs,
            out_specs=out_specs,
            scratch_shapes=[pltpu.VMEM((bsz, tmax, hdim), F32)]),
        compiler_params=pltpu.CompilerParams(
            dimension_semantics=("parallel",)),
    )(feat_s, emb_s, mask_s, h0_s, c0_s,
      dp['w_enc_att'], dp['w_dec_att'], b_att, dp['w_full_att'],
      dp['w_f_beta'], dp['b_f_beta'],
      dp['w_ih_e'], dp['w_ih_c'], dp['w_hh'], dp['b_lstm'],
      params['w_out_pad'], params['b_out_pad'])


# ---------------------------------- parameters ----------------------------------
def init_params(key):
    keys = [key]

    def rnd(shape, scale=0.1):
        keys[0], sub = jax.random.split(keys[0])
        return scale * jax.random.normal(sub, shape, dtype=F32)

    S = NUM_SENTS
    emb_tbl = rnd((S, VOCAB_SIZE, EMBEDDING_SIZE))
    emb_tbl = emb_tbl.at[:, 3].set(0.0)                      # padding_idx=3
    w_ih = rnd((S, 4 * HIDDEN_SIZE, EMBEDDING_SIZE + ENCODER_DIM))

    w_out = rnd((VOCAB_SIZE, HIDDEN_SIZE))
    b_out = rnd((VOCAB_SIZE,))
    # lane-dense padded out_layer: pad rows have zero weight and -1e30 bias so
    # the extra columns vanish from the log-sum-exp (real columns unchanged).
    w_out_pad = jnp.zeros((VOCAB_PAD, HIDDEN_SIZE), F32).at[:VOCAB_SIZE].set(w_out)
    b_out_pad = jnp.full((1, VOCAB_PAD), -1e30, F32).at[0, :VOCAB_SIZE].set(b_out)

    params = {
        # fc7 stand-in (replaces pretrained resnet152); applied in plain XLA
        'w_proj': rnd((ENCODER_DIM, 3)),
        'b_proj': rnd((1, ENCODER_DIM)),
        # single-layer bidirectional encoder LSTM
        'enc_w_ih_f': rnd((4 * HALF_HIDDEN, ENCODER_DIM)),
        'enc_w_hh_f': rnd((4 * HALF_HIDDEN, HALF_HIDDEN)),
        'enc_b_f': rnd((1, 4 * HALF_HIDDEN)),
        'enc_w_ih_b': rnd((4 * HALF_HIDDEN, ENCODER_DIM)),
        'enc_w_hh_b': rnd((4 * HALF_HIDDEN, HALF_HIDDEN)),
        'enc_b_b': rnd((1, 4 * HALF_HIDDEN)),
        # shared out_layer (padded to 128 output lanes), fused into decoder kernel
        'w_out_pad': w_out_pad,
        'b_out_pad': b_out_pad,
        # all decoders stacked along a leading sentence axis
        'decoders': {
            'embedding': emb_tbl,
            'w_enc_att': rnd((S, ATTENTION_DIM, ENCODER_DIM)),
            'b_enc_att': rnd((S, 1, ATTENTION_DIM)),
            'w_dec_att': rnd((S, ATTENTION_DIM, HIDDEN_SIZE)),
            'b_dec_att': rnd((S, 1, ATTENTION_DIM)),
            'w_full_att': rnd((S, 1, ATTENTION_DIM)),
            'b_full_att': rnd((S, 1, 1)),          # unused: softmax-invariant
            'w_f_beta': rnd((S, ENCODER_DIM, HIDDEN_SIZE)),
            'b_f_beta': rnd((S, 1, ENCODER_DIM)),
            'w_ih_e': w_ih[:, :, :EMBEDDING_SIZE],  # split once at build time
            'w_ih_c': w_ih[:, :, EMBEDDING_SIZE:],
            'w_hh': rnd((S, 4 * HIDDEN_SIZE, HIDDEN_SIZE)),
            'b_lstm': rnd((S, 1, 4 * HIDDEN_SIZE)),
        },
    }
    return params


# ---------------------------------- model glue ----------------------------------
def run_encoder(params, images):
    bsz, num_pics, ch, hh, ww = images.shape
    ph, pw = hh // FEATURE_MAP_DIM, ww // FEATURE_MAP_DIM
    # torch: batch_i = images[:, -(i+1)]  (reversed picture order), then
    # AdaptiveAvgPool2d(FEATURE_MAP_DIM) + channels-last flatten.
    imgs_rev = images[:, ::-1]
    pooled = imgs_rev.reshape(bsz, num_pics, ch, FEATURE_MAP_DIM, ph,
                              FEATURE_MAP_DIM, pw).mean(axis=(4, 6))     # (B,S,C,F,F)
    fm = jnp.transpose(pooled, (1, 0, 3, 4, 2)).reshape(
        num_pics, bsz, NUM_PIXELS, ch)
    # fc7 stand-in projection in plain XLA (3->ENCODER_DIM; fuses with pooling)
    feature_map = jnp.einsum('sbpc,ec->sbpe', fm, params['w_proj']) + params['b_proj']
    feature_vec = jnp.mean(feature_map, axis=2)                          # (S, B, E)

    h_f, h_b, c_f, c_b = pallas_encoder_bilstm(feature_vec, params)
    # torch bidirectional layout: h_n[-2] = forward final, h_n[-1] = backward final
    h0 = jnp.concatenate([h_f, h_b], axis=1)                             # (B, H)
    c0 = jnp.concatenate([c_f, c_b], axis=1)
    return feature_map, (h0, c0)


def run_decoders(params, feature_map, stories, story_lens, h0, c0):
    nsent, bsz, tmax = stories.shape
    dp = params['decoders']
    feats, embs, masks, h0s, c0s, orders = [], [], [], [], [], []
    for i in range(nsent):
        # stable descending sort by length (mirrors torch sort(descending=True))
        order = jnp.argsort(-story_lens[i])
        lens_sorted = story_lens[i][order]
        feats.append(feature_map[i][order])                              # (B, P, E)
        embs.append(dp['embedding'][i][stories[i]][order])               # (B, T, Emb)
        masks.append((jnp.arange(tmax)[None, :] < lens_sorted[:, None])
                     .astype(F32)[:, :, None])                           # (B, T, 1)
        h0s.append(h0[order])
        c0s.append(c0[order])
        orders.append(order)
    feat_s = jnp.stack(feats)
    emb_s = jnp.stack(embs)
    mask_s = jnp.stack(masks)
    h0_s = jnp.stack(h0s)
    c0_s = jnp.stack(c0s)

    scores_s, alpha_s = pallas_decoder_all(feat_s, emb_s, mask_s, h0_s, c0_s, params)
    # Outputs already come back in (S, B, T, .) layout -> no XLA transpose.
    # NOTE: the torch reference re-applies the *forward* sort permutation
    # (`outputs = outputs[ordered_idx]`) before out_layer; since out_layer +
    # logSoftmax are per-row, applying the same permutation to the fused kernel
    # scores is exactly equivalent (replicated verbatim for fidelity).
    scores = jnp.stack([scores_s[i][orders[i]] for i in range(nsent)])
    out_attention = jnp.stack([alpha_s[i][orders[i]] for i in range(nsent)])
    return scores, out_attention


@jax.jit
def model_v2_forward(params, images, stories, story_lens):
    nsent, bsz, tmax = stories.shape
    feature_map, (h0, c0) = run_encoder(params, images)
    scores, out_attention = run_decoders(params, feature_map, stories,
                                         story_lens, h0, c0)
    out_probs = [scores[i, :, :, :VOCAB_SIZE] for i in range(nsent)]

    # NLLLoss(reduction='sum') over positions with j+1 < length, then divided
    # by n_tokens exactly as the torch reference does (`loss /= n_tokens`).
    tgt = stories[:, :, 1:]                                              # (S, B, T-1)
    picked = jnp.take_along_axis(scores[:, :, :tmax - 1, :],
                                 tgt[..., None], axis=3)[..., 0]
    active = jnp.arange(1, tmax)[None, None, :] < story_lens[:, :, None]
    loss = jnp.sum(jnp.where(active, -picked, 0.0)) / jnp.sum(active.astype(F32))
    return loss, out_probs, out_attention


if __name__ == "__main__":
    key = jax.random.PRNGKey(0)
    k_img, k_story, k_lens, k_par = jax.random.split(key, 4)
    params = init_params(k_par)
    images = jax.random.normal(k_img, (BATCH, NUM_SENTS, 3, IMG, IMG), dtype=F32)
    stories = jax.random.randint(k_story, (NUM_SENTS, BATCH, MAX_SENT_LEN),
                                 0, VOCAB_SIZE, dtype=jnp.int32)
    story_lens = jax.random.randint(k_lens, (NUM_SENTS, BATCH),
                                    2, MAX_SENT_LEN + 1, dtype=jnp.int32)

    loss, out_probs, out_attention = model_v2_forward(params, images, stories, story_lens)
    jax.block_until_ready((loss, out_probs, out_attention))
    print("KERNEL_OK")
</pallas_src>

<mosaic_0001>
module attributes {stable_mosaic.version = 11 : i64} {
  func.func @encoder_bilstm_kernel(%arg0: memref<2x2x32xf32, #tpu.memory_space<vmem>>, %arg1: memref<64x32xf32, #tpu.memory_space<vmem>>, %arg2: memref<64x16xf32, #tpu.memory_space<vmem>>, %arg3: memref<1x64xf32, #tpu.memory_space<vmem>>, %arg4: memref<64x32xf32, #tpu.memory_space<vmem>>, %arg5: memref<64x16xf32, #tpu.memory_space<vmem>>, %arg6: memref<1x64xf32, #tpu.memory_space<vmem>>, %arg7: memref<2x16xf32, #tpu.memory_space<vmem>>, %arg8: memref<2x16xf32, #tpu.memory_space<vmem>>, %arg9: memref<2x16xf32, #tpu.memory_space<vmem>>, %arg10: memref<2x16xf32, #tpu.memory_space<vmem>>) attributes {dimension_semantics = [], scalar_prefetch = 0 : i64, scratch_operands = 0 : i64, tpu.core_type = #tpu.core_type<tc>} {
    %c0 = arith.constant 0 : index
    %c0_0 = arith.constant 0 : index
    %c0_1 = arith.constant 0 : index
    %0 = vector.load %arg0[%c0, %c0_0, %c0_1] : memref<2x2x32xf32, #tpu.memory_space<vmem>>, vector<2x2x32xf32>
    %1 = vector.shape_cast %0 : vector<2x2x32xf32> to vector<4x32xf32>
    %c0_2 = arith.constant 0 : index
    %c0_3 = arith.constant 0 : index
    %2 = vector.load %arg1[%c0_2, %c0_3] : memref<64x32xf32, #tpu.memory_space<vmem>>, vector<64x32xf32>
    %cst = arith.constant dense<0.000000e+00> : vector<4x64xf32>
    %3 = tpu.matmul %1, %2, %cst {dimension_numbers = #tpu.dot_dimension_numbers<[1], [1], [0], [0], [0, 0, 1, 0], [], []>} : vector<4x32xf32>, vector<64x32xf32>, vector<4x64xf32> -> vector<4x64xf32>
    %c0_4 = arith.constant 0 : index
    %c0_5 = arith.constant 0 : index
    %4 = vector.load %arg3[%c0_4, %c0_5] : memref<1x64xf32, #tpu.memory_space<vmem>>, vector<1x64xf32>
    %5 = vector.broadcast %4 : vector<1x64xf32> to vector<4x64xf32>
    %6 = arith.addf %3, %5 : vector<4x64xf32>
    %7 = vector.shape_cast %6 : vector<4x64xf32> to vector<2x2x64xf32>
    %c0_6 = arith.constant 0 : index
    %c0_7 = arith.constant 0 : index
    %8 = vector.load %arg4[%c0_6, %c0_7] : memref<64x32xf32, #tpu.memory_space<vmem>>, vector<64x32xf32>
    %cst_8 = arith.constant dense<0.000000e+00> : vector<4x64xf32>
    %9 = tpu.matmul %1, %8, %cst_8 {dimension_numbers = #tpu.dot_dimension_numbers<[1], [1], [0], [0], [0, 0, 1, 0], [], []>} : vector<4x32xf32>, vector<64x32xf32>, vector<4x64xf32> -> vector<4x64xf32>
    %c0_9 = arith.constant 0 : index
    %c0_10 = arith.constant 0 : index
    %10 = vector.load %arg6[%c0_9, %c0_10] : memref<1x64xf32, #tpu.memory_space<vmem>>, vector<1x64xf32>
    %11 = vector.broadcast %10 : vector<1x64xf32> to vector<4x64xf32>
    %12 = arith.addf %9, %11 : vector<4x64xf32>
    %13 = vector.shape_cast %12 : vector<4x64xf32> to vector<2x2x64xf32>
    %c0_11 = arith.constant 0 : index
    %c0_12 = arith.constant 0 : index
    %14 = vector.load %arg2[%c0_11, %c0_12] : memref<64x16xf32, #tpu.memory_space<vmem>>, vector<64x16xf32>
    %c0_13 = arith.constant 0 : index
    %c0_14 = arith.constant 0 : index
    %15 = vector.load %arg5[%c0_13, %c0_14] : memref<64x16xf32, #tpu.memory_space<vmem>>, vector<64x16xf32>
    %cst_15 = arith.constant 0.000000e+00 : f32
    %16 = vector.broadcast %cst_15 : f32 to vector<2x16xf32>
    %cst_16 = arith.constant 0.000000e+00 : f32
    %17 = vector.broadcast %cst_16 : f32 to vector<2x16xf32>
    %18 = vector.extract_strided_slice %7 {offsets = [0, 0, 0], sizes = [1, 2, 64], strides = [1, 1, 1]} : vector<2x2x64xf32> to vector<1x2x64xf32>
    %19 = vector.shape_cast %18 : vector<1x2x64xf32> to vector<2x64xf32>
    %cst_17 = arith.constant dense<0.000000e+00> : vector<2x64xf32>
    %20 = tpu.matmul %16, %14, %cst_17 {dimension_numbers = #tpu.dot_dimension_numbers<[1], [1], [0], [0], [0, 0, 1, 0], [], []>} : vector<2x16xf32>, vector<64x16xf32>, vector<2x64xf32> -> vector<2x64xf32>
    %21 = arith.addf %19, %20 : vector<2x64xf32>
    %22 = vector.extract_strided_slice %21 {offsets = [0, 0], sizes = [2, 16], strides = [1, 1]} : vector<2x64xf32> to vector<2x16xf32>
    %23 = arith.negf %22 : vector<2x16xf32>
    %24 = math.exp %23 : vector<2x16xf32>
    %cst_18 = arith.constant 1.000000e+00 : f32
    %25 = vector.broadcast %cst_18 : f32 to vector<2x16xf32>
    %26 = arith.addf %25, %24 : vector<2x16xf32>
    %27 = arith.divf %25, %26 : vector<2x16xf32>
    %28 = vector.extract_strided_slice %21 {offsets = [0, 16], sizes = [2, 16], strides = [1, 1]} : vector<2x64xf32> to vector<2x16xf32>
    %29 = arith.negf %28 : vector<2x16xf32>
    %30 = math.exp %29 : vector<2x16xf32>
    %cst_19 = arith.constant 1.000000e+00 : f32
    %31 = vector.broadcast %cst_19 : f32 to vector<2x16xf32>
    %32 = arith.addf %31, %30 : vector<2x16xf32>
    %33 = arith.divf %31, %32 : vector<2x16xf32>
    %34 = vector.extract_strided_slice %21 {offsets = [0, 32], sizes = [2, 16], strides = [1, 1]} : vector<2x64xf32> to vector<2x16xf32>
    %35 = math.tanh %34 : vector<2x16xf32>
    %36 = vector.extract_strided_slice %21 {offsets = [0, 48], sizes = [2, 16], strides = [1, 1]} : vector<2x64xf32> to vector<2x16xf32>
    %37 = arith.negf %36 : vector<2x16xf32>
    %38 = math.exp %37 : vector<2x16xf32>
    %cst_20 = arith.constant 1.000000e+00 : f32
    %39 = vector.broadcast %cst_20 : f32 to vector<2x16xf32>
    %40 = arith.addf %39, %38 : vector<2x16xf32>
    %41 = arith.divf %39, %40 : vector<2x16xf32>
    %42 = arith.mulf %33, %17 : vector<2x16xf32>
    %43 = arith.mulf %27, %35 : vector<2x16xf32>
    %44 = arith.addf %42, %43 : vector<2x16xf32>
    %45 = math.tanh %44 : vector<2x16xf32>
    %46 = arith.mulf %41, %45 : vector<2x16xf32>
    %47 = vector.extract_strided_slice %7 {offsets = [1, 0, 0], sizes = [1, 2, 64], strides = [1, 1, 1]} : vector<2x2x64xf32> to vector<1x2x64xf32>
    %48 = vector.shape_cast %47 : vector<1x2x64xf32> to vector<2x64xf32>
    %cst_21 = arith.constant dense<0.000000e+00> : vector<2x64xf32>
    %49 = tpu.matmul %46, %14, %cst_21 {dimension_numbers = #tpu.dot_dimension_numbers<[1], [1], [0], [0], [0, 0, 1, 0], [], []>} : vector<2x16xf32>, vector<64x16xf32>, vector<2x64xf32> -> vector<2x64xf32>
    %50 = arith.addf %48, %49 : vector<2x64xf32>
    %51 = vector.extract_strided_slice %50 {offsets = [0, 0], sizes = [2, 16], strides = [1, 1]} : vector<2x64xf32> to vector<2x16xf32>
    %52 = arith.negf %51 : vector<2x16xf32>
    %53 = math.exp %52 : vector<2x16xf32>
    %cst_22 = arith.constant 1.000000e+00 : f32
    %54 = vector.broadcast %cst_22 : f32 to vector<2x16xf32>
    %55 = arith.addf %54, %53 : vector<2x16xf32>
    %56 = arith.divf %54, %55 : vector<2x16xf32>
    %57 = vector.extract_strided_slice %50 {offsets = [0, 16], sizes = [2, 16], strides = [1, 1]} : vector<2x64xf32> to vector<2x16xf32>
    %58 = arith.negf %57 : vector<2x16xf32>
    %59 = math.exp %58 : vector<2x16xf32>
    %cst_23 = arith.constant 1.000000e+00 : f32
    %60 = vector.broadcast %cst_23 : f32 to vector<2x16xf32>
    %61 = arith.addf %60, %59 : vector<2x16xf32>
    %62 = arith.divf %60, %61 : vector<2x16xf32>
    %63 = vector.extract_strided_slice %50 {offsets = [0, 32], sizes = [2, 16], strides = [1, 1]} : vector<2x64xf32> to vector<2x16xf32>
    %64 = math.tanh %63 : vector<2x16xf32>
    %65 = vector.extract_strided_slice %50 {offsets = [0, 48], sizes = [2, 16], strides = [1, 1]} : vector<2x64xf32> to vector<2x16xf32>
    %66 = arith.negf %65 : vector<2x16xf32>
    %67 = math.exp %66 : vector<2x16xf32>
    %cst_24 = arith.constant 1.000000e+00 : f32
    %68 = vector.broadcast %cst_24 : f32 to vector<2x16xf32>
    %69 = arith.addf %68, %67 : vector<2x16xf32>
    %70 = arith.divf %68, %69 : vector<2x16xf32>
    %71 = arith.mulf %62, %44 : vector<2x16xf32>
    %72 = arith.mulf %56, %64 : vector<2x16xf32>
    %73 = arith.addf %71, %72 : vector<2x16xf32>
    %74 = math.tanh %73 : vector<2x16xf32>
    %75 = arith.mulf %70, %74 : vector<2x16xf32>
    %c0_25 = arith.constant 0 : index
    %c0_26 = arith.constant 0 : index
    %76 = vector.load %arg7[%c0_25, %c0_26] : memref<2x16xf32, #tpu.memory_space<vmem>>, vector<2x16xf32>
    tpu.vector_store %arg7[%c0_25, %c0_26], %75 {strides = array<i32>} : memref<2x16xf32, #tpu.memory_space<vmem>>, vector<2x16xf32>,
    %c0_27 = arith.constant 0 : index
    %c0_28 = arith.constant 0 : index
    %77 = vector.load %arg9[%c0_27, %c0_28] : memref<2x16xf32, #tpu.memory_space<vmem>>, vector<2x16xf32>
    tpu.vector_store %arg9[%c0_27, %c0_28], %73 {strides = array<i32>} : memref<2x16xf32, #tpu.memory_space<vmem>>, vector<2x16xf32>,
    %cst_29 = arith.constant 0.000000e+00 : f32
    %78 = vector.broadcast %cst_29 : f32 to vector<2x16xf32>
    %cst_30 = arith.constant 0.000000e+00 : f32
    %79 = vector.broadcast %cst_30 : f32 to vector<2x16xf32>
    %80 = vector.extract_strided_slice %13 {offsets = [1, 0, 0], sizes = [1, 2, 64], strides = [1, 1, 1]} : vector<2x2x64xf32> to vector<1x2x64xf32>
    %81 = vector.shape_cast %80 : vector<1x2x64xf32> to vector<2x64xf32>
    %cst_31 = arith.constant dense<0.000000e+00> : vector<2x64xf32>
    %82 = tpu.matmul %78, %15, %cst_31 {dimension_numbers = #tpu.dot_dimension_numbers<[1], [1], [0], [0], [0, 0, 1, 0], [], []>} : vector<2x16xf32>, vector<64x16xf32>, vector<2x64xf32> -> vector<2x64xf32>
    %83 = arith.addf %81, %82 : vector<2x64xf32>
    %84 = vector.extract_strided_slice %83 {offsets = [0, 0], sizes = [2, 16], strides = [1, 1]} : vector<2x64xf32> to vector<2x16xf32>
    %85 = arith.negf %84 : vector<2x16xf32>
    %86 = math.exp %85 : vector<2x16xf32>
    %cst_32 = arith.constant 1.000000e+00 : f32
    %87 = vector.broadcast %cst_32 : f32 to vector<2x16xf32>
    %88 = arith.addf %87, %86 : vector<2x16xf32>
    %89 = arith.divf %87, %88 : vector<2x16xf32>
    %90 = vector.extract_strided_slice %83 {offsets = [0, 16], sizes = [2, 16], strides = [1, 1]} : vector<2x64xf32> to vector<2x16xf32>
    %91 = arith.negf %90 : vector<2x16xf32>
    %92 = math.exp %91 : vector<2x16xf32>
    %cst_33 = arith.constant 1.000000e+00 : f32
    %93 = vector.broadcast %cst_33 : f32 to vector<2x16xf32>
    %94 = arith.addf %93, %92 : vector<2x16xf32>
    %95 = arith.divf %93, %94 : vector<2x16xf32>
    %96 = vector.extract_strided_slice %83 {offsets = [0, 32], sizes = [2, 16], strides = [1, 1]} : vector<2x64xf32> to vector<2x16xf32>
    %97 = math.tanh %96 : vector<2x16xf32>
    %98 = vector.extract_strided_slice %83 {offsets = [0, 48], sizes = [2, 16], strides = [1, 1]} : vector<2x64xf32> to vector<2x16xf32>
    %99 = arith.negf %98 : vector<2x16xf32>
    %100 = math.exp %99 : vector<2x16xf32>
    %cst_34 = arith.constant 1.000000e+00 : f32
    %101 = vector.broadcast %cst_34 : f32 to vector<2x16xf32>
    %102 = arith.addf %101, %100 : vector<2x16xf32>
    %103 = arith.divf %101, %102 : vector<2x16xf32>
    %104 = arith.mulf %95, %79 : vector<2x16xf32>
    %105 = arith.mulf %89, %97 : vector<2x16xf32>
    %106 = arith.addf %104, %105 : vector<2x16xf32>
    %107 = math.tanh %106 : vector<2x16xf32>
    %108 = arith.mulf %103, %107 : vector<2x16xf32>
    %109 = vector.extract_strided_slice %13 {offsets = [0, 0, 0], sizes = [1, 2, 64], strides = [1, 1, 1]} : vector<2x2x64xf32> to vector<1x2x64xf32>
    %110 = vector.shape_cast %109 : vector<1x2x64xf32> to vector<2x64xf32>
    %cst_35 = arith.constant dense<0.000000e+00> : vector<2x64xf32>
    %111 = tpu.matmul %108, %15, %cst_35 {dimension_numbers = #tpu.dot_dimension_numbers<[1], [1], [0], [0], [0, 0, 1, 0], [], []>} : vector<2x16xf32>, vector<64x16xf32>, vector<2x64xf32> -> vector<2x64xf32>
    %112 = arith.addf %110, %111 : vector<2x64xf32>
    %113 = vector.extract_strided_slice %112 {offsets = [0, 0], sizes = [2, 16], strides = [1, 1]} : vector<2x64xf32> to vector<2x16xf32>
    %114 = arith.negf %113 : vector<2x16xf32>
    %115 = math.exp %114 : vector<2x16xf32>
    %cst_36 = arith.constant 1.000000e+00 : f32
    %116 = vector.broadcast %cst_36 : f32 to vector<2x16xf32>
    %117 = arith.addf %116, %115 : vector<2x16xf32>
    %118 = arith.divf %116, %117 : vector<2x16xf32>
    %119 = vector.extract_strided_slice %112 {offsets = [0, 16], sizes = [2, 16], strides = [1, 1]} : vector<2x64xf32> to vector<2x16xf32>
    %120 = arith.negf %119 : vector<2x16xf32>
    %121 = math.exp %120 : vector<2x16xf32>
    %cst_37 = arith.constant 1.000000e+00 : f32
    %122 = vector.broadcast %cst_37 : f32 to vector<2x16xf32>
    %123 = arith.addf %122, %121 : vector<2x16xf32>
    %124 = arith.divf %122, %123 : vector<2x16xf32>
    %125 = vector.extract_strided_slice %112 {offsets = [0, 32], sizes = [2, 16], strides = [1, 1]} : vector<2x64xf32> to vector<2x16xf32>
    %126 = math.tanh %125 : vector<2x16xf32>
    %127 = vector.extract_strided_slice %112 {offsets = [0, 48], sizes = [2, 16], strides = [1, 1]} : vector<2x64xf32> to vector<2x16xf32>
    %128 = arith.negf %127 : vector<2x16xf32>
    %129 = math.exp %128 : vector<2x16xf32>
    %cst_38 = arith.constant 1.000000e+00 : f32
    %130 = vector.broadcast %cst_38 : f32 to vector<2x16xf32>
    %131 = arith.addf %130, %129 : vector<2x16xf32>
    %132 = arith.divf %130, %131 : vector<2x16xf32>
    %133 = arith.mulf %124, %106 : vector<2x16xf32>
    %134 = arith.mulf %118, %126 : vector<2x16xf32>
    %135 = arith.addf %133, %134 : vector<2x16xf32>
    %136 = math.tanh %135 : vector<2x16xf32>
    %137 = arith.mulf %132, %136 : vector<2x16xf32>
    %c0_39 = arith.constant 0 : index
    %c0_40 = arith.constant 0 : index
    %138 = vector.load %arg8[%c0_39, %c0_40] : memref<2x16xf32, #tpu.memory_space<vmem>>, vector<2x16xf32>
    tpu.vector_store %arg8[%c0_39, %c0_40], %137 {strides = array<i32>} : memref<2x16xf32, #tpu.memory_space<vmem>>, vector<2x16xf32>,
    %c0_41 = arith.constant 0 : index
    %c0_42 = arith.constant 0 : index
    %139 = vector.load %arg10[%c0_41, %c0_42] : memref<2x16xf32, #tpu.memory_space<vmem>>, vector<2x16xf32>
    tpu.vector_store %arg10[%c0_41, %c0_42], %135 {strides = array<i32>} : memref<2x16xf32, #tpu.memory_space<vmem>>, vector<2x16xf32>,
    return
  }
}

module attributes {stable_mosaic.version = 11 : i64} {
  func.func @decoder_seq_kernel(%arg0: i32, %arg1: memref<1x2x16x32xf32, #tpu.memory_space<vmem>>, %arg2: memref<1x2x8x16xf32, #tpu.memory_space<vmem>>, %arg3: memref<1x2x8x1xf32, #tpu.memory_space<vmem>>, %arg4: memref<1x2x32xf32, #tpu.memory_space<vmem>>, %arg5: memref<1x2x32xf32, #tpu.memory_space<vmem>>, %arg6: memref<1x16x32xf32, #tpu.memory_space<vmem>>, %arg7: memref<1x16x32xf32, #tpu.memory_space<vmem>>, %arg8: memref<1x1x16xf32, #tpu.memory_space<vmem>>, %arg9: memref<1x1x16xf32, #tpu.memory_space<vmem>>, %arg10: memref<1x32x32xf32, #tpu.memory_space<vmem>>, %arg11: memref<1x1x32xf32, #tpu.memory_space<vmem>>, %arg12: memref<1x128x16xf32, #tpu.memory_space<vmem>>, %arg13: memref<1x128x32xf32, #tpu.memory_space<vmem>>, %arg14: memref<1x128x32xf32, #tpu.memory_space<vmem>>, %arg15: memref<1x1x128xf32, #tpu.memory_space<vmem>>, %arg16: memref<128x32xf32, #tpu.memory_space<vmem>>, %arg17: memref<1x128xf32, #tpu.memory_space<vmem>>, %arg18: memref<1x2x8x128xf32, #tpu.memory_space<vmem>>, %arg19: memref<1x2x8x16xf32, #tpu.memory_space<vmem>>, %arg20: memref<2x8x32xf32, #tpu.memory_space<vmem>>) attributes {dimension_semantics = [#tpu.dimension_semantics<parallel>], iteration_bounds = array<i64: 2>, scalar_prefetch = 0 : i64, scratch_operands = 1 : i64, tpu.core_type = #tpu.core_type<tc>, window_params = [{transform_indices = @transform_0, window_bounds = array<i64: 1, 2, 16, 32>}, {transform_indices = @transform_1, window_bounds = array<i64: 1, 2, 8, 16>}, {transform_indices = @transform_2, window_bounds = array<i64: 1, 2, 8, 1>}, {transform_indices = @transform_3, window_bounds = array<i64: 1, 2, 32>}, {transform_indices = @transform_4, window_bounds = array<i64: 1, 2, 32>}, {transform_indices = @transform_5, window_bounds = array<i64: 1, 16, 32>}, {transform_indices = @transform_6, window_bounds = array<i64: 1, 16, 32>}, {transform_indices = @transform_7, window_bounds = array<i64: 1, 1, 16>}, {transform_indices = @transform_8, window_bounds = array<i64: 1, 1, 16>}, {transform_indices = @transform_9, window_bounds = array<i64: 1, 32, 32>}, {transform_indices = @transform_10, window_bounds = array<i64: 1, 1, 32>}, {transform_indices = @transform_11, window_bounds = array<i64: 1, 128, 16>}, {transform_indices = @transform_12, window_bounds = array<i64: 1, 128, 32>}, {transform_indices = @transform_13, window_bounds = array<i64: 1, 128, 32>}, {transform_indices = @transform_14, window_bounds = array<i64: 1, 1, 128>}, {pipeline_mode = #tpu.pipeline_mode<synchronous>, transform_indices = @transform_15, window_bounds = array<i64: 128, 32>}, {pipeline_mode = #tpu.pipeline_mode<synchronous>, transform_indices = @transform_16, window_bounds = array<i64: 1, 128>}, {transform_indices = @transform_17, window_bounds = array<i64: 1, 2, 8, 128>}, {transform_indices = @transform_18, window_bounds = array<i64: 1, 2, 8, 16>}]} {
    %c0 = arith.constant 0 : index
    %c0_0 = arith.constant 0 : index
    %c0_1 = arith.constant 0 : index
    %c0_2 = arith.constant 0 : index
    %0 = vector.load %arg1[%c0, %c0_0, %c0_1, %c0_2] : memref<1x2x16x32xf32, #tpu.memory_space<vmem>>, vector<1x2x16x32xf32>
    %1 = vector.shape_cast %0 : vector<1x2x16x32xf32> to vector<2x16x32xf32>
    %2 = vector.shape_cast %1 : vector<2x16x32xf32> to vector<32x32xf32>
    %c0_3 = arith.constant 0 : index
    %c0_4 = arith.constant 0 : index
    %c0_5 = arith.constant 0 : index
    %3 = vector.load %arg6[%c0_3, %c0_4, %c0_5] : memref<1x16x32xf32, #tpu.memory_space<vmem>>, vector<1x16x32xf32>
    %4 = vector.shape_cast %3 : vector<1x16x32xf32> to vector<16x32xf32>
    %cst = arith.constant dense<0.000000e+00> : vector<32x16xf32>
    %5 = tpu.matmul %2, %4, %cst {dimension_numbers = #tpu.dot_dimension_numbers<[1], [1], [0], [0], [0, 0, 1, 0], [], []>} : vector<32x32xf32>, vector<16x32xf32>, vector<32x16xf32> -> vector<32x16xf32>
    %c0_6 = arith.constant 0 : index
    %c0_7 = arith.constant 0 : index
    %c0_8 = arith.constant 0 : index
    %6 = vector.load %arg8[%c0_6, %c0_7, %c0_8] : memref<1x1x16xf32, #tpu.memory_space<vmem>>, vector<1x1x16xf32>
    %7 = vector.shape_cast %6 : vector<1x1x16xf32> to vector<1x16xf32>
    %8 = vector.broadcast %7 : vector<1x16xf32> to vector<32x16xf32>
    %9 = arith.addf %5, %8 : vector<32x16xf32>
    %10 = vector.shape_cast %9 : vector<32x16xf32> to vector<2x16x16xf32>
    %c0_9 = arith.constant 0 : index
    %c0_10 = arith.constant 0 : index
    %c0_11 = arith.constant 0 : index
    %c0_12 = arith.constant 0 : index
    %11 = vector.load %arg2[%c0_9, %c0_10, %c0_11, %c0_12] : memref<1x2x8x16xf32, #tpu.memory_space<vmem>>, vector<1x2x8x16xf32>
    %12 = vector.shape_cast %11 : vector<1x2x8x16xf32> to vector<2x8x16xf32>
    %13 = vector.shape_cast %12 : vector<2x8x16xf32> to vector<16x16xf32>
    %c0_13 = arith.constant 0 : index
    %c0_14 = arith.constant 0 : index
    %c0_15 = arith.constant 0 : index
    %14 = vector.load %arg12[%c0_13, %c0_14, %c0_15] : memref<1x128x16xf32, #tpu.memory_space<vmem>>, vector<1x128x16xf32>
    %15 = vector.shape_cast %14 : vector<1x128x16xf32> to vector<128x16xf32>
    %cst_16 = arith.constant dense<0.000000e+00> : vector<16x128xf32>
    %16 = tpu.matmul %13, %15, %cst_16 {dimension_numbers = #tpu.dot_dimension_numbers<[1], [1], [0], [0], [0, 0, 1, 0], [], []>} : vector<16x16xf32>, vector<128x16xf32>, vector<16x128xf32> -> vector<16x128xf32>
    %c0_17 = arith.constant 0 : index
    %c0_18 = arith.constant 0 : index
    %c0_19 = arith.constant 0 : index
    %17 = vector.load %arg15[%c0_17, %c0_18, %c0_19] : memref<1x1x128xf32, #tpu.memory_space<vmem>>, vector<1x1x128xf32>
    %18 = vector.shape_cast %17 : vector<1x1x128xf32> to vector<1x128xf32>
    %19 = vector.broadcast %18 : vector<1x128xf32> to vector<16x128xf32>
    %20 = arith.addf %16, %19 : vector<16x128xf32>
    %21 = vector.shape_cast %20 : vector<16x128xf32> to vector<2x8x128xf32>
    %c0_20 = arith.constant 0 : index
    %c0_21 = arith.constant 0 : index
    %c0_22 = arith.constant 0 : index
    %22 = vector.load %arg7[%c0_20, %c0_21, %c0_22] : memref<1x16x32xf32, #tpu.memory_space<vmem>>, vector<1x16x32xf32>
    %23 = vector.shape_cast %22 : vector<1x16x32xf32> to vector<16x32xf32>
    %c0_23 = arith.constant 0 : index
    %c0_24 = arith.constant 0 : index
    %c0_25 = arith.constant 0 : index
    %24 = vector.load %arg9[%c0_23, %c0_24, %c0_25] : memref<1x1x16xf32, #tpu.memory_space<vmem>>, vector<1x1x16xf32>
    %25 = vector.shape_cast %24 : vector<1x1x16xf32> to vector<1x16xf32>
    %c0_26 = arith.constant 0 : index
    %c0_27 = arith.constant 0 : index
    %c0_28 = arith.constant 0 : index
    %26 = vector.load %arg10[%c0_26, %c0_27, %c0_28] : memref<1x32x32xf32, #tpu.memory_space<vmem>>, vector<1x32x32xf32>
    %27 = vector.shape_cast %26 : vector<1x32x32xf32> to vector<32x32xf32>
    %c0_29 = arith.constant 0 : index
    %c0_30 = arith.constant 0 : index
    %c0_31 = arith.constant 0 : index
    %28 = vector.load %arg11[%c0_29, %c0_30, %c0_31] : memref<1x1x32xf32, #tpu.memory_space<vmem>>, vector<1x1x32xf32>
    %29 = vector.shape_cast %28 : vector<1x1x32xf32> to vector<1x32xf32>
    %c0_32 = arith.constant 0 : index
    %c0_33 = arith.constant 0 : index
    %c0_34 = arith.constant 0 : index
    %30 = vector.load %arg13[%c0_32, %c0_33, %c0_34] : memref<1x128x32xf32, #tpu.memory_space<vmem>>, vector<1x128x32xf32>
    %31 = vector.shape_cast %30 : vector<1x128x32xf32> to vector<128x32xf32>
    %c0_35 = arith.constant 0 : index
    %c0_36 = arith.constant 0 : index
    %c0_37 = arith.constant 0 : index
    %32 = vector.load %arg14[%c0_35, %c0_36, %c0_37] : memref<1x128x32xf32, #tpu.memory_space<vmem>>, vector<1x128x32xf32>
    %33 = vector.shape_cast %32 : vector<1x128x32xf32> to vector<128x32xf32>
    %c0_38 = arith.constant 0 : index
    %c0_39 = arith.constant 0 : index
    %c0_40 = arith.constant 0 : index
    %34 = vector.load %arg4[%c0_38, %c0_39, %c0_40] : memref<1x2x32xf32, #tpu.memory_space<vmem>>, vector<1x2x32xf32>
    %35 = vector.shape_cast %34 : vector<1x2x32xf32> to vector<2x32xf32>
    %c0_41 = arith.constant 0 : index
    %c0_42 = arith.constant 0 : index
    %c0_43 = arith.constant 0 : index
    %36 = vector.load %arg5[%c0_41, %c0_42, %c0_43] : memref<1x2x32xf32, #tpu.memory_space<vmem>>, vector<1x2x32xf32>
    %37 = vector.shape_cast %36 : vector<1x2x32xf32> to vector<2x32xf32>
    %cst_44 = arith.constant dense<0.000000e+00> : vector<2x16xf32>
    %38 = tpu.matmul %35, %23, %cst_44 {dimension_numbers = #tpu.dot_dimension_numbers<[1], [1], [0], [0], [0, 0, 1, 0], [], []>} : vector<2x32xf32>, vector<16x32xf32>, vector<2x16xf32> -> vector<2x16xf32>
    %39 = vector.shape_cast %38 : vector<2x16xf32> to vector<2x1x16xf32>
    %40 = vector.broadcast %39 : vector<2x1x16xf32> to vector<2x16x16xf32>
    %41 = arith.addf %10, %40 : vector<2x16x16xf32>
    %cst_45 = arith.constant 0.000000e+00 : f32
    %42 = vector.broadcast %cst_45 : f32 to vector<2x16x16xf32>
    %43 = arith.maximumf %41, %42 : vector<2x16x16xf32>
    %44 = vector.shape_cast %25 : vector<1x16xf32> to vector<1x1x16xf32>
    %45 = vector.broadcast %44 : vector<1x1x16xf32> to vector<2x16x16xf32>
    %46 = arith.mulf %43, %45 : vector<2x16x16xf32>
    %cst_46 = arith.constant dense<0.000000e+00> : vector<2x16xf32>
    %47 = vector.multi_reduction <add>, %46, %cst_46 [2] : vector<2x16x16xf32> to vector<2x16xf32>
    %cst_47 = arith.constant dense<0xFF800000> : vector<2xf32>
    %48 = vector.multi_reduction <maximumf>, %47, %cst_47 [1] : vector<2x16xf32> to vector<2xf32>
    %49 = vector.shape_cast %48 : vector<2xf32> to vector<2x1xf32>
    %50 = vector.broadcast %49 : vector<2x1xf32> to vector<2x16xf32>
    %51 = arith.subf %47, %50 : vector<2x16xf32>
    %52 = math.exp %51 : vector<2x16xf32>
    %cst_48 = arith.constant dense<0.000000e+00> : vector<2xf32>
    %53 = vector.multi_reduction <add>, %52, %cst_48 [1] : vector<2x16xf32> to vector<2xf32>
    %54 = vector.shape_cast %53 : vector<2xf32> to vector<2x1xf32>
    %55 = tpu.reciprocal %54 {approx = true} : vector<2x1xf32> -> vector<2x1xf32>
    %56 = vector.broadcast %55 : vector<2x1xf32> to vector<2x16xf32>
    %57 = arith.mulf %52, %56 : vector<2x16xf32>
    %58 = vector.shape_cast %57 : vector<2x16xf32> to vector<2x16x1xf32>
    %59 = vector.broadcast %58 : vector<2x16x1xf32> to vector<2x16x32xf32>
    %60 = arith.mulf %1, %59 : vector<2x16x32xf32>
    %cst_49 = arith.constant dense<0.000000e+00> : vector<2x32xf32>
    %61 = vector.multi_reduction <add>, %60, %cst_49 [1] : vector<2x16x32xf32> to vector<2x32xf32>
    %cst_50 = arith.constant dense<0.000000e+00> : vector<2x32xf32>
    %62 = tpu.matmul %35, %27, %cst_50 {dimension_numbers = #tpu.dot_dimension_numbers<[1], [1], [0], [0], [0, 0, 1, 0], [], []>} : vector<2x32xf32>, vector<32x32xf32>, vector<2x32xf32> -> vector<2x32xf32>
    %63 = vector.broadcast %29 : vector<1x32xf32> to vector<2x32xf32>
    %64 = arith.addf %62, %63 : vector<2x32xf32>
    %65 = arith.negf %64 : vector<2x32xf32>
    %66 = math.exp %65 : vector<2x32xf32>
    %cst_51 = arith.constant 1.000000e+00 : f32
    %67 = vector.broadcast %cst_51 : f32 to vector<2x32xf32>
    %68 = arith.addf %67, %66 : vector<2x32xf32>
    %69 = arith.divf %67, %68 : vector<2x32xf32>
    %70 = arith.mulf %69, %61 : vector<2x32xf32>
    %71 = vector.extract_strided_slice %21 {offsets = [0, 0, 0], sizes = [2, 1, 128], strides = [1, 1, 1]} : vector<2x8x128xf32> to vector<2x1x128xf32>
    %72 = vector.shape_cast %71 : vector<2x1x128xf32> to vector<2x128xf32>
    %cst_52 = arith.constant dense<0.000000e+00> : vector<2x128xf32>
    %73 = tpu.matmul %70, %31, %cst_52 {dimension_numbers = #tpu.dot_dimension_numbers<[1], [1], [0], [0], [0, 0, 1, 0], [], []>} : vector<2x32xf32>, vector<128x32xf32>, vector<2x128xf32> -> vector<2x128xf32>
    %74 = arith.addf %72, %73 : vector<2x128xf32>
    %cst_53 = arith.constant dense<0.000000e+00> : vector<2x128xf32>
    %75 = tpu.matmul %35, %33, %cst_53 {dimension_numbers = #tpu.dot_dimension_numbers<[1], [1], [0], [0], [0, 0, 1, 0], [], []>} : vector<2x32xf32>, vector<128x32xf32>, vector<2x128xf32> -> vector<2x128xf32>
    %76 = arith.addf %74, %75 : vector<2x128xf32>
    %77 = vector.extract_strided_slice %76 {offsets = [0, 0], sizes = [2, 32], strides = [1, 1]} : vector<2x128xf32> to vector<2x32xf32>
    %78 = arith.negf %77 : vector<2x32xf32>
    %79 = math.exp %78 : vector<2x32xf32>
    %cst_54 = arith.constant 1.000000e+00 : f32
    %80 = vector.broadcast %cst_54 : f32 to vector<2x32xf32>
    %81 = arith.addf %80, %79 : vector<2x32xf32>
    %82 = arith.divf %80, %81 : vector<2x32xf32>
    %83 = vector.extract_strided_slice %76 {offsets = [0, 32], sizes = [2, 32], strides = [1, 1]} : vector<2x128xf32> to vector<2x32xf32>
    %84 = arith.negf %83 : vector<2x32xf32>
    %85 = math.exp %84 : vector<2x32xf32>
    %cst_55 = arith.constant 1.000000e+00 : f32
    %86 = vector.broadcast %cst_55 : f32 to vector<2x32xf32>
    %87 = arith.addf %86, %85 : vector<2x32xf32>
    %88 = arith.divf %86, %87 : vector<2x32xf32>
    %89 = vector.extract_strided_slice %76 {offsets = [0, 64], sizes = [2, 32], strides = [1, 1]} : vector<2x128xf32> to vector<2x32xf32>
    %90 = math.tanh %89 : vector<2x32xf32>
    %91 = vector.extract_strided_slice %76 {offsets = [0, 96], sizes = [2, 32], strides = [1, 1]} : vector<2x128xf32> to vector<2x32xf32>
    %92 = arith.negf %91 : vector<2x32xf32>
    %93 = math.exp %92 : vector<2x32xf32>
    %cst_56 = arith.constant 1.000000e+00 : f32
    %94 = vector.broadcast %cst_56 : f32 to vector<2x32xf32>
    %95 = arith.addf %94, %93 : vector<2x32xf32>
    %96 = arith.divf %94, %95 : vector<2x32xf32>
    %97 = arith.mulf %88, %37 : vector<2x32xf32>
    %98 = arith.mulf %82, %90 : vector<2x32xf32>
    %99 = arith.addf %97, %98 : vector<2x32xf32>
    %100 = math.tanh %99 : vector<2x32xf32>
    %101 = arith.mulf %96, %100 : vector<2x32xf32>
    %c0_57 = arith.constant 0 : index
    %c0_58 = arith.constant 0 : index
    %c0_59 = arith.constant 0 : index
    %c0_60 = arith.constant 0 : index
    %102 = vector.load %arg3[%c0_57, %c0_58, %c0_59, %c0_60] : memref<1x2x8x1xf32, #tpu.memory_space<vmem>>, vector<1x2x1x1xf32>
    %103 = vector.shape_cast %102 : vector<1x2x1x1xf32> to vector<2x1xf32>
    %104 = vector.broadcast %103 : vector<2x1xf32> to vector<2x32xf32>
    %105 = arith.mulf %101, %104 : vector<2x32xf32>
    %c0_61 = arith.constant 0 : index
    %c0_62 = arith.constant 0 : index
    %c0_63 = arith.constant 0 : index
    %106 = vector.load %arg20[%c0_61, %c0_62, %c0_63] : memref<2x8x32xf32, #tpu.memory_space<vmem>>, vector<2x1x32xf32>
    %107 = vector.shape_cast %106 : vector<2x1x32xf32> to vector<2x32xf32>
    %108 = vector.shape_cast %105 : vector<2x32xf32> to vector<2x1x32xf32>
    tpu.vector_store %arg20[%c0_61, %c0_62, %c0_63], %108 {strides = array<i32>} : memref<2x8x32xf32, #tpu.memory_space<vmem>>, vector<2x1x32xf32>,
    %109 = vector.broadcast %103 : vector<2x1xf32> to vector<2x16xf32>
    %110 = arith.mulf %57, %109 : vector<2x16xf32>
    %c0_64 = arith.constant 0 : index
    %c0_65 = arith.constant 0 : index
    %c0_66 = arith.constant 0 : index
    %c0_67 = arith.constant 0 : index
    %111 = vector.load %arg19[%c0_64, %c0_65, %c0_66, %c0_67] : memref<1x2x8x16xf32, #tpu.memory_space<vmem>>, vector<1x2x1x16xf32>
    %112 = vector.shape_cast %111 : vector<1x2x1x16xf32> to vector<2x16xf32>
    %113 = vector.shape_cast %110 : vector<2x16xf32> to vector<1x2x1x16xf32>
    tpu.vector_store %arg19[%c0_64, %c0_65, %c0_66, %c0_67], %113 {strides = array<i32>} : memref<1x2x8x16xf32, #tpu.memory_space<vmem>>, vector<1x2x1x16xf32>,
    %cst_68 = arith.constant dense<0.000000e+00> : vector<2x16xf32>
    %114 = tpu.matmul %101, %23, %cst_68 {dimension_numbers = #tpu.dot_dimension_numbers<[1], [1], [0], [0], [0, 0, 1, 0], [], []>} : vector<2x32xf32>, vector<16x32xf32>, vector<2x16xf32> -> vector<2x16xf32>
    %115 = vector.shape_cast %114 : vector<2x16xf32> to vector<2x1x16xf32>
    %116 = vector.broadcast %115 : vector<2x1x16xf32> to vector<2x16x16xf32>
    %117 = arith.addf %10, %116 : vector<2x16x16xf32>
    %cst_69 = arith.constant 0.000000e+00 : f32
    %118 = vector.broadcast %cst_69 : f32 to vector<2x16x16xf32>
    %119 = arith.maximumf %117, %118 : vector<2x16x16xf32>
    %120 = vector.shape_cast %25 : vector<1x16xf32> to vector<1x1x16xf32>
    %121 = vector.broadcast %120 : vector<1x1x16xf32> to vector<2x16x16xf32>
    %122 = arith.mulf %119, %121 : vector<2x16x16xf32>
    %cst_70 = arith.constant dense<0.000000e+00> : vector<2x16xf32>
    %123 = vector.multi_reduction <add>, %122, %cst_70 [2] : vector<2x16x16xf32> to vector<2x16xf32>
    %cst_71 = arith.constant dense<0xFF800000> : vector<2xf32>
    %124 = vector.multi_reduction <maximumf>, %123, %cst_71 [1] : vector<2x16xf32> to vector<2xf32>
    %125 = vector.shape_cast %124 : vector<2xf32> to vector<2x1xf32>
    %126 = vector.broadcast %125 : vector<2x1xf32> to vector<2x16xf32>
    %127 = arith.subf %123, %126 : vector<2x16xf32>
    %128 = math.exp %127 : vector<2x16xf32>
    %cst_72 = arith.constant dense<0.000000e+00> : vector<2xf32>
    %129 = vector.multi_reduction <add>, %128, %cst_72 [1] : vector<2x16xf32> to vector<2xf32>
    %130 = vector.shape_cast %129 : vector<2xf32> to vector<2x1xf32>
    %131 = tpu.reciprocal %130 {approx = true} : vector<2x1xf32> -> vector<2x1xf32>
    %132 = vector.broadcast %131 : vector<2x1xf32> to vector<2x16xf32>
    %133 = arith.mulf %128, %132 : vector<2x16xf32>
    %134 = vector.shape_cast %133 : vector<2x16xf32> to vector<2x16x1xf32>
    %135 = vector.broadcast %134 : vector<2x16x1xf32> to vector<2x16x32xf32>
    %136 = arith.mulf %1, %135 : vector<2x16x32xf32>
    %cst_73 = arith.constant dense<0.000000e+00> : vector<2x32xf32>
    %137 = vector.multi_reduction <add>, %136, %cst_73 [1] : vector<2x16x32xf32> to vector<2x32xf32>
    %cst_74 = arith.constant dense<0.000000e+00> : vector<2x32xf32>
    %138 = tpu.matmul %101, %27, %cst_74 {dimension_numbers = #tpu.dot_dimension_numbers<[1], [1], [0], [0], [0, 0, 1, 0], [], []>} : vector<2x32xf32>, vector<32x32xf32>, vector<2x32xf32> -> vector<2x32xf32>
    %139 = vector.broadcast %29 : vector<1x32xf32> to vector<2x32xf32>
    %140 = arith.addf %138, %139 : vector<2x32xf32>
    %141 = arith.negf %140 : vector<2x32xf32>
    %142 = math.exp %141 : vector<2x32xf32>
    %cst_75 = arith.constant 1.000000e+00 : f32
    %143 = vector.broadcast %cst_75 : f32 to vector<2x32xf32>
    %144 = arith.addf %143, %142 : vector<2x32xf32>
    %145 = arith.divf %143, %144 : vector<2x32xf32>
    %146 = arith.mulf %145, %137 : vector<2x32xf32>
    %147 = vector.extract_strided_slice %21 {offsets = [0, 1, 0], sizes = [2, 1, 128], strides = [1, 1, 1]} : vector<2x8x128xf32> to vector<2x1x128xf32>
    %148 = vector.shape_cast %147 : vector<2x1x128xf32> to vector<2x128xf32>
    %cst_76 = arith.constant dense<0.000000e+00> : vector<2x128xf32>
    %149 = tpu.matmul %146, %31, %cst_76 {dimension_numbers = #tpu.dot_dimension_numbers<[1], [1], [0], [0], [0, 0, 1, 0], [], []>} : vector<2x32xf32>, vector<128x32xf32>, vector<2x128xf32> -> vector<2x128xf32>
    %150 = arith.addf %148, %149 : vector<2x128xf32>
    %cst_77 = arith.constant dense<0.000000e+00> : vector<2x128xf32>
    %151 = tpu.matmul %101, %33, %cst_77 {dimension_numbers = #tpu.dot_dimension_numbers<[1], [1], [0], [0], [0, 0, 1, 0], [], []>} : vector<2x32xf32>, vector<128x32xf32>, vector<2x128xf32> -> vector<2x128xf32>
    %152 = arith.addf %150, %151 : vector<2x128xf32>
    %153 = vector.extract_strided_slice %152 {offsets = [0, 0], sizes = [2, 32], strides = [1, 1]} : vector<2x128xf32> to vector<2x32xf32>
    %154 = arith.negf %153 : vector<2x32xf32>
    %155 = math.exp %154 : vector<2x32xf32>
    %cst_78 = arith.constant 1.000000e+00 : f32
    %156 = vector.broadcast %cst_78 : f32 to vector<2x32xf32>
    %157 = arith.addf %156, %155 : vector<2x32xf32>
    %158 = arith.divf %156, %157 : vector<2x32xf32>
    %159 = vector.extract_strided_slice %152 {offsets = [0, 32], sizes = [2, 32], strides = [1, 1]} : vector<2x128xf32> to vector<2x32xf32>
    %160 = arith.negf %159 : vector<2x32xf32>
    %161 = math.exp %160 : vector<2x32xf32>
    %cst_79 = arith.constant 1.000000e+00 : f32
    %162 = vector.broadcast %cst_79 : f32 to vector<2x32xf32>
    %163 = arith.addf %162, %161 : vector<2x32xf32>
    %164 = arith.divf %162, %163 : vector<2x32xf32>
    %165 = vector.extract_strided_slice %152 {offsets = [0, 64], sizes = [2, 32], strides = [1, 1]} : vector<2x128xf32> to vector<2x32xf32>
    %166 = math.tanh %165 : vector<2x32xf32>
    %167 = vector.extract_strided_slice %152 {offsets = [0, 96], sizes = [2, 32], strides = [1, 1]} : vector<2x128xf32> to vector<2x32xf32>
    %168 = arith.negf %167 : vector<2x32xf32>
    %169 = math.exp %168 : vector<2x32xf32>
    %cst_80 = arith.constant 1.000000e+00 : f32
    %170 = vector.broadcast %cst_80 : f32 to vector<2x32xf32>
    %171 = arith.addf %170, %169 : vector<2x32xf32>
    %172 = arith.divf %170, %171 : vector<2x32xf32>
    %173 = arith.mulf %164, %99 : vector<2x32xf32>
    %174 = arith.mulf %158, %166 : vector<2x32xf32>
    %175 = arith.addf %173, %174 : vector<2x32xf32>
    %176 = math.tanh %175 : vector<2x32xf32>
    %177 = arith.mulf %172, %176 : vector<2x32xf32>
    %c0_81 = arith.constant 0 : index
    %c0_82 = arith.constant 0 : index
    %c1 = arith.constant 1 : index
    %c0_83 = arith.constant 0 : index
    %178 = vector.load %arg3[%c0_81, %c0_82, %c1, %c0_83] : memref<1x2x8x1xf32, #tpu.memory_space<vmem>>, vector<1x2x1x1xf32>
    %179 = vector.shape_cast %178 : vector<1x2x1x1xf32> to vector<2x1xf32>
    %180 = vector.broadcast %179 : vector<2x1xf32> to vector<2x32xf32>
    %181 = arith.mulf %177, %180 : vector<2x32xf32>
    %c0_84 = arith.constant 0 : index
    %c1_85 = arith.constant 1 : index
    %c0_86 = arith.constant 0 : index
    %182 = vector.load %arg20[%c0_84, %c1_85, %c0_86] : memref<2x8x32xf32, #tpu.memory_space<vmem>>, vector<2x1x32xf32>
    %183 = vector.shape_cast %182 : vector<2x1x32xf32> to vector<2x32xf32>
    %184 = vector.shape_cast %181 : vector<2x32xf32> to vector<2x1x32xf32>
    tpu.vector_store %arg20[%c0_84, %c1_85, %c0_86], %184 {strides = array<i32>} : memref<2x8x32xf32, #tpu.memory_space<vmem>>, vector<2x1x32xf32>,
    %185 = vector.broadcast %179 : vector<2x1xf32> to vector<2x16xf32>
    %186 = arith.mulf %133, %185 : vector<2x16xf32>
    %c0_87 = arith.constant 0 : index
    %c0_88 = arith.constant 0 : index
    %c1_89 = arith.constant 1 : index
    %c0_90 = arith.constant 0 : index
    %187 = vector.load %arg19[%c0_87, %c0_88, %c1_89, %c0_90] : memref<1x2x8x16xf32, #tpu.memory_space<vmem>>, vector<1x2x1x16xf32>
    %188 = vector.shape_cast %187 : vector<1x2x1x16xf32> to vector<2x16xf32>
    %189 = vector.shape_cast %186 : vector<2x16xf32> to vector<1x2x1x16xf32>
    tpu.vector_store %arg19[%c0_87, %c0_88, %c1_89, %c0_90], %189 {strides = array<i32>} : memref<1x2x8x16xf32, #tpu.memory_space<vmem>>, vector<1x2x1x16xf32>,
    %cst_91 = arith.constant dense<0.000000e+00> : vector<2x16xf32>
    %190 = tpu.matmul %177, %23, %cst_91 {dimension_numbers = #tpu.dot_dimension_numbers<[1], [1], [0], [0], [0, 0, 1, 0], [], []>} : vector<2x32xf32>, vector<16x32xf32>, vector<2x16xf32> -> vector<2x16xf32>
    %191 = vector.shape_cast %190 : vector<2x16xf32> to vector<2x1x16xf32>
    %192 = vector.broadcast %191 : vector<2x1x16xf32> to vector<2x16x16xf32>
    %193 = arith.addf %10, %192 : vector<2x16x16xf32>
    %cst_92 = arith.constant 0.000000e+00 : f32
    %194 = vector.broadcast %cst_92 : f32 to vector<2x16x16xf32>
    %195 = arith.maximumf %193, %194 : vector<2x16x16xf32>
    %196 = vector.shape_cast %25 : vector<1x16xf32> to vector<1x1x16xf32>
    %197 = vector.broadcast %196 : vector<1x1x16xf32> to vector<2x16x16xf32>
    %198 = arith.mulf %195, %197 : vector<2x16x16xf32>
    %cst_93 = arith.constant dense<0.000000e+00> : vector<2x16xf32>
    %199 = vector.multi_reduction <add>, %198, %cst_93 [2] : vector<2x16x16xf32> to vector<2x16xf32>
    %cst_94 = arith.constant dense<0xFF800000> : vector<2xf32>
    %200 = vector.multi_reduction <maximumf>, %199, %cst_94 [1] : vector<2x16xf32> to vector<2xf32>
    %201 = vector.shape_cast %200 : vector<2xf32> to vector<2x1xf32>
    %202 = vector.broadcast %201 : vector<2x1xf32> to vector<2x16xf32>
    %203 = arith.subf %199, %202 : vector<2x16xf32>
    %204 = math.exp %203 : vector<2x16xf32>
    %cst_95 = arith.constant dense<0.000000e+00> : vector<2xf32>
    %205 = vector.multi_reduction <add>, %204, %cst_95 [1] : vector<2x16xf32> to vector<2xf32>
    %206 = vector.shape_cast %205 : vector<2xf32> to vector<2x1xf32>
    %207 = tpu.reciprocal %206 {approx = true} : vector<2x1xf32> -> vector<2x1xf32>
    %208 = vector.broadcast %207 : vector<2x1xf32> to vector<2x16xf32>
    %209 = arith.mulf %204, %208 : vector<2x16xf32>
    %210 = vector.shape_cast %209 : vector<2x16xf32> to vector<2x16x1xf32>
    %211 = vector.broadcast %210 : vector<2x16x1xf32> to vector<2x16x32xf32>
    %212 = arith.mulf %1, %211 : vector<2x16x32xf32>
    %cst_96 = arith.constant dense<0.000000e+00> : vector<2x32xf32>
    %213 = vector.multi_reduction <add>, %212, %cst_96 [1] : vector<2x16x32xf32> to vector<2x32xf32>
    %cst_97 = arith.constant dense<0.000000e+00> : vector<2x32xf32>
    %214 = tpu.matmul %177, %27, %cst_97 {dimension_numbers = #tpu.dot_dimension_numbers<[1], [1], [0], [0], [0, 0, 1, 0], [], []>} : vector<2x32xf32>, vector<32x32xf32>, vector<2x32xf32> -> vector<2x32xf32>
    %215 = vector.broadcast %29 : vector<1x32xf32> to vector<2x32xf32>
    %216 = arith.addf %214, %215 : vector<2x32xf32>
    %217 = arith.negf %216 : vector<2x32xf32>
    %218 = math.exp %217 : vector<2x32xf32>
    %cst_98 = arith.constant 1.000000e+00 : f32
    %219 = vector.broadcast %cst_98 : f32 to vector<2x32xf32>
    %220 = arith.addf %219, %218 : vector<2x32xf32>
    %221 = arith.divf %219, %220 : vector<2x32xf32>
    %222 = arith.mulf %221, %213 : vector<2x32xf32>
    %223 = vector.extract_strided_slice %21 {offsets = [0, 2, 0], sizes = [2, 1, 128], strides = [1, 1, 1]} : vector<2x8x128xf32> to vector<2x1x128xf32>
    %224 = vector.shape_cast %223 : vector<2x1x128xf32> to vector<2x128xf32>
    %cst_99 = arith.constant dense<0.000000e+00> : vector<2x128xf32>
    %225 = tpu.matmul %222, %31, %cst_99 {dimension_numbers = #tpu.dot_dimension_numbers<[1], [1], [0], [0], [0, 0, 1, 0], [], []>} : vector<2x32xf32>, vector<128x32xf32>, vector<2x128xf32> -> vector<2x128xf32>
    %226 = arith.addf %224, %225 : vector<2x128xf32>
    %cst_100 = arith.constant dense<0.000000e+00> : vector<2x128xf32>
    %227 = tpu.matmul %177, %33, %cst_100 {dimension_numbers = #tpu.dot_dimension_numbers<[1], [1], [0], [0], [0, 0, 1, 0], [], []>} : vector<2x32xf32>, vector<128x32xf32>, vector<2x128xf32> -> vector<2x128xf32>
    %228 = arith.addf %226, %227 : vector<2x128xf32>
    %229 = vector.extract_strided_slice %228 {offsets = [0, 0], sizes = [2, 32], strides = [1, 1]} : vector<2x128xf32> to vector<2x32xf32>
    %230 = arith.negf %229 : vector<2x32xf32>
    %231 = math.exp %230 : vector<2x32xf32>
    %cst_101 = arith.constant 1.000000e+00 : f32
    %232 = vector.broadcast %cst_101 : f32 to vector<2x32xf32>
    %233 = arith.addf %232, %231 : vector<2x32xf32>
    %234 = arith.divf %232, %233 : vector<2x32xf32>
    %235 = vector.extract_strided_slice %228 {offsets = [0, 32], sizes = [2, 32], strides = [1, 1]} : vector<2x128xf32> to vector<2x32xf32>
    %236 = arith.negf %235 : vector<2x32xf32>
    %237 = math.exp %236 : vector<2x32xf32>
    %cst_102 = arith.constant 1.000000e+00 : f32
    %238 = vector.broadcast %cst_102 : f32 to vector<2x32xf32>
    %239 = arith.addf %238, %237 : vector<2x32xf32>
    %240 = arith.divf %238, %239 : vector<2x32xf32>
    %241 = vector.extract_strided_slice %228 {offsets = [0, 64], sizes = [2, 32], strides = [1, 1]} : vector<2x128xf32> to vector<2x32xf32>
    %242 = math.tanh %241 : vector<2x32xf32>
    %243 = vector.extract_strided_slice %228 {offsets = [0, 96], sizes = [2, 32], strides = [1, 1]} : vector<2x128xf32> to vector<2x32xf32>
    %244 = arith.negf %243 : vector<2x32xf32>
    %245 = math.exp %244 : vector<2x32xf32>
    %cst_103 = arith.constant 1.000000e+00 : f32
    %246 = vector.broadcast %cst_103 : f32 to vector<2x32xf32>
    %247 = arith.addf %246, %245 : vector<2x32xf32>
    %248 = arith.divf %246, %247 : vector<2x32xf32>
    %249 = arith.mulf %240, %175 : vector<2x32xf32>
    %250 = arith.mulf %234, %242 : vector<2x32xf32>
    %251 = arith.addf %249, %250 : vector<2x32xf32>
    %252 = math.tanh %251 : vector<2x32xf32>
    %253 = arith.mulf %248, %252 : vector<2x32xf32>
    %c0_104 = arith.constant 0 : index
    %c0_105 = arith.constant 0 : index
    %c2 = arith.constant 2 : index
    %c0_106 = arith.constant 0 : index
    %254 = vector.load %arg3[%c0_104, %c0_105, %c2, %c0_106] : memref<1x2x8x1xf32, #tpu.memory_space<vmem>>, vector<1x2x1x1xf32>
    %255 = vector.shape_cast %254 : vector<1x2x1x1xf32> to vector<2x1xf32>
    %256 = vector.broadcast %255 : vector<2x1xf32> to vector<2x32xf32>
    %257 = arith.mulf %253, %256 : vector<2x32xf32>
    %c0_107 = arith.constant 0 : index
    %c2_108 = arith.constant 2 : index
    %c0_109 = arith.constant 0 : index
    %258 = vector.load %arg20[%c0_107, %c2_108, %c0_109] : memref<2x8x32xf32, #tpu.memory_space<vmem>>, vector<2x1x32xf32>
    %259 = vector.shape_cast %258 : vector<2x1x32xf32> to vector<2x32xf32>
    %260 = vector.shape_cast %257 : vector<2x32xf32> to vector<2x1x32xf32>
    tpu.vector_store %arg20[%c0_107, %c2_108, %c0_109], %260 {strides = array<i32>} : memref<2x8x32xf32, #tpu.memory_space<vmem>>, vector<2x1x32xf32>,
    %261 = vector.broadcast %255 : vector<2x1xf32> to vector<2x16xf32>
    %262 = arith.mulf %209, %261 : vector<2x16xf32>
    %c0_110 = arith.constant 0 : index
    %c0_111 = arith.constant 0 : index
    %c2_112 = arith.constant 2 : index
    %c0_113 = arith.constant 0 : index
    %263 = vector.load %arg19[%c0_110, %c0_111, %c2_112, %c0_113] : memref<1x2x8x16xf32, #tpu.memory_space<vmem>>, vector<1x2x1x16xf32>
    %264 = vector.shape_cast %263 : vector<1x2x1x16xf32> to vector<2x16xf32>
    %265 = vector.shape_cast %262 : vector<2x16xf32> to vector<1x2x1x16xf32>
    tpu.vector_store %arg19[%c0_110, %c0_111, %c2_112, %c0_113], %265 {strides = array<i32>} : memref<1x2x8x16xf32, #tpu.memory_space<vmem>>, vector<1x2x1x16xf32>,
    %cst_114 = arith.constant dense<0.000000e+00> : vector<2x16xf32>
    %266 = tpu.matmul %253, %23, %cst_114 {dimension_numbers = #tpu.dot_dimension_numbers<[1], [1], [0], [0], [0, 0, 1, 0], [], []>} : vector<2x32xf32>, vector<16x32xf32>, vector<2x16xf32> -> vector<2x16xf32>
    %267 = vector.shape_cast %266 : vector<2x16xf32> to vector<2x1x16xf32>
    %268 = vector.broadcast %267 : vector<2x1x16xf32> to vector<2x16x16xf32>
    %269 = arith.addf %10, %268 : vector<2x16x16xf32>
    %cst_115 = arith.constant 0.000000e+00 : f32
    %270 = vector.broadcast %cst_115 : f32 to vector<2x16x16xf32>
    %271 = arith.maximumf %269, %270 : vector<2x16x16xf32>
    %272 = vector.shape_cast %25 : vector<1x16xf32> to vector<1x1x16xf32>
    %273 = vector.broadcast %272 : vector<1x1x16xf32> to vector<2x16x16xf32>
    %274 = arith.mulf %271, %273 : vector<2x16x16xf32>
    %cst_116 = arith.constant dense<0.000000e+00> : vector<2x16xf32>
    %275 = vector.multi_reduction <add>, %274, %cst_116 [2] : vector<2x16x16xf32> to vector<2x16xf32>
    %cst_117 = arith.constant dense<0xFF800000> : vector<2xf32>
    %276 = vector.multi_reduction <maximumf>, %275, %cst_117 [1] : vector<2x16xf32> to vector<2xf32>
    %277 = vector.shape_cast %276 : vector<2xf32> to vector<2x1xf32>
    %278 = vector.broadcast %277 : vector<2x1xf32> to vector<2x16xf32>
    %279 = arith.subf %275, %278 : vector<2x16xf32>
    %280 = math.exp %279 : vector<2x16xf32>
    %cst_118 = arith.constant dense<0.000000e+00> : vector<2xf32>
    %281 = vector.multi_reduction <add>, %280, %cst_118 [1] : vector<2x16xf32> to vector<2xf32>
    %282 = vector.shape_cast %281 : vector<2xf32> to vector<2x1xf32>
    %283 = tpu.reciprocal %282 {approx = true} : vector<2x1xf32> -> vector<2x1xf32>
    %284 = vector.broadcast %283 : vector<2x1xf32> to vector<2x16xf32>
    %285 = arith.mulf %280, %284 : vector<2x16xf32>
    %286 = vector.shape_cast %285 : vector<2x16xf32> to vector<2x16x1xf32>
    %287 = vector.broadcast %286 : vector<2x16x1xf32> to vector<2x16x32xf32>
    %288 = arith.mulf %1, %287 : vector<2x16x32xf32>
    %cst_119 = arith.constant dense<0.000000e+00> : vector<2x32xf32>
    %289 = vector.multi_reduction <add>, %288, %cst_119 [1] : vector<2x16x32xf32> to vector<2x32xf32>
    %cst_120 = arith.constant dense<0.000000e+00> : vector<2x32xf32>
    %290 = tpu.matmul %253, %27, %cst_120 {dimension_numbers = #tpu.dot_dimension_numbers<[1], [1], [0], [0], [0, 0, 1, 0], [], []>} : vector<2x32xf32>, vector<32x32xf32>, vector<2x32xf32> -> vector<2x32xf32>
    %291 = vector.broadcast %29 : vector<1x32xf32> to vector<2x32xf32>
    %292 = arith.addf %290, %291 : vector<2x32xf32>
    %293 = arith.negf %292 : vector<2x32xf32>
    %294 = math.exp %293 : vector<2x32xf32>
    %cst_121 = arith.constant 1.000000e+00 : f32
    %295 = vector.broadcast %cst_121 : f32 to vector<2x32xf32>
    %296 = arith.addf %295, %294 : vector<2x32xf32>
    %297 = arith.divf %295, %296 : vector<2x32xf32>
    %298 = arith.mulf %297, %289 : vector<2x32xf32>
    %299 = vector.extract_strided_slice %21 {offsets = [0, 3, 0], sizes = [2, 1, 128], strides = [1, 1, 1]} : vector<2x8x128xf32> to vector<2x1x128xf32>
    %300 = vector.shape_cast %299 : vector<2x1x128xf32> to vector<2x128xf32>
    %cst_122 = arith.constant dense<0.000000e+00> : vector<2x128xf32>
    %301 = tpu.matmul %298, %31, %cst_122 {dimension_numbers = #tpu.dot_dimension_numbers<[1], [1], [0], [0], [0, 0, 1, 0], [], []>} : vector<2x32xf32>, vector<128x32xf32>, vector<2x128xf32> -> vector<2x128xf32>
    %302 = arith.addf %300, %301 : vector<2x128xf32>
    %cst_123 = arith.constant dense<0.000000e+00> : vector<2x128xf32>
    %303 = tpu.matmul %253, %33, %cst_123 {dimension_numbers = #tpu.dot_dimension_numbers<[1], [1], [0], [0], [0, 0, 1, 0], [], []>} : vector<2x32xf32>, vector<128x32xf32>, vector<2x128xf32> -> vector<2x128xf32>
    %304 = arith.addf %302, %303 : vector<2x128xf32>
    %305 = vector.extract_strided_slice %304 {offsets = [0, 0], sizes = [2, 32], strides = [1, 1]} : vector<2x128xf32> to vector<2x32xf32>
    %306 = arith.negf %305 : vector<2x32xf32>
    %307 = math.exp %306 : vector<2x32xf32>
    %cst_124 = arith.constant 1.000000e+00 : f32
    %308 = vector.broadcast %cst_124 : f32 to vector<2x32xf32>
    %309 = arith.addf %308, %307 : vector<2x32xf32>
    %310 = arith.divf %308, %309 : vector<2x32xf32>
    %311 = vector.extract_strided_slice %304 {offsets = [0, 32], sizes = [2, 32], strides = [1, 1]} : vector<2x128xf32> to vector<2x32xf32>
    %312 = arith.negf %311 : vector<2x32xf32>
    %313 = math.exp %312 : vector<2x32xf32>
    %cst_125 = arith.constant 1.000000e+00 : f32
    %314 = vector.broadcast %cst_125 : f32 to vector<2x32xf32>
    %315 = arith.addf %314, %313 : vector<2x32xf32>
    %316 = arith.divf %314, %315 : vector<2x32xf32>
    %317 = vector.extract_strided_slice %304 {offsets = [0, 64], sizes = [2, 32], strides = [1, 1]} : vector<2x128xf32> to vector<2x32xf32>
    %318 = math.tanh %317 : vector<2x32xf32>
    %319 = vector.extract_strided_slice %304 {offsets = [0, 96], sizes = [2, 32], strides = [1, 1]} : vector<2x128xf32> to vector<2x32xf32>
    %320 = arith.negf %319 : vector<2x32xf32>
    %321 = math.exp %320 : vector<2x32xf32>
    %cst_126 = arith.constant 1.000000e+00 : f32
    %322 = vector.broadcast %cst_126 : f32 to vector<2x32xf32>
    %323 = arith.addf %322, %321 : vector<2x32xf32>
    %324 = arith.divf %322, %323 : vector<2x32xf32>
    %325 = arith.mulf %316, %251 : vector<2x32xf32>
    %326 = arith.mulf %310, %318 : vector<2x32xf32>
    %327 = arith.addf %325, %326 : vector<2x32xf32>
    %328 = math.tanh %327 : vector<2x32xf32>
    %329 = arith.mulf %324, %328 : vector<2x32xf32>
    %c0_127 = arith.constant 0 : index
    %c0_128 = arith.constant 0 : index
    %c3 = arith.constant 3 : index
    %c0_129 = arith.constant 0 : index
    %330 = vector.load %arg3[%c0_127, %c0_128, %c3, %c0_129] : memref<1x2x8x1xf32, #tpu.memory_space<vmem>>, vector<1x2x1x1xf32>
    %331 = vector.shape_cast %330 : vector<1x2x1x1xf32> to vector<2x1xf32>
    %332 = vector.broadcast %331 : vector<2x1xf32> to vector<2x32xf32>
    %333 = arith.mulf %329, %332 : vector<2x32xf32>
    %c0_130 = arith.constant 0 : index
    %c3_131 = arith.constant 3 : index
    %c0_132 = arith.constant 0 : index
    %334 = vector.load %arg20[%c0_130, %c3_131, %c0_132] : memref<2x8x32xf32, #tpu.memory_space<vmem>>, vector<2x1x32xf32>
    %335 = vector.shape_cast %334 : vector<2x1x32xf32> to vector<2x32xf32>
    %336 = vector.shape_cast %333 : vector<2x32xf32> to vector<2x1x32xf32>
    tpu.vector_store %arg20[%c0_130, %c3_131, %c0_132], %336 {strides = array<i32>} : memref<2x8x32xf32, #tpu.memory_space<vmem>>, vector<2x1x32xf32>,
    %337 = vector.broadcast %331 : vector<2x1xf32> to vector<2x16xf32>
    %338 = arith.mulf %285, %337 : vector<2x16xf32>
    %c0_133 = arith.constant 0 : index
    %c0_134 = arith.constant 0 : index
    %c3_135 = arith.constant 3 : index
    %c0_136 = arith.constant 0 : index
    %339 = vector.load %arg19[%c0_133, %c0_134, %c3_135, %c0_136] : memref<1x2x8x16xf32, #tpu.memory_space<vmem>>, vector<1x2x1x16xf32>
    %340 = vector.shape_cast %339 : vector<1x2x1x16xf32> to vector<2x16xf32>
    %341 = vector.shape_cast %338 : vector<2x16xf32> to vector<1x2x1x16xf32>
    tpu.vector_store %arg19[%c0_133, %c0_134, %c3_135, %c0_136], %341 {strides = array<i32>} : memref<1x2x8x16xf32, #tpu.memory_space<vmem>>, vector<1x2x1x16xf32>,
    %cst_137 = arith.constant dense<0.000000e+00> : vector<2x16xf32>
    %342 = tpu.matmul %329, %23, %cst_137 {dimension_numbers = #tpu.dot_dimension_numbers<[1], [1], [0], [0], [0, 0, 1, 0], [], []>} : vector<2x32xf32>, vector<16x32xf32>, vector<2x16xf32> -> vector<2x16xf32>
    %343 = vector.shape_cast %342 : vector<2x16xf32> to vector<2x1x16xf32>
    %344 = vector.broadcast %343 : vector<2x1x16xf32> to vector<2x16x16xf32>
    %345 = arith.addf %10, %344 : vector<2x16x16xf32>
    %cst_138 = arith.constant 0.000000e+00 : f32
    %346 = vector.broadcast %cst_138 : f32 to vector<2x16x16xf32>
    %347 = arith.maximumf %345, %346 : vector<2x16x16xf32>
    %348 = vector.shape_cast %25 : vector<1x16xf32> to vector<1x1x16xf32>
    %349 = vector.broadcast %348 : vector<1x1x16xf32> to vector<2x16x16xf32>
    %350 = arith.mulf %347, %349 : vector<2x16x16xf32>
    %cst_139 = arith.constant dense<0.000000e+00> : vector<2x16xf32>
    %351 = vector.multi_reduction <add>, %350, %cst_139 [2] : vector<2x16x16xf32> to vector<2x16xf32>
    %cst_140 = arith.constant dense<0xFF800000> : vector<2xf32>
    %352 = vector.multi_reduction <maximumf>, %351, %cst_140 [1] : vector<2x16xf32> to vector<2xf32>
    %353 = vector.shape_cast %352 : vector<2xf32> to vector<2x1xf32>
    %354 = vector.broadcast %353 : vector<2x1xf32> to vector<2x16xf32>
    %355 = arith.subf %351, %354 : vector<2x16xf32>
    %356 = math.exp %355 : vector<2x16xf32>
    %cst_141 = arith.constant dense<0.000000e+00> : vector<2xf32>
    %357 = vector.multi_reduction <add>, %356, %cst_141 [1] : vector<2x16xf32> to vector<2xf32>
    %358 = vector.shape_cast %357 : vector<2xf32> to vector<2x1xf32>
    %359 = tpu.reciprocal %358 {approx = true} : vector<2x1xf32> -> vector<2x1xf32>
    %360 = vector.broadcast %359 : vector<2x1xf32> to vector<2x16xf32>
    %361 = arith.mulf %356, %360 : vector<2x16xf32>
    %362 = vector.shape_cast %361 : vector<2x16xf32> to vector<2x16x1xf32>
    %363 = vector.broadcast %362 : vector<2x16x1xf32> to vector<2x16x32xf32>
    %364 = arith.mulf %1, %363 : vector<2x16x32xf32>
    %cst_142 = arith.constant dense<0.000000e+00> : vector<2x32xf32>
    %365 = vector.multi_reduction <add>, %364, %cst_142 [1] : vector<2x16x32xf32> to vector<2x32xf32>
    %cst_143 = arith.constant dense<0.000000e+00> : vector<2x32xf32>
    %366 = tpu.matmul %329, %27, %cst_143 {dimension_numbers = #tpu.dot_dimension_numbers<[1], [1], [0], [0], [0, 0, 1, 0], [], []>} : vector<2x32xf32>, vector<32x32xf32>, vector<2x32xf32> -> vector<2x32xf32>
    %367 = vector.broadcast %29 : vector<1x32xf32> to vector<2x32xf32>
    %368 = arith.addf %366, %367 : vector<2x32xf32>
    %369 = arith.negf %368 : vector<2x32xf32>
    %370 = math.exp %369 : vector<2x32xf32>
    %cst_144 = arith.constant 1.000000e+00 : f32
    %371 = vector.broadcast %cst_144 : f32 to vector<2x32xf32>
    %372 = arith.addf %371, %370 : vector<2x32xf32>
    %373 = arith.divf %371, %372 : vector<2x32xf32>
    %374 = arith.mulf %373, %365 : vector<2x32xf32>
    %375 = vector.extract_strided_slice %21 {offsets = [0, 4, 0], sizes = [2, 1, 128], strides = [1, 1, 1]} : vector<2x8x128xf32> to vector<2x1x128xf32>
    %376 = vector.shape_cast %375 : vector<2x1x128xf32> to vector<2x128xf32>
    %cst_145 = arith.constant dense<0.000000e+00> : vector<2x128xf32>
    %377 = tpu.matmul %374, %31, %cst_145 {dimension_numbers = #tpu.dot_dimension_numbers<[1], [1], [0], [0], [0, 0, 1, 0], [], []>} : vector<2x32xf32>, vector<128x32xf32>, vector<2x128xf32> -> vector<2x128xf32>
    %378 = arith.addf %376, %377 : vector<2x128xf32>
    %cst_146 = arith.constant dense<0.000000e+00> : vector<2x128xf32>
    %379 = tpu.matmul %329, %33, %cst_146 {dimension_numbers = #tpu.dot_dimension_numbers<[1], [1], [0], [0], [0, 0, 1, 0], [], []>} : vector<2x32xf32>, vector<128x32xf32>, vector<2x128xf32> -> vector<2x128xf32>
    %380 = arith.addf %378, %379 : vector<2x128xf32>
    %381 = vector.extract_strided_slice %380 {offsets = [0, 0], sizes = [2, 32], strides = [1, 1]} : vector<2x128xf32> to vector<2x32xf32>
    %382 = arith.negf %381 : vector<2x32xf32>
    %383 = math.exp %382 : vector<2x32xf32>
    %cst_147 = arith.constant 1.000000e+00 : f32
    %384 = vector.broadcast %cst_147 : f32 to vector<2x32xf32>
    %385 = arith.addf %384, %383 : vector<2x32xf32>
    %386 = arith.divf %384, %385 : vector<2x32xf32>
    %387 = vector.extract_strided_slice %380 {offsets = [0, 32], sizes = [2, 32], strides = [1, 1]} : vector<2x128xf32> to vector<2x32xf32>
    %388 = arith.negf %387 : vector<2x32xf32>
    %389 = math.exp %388 : vector<2x32xf32>
    %cst_148 = arith.constant 1.000000e+00 : f32
    %390 = vector.broadcast %cst_148 : f32 to vector<2x32xf32>
    %391 = arith.addf %390, %389 : vector<2x32xf32>
    %392 = arith.divf %390, %391 : vector<2x32xf32>
    %393 = vector.extract_strided_slice %380 {offsets = [0, 64], sizes = [2, 32], strides = [1, 1]} : vector<2x128xf32> to vector<2x32xf32>
    %394 = math.tanh %393 : vector<2x32xf32>
    %395 = vector.extract_strided_slice %380 {offsets = [0, 96], sizes = [2, 32], strides = [1, 1]} : vector<2x128xf32> to vector<2x32xf32>
    %396 = arith.negf %395 : vector<2x32xf32>
    %397 = math.exp %396 : vector<2x32xf32>
    %cst_149 = arith.constant 1.000000e+00 : f32
    %398 = vector.broadcast %cst_149 : f32 to vector<2x32xf32>
    %399 = arith.addf %398, %397 : vector<2x32xf32>
    %400 = arith.divf %398, %399 : vector<2x32xf32>
    %401 = arith.mulf %392, %327 : vector<2x32xf32>
    %402 = arith.mulf %386, %394 : vector<2x32xf32>
    %403 = arith.addf %401, %402 : vector<2x32xf32>
    %404 = math.tanh %403 : vector<2x32xf32>
    %405 = arith.mulf %400, %404 : vector<2x32xf32>
    %c0_150 = arith.constant 0 : index
    %c0_151 = arith.constant 0 : index
    %c4 = arith.constant 4 : index
    %c0_152 = arith.constant 0 : index
    %406 = vector.load %arg3[%c0_150, %c0_151, %c4, %c0_152] : memref<1x2x8x1xf32, #tpu.memory_space<vmem>>, vector<1x2x1x1xf32>
    %407 = vector.shape_cast %406 : vector<1x2x1x1xf32> to vector<2x1xf32>
    %408 = vector.broadcast %407 : vector<2x1xf32> to vector<2x32xf32>
    %409 = arith.mulf %405, %408 : vector<2x32xf32>
    %c0_153 = arith.constant 0 : index
    %c4_154 = arith.constant 4 : index
    %c0_155 = arith.constant 0 : index
    %410 = vector.load %arg20[%c0_153, %c4_154, %c0_155] : memref<2x8x32xf32, #tpu.memory_space<vmem>>, vector<2x1x32xf32>
    %411 = vector.shape_cast %410 : vector<2x1x32xf32> to vector<2x32xf32>
    %412 = vector.shape_cast %409 : vector<2x32xf32> to vector<2x1x32xf32>
    tpu.vector_store %arg20[%c0_153, %c4_154, %c0_155], %412 {strides = array<i32>} : memref<2x8x32xf32, #tpu.memory_space<vmem>>, vector<2x1x32xf32>,
    %413 = vector.broadcast %407 : vector<2x1xf32> to vector<2x16xf32>
    %414 = arith.mulf %361, %413 : vector<2x16xf32>
    %c0_156 = arith.constant 0 : index
    %c0_157 = arith.constant 0 : index
    %c4_158 = arith.constant 4 : index
    %c0_159 = arith.constant 0 : index
    %415 = vector.load %arg19[%c0_156, %c0_157, %c4_158, %c0_159] : memref<1x2x8x16xf32, #tpu.memory_space<vmem>>, vector<1x2x1x16xf32>
    %416 = vector.shape_cast %415 : vector<1x2x1x16xf32> to vector<2x16xf32>
    %417 = vector.shape_cast %414 : vector<2x16xf32> to vector<1x2x1x16xf32>
    tpu.vector_store %arg19[%c0_156, %c0_157, %c4_158, %c0_159], %417 {strides = array<i32>} : memref<1x2x8x16xf32, #tpu.memory_space<vmem>>, vector<1x2x1x16xf32>,
    %cst_160 = arith.constant dense<0.000000e+00> : vector<2x16xf32>
    %418 = tpu.matmul %405, %23, %cst_160 {dimension_numbers = #tpu.dot_dimension_numbers<[1], [1], [0], [0], [0, 0, 1, 0], [], []>} : vector<2x32xf32>, vector<16x32xf32>, vector<2x16xf32> -> vector<2x16xf32>
    %419 = vector.shape_cast %418 : vector<2x16xf32> to vector<2x1x16xf32>
    %420 = vector.broadcast %419 : vector<2x1x16xf32> to vector<2x16x16xf32>
    %421 = arith.addf %10, %420 : vector<2x16x16xf32>
    %cst_161 = arith.constant 0.000000e+00 : f32
    %422 = vector.broadcast %cst_161 : f32 to vector<2x16x16xf32>
    %423 = arith.maximumf %421, %422 : vector<2x16x16xf32>
    %424 = vector.shape_cast %25 : vector<1x16xf32> to vector<1x1x16xf32>
    %425 = vector.broadcast %424 : vector<1x1x16xf32> to vector<2x16x16xf32>
    %426 = arith.mulf %423, %425 : vector<2x16x16xf32>
    %cst_162 = arith.constant dense<0.000000e+00> : vector<2x16xf32>
    %427 = vector.multi_reduction <add>, %426, %cst_162 [2] : vector<2x16x16xf32> to vector<2x16xf32>
    %cst_163 = arith.constant dense<0xFF800000> : vector<2xf32>
    %428 = vector.multi_reduction <maximumf>, %427, %cst_163 [1] : vector<2x16xf32> to vector<2xf32>
    %429 = vector.shape_cast %428 : vector<2xf32> to vector<2x1xf32>
    %430 = vector.broadcast %429 : vector<2x1xf32> to vector<2x16xf32>
    %431 = arith.subf %427, %430 : vector<2x16xf32>
    %432 = math.exp %431 : vector<2x16xf32>
    %cst_164 = arith.constant dense<0.000000e+00> : vector<2xf32>
    %433 = vector.multi_reduction <add>, %432, %cst_164 [1] : vector<2x16xf32> to vector<2xf32>
    %434 = vector.shape_cast %433 : vector<2xf32> to vector<2x1xf32>
    %435 = tpu.reciprocal %434 {approx = true} : vector<2x1xf32> -> vector<2x1xf32>
    %436 = vector.broadcast %435 : vector<2x1xf32> to vector<2x16xf32>
    %437 = arith.mulf %432, %436 : vector<2x16xf32>
    %438 = vector.shape_cast %437 : vector<2x16xf32> to vector<2x16x1xf32>
    %439 = vector.broadcast %438 : vector<2x16x1xf32> to vector<2x16x32xf32>
    %440 = arith.mulf %1, %439 : vector<2x16x32xf32>
    %cst_165 = arith.constant dense<0.000000e+00> : vector<2x32xf32>
    %441 = vector.multi_reduction <add>, %440, %cst_165 [1] : vector<2x16x32xf32> to vector<2x32xf32>
    %cst_166 = arith.constant dense<0.000000e+00> : vector<2x32xf32>
    %442 = tpu.matmul %405, %27, %cst_166 {dimension_numbers = #tpu.dot_dimension_numbers<[1], [1], [0], [0], [0, 0, 1, 0], [], []>} : vector<2x32xf32>, vector<32x32xf32>, vector<2x32xf32> -> vector<2x32xf32>
    %443 = vector.broadcast %29 : vector<1x32xf32> to vector<2x32xf32>
    %444 = arith.addf %442, %443 : vector<2x32xf32>
    %445 = arith.negf %444 : vector<2x32xf32>
    %446 = math.exp %445 : vector<2x32xf32>
    %cst_167 = arith.constant 1.000000e+00 : f32
    %447 = vector.broadcast %cst_167 : f32 to vector<2x32xf32>
    %448 = arith.addf %447, %446 : vector<2x32xf32>
    %449 = arith.divf %447, %448 : vector<2x32xf32>
    %450 = arith.mulf %449, %441 : vector<2x32xf32>
    %451 = vector.extract_strided_slice %21 {offsets = [0, 5, 0], sizes = [2, 1, 128], strides = [1, 1, 1]} : vector<2x8x128xf32> to vector<2x1x128xf32>
    %452 = vector.shape_cast %451 : vector<2x1x128xf32> to vector<2x128xf32>
    %cst_168 = arith.constant dense<0.000000e+00> : vector<2x128xf32>
    %453 = tpu.matmul %450, %31, %cst_168 {dimension_numbers = #tpu.dot_dimension_numbers<[1], [1], [0], [0], [0, 0, 1, 0], [], []>} : vector<2x32xf32>, vector<128x32xf32>, vector<2x128xf32> -> vector<2x128xf32>
    %454 = arith.addf %452, %453 : vector<2x128xf32>
    %cst_169 = arith.constant dense<0.000000e+00> : vector<2x128xf32>
    %455 = tpu.matmul %405, %33, %cst_169 {dimension_numbers = #tpu.dot_dimension_numbers<[1], [1], [0], [0], [0, 0, 1, 0], [], []>} : vector<2x32xf32>, vector<128x32xf32>, vector<2x128xf32> -> vector<2x128xf32>
    %456 = arith.addf %454, %455 : vector<2x128xf32>
    %457 = vector.extract_strided_slice %456 {offsets = [0, 0], sizes = [2, 32], strides = [1, 1]} : vector<2x128xf32> to vector<2x32xf32>
    %458 = arith.negf %457 : vector<2x32xf32>
    %459 = math.exp %458 : vector<2x32xf32>
    %cst_170 = arith.constant 1.000000e+00 : f32
    %460 = vector.broadcast %cst_170 : f32 to vector<2x32xf32>
    %461 = arith.addf %460, %459 : vector<2x32xf32>
    %462 = arith.divf %460, %461 : vector<2x32xf32>
    %463 = vector.extract_strided_slice %456 {offsets = [0, 32], sizes = [2, 32], strides = [1, 1]} : vector<2x128xf32> to vector<2x32xf32>
    %464 = arith.negf %463 : vector<2x32xf32>
    %465 = math.exp %464 : vector<2x32xf32>
    %cst_171 = arith.constant 1.000000e+00 : f32
    %466 = vector.broadcast %cst_171 : f32 to vector<2x32xf32>
    %467 = arith.addf %466, %465 : vector<2x32xf32>
    %468 = arith.divf %466, %467 : vector<2x32xf32>
    %469 = vector.extract_strided_slice %456 {offsets = [0, 64], sizes = [2, 32], strides = [1, 1]} : vector<2x128xf32> to vector<2x32xf32>
    %470 = math.tanh %469 : vector<2x32xf32>
    %471 = vector.extract_strided_slice %456 {offsets = [0, 96], sizes = [2, 32], strides = [1, 1]} : vector<2x128xf32> to vector<2x32xf32>
    %472 = arith.negf %471 : vector<2x32xf32>
    %473 = math.exp %472 : vector<2x32xf32>
    %cst_172 = arith.constant 1.000000e+00 : f32
    %474 = vector.broadcast %cst_172 : f32 to vector<2x32xf32>
    %475 = arith.addf %474, %473 : vector<2x32xf32>
    %476 = arith.divf %474, %475 : vector<2x32xf32>
    %477 = arith.mulf %468, %403 : vector<2x32xf32>
    %478 = arith.mulf %462, %470 : vector<2x32xf32>
    %479 = arith.addf %477, %478 : vector<2x32xf32>
    %480 = math.tanh %479 : vector<2x32xf32>
    %481 = arith.mulf %476, %480 : vector<2x32xf32>
    %c0_173 = arith.constant 0 : index
    %c0_174 = arith.constant 0 : index
    %c5 = arith.constant 5 : index
    %c0_175 = arith.constant 0 : index
    %482 = vector.load %arg3[%c0_173, %c0_174, %c5, %c0_175] : memref<1x2x8x1xf32, #tpu.memory_space<vmem>>, vector<1x2x1x1xf32>
    %483 = vector.shape_cast %482 : vector<1x2x1x1xf32> to vector<2x1xf32>
    %484 = vector.broadcast %483 : vector<2x1xf32> to vector<2x32xf32>
    %485 = arith.mulf %481, %484 : vector<2x32xf32>
    %c0_176 = arith.constant 0 : index
    %c5_177 = arith.constant 5 : index
    %c0_178 = arith.constant 0 : index
    %486 = vector.load %arg20[%c0_176, %c5_177, %c0_178] : memref<2x8x32xf32, #tpu.memory_space<vmem>>, vector<2x1x32xf32>
    %487 = vector.shape_cast %486 : vector<2x1x32xf32> to vector<2x32xf32>
    %488 = vector.shape_cast %485 : vector<2x32xf32> to vector<2x1x32xf32>
    tpu.vector_store %arg20[%c0_176, %c5_177, %c0_178], %488 {strides = array<i32>} : memref<2x8x32xf32, #tpu.memory_space<vmem>>, vector<2x1x32xf32>,
    %489 = vector.broadcast %483 : vector<2x1xf32> to vector<2x16xf32>
    %490 = arith.mulf %437, %489 : vector<2x16xf32>
    %c0_179 = arith.constant 0 : index
    %c0_180 = arith.constant 0 : index
    %c5_181 = arith.constant 5 : index
    %c0_182 = arith.constant 0 : index
    %491 = vector.load %arg19[%c0_179, %c0_180, %c5_181, %c0_182] : memref<1x2x8x16xf32, #tpu.memory_space<vmem>>, vector<1x2x1x16xf32>
    %492 = vector.shape_cast %491 : vector<1x2x1x16xf32> to vector<2x16xf32>
    %493 = vector.shape_cast %490 : vector<2x16xf32> to vector<1x2x1x16xf32>
    tpu.vector_store %arg19[%c0_179, %c0_180, %c5_181, %c0_182], %493 {strides = array<i32>} : memref<1x2x8x16xf32, #tpu.memory_space<vmem>>, vector<1x2x1x16xf32>,
    %cst_183 = arith.constant dense<0.000000e+00> : vector<2x16xf32>
    %494 = tpu.matmul %481, %23, %cst_183 {dimension_numbers = #tpu.dot_dimension_numbers<[1], [1], [0], [0], [0, 0, 1, 0], [], []>} : vector<2x32xf32>, vector<16x32xf32>, vector<2x16xf32> -> vector<2x16xf32>
    %495 = vector.shape_cast %494 : vector<2x16xf32> to vector<2x1x16xf32>
    %496 = vector.broadcast %495 : vector<2x1x16xf32> to vector<2x16x16xf32>
    %497 = arith.addf %10, %496 : vector<2x16x16xf32>
    %cst_184 = arith.constant 0.000000e+00 : f32
    %498 = vector.broadcast %cst_184 : f32 to vector<2x16x16xf32>
    %499 = arith.maximumf %497, %498 : vector<2x16x16xf32>
    %500 = vector.shape_cast %25 : vector<1x16xf32> to vector<1x1x16xf32>
    %501 = vector.broadcast %500 : vector<1x1x16xf32> to vector<2x16x16xf32>
    %502 = arith.mulf %499, %501 : vector<2x16x16xf32>
    %cst_185 = arith.constant dense<0.000000e+00> : vector<2x16xf32>
    %503 = vector.multi_reduction <add>, %502, %cst_185 [2] : vector<2x16x16xf32> to vector<2x16xf32>
    %cst_186 = arith.constant dense<0xFF800000> : vector<2xf32>
    %504 = vector.multi_reduction <maximumf>, %503, %cst_186 [1] : vector<2x16xf32> to vector<2xf32>
    %505 = vector.shape_cast %504 : vector<2xf32> to vector<2x1xf32>
    %506 = vector.broadcast %505 : vector<2x1xf32> to vector<2x16xf32>
    %507 = arith.subf %503, %506 : vector<2x16xf32>
    %508 = math.exp %507 : vector<2x16xf32>
    %cst_187 = arith.constant dense<0.000000e+00> : vector<2xf32>
    %509 = vector.multi_reduction <add>, %508, %cst_187 [1] : vector<2x16xf32> to vector<2xf32>
    %510 = vector.shape_cast %509 : vector<2xf32> to vector<2x1xf32>
    %511 = tpu.reciprocal %510 {approx = true} : vector<2x1xf32> -> vector<2x1xf32>
    %512 = vector.broadcast %511 : vector<2x1xf32> to vector<2x16xf32>
    %513 = arith.mulf %508, %512 : vector<2x16xf32>
    %514 = vector.shape_cast %513 : vector<2x16xf32> to vector<2x16x1xf32>
    %515 = vector.broadcast %514 : vector<2x16x1xf32> to vector<2x16x32xf32>
    %516 = arith.mulf %1, %515 : vector<2x16x32xf32>
    %cst_188 = arith.constant dense<0.000000e+00> : vector<2x32xf32>
    %517 = vector.multi_reduction <add>, %516, %cst_188 [1] : vector<2x16x32xf32> to vector<2x32xf32>
    %cst_189 = arith.constant dense<0.000000e+00> : vector<2x32xf32>
    %518 = tpu.matmul %481, %27, %cst_189 {dimension_numbers = #tpu.dot_dimension_numbers<[1], [1], [0], [0], [0, 0, 1, 0], [], []>} : vector<2x32xf32>, vector<32x32xf32>, vector<2x32xf32> -> vector<2x32xf32>
    %519 = vector.broadcast %29 : vector<1x32xf32> to vector<2x32xf32>
    %520 = arith.addf %518, %519 : vector<2x32xf32>
    %521 = arith.negf %520 : vector<2x32xf32>
    %522 = math.exp %521 : vector<2x32xf32>
    %cst_190 = arith.constant 1.000000e+00 : f32
    %523 = vector.broadcast %cst_190 : f32 to vector<2x32xf32>
    %524 = arith.addf %523, %522 : vector<2x32xf32>
    %525 = arith.divf %523, %524 : vector<2x32xf32>
    %526 = arith.mulf %525, %517 : vector<2x32xf32>
    %527 = vector.extract_strided_slice %21 {offsets = [0, 6, 0], sizes = [2, 1, 128], strides = [1, 1, 1]} : vector<2x8x128xf32> to vector<2x1x128xf32>
    %528 = vector.shape_cast %527 : vector<2x1x128xf32> to vector<2x128xf32>
    %cst_191 = arith.constant dense<0.000000e+00> : vector<2x128xf32>
    %529 = tpu.matmul %526, %31, %cst_191 {dimension_numbers = #tpu.dot_dimension_numbers<[1], [1], [0], [0], [0, 0, 1, 0], [], []>} : vector<2x32xf32>, vector<128x32xf32>, vector<2x128xf32> -> vector<2x128xf32>
    %530 = arith.addf %528, %529 : vector<2x128xf32>
    %cst_192 = arith.constant dense<0.000000e+00> : vector<2x128xf32>
    %531 = tpu.matmul %481, %33, %cst_192 {dimension_numbers = #tpu.dot_dimension_numbers<[1], [1], [0], [0], [0, 0, 1, 0], [], []>} : vector<2x32xf32>, vector<128x32xf32>, vector<2x128xf32> -> vector<2x128xf32>
    %532 = arith.addf %530, %531 : vector<2x128xf32>
    %533 = vector.extract_strided_slice %532 {offsets = [0, 0], sizes = [2, 32], strides = [1, 1]} : vector<2x128xf32> to vector<2x32xf32>
    %534 = arith.negf %533 : vector<2x32xf32>
    %535 = math.exp %534 : vector<2x32xf32>
    %cst_193 = arith.constant 1.000000e+00 : f32
    %536 = vector.broadcast %cst_193 : f32 to vector<2x32xf32>
    %537 = arith.addf %536, %535 : vector<2x32xf32>
    %538 = arith.divf %536, %537 : vector<2x32xf32>
    %539 = vector.extract_strided_slice %532 {offsets = [0, 32], sizes = [2, 32], strides = [1, 1]} : vector<2x128xf32> to vector<2x32xf32>
    %540 = arith.negf %539 : vector<2x32xf32>
    %541 = math.exp %540 : vector<2x32xf32>
    %cst_194 = arith.constant 1.000000e+00 : f32
    %542 = vector.broadcast %cst_194 : f32 to vector<2x32xf32>
    %543 = arith.addf %542, %541 : vector<2x32xf32>
    %544 = arith.divf %542, %543 : vector<2x32xf32>
    %545 = vector.extract_strided_slice %532 {offsets = [0, 64], sizes = [2, 32], strides = [1, 1]} : vector<2x128xf32> to vector<2x32xf32>
    %546 = math.tanh %545 : vector<2x32xf32>
    %547 = vector.extract_strided_slice %532 {offsets = [0, 96], sizes = [2, 32], strides = [1, 1]} : vector<2x128xf32> to vector<2x32xf32>
    %548 = arith.negf %547 : vector<2x32xf32>
    %549 = math.exp %548 : vector<2x32xf32>
    %cst_195 = arith.constant 1.000000e+00 : f32
    %550 = vector.broadcast %cst_195 : f32 to vector<2x32xf32>
    %551 = arith.addf %550, %549 : vector<2x32xf32>
    %552 = arith.divf %550, %551 : vector<2x32xf32>
    %553 = arith.mulf %544, %479 : vector<2x32xf32>
    %554 = arith.mulf %538, %546 : vector<2x32xf32>
    %555 = arith.addf %553, %554 : vector<2x32xf32>
    %556 = math.tanh %555 : vector<2x32xf32>
    %557 = arith.mulf %552, %556 : vector<2x32xf32>
    %c0_196 = arith.constant 0 : index
    %c0_197 = arith.constant 0 : index
    %c6 = arith.constant 6 : index
    %c0_198 = arith.constant 0 : index
    %558 = vector.load %arg3[%c0_196, %c0_197, %c6, %c0_198] : memref<1x2x8x1xf32, #tpu.memory_space<vmem>>, vector<1x2x1x1xf32>
    %559 = vector.shape_cast %558 : vector<1x2x1x1xf32> to vector<2x1xf32>
    %560 = vector.broadcast %559 : vector<2x1xf32> to vector<2x32xf32>
    %561 = arith.mulf %557, %560 : vector<2x32xf32>
    %c0_199 = arith.constant 0 : index
    %c6_200 = arith.constant 6 : index
    %c0_201 = arith.constant 0 : index
    %562 = vector.load %arg20[%c0_199, %c6_200, %c0_201] : memref<2x8x32xf32, #tpu.memory_space<vmem>>, vector<2x1x32xf32>
    %563 = vector.shape_cast %562 : vector<2x1x32xf32> to vector<2x32xf32>
    %564 = vector.shape_cast %561 : vector<2x32xf32> to vector<2x1x32xf32>
    tpu.vector_store %arg20[%c0_199, %c6_200, %c0_201], %564 {strides = array<i32>} : memref<2x8x32xf32, #tpu.memory_space<vmem>>, vector<2x1x32xf32>,
    %565 = vector.broadcast %559 : vector<2x1xf32> to vector<2x16xf32>
    %566 = arith.mulf %513, %565 : vector<2x16xf32>
    %c0_202 = arith.constant 0 : index
    %c0_203 = arith.constant 0 : index
    %c6_204 = arith.constant 6 : index
    %c0_205 = arith.constant 0 : index
    %567 = vector.load %arg19[%c0_202, %c0_203, %c6_204, %c0_205] : memref<1x2x8x16xf32, #tpu.memory_space<vmem>>, vector<1x2x1x16xf32>
    %568 = vector.shape_cast %567 : vector<1x2x1x16xf32> to vector<2x16xf32>
    %569 = vector.shape_cast %566 : vector<2x16xf32> to vector<1x2x1x16xf32>
    tpu.vector_store %arg19[%c0_202, %c0_203, %c6_204, %c0_205], %569 {strides = array<i32>} : memref<1x2x8x16xf32, #tpu.memory_space<vmem>>, vector<1x2x1x16xf32>,
    %cst_206 = arith.constant dense<0.000000e+00> : vector<2x16xf32>
    %570 = tpu.matmul %557, %23, %cst_206 {dimension_numbers = #tpu.dot_dimension_numbers<[1], [1], [0], [0], [0, 0, 1, 0], [], []>} : vector<2x32xf32>, vector<16x32xf32>, vector<2x16xf32> -> vector<2x16xf32>
    %571 = vector.shape_cast %570 : vector<2x16xf32> to vector<2x1x16xf32>
    %572 = vector.broadcast %571 : vector<2x1x16xf32> to vector<2x16x16xf32>
    %573 = arith.addf %10, %572 : vector<2x16x16xf32>
    %cst_207 = arith.constant 0.000000e+00 : f32
    %574 = vector.broadcast %cst_207 : f32 to vector<2x16x16xf32>
    %575 = arith.maximumf %573, %574 : vector<2x16x16xf32>
    %576 = vector.shape_cast %25 : vector<1x16xf32> to vector<1x1x16xf32>
    %577 = vector.broadcast %576 : vector<1x1x16xf32> to vector<2x16x16xf32>
    %578 = arith.mulf %575, %577 : vector<2x16x16xf32>
    %cst_208 = arith.constant dense<0.000000e+00> : vector<2x16xf32>
    %579 = vector.multi_reduction <add>, %578, %cst_208 [2] : vector<2x16x16xf32> to vector<2x16xf32>
    %cst_209 = arith.constant dense<0xFF800000> : vector<2xf32>
    %580 = vector.multi_reduction <maximumf>, %579, %cst_209 [1] : vector<2x16xf32> to vector<2xf32>
    %581 = vector.shape_cast %580 : vector<2xf32> to vector<2x1xf32>
    %582 = vector.broadcast %581 : vector<2x1xf32> to vector<2x16xf32>
    %583 = arith.subf %579, %582 : vector<2x16xf32>
    %584 = math.exp %583 : vector<2x16xf32>
    %cst_210 = arith.constant dense<0.000000e+00> : vector<2xf32>
    %585 = vector.multi_reduction <add>, %584, %cst_210 [1] : vector<2x16xf32> to vector<2xf32>
    %586 = vector.shape_cast %585 : vector<2xf32> to vector<2x1xf32>
    %587 = tpu.reciprocal %586 {approx = true} : vector<2x1xf32> -> vector<2x1xf32>
    %588 = vector.broadcast %587 : vector<2x1xf32> to vector<2x16xf32>
    %589 = arith.mulf %584, %588 : vector<2x16xf32>
    %590 = vector.shape_cast %589 : vector<2x16xf32> to vector<2x16x1xf32>
    %591 = vector.broadcast %590 : vector<2x16x1xf32> to vector<2x16x32xf32>
    %592 = arith.mulf %1, %591 : vector<2x16x32xf32>
    %cst_211 = arith.constant dense<0.000000e+00> : vector<2x32xf32>
    %593 = vector.multi_reduction <add>, %592, %cst_211 [1] : vector<2x16x32xf32> to vector<2x32xf32>
    %cst_212 = arith.constant dense<0.000000e+00> : vector<2x32xf32>
    %594 = tpu.matmul %557, %27, %cst_212 {dimension_numbers = #tpu.dot_dimension_numbers<[1], [1], [0], [0], [0, 0, 1, 0], [], []>} : vector<2x32xf32>, vector<32x32xf32>, vector<2x32xf32> -> vector<2x32xf32>
    %595 = vector.broadcast %29 : vector<1x32xf32> to vector<2x32xf32>
    %596 = arith.addf %594, %595 : vector<2x32xf32>
    %597 = arith.negf %596 : vector<2x32xf32>
    %598 = math.exp %597 : vector<2x32xf32>
    %cst_213 = arith.constant 1.000000e+00 : f32
    %599 = vector.broadcast %cst_213 : f32 to vector<2x32xf32>
    %600 = arith.addf %599, %598 : vector<2x32xf32>
    %601 = arith.divf %599, %600 : vector<2x32xf32>
    %602 = arith.mulf %601, %593 : vector<2x32xf32>
    %603 = vector.extract_strided_slice %21 {offsets = [0, 7, 0], sizes = [2, 1, 128], strides = [1, 1, 1]} : vector<2x8x128xf32> to vector<2x1x128xf32>
    %604 = vector.shape_cast %603 : vector<2x1x128xf32> to vector<2x128xf32>
    %cst_214 = arith.constant dense<0.000000e+00> : vector<2x128xf32>
    %605 = tpu.matmul %602, %31, %cst_214 {dimension_numbers = #tpu.dot_dimension_numbers<[1], [1], [0], [0], [0, 0, 1, 0], [], []>} : vector<2x32xf32>, vector<128x32xf32>, vector<2x128xf32> -> vector<2x128xf32>
    %606 = arith.addf %604, %605 : vector<2x128xf32>
    %cst_215 = arith.constant dense<0.000000e+00> : vector<2x128xf32>
    %607 = tpu.matmul %557, %33, %cst_215 {dimension_numbers = #tpu.dot_dimension_numbers<[1], [1], [0], [0], [0, 0, 1, 0], [], []>} : vector<2x32xf32>, vector<128x32xf32>, vector<2x128xf32> -> vector<2x128xf32>
    %608 = arith.addf %606, %607 : vector<2x128xf32>
    %609 = vector.extract_strided_slice %608 {offsets = [0, 0], sizes = [2, 32], strides = [1, 1]} : vector<2x128xf32> to vector<2x32xf32>
    %610 = arith.negf %609 : vector<2x32xf32>
    %611 = math.exp %610 : vector<2x32xf32>
    %cst_216 = arith.constant 1.000000e+00 : f32
    %612 = vector.broadcast %cst_216 : f32 to vector<2x32xf32>
    %613 = arith.addf %612, %611 : vector<2x32xf32>
    %614 = arith.divf %612, %613 : vector<2x32xf32>
    %615 = vector.extract_strided_slice %608 {offsets = [0, 32], sizes = [2, 32], strides = [1, 1]} : vector<2x128xf32> to vector<2x32xf32>
    %616 = arith.negf %615 : vector<2x32xf32>
    %617 = math.exp %616 : vector<2x32xf32>
    %cst_217 = arith.constant 1.000000e+00 : f32
    %618 = vector.broadcast %cst_217 : f32 to vector<2x32xf32>
    %619 = arith.addf %618, %617 : vector<2x32xf32>
    %620 = arith.divf %618, %619 : vector<2x32xf32>
    %621 = vector.extract_strided_slice %608 {offsets = [0, 64], sizes = [2, 32], strides = [1, 1]} : vector<2x128xf32> to vector<2x32xf32>
    %622 = math.tanh %621 : vector<2x32xf32>
    %623 = vector.extract_strided_slice %608 {offsets = [0, 96], sizes = [2, 32], strides = [1, 1]} : vector<2x128xf32> to vector<2x32xf32>
    %624 = arith.negf %623 : vector<2x32xf32>
    %625 = math.exp %624 : vector<2x32xf32>
    %cst_218 = arith.constant 1.000000e+00 : f32
    %626 = vector.broadcast %cst_218 : f32 to vector<2x32xf32>
    %627 = arith.addf %626, %625 : vector<2x32xf32>
    %628 = arith.divf %626, %627 : vector<2x32xf32>
    %629 = arith.mulf %620, %555 : vector<2x32xf32>
    %630 = arith.mulf %614, %622 : vector<2x32xf32>
    %631 = arith.addf %629, %630 : vector<2x32xf32>
    %632 = math.tanh %631 : vector<2x32xf32>
    %633 = arith.mulf %628, %632 : vector<2x32xf32>
    %c0_219 = arith.constant 0 : index
    %c0_220 = arith.constant 0 : index
    %c7 = arith.constant 7 : index
    %c0_221 = arith.constant 0 : index
    %634 = vector.load %arg3[%c0_219, %c0_220, %c7, %c0_221] : memref<1x2x8x1xf32, #tpu.memory_space<vmem>>, vector<1x2x1x1xf32>
    %635 = vector.shape_cast %634 : vector<1x2x1x1xf32> to vector<2x1xf32>
    %636 = vector.broadcast %635 : vector<2x1xf32> to vector<2x32xf32>
    %637 = arith.mulf %633, %636 : vector<2x32xf32>
    %c0_222 = arith.constant 0 : index
    %c7_223 = arith.constant 7 : index
    %c0_224 = arith.constant 0 : index
    %638 = vector.load %arg20[%c0_222, %c7_223, %c0_224] : memref<2x8x32xf32, #tpu.memory_space<vmem>>, vector<2x1x32xf32>
    %639 = vector.shape_cast %638 : vector<2x1x32xf32> to vector<2x32xf32>
    %640 = vector.shape_cast %637 : vector<2x32xf32> to vector<2x1x32xf32>
    tpu.vector_store %arg20[%c0_222, %c7_223, %c0_224], %640 {strides = array<i32>} : memref<2x8x32xf32, #tpu.memory_space<vmem>>, vector<2x1x32xf32>,
    %641 = vector.broadcast %635 : vector<2x1xf32> to vector<2x16xf32>
    %642 = arith.mulf %589, %641 : vector<2x16xf32>
    %c0_225 = arith.constant 0 : index
    %c0_226 = arith.constant 0 : index
    %c7_227 = arith.constant 7 : index
    %c0_228 = arith.constant 0 : index
    %643 = vector.load %arg19[%c0_225, %c0_226, %c7_227, %c0_228] : memref<1x2x8x16xf32, #tpu.memory_space<vmem>>, vector<1x2x1x16xf32>
    %644 = vector.shape_cast %643 : vector<1x2x1x16xf32> to vector<2x16xf32>
    %645 = vector.shape_cast %642 : vector<2x16xf32> to vector<1x2x1x16xf32>
    tpu.vector_store %arg19[%c0_225, %c0_226, %c7_227, %c0_228], %645 {strides = array<i32>} : memref<1x2x8x16xf32, #tpu.memory_space<vmem>>, vector<1x2x1x16xf32>,
    %c0_229 = arith.constant 0 : index
    %c0_230 = arith.constant 0 : index
    %c0_231 = arith.constant 0 : index
    %646 = vector.load %arg20[%c0_229, %c0_230, %c0_231] : memref<2x8x32xf32, #tpu.memory_space<vmem>>, vector<2x8x32xf32>
    %647 = vector.shape_cast %646 : vector<2x8x32xf32> to vector<16x32xf32>
    %c0_232 = arith.constant 0 : index
    %c0_233 = arith.constant 0 : index
    %648 = vector.load %arg16[%c0_232, %c0_233] : memref<128x32xf32, #tpu.memory_space<vmem>>, vector<128x32xf32>
    %cst_234 = arith.constant dense<0.000000e+00> : vector<16x128xf32>
    %649 = tpu.matmul %647, %648, %cst_234 {dimension_numbers = #tpu.dot_dimension_numbers<[1], [1], [0], [0], [0, 0, 1, 0], [], []>} : vector<16x32xf32>, vector<128x32xf32>, vector<16x128xf32> -> vector<16x128xf32>
    %c0_235 = arith.constant 0 : index
    %c0_236 = arith.constant 0 : index
    %650 = vector.load %arg17[%c0_235, %c0_236] : memref<1x128xf32, #tpu.memory_space<vmem>>, vector<1x128xf32>
    %651 = vector.broadcast %650 : vector<1x128xf32> to vector<16x128xf32>
    %652 = arith.addf %649, %651 : vector<16x128xf32>
    %cst_237 = arith.constant dense<0xFF800000> : vector<16xf32>
    %653 = vector.multi_reduction <maximumf>, %652, %cst_237 [1] : vector<16x128xf32> to vector<16xf32>
    %654 = vector.shape_cast %653 : vector<16xf32> to vector<16x1xf32>
    %655 = vector.broadcast %654 : vector<16x1xf32> to vector<16x128xf32>
    %656 = arith.subf %652, %655 : vector<16x128xf32>
    %657 = math.exp %656 : vector<16x128xf32>
    %cst_238 = arith.constant dense<0.000000e+00> : vector<16xf32>
    %658 = vector.multi_reduction <add>, %657, %cst_238 [1] : vector<16x128xf32> to vector<16xf32>
    %659 = vector.shape_cast %658 : vector<16xf32> to vector<16x1xf32>
    %660 = math.log %659 : vector<16x1xf32>
    %661 = vector.broadcast %660 : vector<16x1xf32> to vector<16x128xf32>
    %662 = arith.subf %656, %661 : vector<16x128xf32>
    %663 = vector.shape_cast %662 : vector<16x128xf32> to vector<2x8x128xf32>
    %c0_239 = arith.constant 0 : index
    %c0_240 = arith.constant 0 : index
    %c0_241 = arith.constant 0 : index
    %c0_242 = arith.constant 0 : index
    %664 = vector.load %arg18[%c0_239, %c0_240, %c0_241, %c0_242] : memref<1x2x8x128xf32, #tpu.memory_space<vmem>>, vector<1x2x8x128xf32>
    %665 = vector.shape_cast %664 : vector<1x2x8x128xf32> to vector<2x8x128xf32>
    %666 = vector.shape_cast %663 : vector<2x8x128xf32> to vector<1x2x8x128xf32>
    tpu.vector_store %arg18[%c0_239, %c0_240, %c0_241, %c0_242], %666 {strides = array<i32>} : memref<1x2x8x128xf32, #tpu.memory_space<vmem>>, vector<1x2x8x128xf32>,
    return
  }
  func.func @transform_0(%arg0: i32) -> (i32, i32, i32, i32) {
    %c0_i32 = arith.constant 0 : i32
    %c0_i32_0 = arith.constant 0 : i32
    %c0_i32_1 = arith.constant 0 : i32
    %c0_i32_2 = arith.constant 0 : i32
    return %arg0, %c0_i32, %c0_i32_0, %c0_i32_1 : i32, i32, i32, i32
  }
  func.func @transform_1(%arg0: i32) -> (i32, i32, i32, i32) {
    %c0_i32 = arith.constant 0 : i32
    %c0_i32_0 = arith.constant 0 : i32
    %c0_i32_1 = arith.constant 0 : i32
    %c0_i32_2 = arith.constant 0 : i32
    return %arg0, %c0_i32, %c0_i32_0, %c0_i32_1 : i32, i32, i32, i32
  }
  func.func @transform_2(%arg0: i32) -> (i32, i32, i32, i32) {
    %c0_i32 = arith.constant 0 : i32
    %c0_i32_0 = arith.constant 0 : i32
    %c0_i32_1 = arith.constant 0 : i32
    %c0_i32_2 = arith.constant 0 : i32
    return %arg0, %c0_i32, %c0_i32_0, %c0_i32_1 : i32, i32, i32, i32
  }
  func.func @transform_3(%arg0: i32) -> (i32, i32, i32) {
    %c0_i32 = arith.constant 0 : i32
    %c0_i32_0 = arith.constant 0 : i32
    %c0_i32_1 = arith.constant 0 : i32
    return %arg0, %c0_i32, %c0_i32_0 : i32, i32, i32
  }
  func.func @transform_4(%arg0: i32) -> (i32, i32, i32) {
    %c0_i32 = arith.constant 0 : i32
    %c0_i32_0 = arith.constant 0 : i32
    %c0_i32_1 = arith.constant 0 : i32
    return %arg0, %c0_i32, %c0_i32_0 : i32, i32, i32
  }
  func.func @transform_5(%arg0: i32) -> (i32, i32, i32) {
    %c0_i32 = arith.constant 0 : i32
    %c0_i32_0 = arith.constant 0 : i32
    %c0_i32_1 = arith.constant 0 : i32
    return %arg0, %c0_i32, %c0_i32_0 : i32, i32, i32
  }
  func.func @transform_6(%arg0: i32) -> (i32, i32, i32) {
    %c0_i32 = arith.constant 0 : i32
    %c0_i32_0 = arith.constant 0 : i32
    %c0_i32_1 = arith.constant 0 : i32
    return %arg0, %c0_i32, %c0_i32_0 : i32, i32, i32
  }
  func.func @transform_7(%arg0: i32) -> (i32, i32, i32) {
    %c0_i32 = arith.constant 0 : i32
    %c0_i32_0 = arith.constant 0 : i32
    %c0_i32_1 = arith.constant 0 : i32
    return %arg0, %c0_i32, %c0_i32_0 : i32, i32, i32
  }
  func.func @transform_8(%arg0: i32) -> (i32, i32, i32) {
    %c0_i32 = arith.constant 0 : i32
    %c0_i32_0 = arith.constant 0 : i32
    %c0_i32_1 = arith.constant 0 : i32
    return %arg0, %c0_i32, %c0_i32_0 : i32, i32, i32
  }
  func.func @transform_9(%arg0: i32) -> (i32, i32, i32) {
    %c0_i32 = arith.constant 0 : i32
    %c0_i32_0 = arith.constant 0 : i32
    %c0_i32_1 = arith.constant 0 : i32
    return %arg0, %c0_i32, %c0_i32_0 : i32, i32, i32
  }
  func.func @transform_10(%arg0: i32) -> (i32, i32, i32) {
    %c0_i32 = arith.constant 0 : i32
    %c0_i32_0 = arith.constant 0 : i32
    %c0_i32_1 = arith.constant 0 : i32
    return %arg0, %c0_i32, %c0_i32_0 : i32, i32, i32
  }
  func.func @transform_11(%arg0: i32) -> (i32, i32, i32) {
    %c0_i32 = arith.constant 0 : i32
    %c0_i32_0 = arith.constant 0 : i32
    %c0_i32_1 = arith.constant 0 : i32
    return %arg0, %c0_i32, %c0_i32_0 : i32, i32, i32
  }
  func.func @transform_12(%arg0: i32) -> (i32, i32, i32) {
    %c0_i32 = arith.constant 0 : i32
    %c0_i32_0 = arith.constant 0 : i32
    %c0_i32_1 = arith.constant 0 : i32
    return %arg0, %c0_i32, %c0_i32_0 : i32, i32, i32
  }
  func.func @transform_13(%arg0: i32) -> (i32, i32, i32) {
    %c0_i32 = arith.constant 0 : i32
    %c0_i32_0 = arith.constant 0 : i32
    %c0_i32_1 = arith.constant 0 : i32
    return %arg0, %c0_i32, %c0_i32_0 : i32, i32, i32
  }
  func.func @transform_14(%arg0: i32) -> (i32, i32, i32) {
    %c0_i32 = arith.constant 0 : i32
    %c0_i32_0 = arith.constant 0 : i32
    %c0_i32_1 = arith.constant 0 : i32
    return %arg0, %c0_i32, %c0_i32_0 : i32, i32, i32
  }
  func.func @transform_15(%arg0: i32) -> (i32, i32) {
    %c0_i32 = arith.constant 0 : i32
    %c0_i32_0 = arith.constant 0 : i32
    %c0_i32_1 = arith.constant 0 : i32
    return %c0_i32, %c0_i32_0 : i32, i32
  }
  func.func @transform_16(%arg0: i32) -> (i32, i32) {
    %c0_i32 = arith.constant 0 : i32
    %c0_i32_0 = arith.constant 0 : i32
    %c0_i32_1 = arith.constant 0 : i32
    return %c0_i32, %c0_i32_0 : i32, i32
  }
  func.func @transform_17(%arg0: i32) -> (i32, i32, i32, i32) {
    %c0_i32 = arith.constant 0 : i32
    %c0_i32_0 = arith.constant 0 : i32
    %c0_i32_1 = arith.constant 0 : i32
    %c0_i32_2 = arith.constant 0 : i32
    return %arg0, %c0_i32, %c0_i32_0, %c0_i32_1 : i32, i32, i32, i32
  }
  func.func @transform_18(%arg0: i32) -> (i32, i32, i32, i32) {
    %c0_i32 = arith.constant 0 : i32
    %c0_i32_0 = arith.constant 0 : i32
    %c0_i32_1 = arith.constant 0 : i32
    %c0_i32_2 = arith.constant 0 : i32
    return %arg0, %c0_i32, %c0_i32_0, %c0_i32_1 : i32, i32, i32, i32
  }
}

</mosaic_0001>

<bundles_post_ra>
// kernel: model_v2_forward.2
= control target key start
LH: loop header
LB: loop body
LE: loop exit
PB: predicated region body
PF: predicated region fallthrough
CT: control target
= control target key end

     0   :  { %vm57_vm0 = vcmask 261120   ;;  %v1088_v0 = vmov 0.0   ;;  %vm1089_vm1 = vmmov 0   ;;  %v1090_v10 = vmov 1983009808   ;;  %s1094_s18 = smov 80   ;;  %s1462_s1 = inlined_call_operand.vmem [shape: f32[64,32], index: 1, kind: input, shape index: {}]   ;;  %s1463_s4 = inlined_call_operand.vmem [shape: f32[64,32], index: 4, kind: input, shape index: {}]   ;;  %s1464_s0 = inlined_call_operand.vmem [shape: f32[2,2,32], index: 0, kind: input, shape index: {}]   ;;  %s1465_s2 = inlined_call_operand.vmem [shape: f32[64,16], index: 2, kind: input, shape index: {}]   ;;  %s1466_s5 = inlined_call_operand.vmem [shape: f32[64,16], index: 5, kind: input, shape index: {}]   ;;  %s1467_s3 = inlined_call_operand.vmem [shape: f32[1,64], index: 3, kind: input, shape index: {}]   ;;  %s1468_s6 = inlined_call_operand.vmem [shape: f32[1,64], index: 6, kind: input, shape index: {}]   ;;  %s1469_s9 = inlined_call_operand.vmem [shape: f32[2,16], index: 9, kind: output, shape index: {2}]   ;;  %s1470_s10 = inlined_call_operand.vmem [shape: f32[2,16], index: 10, kind: output, shape index: {3}]   ;;  %s1471_s7 = inlined_call_operand.vmem [shape: f32[2,16], index: 7, kind: output, shape index: {0}]   ;;  %s1472_s8 = inlined_call_operand.vmem [shape: f32[2,16], index: 8, kind: output, shape index: {1}]  }
   0x1   :  { %934 = vmatprep.subr.mxu0 %v1088_v0  ;;  %v39_v1 = vld [vmem:[%s1462_s1 + $0x38] sm:$0xff]  ;;  %950 = vmatprep.mubr.msk.f32.mxu0 %vm1089_vm1, %v1088_v0  ;;  %v38_v2 = vld [vmem:[%s1462_s1 + $0x30] sm:$0xff]  ;;  %v37_v4 = vld [vmem:[%s1462_s1 + $0x28] sm:$0xff]  ;;  %v51_v11 = vunpack.c.l.s4 %v1090_v10  ;;  %v53_v12 = vlaneseq  ;;  %vm301_vm2 = vcmask 130048   ;;  %s1095_s19 = smov 112   ;;  %vm542_vm3 = vcmask 123904  }
   0x2   :  { %935 = vmatpush3.xpose.msk.msra.mxu0 %vm57_vm0, %v39_v1  ;;  %953 = vmatprep.subr.mxu1 %v1088_v0  ;;  %v172_v3 = vld [vmem:[%s1463_s4 + $0x38] sm:$0xff]  ;;  %v171_v5 = vld [vmem:[%s1463_s4 + $0x30] sm:$0xff]  ;;  %v36_v6 = vld [vmem:[%s1462_s1 + $0x20] sm:$0xff] }
   0x3   :  { %936 = vmatprep.subr.mxu0 %v1088_v0  ;;  %969 = vmatprep.mubr.msk.f32.mxu1 %vm1089_vm1, %v1088_v0  ;;  %v170_v7 = vld [vmem:[%s1463_s4 + $0x28] sm:$0xff]  ;;  %v35_v8 = vld [vmem:[%s1462_s1 + $0x18] sm:$0xff]  ;;  %v169_v9 = vld [vmem:[%s1463_s4 + $0x20] sm:$0xff]  ;;  %v52_v15 = vunpack.c.0.s8 %v51_v11  ;;  %v54_v16 = vshrl.u32 %v53_v12, 7 }
   0x4   :  { %954 = vmatpush3.xpose.msk.msra.mxu1 %vm57_vm0, %v172_v3  ;;  %v34_v13 = vld [vmem:[%s1462_s1 + $0x10] sm:$0xff]  ;;  %v168_v14 = vld [vmem:[%s1463_s4 + $0x18] sm:$0xff]  ;;  %v30_v17 = vld [vmem:[%s1464_s0] sm:$0x3] }
   0x5   :  { %955 = vmatprep.subr.mxu1 %v1088_v0  ;;  %v31_v18 = vld [vmem:[%s1464_s0 + $0x2] sm:$0x3]  ;;  %v33_v19 = vld [vmem:[%s1462_s1 + $0x8] sm:$0xff]  ;;  %v167_v20 = vld [vmem:[%s1463_s4 + $0x10] sm:$0xff]  ;;  %v1224_v22 = vsub.s32 %v52_v15, %v54_v16 }
   0x6   :  { %937 = vmatpush3.xpose.msk.msra.mxu0 %vm57_vm0, %v38_v2  ;;  %v49_v21 = vcombine.low %v30_v17, %v31_v18  ;;  %v32_v23 = vld [vmem:[%s1462_s1] sm:$0xff]  ;;  %v166_v24 = vld [vmem:[%s1463_s4 + $0x8] sm:$0xff]  ;;  %v292_v26 = vld [vmem:[%s1465_s2 + $0x38] sm:$0xff] }
   0x7   :  { %938 = vmatprep.subr.mxu0 %v1088_v0  ;;  %v165_v27 = vld [vmem:[%s1463_s4] sm:$0xff]  ;;  %v291_v28 = vld [vmem:[%s1465_s2 + $0x30] sm:$0xff]  ;;  %v290_v29 = vld [vmem:[%s1465_s2 + $0x28] sm:$0xff] }
   0x8   :  { %956 = vmatpush3.xpose.msk.msra.mxu1 %vm57_vm0, %v171_v5  ;;  %v56_v25 = vrot.slane %v49_v21, %v1224_v22  ;;  %v289_v30 = vld [vmem:[%s1465_s2 + $0x20] sm:$0xff]  ;;  %v288_v31 = vld [vmem:[%s1465_s2 + $0x18] sm:$0xff]  ;;  %v287_v32 = vld [vmem:[%s1465_s2 + $0x10] sm:$0xff] }
   0x9   :  { %957 = vmatprep.subr.mxu1 %v1088_v0  ;;  %v286_v33 = vld [vmem:[%s1465_s2 + $0x8] sm:$0xff]  ;;  %v285_v34 = vld [vmem:[%s1465_s2] sm:$0xff]  ;;  %v1307_v35 = vld [vmem:[%s1466_s5 + $0x38] sm:$0xff] }
   0xa   :  { %939 = vmatpush3.xpose.msk.msra.mxu0 %vm57_vm0, %v37_v4  ;;  %v1320_v36 = vld [vmem:[%s1466_s5 + $0x30] sm:$0xff]  ;;  %v1330_v37 = vld [vmem:[%s1466_s5 + $0x28] sm:$0xff]  ;;  %v1338_v38 = vld [vmem:[%s1466_s5 + $0x20] sm:$0xff] }
   0xb   :  { %940 = vmatprep.subr.mxu0 %v1088_v0  ;;  %v1346_v39 = vld [vmem:[%s1466_s5 + $0x18] sm:$0xff]  ;;  %v1354_v40 = vld [vmem:[%s1466_s5 + $0x10] sm:$0xff]  ;;  %v1362_v41 = vld [vmem:[%s1466_s5 + $0x8] sm:$0xff] }
   0xc   :  { %958 = vmatpush3.xpose.msk.msra.mxu1 %vm57_vm0, %v170_v7  ;;  %v1370_v42 = vld [vmem:[%s1466_s5] sm:$0xff]  ;;  %s1091_s5 = smov 96  }
   0xd   :  { %959 = vmatprep.subr.mxu1 %v1088_v0  ;;  %v822_v47 = vld [vmem:[%s1467_s3] ss:$0 sm:$0xff]  ;;  %s1092_s3 = smov 16  }
   0xe   :  { %941 = vmatpush3.xpose.msk.msra.mxu0 %vm57_vm0, %v36_v6  ;;  %v832_v54 = vld [vmem:[%s1468_s6] ss:$0 sm:$0xff]  ;;  %s1093_s6 = smov 32  }
   0xf   :  { %942 = vmatprep.subr.mxu0 %v1088_v0 }
  0x10   :  { %960 = vmatpush3.xpose.msk.msra.mxu1 %vm57_vm0, %v169_v9 }
  0x11   :  { %961 = vmatprep.subr.mxu1 %v1088_v0 }
  0x12   :  { %943 = vmatpush3.xpose.msk.msra.mxu0 %vm57_vm0, %v35_v8 }
  0x13   :  { %944 = vmatprep.subr.mxu0 %v1088_v0 }
  0x14   :  { %962 = vmatpush3.xpose.msk.msra.mxu1 %vm57_vm0, %v168_v14 }
  0x15   :  { %963 = vmatprep.subr.mxu1 %v1088_v0 }
  0x16   :  { %945 = vmatpush3.xpose.msk.msra.mxu0 %vm57_vm0, %v34_v13 }
  0x17   :  { %946 = vmatprep.subr.mxu0 %v1088_v0 }
  0x18   :  { %964 = vmatpush3.xpose.msk.msra.mxu1 %vm57_vm0, %v167_v20 }
  0x19   :  { %965 = vmatprep.subr.mxu1 %v1088_v0 }
  0x1a   :  { %947 = vmatpush3.xpose.msk.msra.mxu0 %vm57_vm0, %v33_v19 }
  0x1b   :  { %948 = vmatprep.subr.mxu0 %v1088_v0 }
  0x1c   :  { %966 = vmatpush3.xpose.msk.msra.mxu1 %vm57_vm0, %v166_v24 }
  0x1d   :  { %967 = vmatprep.subr.mxu1 %v1088_v0 }
  0x1e   :  { %949 = vmatpush3.xpose.msk.msra.mxu0 %vm57_vm0, %v32_v23 }
  0x1f   :  { %972 = vmatprep.subr.mxu0 %v1088_v0 }
  0x20   :  { %968 = vmatpush3.xpose.msk.msra.mxu1 %vm57_vm0, %v165_v27 }
  0x21   :  { %951 = vmatmul.mubr.msk.f32.vlgmr.msra.gmra.mxu0 %vm57_vm0, %v56_v25  ;;  %991 = vmatprep.subr.mxu1 %v1088_v0 }
  0x22   :  { %973 = vmatpush3.xpose.msk.msra.mxu0 %vm301_vm2, %v292_v26  ;;  %988 = vmatprep.mubr.msk.f32.mxu0 %vm1089_vm1, %v1088_v0 }
  0x23   :  { %974 = vmatprep.subr.mxu0 %v1088_v0  ;;  %970 = vmatmul.mubr.msk.f32.vlgmr.msra.gmra.mxu1 %vm57_vm0, %v56_v25 }
  0x24   :  { %992 = vmatpush3.xpose.msk.msra.mxu1 %vm301_vm2, %v292_v26  ;;  %1007 = vmatprep.mubr.msk.f32.mxu1 %vm1089_vm1, %v1088_v0 }
  0x25   :  { %993 = vmatprep.subr.mxu1 %v1088_v0 }
  0x26   :  { %975 = vmatpush3.xpose.msk.msra.mxu0 %vm301_vm2, %v291_v28 }
  0x27   :  { %976 = vmatprep.subr.mxu0 %v1088_v0 }
  0x28   :  { %994 = vmatpush3.xpose.msk.msra.mxu1 %vm301_vm2, %v291_v28 }
  0x29   :  { %995 = vmatprep.subr.mxu1 %v1088_v0 }
  0x2a   :  { %977 = vmatpush3.xpose.msk.msra.mxu0 %vm301_vm2, %v290_v29 }
  0x2b   :  { %978 = vmatprep.subr.mxu0 %v1088_v0 }
  0x2c   :  { %996 = vmatpush3.xpose.msk.msra.mxu1 %vm301_vm2, %v290_v29 }
  0x2d   :  { %997 = vmatprep.subr.mxu1 %v1088_v0 }
  0x2e   :  { %979 = vmatpush3.xpose.msk.msra.mxu0 %vm301_vm2, %v289_v30 }
  0x2f   :  { %980 = vmatprep.subr.mxu0 %v1088_v0 }
  0x30   :  { %998 = vmatpush3.xpose.msk.msra.mxu1 %vm301_vm2, %v289_v30 }
  0x31   :  { %999 = vmatprep.subr.mxu1 %v1088_v0 }
  0x32   :  { %981 = vmatpush3.xpose.msk.msra.mxu0 %vm301_vm2, %v288_v31 }
  0x33   :  { %982 = vmatprep.subr.mxu0 %v1088_v0 }
  0x34   :  { %1000 = vmatpush3.xpose.msk.msra.mxu1 %vm301_vm2, %v288_v31 }
  0x35   :  { %1001 = vmatprep.subr.mxu1 %v1088_v0 }
  0x36   :  { %983 = vmatpush3.xpose.msk.msra.mxu0 %vm301_vm2, %v287_v32 }
  0x37   :  { %984 = vmatprep.subr.mxu0 %v1088_v0 }
  0x38   :  { %1002 = vmatpush3.xpose.msk.msra.mxu1 %vm301_vm2, %v287_v32 }
  0x39   :  { %1003 = vmatprep.subr.mxu1 %v1088_v0 }
  0x3a   :  { %985 = vmatpush3.xpose.msk.msra.mxu0 %vm301_vm2, %v286_v33 }
  0x3b   :  { %986 = vmatprep.subr.mxu0 %v1088_v0 }
  0x3c   :  { %1004 = vmatpush3.xpose.msk.msra.mxu1 %vm301_vm2, %v286_v33 }
  0x3d   :  { %1005 = vmatprep.subr.mxu1 %v1088_v0 }
  0x3e   :  { %987 = vmatpush3.xpose.msk.msra.mxu0 %vm301_vm2, %v285_v34 }
  0x3f   :  { %1010 = vmatprep.subr.mxu0 %v1088_v0 }
  0x40   :  { %1006 = vmatpush3.xpose.msk.msra.mxu1 %vm301_vm2, %v285_v34 }
  0x41   :  { %989 = vmatmul.mubr.f32.vlgmr.msra.gmra.mxu0 %v1088_v0  ;;  %1029 = vmatprep.subr.mxu1 %v1088_v0 }
  0x42   :  { %1011 = vmatpush3.xpose.msk.msra.mxu0 %vm301_vm2, %v1307_v35  ;;  %1026 = vmatprep.mubr.msk.f32.mxu0 %vm1089_vm1, %v1088_v0 }
  0x43   :  { %1012 = vmatprep.subr.mxu0 %v1088_v0 }
  0x46   :  { %1013 = vmatpush3.xpose.msk.msra.mxu0 %vm301_vm2, %v1320_v36 }
  0x47   :  { %1014 = vmatprep.subr.mxu0 %v1088_v0 }
  0x4a   :  { %1015 = vmatpush3.xpose.msk.msra.mxu0 %vm301_vm2, %v1330_v37 }
  0x4b   :  { %1016 = vmatprep.subr.mxu0 %v1088_v0 }
  0x4e   :  { %1017 = vmatpush3.xpose.msk.msra.mxu0 %vm301_vm2, %v1338_v38 }
  0x4f   :  { %1018 = vmatprep.subr.mxu0 %v1088_v0 }
  0x52   :  { %1019 = vmatpush3.xpose.msk.msra.mxu0 %vm301_vm2, %v1346_v39 }
  0x53   :  { %1020 = vmatprep.subr.mxu0 %v1088_v0 }
  0x56   :  { %1021 = vmatpush3.xpose.msk.msra.mxu0 %vm301_vm2, %v1354_v40 }
  0x57   :  { %1022 = vmatprep.subr.mxu0 %v1088_v0 }
  0x5a   :  { %1023 = vmatpush3.xpose.msk.msra.mxu0 %vm301_vm2, %v1362_v41 }
  0x5b   :  { %1024 = vmatprep.subr.mxu0 %v1088_v0 }
  0x5e   :  { %1025 = vmatpush3.xpose.msk.msra.mxu0 %vm301_vm2, %v1370_v42 }
  0x61   :  { %1027 = vmatmul.mubr.f32.vlgmr.msra.gmra.mxu0 %v1088_v0 }
  0xe1   :  { %v150_v43 = vpop.f32.mrf.mxu0 }
  0xe2   :  { %v151_v48 = vadd.f32 %v822_v47, %v150_v43 }
  0xe3   :  { %v952_v44 = vpop.f32.mrf.mxu0  ;;  %v270_v45 = vpop.f32.mrf.mxu1 }
  0xe4   :  { %v1379_v49 = vrot.slane %v151_v48, %v1224_v22  ;;  %v271_v55 = vadd.f32 %v832_v54, %v270_v45 }
  0xe5   :  { %v971_v46 = vpop.f32.mrf.mxu1 }
  0xe6   :  { %v1387_v56 = vrot.slane %v271_v55, %v1224_v22  ;;  %v162_v28 = vcombine.high %v1379_v49, %v1379_v49 }
  0xe8   :  { %v282_v57 = vcombine.high %v1387_v56, %v1387_v56 }
 0x101   :  { %v395_v50 = vpop.f32.mrf.mxu0 }
 0x102   :  { %v399_v51 = vadd.f32 %v395_v50, %v1379_v49 }
 0x103   :  { %v990_v52 = vpop.f32.mrf.mxu0 }
 0x104   :  { %1056 = vtanh.f32 %v399_v51  ;;  %v850_v62 = vmul.f32 -1.442695, %v399_v51 }
 0x111   :  { %v1057_v53 = vpop.eup %1056 }
 0x112   :  { %409 = vrot.lane.b32.xlu0 %v1057_v53, %s1091_s5 }
 0x121   :  { %v646_v58 = vpop.f32.mrf.mxu0 }
 0x122   :  { %v650_v59 = vadd.f32 %v646_v58, %v282_v57 }
 0x123   :  { %v1028_v60 = vpop.f32.mrf.mxu0 }
 0x124   :  { %1058 = vtanh.f32 %v650_v59  ;;  %v869_v2 = vmul.f32 -1.442695, %v650_v59 }
 0x125   :  { %1060 = vpow2.f32 %v850_v62 }
 0x131   :  { %v1059_v61 = vpop.eup %1058 }
 0x132   :  { %660 = vrot.lane.b32.xlu0 %v1059_v61, %s1091_s5  ;;  %v1061_v63 = vpop.eup %1060 }
 0x133   :  { %v403_v1 = vadd.f32 1.0, %v1061_v63 }
 0x135   :  { %1062 = vrcp.f32 %v403_v1 }
 0x136   :  { %1064 = vpow2.f32 %v869_v2 }
 0x142   :  { %v1063_v3 = vpop.eup %1062 }
 0x143   :  { %v1065_v6 = vpop.eup %1064  ;;  %v407_v11 = vmul.f32 0.0, %v1063_v3 }
 0x144   :  { %v654_v7 = vadd.f32 1.0, %v1065_v6 }
 0x146   :  { %1066 = vrcp.f32 %v654_v7 }
 0x153   :  { %v1067_v8 = vpop.eup %1066 }
 0x154   :  { %v658_v15 = vmul.f32 0.0, %v1067_v8 }
 0x184   :  { %v410_v4 = vpop.permute.xlu0 %409 }
 0x185   :  { %v412_v5 = vmul.f32 %v1063_v3, %v410_v4 }
 0x187   :  { %414 = vrot.lane.b32.xlu1 %v412_v5, %s1092_s3 }
 0x1a4   :  { %v661_v9 = vpop.permute.xlu0 %660 }
 0x1a5   :  { %v663_v10 = vmul.f32 %v1067_v8, %v661_v9 }
 0x1a7   :  { %665 = vrot.lane.b32.xlu1 %v663_v10, %s1092_s3 }
 0x1f9   :  { %v415_v12 = vpop.permute.xlu1 %414 }
 0x1fa   :  { %v1394_v13 = vadd.f32 %v415_v12, %v407_v11 }
 0x1fc   :  { %1068 = vtanh.f32 %v1394_v13 }
 0x209   :  { %v1069_v14 = vpop.eup %1068 }
 0x20a   :  { %420 = vrot.lane.b32.xlu0 %v1069_v14, %s1093_s6 }
 0x219   :  { %v666_v16 = vpop.permute.xlu1 %665 }
 0x21a   :  { %v1398_v17 = vadd.f32 %v666_v16, %v658_v15 }
 0x21c   :  { %1070 = vtanh.f32 %v1398_v17 }
 0x229   :  { %v1071_v18 = vpop.eup %1070 }
 0x22a   :  { %671 = vrot.lane.b32.xlu1 %v1071_v18, %s1093_s6 }
 0x27c   :  { %v421_v19 = vpop.permute.xlu0 %420 }
 0x27d   :  { %v423_v20 = vmul.f32 %v1063_v3, %v421_v19 }
 0x27f   :  { %v431_v21 = vrot.slane %v423_v20, %v1224_v22 }
 0x281   :  { %432 = vrot.lane.b32.xlu0 %v431_v21, %s1094_s18 }
 0x29c   :  { %v672_v23 = vpop.permute.xlu1 %671 }
 0x29d   :  { %v674_v24 = vmul.f32 %v1067_v8, %v672_v23 }
 0x29f   :  { %v682_v25 = vrot.slane %v674_v24, %v1224_v22 }
 0x2a1   :  { %683 = vrot.lane.b32.xlu1 %v682_v25, %s1094_s18 }
 0x2f3   :  { %v433_v26 = vpop.permute.xlu0 %432 }
 0x2f4   :  { %1008 = vmatmul.mubr.msk.f32.vlgmr.msra.gmra.mxu1 %vm301_vm2, %v433_v26 }
 0x2f5   :  { %1030 = vmatpush3.xpose.msk.msra.mxu1 %vm301_vm2, %v1307_v35  ;;  %1045 = vmatprep.mubr.msk.f32.mxu1 %vm1089_vm1, %v1088_v0 }
 0x2f6   :  { %1031 = vmatprep.subr.mxu1 %v1088_v0 }
 0x2f9   :  { %1032 = vmatpush3.xpose.msk.msra.mxu1 %vm301_vm2, %v1320_v36 }
 0x2fa   :  { %1033 = vmatprep.subr.mxu1 %v1088_v0 }
 0x2fd   :  { %1034 = vmatpush3.xpose.msk.msra.mxu1 %vm301_vm2, %v1330_v37 }
 0x2fe   :  { %1035 = vmatprep.subr.mxu1 %v1088_v0 }
 0x301   :  { %1036 = vmatpush3.xpose.msk.msra.mxu1 %vm301_vm2, %v1338_v38 }
 0x302   :  { %1037 = vmatprep.subr.mxu1 %v1088_v0 }
 0x305   :  { %1038 = vmatpush3.xpose.msk.msra.mxu1 %vm301_vm2, %v1346_v39 }
 0x306   :  { %1039 = vmatprep.subr.mxu1 %v1088_v0 }
 0x309   :  { %1040 = vmatpush3.xpose.msk.msra.mxu1 %vm301_vm2, %v1354_v40 }
 0x30a   :  { %1041 = vmatprep.subr.mxu1 %v1088_v0 }
 0x30d   :  { %1042 = vmatpush3.xpose.msk.msra.mxu1 %vm301_vm2, %v1362_v41 }
 0x30e   :  { %1043 = vmatprep.subr.mxu1 %v1088_v0 }
 0x311   :  { %1044 = vmatpush3.xpose.msk.msra.mxu1 %vm301_vm2, %v1370_v42 }
 0x313   :  { %v684_v27 = vpop.permute.xlu1 %683 }
 0x314   :  { %1046 = vmatmul.mubr.msk.f32.vlgmr.msra.gmra.mxu1 %vm301_vm2, %v684_v27 }
 0x3b4   :  { %v502_v29 = vpop.f32.mrf.mxu1 }
 0x3b5   :  { %v506_v30 = vadd.f32 %v502_v29, %v162_v28 }
 0x3b6   :  { %v1009_v31 = vpop.f32.mrf.mxu1 }
 0x3b7   :  { %1072 = vtanh.f32 %v506_v30  ;;  %v860_v36 = vmul.f32 -1.442695, %v506_v30 }
 0x3c4   :  { %v1073_v32 = vpop.eup %1072 }
 0x3c5   :  { %516 = vrot.lane.b32.xlu0 %v1073_v32, %s1091_s5 }
 0x3d4   :  { %v753_v33 = vpop.f32.mrf.mxu1 }
 0x3d5   :  { %v757_v34 = vadd.f32 %v753_v33, %v1387_v56 }
 0x3d6   :  { %v1047_v0 = vpop.f32.mrf.mxu1 }
 0x3d7   :  { %1074 = vtanh.f32 %v757_v34  ;;  %v879_v39 = vmul.f32 -1.442695, %v757_v34 }
 0x3d8   :  { %1076 = vpow2.f32 %v860_v36 }
 0x3e4   :  { %v1075_v35 = vpop.eup %1074 }
 0x3e5   :  { %767 = vrot.lane.b32.xlu1 %v1075_v35, %s1091_s5  ;;  %v1077_v37 = vpop.eup %1076 }
 0x3e6   :  { %v510_v38 = vadd.f32 1.0, %v1077_v37 }
 0x3e8   :  { %1078 = vrcp.f32 %v510_v38 }
 0x3e9   :  { %1080 = vpow2.f32 %v879_v39 }
 0x3f5   :  { %v1079_v40 = vpop.eup %1078 }
 0x3f6   :  { %v1081_v43 = vpop.eup %1080  ;;  %v514_v48 = vmul.f32 %v1079_v40, %v1394_v13 }
 0x3f7   :  { %v761_v44 = vadd.f32 1.0, %v1081_v43 }
 0x3f9   :  { %1082 = vrcp.f32 %v761_v44 }
 0x406   :  { %v1083_v45 = vpop.eup %1082 }
 0x407   :  { %v765_v52 = vmul.f32 %v1083_v45, %v1398_v17 }
 0x437   :  { %v517_v41 = vpop.permute.xlu0 %516 }
 0x438   :  { %v519_v42 = vmul.f32 %v1079_v40, %v517_v41 }
 0x43a   :  { %521 = vrot.lane.b32.xlu0 %v519_v42, %s1092_s3 }
 0x457   :  { %v768_v46 = vpop.permute.xlu1 %767 }
 0x458   :  { %v770_v47 = vmul.f32 %v1083_v45, %v768_v46 }
 0x45a   :  { %772 = vrot.lane.b32.xlu1 %v770_v47, %s1092_s3 }
 0x4ac   :  { %v522_v49 = vpop.permute.xlu0 %521 }
 0x4ad   :  { %v524_v50 = vadd.f32 %v522_v49, %v514_v48 }
 0x4af   :  { %1084 = vtanh.f32 %v524_v50  ;;  %v551_v56 = vrot.slane %v524_v50, %v1224_v22 }
 0x4bc   :  { %v1085_v51 = vpop.eup %1084 }
 0x4bd   :  { %527 = vrot.lane.b32.xlu0 %v1085_v51, %s1093_s6 }
 0x4cc   :  { %v773_v53 = vpop.permute.xlu1 %772 }
 0x4cd   :  { %v775_v54 = vadd.f32 %v773_v53, %v765_v52 }
 0x4cf   :  { %1086 = vtanh.f32 %v775_v54  ;;  %v801_v57 = vrot.slane %v775_v54, %v1224_v22 }
 0x4dc   :  { %v1087_v55 = vpop.eup %1086 }
 0x4dd   :  { %778 = vrot.lane.b32.xlu1 %v1087_v55, %s1093_s6 }
 0x4e1   :  { %552 = vrot.lane.b32.xlu1 %v551_v56, %s1095_s19 }
 0x4e5   :  { %802 = vrot.lane.b32.xlu1 %v801_v57, %s1095_s19 }
 0x52f   :  { %v528_v58 = vpop.permute.xlu0 %527 }
 0x530   :  { %v530_v59 = vmul.f32 %v1079_v40, %v528_v58 }
 0x532   :  { %v538_v60 = vrot.slane %v530_v59, %v1224_v22 }
 0x534   :  { %539 = vrot.lane.b32.xlu0 %v538_v60, %s1094_s18 }
 0x54f   :  { %v779_v61 = vpop.permute.xlu1 %778 }
 0x550   :  { %v781_v62 = vmul.f32 %v1083_v45, %v779_v61 }
 0x552   :  { %v789_v63 = vrot.slane %v781_v62, %v1224_v22 }
 0x553   :  { %v553_v1 = vpop.permute.xlu1 %552 }
 0x554   :  { %555 = vst.msk [vmem:[%s1469_s9] sm:$0x3] %vm542_vm3, %v553_v1  ;;  %790 = vrot.lane.b32.xlu0 %v789_v63, %s1094_s18 }
 0x557   :  { %v803_v2 = vpop.permute.xlu1 %802 }
 0x558   :  { %805 = vst.msk [vmem:[%s1470_s10] sm:$0x3] %vm542_vm3, %v803_v2 }
 0x5a6   :  { %v540_v3 = vpop.permute.xlu0 %539 }
 0x5a7   :  { %543 = vst.msk [vmem:[%s1471_s7] sm:$0x3] %vm542_vm3, %v540_v3 }
 0x5c6   :  { %v791_v4 = vpop.permute.xlu0 %790 }
 0x5c7   :  { %793 = vst.msk [vmem:[%s1472_s8] sm:$0x3] %vm542_vm3, %v791_v4 }

// kernel: model_v2_forward.3
= control target key start
LH: loop header
LB: loop body
LE: loop exit
PB: predicated region body
PF: predicated region fallthrough
CT: control target
= control target key end

     0   :  { %s9042_s27 = smov 0   ;;  %s11804_s0 = inlined_call_operand.vmem [shape: f32[2,2,16,32], index: 0, kind: input, shape index: {}]   ;;  %s11805_s1 = inlined_call_operand.vmem [shape: f32[2,2,8,16], index: 1, kind: input, shape index: {}]   ;;  %s11806_s2 = inlined_call_operand.vmem [shape: f32[2,2,8,1], index: 2, kind: input, shape index: {}]   ;;  %s11807_s3 = inlined_call_operand.vmem [shape: f32[2,2,32], index: 3, kind: input, shape index: {}]   ;;  %s11808_s4 = inlined_call_operand.vmem [shape: f32[2,2,32], index: 4, kind: input, shape index: {}]   ;;  %s11809_s5 = inlined_call_operand.vmem [shape: f32[2,16,32], index: 5, kind: input, shape index: {}]   ;;  %s11810_s6 = inlined_call_operand.vmem [shape: f32[2,16,32], index: 6, kind: input, shape index: {}]   ;;  %s11811_s7 = inlined_call_operand.vmem [shape: f32[2,1,16], index: 7, kind: input, shape index: {}]   ;;  %s11812_s8 = inlined_call_operand.vmem [shape: f32[2,1,16], index: 8, kind: input, shape index: {}]   ;;  %s11813_s9 = inlined_call_operand.vmem [shape: f32[2,32,32], index: 9, kind: input, shape index: {}]   ;;  %s11814_s10 = inlined_call_operand.vmem [shape: f32[2,1,32], index: 10, kind: input, shape index: {}]   ;;  %s11815_s11 = inlined_call_operand.vmem [shape: f32[2,128,16], index: 11, kind: input, shape index: {}]   ;;  %s11816_s12 = inlined_call_operand.vmem [shape: f32[2,128,32], index: 12, kind: input, shape index: {}]   ;;  %s11817_s13 = inlined_call_operand.vmem [shape: f32[2,128,32], index: 13, kind: input, shape index: {}]   ;;  %s11818_s14 = inlined_call_operand.vmem [shape: f32[2,1,128], index: 14, kind: input, shape index: {}]   ;;  %s11819_s15 = inlined_call_operand.vmem [shape: f32[128,32], index: 15, kind: input, shape index: {}]   ;;  %s11820_s16 = inlined_call_operand.vmem [shape: f32[1,128], index: 16, kind: input, shape index: {}]   ;;  %s11821_s17 = inlined_call_operand.vmem [shape: f32[2,2,8,128], index: 17, kind: output, shape index: {0}]   ;;  %s11822_s18 = inlined_call_operand.vmem [shape: f32[2,2,8,16], index: 18, kind: output, shape index: {1}]  }
   0x1   :  { %11855 = sst [smem:[#allocation30_spill]] %s11804_s0 }
   0x2   :  { %11856 = sst [smem:[#allocation31_spill]] %s11805_s1 }
   0x3   :  { %11857 = sst [smem:[#allocation32_spill]] %s11806_s2 }
   0x4   :  { %11858 = sst [smem:[#allocation33_spill]] %s11807_s3 }
   0x5 LB: > { %s6926_s28 = sadd.s32 4294967295, %s8939_s27   ;;  %p6930_p0 = scmp.ge.s32.totalorder %s8939_s27, 1  ;;  %s8939_s27 = sphi %s9042_s27, %s29_s27  }
   0x6   : > { %p645_p1 = scmp.lt.s32.totalorder %s8939_s27, 3 }
   0x8   : > { %p646_p2 = pnand %p6930_p0, %p645_p1 }
   0xa   : > { %649 = sbr.rel (%p646_p2) target bundleno = 13840 (0x3610), region = 88 }
   0xf   : > { %p764_p3 = scmp.lt.s32.totalorder %s6926_s28, 1  ;;  %v11824_v0 = vmov 0.0   ;;  %vm8942_vm0 = vmmov 0   ;;  %vm852_vm1 = vcmask 261120   ;;  %s11859_s25 = sld [smem:[#allocation30_spill]]  ;;  %v1236_v12 = vlaneseq }
  0x10   : > { %7798 = vmatprep.subr.mxu0 %v11824_v0  ;;  %7802 = vmatprep.mubr.msk.f32.mxu0 %vm8942_vm0, %v11824_v0  ;;  %s11860_s3 = sld [smem:[#allocation33_spill]]  ;;  %v8943_v10 = vmov 1966171168   ;;  %vm981_vm2 = vcmask 130048   ;;  %vm1310_vm3 = vcmask 130112   ;;  %vm1321_vm4 = vcmask 1041409  }
  0x11   : > { %s11924_s28 = smov (!%p764_p3, %s6926_s28), 1  ;;  %v1234_v11 = vunpack.c.l.s4 %v8943_v10  ;;  %v9124_v14 = vshrl.u32 %v1236_v12, 7  ;;  %v1300_v51 = vand.u32 127, %v1236_v12  ;;  %vm1324_vm5 = vcmask 123904   ;;  %s11861_s20 = sld [smem:[#allocation31_spill]] }
  0x12   : > { %s9056_s29 = sshll.u32 %s11924_s28, 4  ;;  %s7364_s22 = sshll.u32 %s11924_s28, 5  ;;  %vm2528_vm6 = vcmask 254977   ;;  %vm3835_vm7 = vcmask 257027   ;;  %vm5143_vm8 = vcmask 259077   ;;  %vm1876_vm9 = vcmask 253952  }
  0x13   : > { %s791_s19 = scalar_lea.vmem %s11809_s5, %s9056_s29  ;;  %s9066_s21 = scalar_lea.vmem %s11810_s6, %s9056_s29  ;;  %v1235_v13 = vunpack.c.0.s8 %v1234_v11  ;;  %v9135_v19 = vsub.s32 0, %v9124_v14  ;;  %v1305_v52 = vadd.s32 4294967288, %v1300_v51  ;;  %v9174_v56 = vsub.s32 %v1300_v51, %v9124_v14 }
  0x14   : > { %v843_v1 = vld [vmem:[%s791_s19] sm:$0xff]  ;;  %v844_v2 = vld [vmem:[%s791_s19 + $0x8] sm:$0xff]  ;;  %s11823_s2 = sshll.u32 %s11924_s28, 1  ;;  %s799_s23 = scalar_lea.vmem %s11811_s7, %s11924_s28  ;;  %v8944_v11 = vmov 0   ;;  %v9185_v12 = vsub.s32 1, %v9124_v14  ;;  %vm3181_vm10 = vcmask 256002  }
  0x15   : > { %7753 = vmatprep.subr.msk.mxu1 %vm852_vm1, %v844_v2  ;;  %v9070_v3 = vld [vmem:[%s9066_s21 + $0x8] sm:$0xff]  ;;  %s9082_s26 = scalar_lea.vmem %s11859_s25, %s7364_s22  ;;  %v9087_v4 = vld [vmem:[%s9066_s21] sm:$0xff]  ;;  %v9127_v15 = vsub.s32 %v1235_v13, %v9124_v14  ;;  %s9144_s30 = scalar_lea.vmem %s11812_s8, %s11924_s28  ;;  %v9171_v54 = vsub.s32 %v1305_v52, %v9124_v14  ;;  %8552 = vset.pattern.permute.xlu0 %v8944_v11  ;;  %vm4489_vm11 = vcmask 258052   ;;  %vm5797_vm12 = vcmask 260102  }
  0x16   : > { %7799 = vmatpush3.xpose.msk.msra.mxu0 %vm852_vm1, %v9070_v3  ;;  %7754 = vmatpush3.xpose.msk.msra.mxu1 %vm852_vm1, %v844_v2  ;;  %v9090_v5 = vld [vmem:[%s9082_s26] sm:$0xff]  ;;  %s782_s19 = scalar_lea.vmem %s11860_s3, %s11823_s2  ;;  %v9105_v7 = vld [vmem:[%s9082_s26 + $0x8] sm:$0xff]  ;;  %v9108_v8 = vld [vmem:[%s9082_s26 + $0x10] sm:$0xff]  ;;  %s9202_s0 = sshll.u32 %s11924_s28, 7  ;;  %vm6451_vm13 = vcmask 261127   ;;  %vm1929_vm14 = vcmask 122880  }
  0x17   : > { %7800 = vmatprep.subr.mxu0 %v11824_v0  ;;  %7755 = vmatprep.subr.msk.mxu1 %vm852_vm1, %v843_v1  ;;  %v9102_v6 = vld [vmem:[%s782_s19] sm:$0x3]  ;;  %v9118_v9 = vld [vmem:[%s9082_s26 + $0x18] sm:$0xff]  ;;  %s9214_s2 = scalar_lea.vmem %s11815_s11, %s9202_s0  ;;  %s9324_s19 = scalar_lea.vmem %s11817_s13, %s9202_s0 }
  0x18   : > { %7757 = vmatprep.mubr.msk.f32.mxu1 %vm852_vm1, %v9090_v5  ;;  %v6955_v20 = vld [vmem:[%s799_s23] ss:$0 sm:$0xff]  ;;  %8551 = vset.pattern.permute.xlu1 %v8944_v11  ;;  %s9208_s23 = scalar_lea.vmem %s11861_s20, %s9056_s29  ;;  %s9270_s20 = scalar_lea.vmem %s11813_s9, %s7364_s22 }
  0x19   : > { %v9158_v36 = vld [vmem:[%s9144_s30] ss:$0 sm:$0xff]  ;;  %v957_v52 = vld [vmem:[%s9208_s23 + $0x8] sm:$0xff]  ;;  %s9598_s22 = scalar_lea.vmem %s11814_s10, %s11924_s28  ;;  %s828_s25 = scalar_lea.vmem %s11818_s14, %s11924_s28 }
  0x1a   : > { %7801 = vmatpush3.xpose.msk.msra.mxu0 %vm852_vm1, %v9087_v4  ;;  %7756 = vmatpush3.xpose.msk.msra.mxu1 %vm852_vm1, %v843_v1  ;;  %v958_v51 = vld [vmem:[%s9214_s2] sm:$0xff]  ;;  %s8946_s3 = smov 32  }
  0x1b   : > { %7816 = vmatprep.subr.mxu0 %v11824_v0 }
  0x1d   : > { %7803 = vmatmul.mubr.msk.f32.vlgmr.msra.gmra.mxu0 %vm852_vm1, %v9102_v6  ;;  %7758 = vmatmul.mubr.msk.f32.vlgmr.msra.gmra.mxu1 %vm852_vm1, %v9105_v7 }
  0x1e   : > { %7760 = vmatprep.mubr.msk.f32.mxu1 %vm852_vm1, %v9108_v8  ;;  %7848 = vmatprep.mubr.msk.f32.mxu0 %vm8942_vm0, %v11824_v0 }
  0x21   : > { %7761 = vmatmul.mubr.msk.f32.gmra.mxu1 %vm852_vm1, %v9118_v9 }
  0xdd   : > { %v1228_v16 = vpop.f32.mrf.mxu0  ;;  %v7759_v17 = vpop.f32.mrf.mxu1 }
  0xde   : > { %v1239_v18 = vrot.slane %v1228_v16, %v9127_v15  ;;  %v9148_v29 = vadd.f32 %v7759_v17, %v6955_v20 }
  0xdf   : > { %v7804_v21 = vpop.f32.mrf.mxu0  ;;  %v937_v22 = vpop.f32.mrf.mxu1 }
  0xe0   : > { %v1240_v23 = vcombine.high %v1239_v18, %v1239_v18  ;;  %v1247_v24 = vrot.slane %v1239_v18, %v9127_v15  ;;  %v9138_v25 = vadd.f32 %v6955_v20, %v937_v22 }
  0xe1   : > { %v7762_v26 = vpop.f32.mrf.mxu1 }
  0xe2   : > { %v1254_v27 = vrot.slane %v1240_v23, %v9127_v15  ;;  %v1258_v28 = vrot.slane %v1247_v24, %v9135_v19  ;;  %v9150_v30 = vadd.f32 %v7762_v26, %v6955_v20 }
  0xe3   : > { %v947_v31 = vpop.f32.mrf.mxu1 }
  0xe4   : > { %v9152_v32 = vadd.f32 %v6955_v20, %v947_v31  ;;  %v1265_v33 = vadd.f32 %v1258_v28, %v9138_v25  ;;  %v1262_v34 = vrot.slane %v1254_v27, %v9135_v19  ;;  %v1266_v35 = vadd.f32 %v1258_v28, %v9148_v29 }
  0xe6   : > { %v1269_v37 = vmax.f32 %v1265_v33, 0.0  ;;  %v1267_v38 = vadd.f32 %v1262_v34, %v9152_v32  ;;  %v1270_v39 = vmax.f32 %v1266_v35, 0.0  ;;  %v1268_v40 = vadd.f32 %v1262_v34, %v9150_v30  ;;  %v956_v34 = vld [vmem:[%s9208_s23] sm:$0xff]  ;;  %v973_v35 = vld [vmem:[%s9214_s2 + $0x78] sm:$0xff]  ;;  %s9318_s23 = scalar_lea.vmem %s11816_s12, %s9202_s0  ;;  %s11869_s0 = sshll.u32 %s11924_s28, 1 }
  0xe7   : > { %7795 = vmatprep.mubr.msk.f32.mxu1 %vm981_vm2, %v956_v34  ;;  %7763 = vmatprep.subr.msk.mxu1 %vm981_vm2, %v973_v35  ;;  %v9375_v34 = vld [vmem:[%s9318_s23 + $0x58] sm:$0xff]  ;;  %s786_s24 = scalar_lea.vmem %s11808_s4, %s11869_s0 }
  0xe8   : > { %v1279_v41 = vmul.f32 %v9158_v36, %v1269_v37  ;;  %v1271_v42 = vmax.f32 %v1267_v38, 0.0  ;;  %v1272_v43 = vmax.f32 %v1268_v40, 0.0  ;;  %v1280_v46 = vmul.f32 %v9158_v36, %v1270_v39  ;;  %v972_v37 = vld [vmem:[%s9214_s2 + $0x70] sm:$0xff]  ;;  %7764 = vmatpush3.xpose.msk.msra.mxu1 %vm981_vm2, %v973_v35  ;;  %v971_v38 = vld [vmem:[%s9214_s2 + $0x68] sm:$0xff]  ;;  %v970_v39 = vld [vmem:[%s9214_s2 + $0x60] sm:$0xff] }
  0xe9   : > { %7765 = vmatprep.subr.msk.mxu1 %vm981_vm2, %v972_v37  ;;  %v969_v40 = vld [vmem:[%s9214_s2 + $0x58] sm:$0xff] }
  0xea   : > { %v1283_v44 = vsel %vm981_vm2, %v1279_v41, 0.0  ;;  %v1281_v45 = vmul.f32 %v9158_v36, %v1271_v42  ;;  %v1282_v48 = vmul.f32 %v9158_v36, %v1272_v43  ;;  %v1286_v49 = vsel %vm981_vm2, %v1280_v46, 0.0  ;;  %v968_v41 = vld [vmem:[%s9214_s2 + $0x50] sm:$0xff]  ;;  %v967_v42 = vld [vmem:[%s9214_s2 + $0x48] sm:$0xff]  ;;  %v966_v43 = vld [vmem:[%s9214_s2 + $0x40] sm:$0xff] }
  0xeb   : > { %1284 = vadd.xlane.f32.xlu0 %v1283_v44  ;;  %v965_v44 = vld [vmem:[%s9214_s2 + $0x38] sm:$0xff]  ;;  %v963_v46 = vld [vmem:[%s9214_s2 + $0x28] sm:$0xff] }
  0xec   : > { %v1289_v47 = vsel %vm981_vm2, %v1281_v45, 0.0  ;;  %v1292_v50 = vsel %vm981_vm2, %v1282_v48, 0.0  ;;  %7766 = vmatpush3.xpose.msk.msra.mxu1 %vm981_vm2, %v972_v37  ;;  %v964_v45 = vld [vmem:[%s9214_s2 + $0x30] sm:$0xff]  ;;  %v961_v48 = vld [vmem:[%s9214_s2 + $0x18] sm:$0xff] }
  0xed   : > { %1290 = vadd.xlane.f32.xlu1 %v1289_v47  ;;  %7767 = vmatprep.subr.msk.mxu1 %vm981_vm2, %v971_v38  ;;  %v962_v47 = vld [vmem:[%s9214_s2 + $0x20] sm:$0xff]  ;;  %v9378_v35 = vld [vmem:[%s9324_s19 + $0x58] sm:$0xff]  ;;  %v9387_v37 = vld [vmem:[%s9318_s23 + $0x50] sm:$0xff] }
  0xef   : > { %1287 = vadd.xlane.f32.xlu0 %v1286_v49  ;;  %v960_v49 = vld [vmem:[%s9214_s2 + $0x10] sm:$0xff] }
  0xf0   : > { %7768 = vmatpush3.xpose.msk.msra.mxu1 %vm981_vm2, %v971_v38  ;;  %v9390_v38 = vld [vmem:[%s9324_s19 + $0x50] sm:$0xff] }
  0xf1   : > { %1293 = vadd.xlane.f32.xlu1 %v1292_v50  ;;  %7769 = vmatprep.subr.msk.mxu1 %vm981_vm2, %v970_v39  ;;  %v959_v50 = vld [vmem:[%s9214_s2 + $0x8] sm:$0xff] }
  0xf4   : > { %7770 = vmatpush3.xpose.msk.msra.mxu1 %vm981_vm2, %v970_v39  ;;  %v9399_v39 = vld [vmem:[%s9318_s23 + $0x48] sm:$0xff] }
  0xf5   : > { %7771 = vmatprep.subr.msk.mxu1 %vm981_vm2, %v969_v40 }
  0xf8   : > { %7772 = vmatpush3.xpose.msk.msra.mxu1 %vm981_vm2, %v969_v40  ;;  %v9402_v40 = vld [vmem:[%s9324_s19 + $0x48] sm:$0xff] }
  0xf9   : > { %7773 = vmatprep.subr.msk.mxu1 %vm981_vm2, %v968_v41 }
  0xfc   : > { %7774 = vmatpush3.xpose.msk.msra.mxu1 %vm981_vm2, %v968_v41  ;;  %v9411_v41 = vld [vmem:[%s9318_s23 + $0x40] sm:$0xff] }
  0xfd   : > { %7775 = vmatprep.subr.msk.mxu1 %vm981_vm2, %v967_v42 }
 0x100   : > { %7776 = vmatpush3.xpose.msk.msra.mxu1 %vm981_vm2, %v967_v42  ;;  %v9414_v42 = vld [vmem:[%s9324_s19 + $0x40] sm:$0xff] }
 0x101   : > { %7777 = vmatprep.subr.msk.mxu1 %vm981_vm2, %v966_v43 }
 0x104   : > { %7778 = vmatpush3.xpose.msk.msra.mxu1 %vm981_vm2, %v966_v43 }
 0x105   : > { %7779 = vmatprep.subr.msk.mxu1 %vm981_vm2, %v965_v44 }
 0x108   : > { %7780 = vmatpush3.xpose.msk.msra.mxu1 %vm981_vm2, %v965_v44 }
 0x109   : > { %7781 = vmatprep.subr.msk.mxu1 %vm981_vm2, %v964_v45 }
 0x10c   : > { %7782 = vmatpush3.xpose.msk.msra.mxu1 %vm981_vm2, %v964_v45 }
 0x10d   : > { %7783 = vmatprep.subr.msk.mxu1 %vm981_vm2, %v963_v46 }
 0x110   : > { %7784 = vmatpush3.xpose.msk.msra.mxu1 %vm981_vm2, %v963_v46 }
 0x111   : > { %7785 = vmatprep.subr.msk.mxu1 %vm981_vm2, %v962_v47 }
 0x114   : > { %7786 = vmatpush3.xpose.msk.msra.mxu1 %vm981_vm2, %v962_v47 }
 0x115   : > { %7787 = vmatprep.subr.msk.mxu1 %vm981_vm2, %v961_v48 }
 0x118   : > { %7788 = vmatpush3.xpose.msk.msra.mxu1 %vm981_vm2, %v961_v48 }
 0x119   : > { %7789 = vmatprep.subr.msk.mxu1 %vm981_vm2, %v960_v49 }
 0x11c   : > { %7790 = vmatpush3.xpose.msk.msra.mxu1 %vm981_vm2, %v960_v49 }
 0x11d   : > { %7791 = vmatprep.subr.msk.mxu1 %vm981_vm2, %v959_v50 }
 0x120   : > { %7792 = vmatpush3.xpose.msk.msra.mxu1 %vm981_vm2, %v959_v50 }
 0x121   : > { %7793 = vmatprep.subr.msk.mxu1 %vm981_vm2, %v958_v51 }
 0x124   : > { %7794 = vmatpush3.xpose.msk.msra.mxu1 %vm981_vm2, %v958_v51  ;;  %v9433_v51 = vld [vmem:[%s9318_s23 + $0x38] sm:$0xff] }
 0x125   : > { %7805 = vmatprep.subr.mxu1 %v11824_v0 }
 0x127   : > { %7796 = vmatmul.mubr.msk.f32.vlgmr.msra.gmra.mxu1 %vm981_vm2, %v957_v52  ;;  %v9436_v52 = vld [vmem:[%s9324_s19 + $0x38] sm:$0xff] }
 0x128   : > { %7813 = vmatprep.mubr.msk.f32.mxu1 %vm8942_vm0, %v11824_v0 }
 0x174   : > { %v1285_v53 = vpop.xlane.xlu0 %1284 }
 0x175   : > { %v1304_v60 = vrot.slane %v1285_v53, %v9174_v56 }
 0x176   : > { %v1291_v55 = vpop.xlane.xlu1 %1290 }
 0x177   : > { %v1315_v61 = vrot.slane %v1291_v55, %v9174_v56 }
 0x178   : > { %v1288_v57 = vpop.xlane.xlu0 %1287 }
 0x179   : > { %v1309_v58 = vrot.slane %v1288_v57, %v9171_v54 }
 0x17a   : > { %v1294_v59 = vpop.xlane.xlu1 %1293 }
 0x17b   : > { %v1319_v62 = vrot.slane %v1294_v59, %v9171_v54  ;;  %v1311_v63 = vsel %vm1310_vm3, %v1309_v58, %v1304_v60  ;;  %v9297_v58 = vld [vmem:[%s9270_s20] sm:$0xff] }
 0x17d   : > { %v1320_v1 = vsel %vm1310_vm3, %v1319_v62, %v1315_v61 }
 0x17e   : > { %v1322_v2 = vsel %vm1321_vm4, %v1320_v1, %v1311_v63 }
 0x17f   : > { %v1325_v10 = vsel %vm1324_vm5, %v1322_v2, -inf }
 0x180   : > { %1326 = vmax.xlane.f32.xlu0 %v1325_v10 }
 0x1e7   : > { %v9422_v44 = vpop.f32.mrf.mxu1 }
 0x1e9   : > { %v9424_v45 = vpop.f32.mrf.mxu1 }
 0x209   : > { %v1327_v13 = vpop.xlane.xlu0 %1326 }
 0x20a   : > { %v1332_v16 = vrot.slane %v1327_v13, %v9135_v19  ;;  %v1336_v17 = vrot.slane %v1327_v13, %v9185_v12 }
 0x20c   : > { %v1339_v18 = vsub.f32 %v1285_v53, %v1332_v16  ;;  %v1340_v20 = vsub.f32 %v1288_v57, %v1332_v16  ;;  %v1341_v21 = vsub.f32 %v1291_v55, %v1336_v17  ;;  %v1342_v24 = vsub.f32 %v1294_v59, %v1336_v17  ;;  %v9276_v53 = vld [vmem:[%s9270_s20 + $0x18] sm:$0xff]  ;;  %v9285_v55 = vld [vmem:[%s9270_s20 + $0x10] sm:$0xff]  ;;  %v9291_v57 = vld [vmem:[%s9270_s20 + $0x8] sm:$0xff] }
 0x20d   : > { %7806 = vmatpush3.xpose.msk.msra.mxu1 %vm852_vm1, %v9276_v53 }
 0x20e   : > { %v1343_v22 = vmul.f32 1.442695, %v1339_v18  ;;  %v1345_v23 = vmul.f32 1.442695, %v1340_v20  ;;  %v1347_v26 = vmul.f32 1.442695, %v1341_v21  ;;  %7807 = vmatprep.subr.mxu1 %v11824_v0 }
 0x20f   : > { %v1349_v27 = vmul.f32 1.442695, %v1342_v24  ;;  %v9327_v18 = vld [vmem:[%s9318_s23 + $0x78] sm:$0xff]  ;;  %v9339_v21 = vld [vmem:[%s9318_s23 + $0x70] sm:$0xff]  ;;  %v9354_v24 = vld [vmem:[%s9324_s19 + $0x68] sm:$0xff] }
 0x210   : > { %8553 = vpow2.f32 %v1343_v22  ;;  %v9330_v20 = vld [vmem:[%s9324_s19 + $0x78] sm:$0xff]  ;;  %7817 = vmatpush3.xpose.msk.msra.mxu0 %vm852_vm1, %v9327_v18  ;;  %v9342_v22 = vld [vmem:[%s9324_s19 + $0x70] sm:$0xff] }
 0x211   : > { %8555 = vpow2.f32 %v1345_v23  ;;  %7808 = vmatpush3.xpose.msk.msra.mxu1 %vm852_vm1, %v9285_v55  ;;  %7818 = vmatprep.subr.mxu0 %v11824_v0  ;;  %v9351_v23 = vld [vmem:[%s9318_s23 + $0x68] sm:$0xff] }
 0x212   : > { %8557 = vpow2.f32 %v1347_v26  ;;  %7809 = vmatprep.subr.mxu1 %v11824_v0  ;;  %v9363_v26 = vld [vmem:[%s9318_s23 + $0x60] sm:$0xff] }
 0x213   : > { %8559 = vpow2.f32 %v1349_v27  ;;  %v9366_v27 = vld [vmem:[%s9324_s19 + $0x60] sm:$0xff] }
 0x214   : > { %7819 = vmatpush3.xpose.msk.msra.mxu0 %vm852_vm1, %v9339_v21 }
 0x215   : > { %7810 = vmatpush3.xpose.msk.msra.mxu1 %vm852_vm1, %v9291_v57  ;;  %7820 = vmatprep.subr.mxu0 %v11824_v0 }
 0x216   : > { %7811 = vmatprep.subr.mxu1 %v11824_v0 }
 0x218   : > { %7821 = vmatpush3.xpose.msk.msra.mxu0 %vm852_vm1, %v9351_v23 }
 0x219   : > { %7812 = vmatpush3.xpose.msk.msra.mxu1 %vm852_vm1, %v9297_v58  ;;  %7822 = vmatprep.subr.mxu0 %v11824_v0 }
 0x21a   : > { %7851 = vmatprep.subr.mxu1 %v11824_v0 }
 0x21c   : > { %7814 = vmatmul.mubr.msk.f32.vlgmr.msra.gmra.mxu1 %vm852_vm1, %v9102_v6  ;;  %7823 = vmatpush3.xpose.msk.msra.mxu0 %vm852_vm1, %v9363_v26 }
 0x21d   : > { %v9189_v14 = vpop.eup %8553  ;;  %7883 = vmatprep.mubr.msk.f32.mxu1 %vm8942_vm0, %v11824_v0  ;;  %7852 = vmatpush3.xpose.msk.msra.mxu1 %vm852_vm1, %v9330_v20 }
 0x21e   : > { %v9191_v28 = vpop.eup %8555  ;;  %1356 = vperm.xlu1 %8551, %v9189_v14   ;;  %7853 = vmatprep.subr.mxu1 %v11824_v0 }
 0x21f   : > { %1359 = vperm.xlu0 %8552, %v9191_v28   ;;  %v9195_v31 = vpop.eup %8557  ;;  %7824 = vmatprep.subr.mxu0 %v11824_v0 }
 0x220   : > { %v9198_v33 = vpop.eup %8559  ;;  %7825 = vmatpush3.xpose.msk.msra.mxu0 %vm852_vm1, %v9375_v34 }
 0x221   : > { %7854 = vmatpush3.xpose.msk.msra.mxu1 %vm852_vm1, %v9342_v22  ;;  %7826 = vmatprep.subr.mxu0 %v11824_v0 }
 0x222   : > { %1362 = vperm.xlu1 %8551, %v9195_v31   ;;  %7855 = vmatprep.subr.mxu1 %v11824_v0 }
 0x224   : > { %7827 = vmatpush3.xpose.msk.msra.mxu0 %vm852_vm1, %v9387_v37 }
 0x225   : > { %7856 = vmatpush3.xpose.msk.msra.mxu1 %vm852_vm1, %v9354_v24  ;;  %7828 = vmatprep.subr.mxu0 %v11824_v0 }
 0x226   : > { %1365 = vperm.xlu1 %8551, %v9198_v33   ;;  %7857 = vmatprep.subr.mxu1 %v11824_v0 }
 0x228   : > { %7829 = vmatpush3.xpose.msk.msra.mxu0 %vm852_vm1, %v9399_v39 }
 0x229   : > { %7858 = vmatpush3.xpose.msk.msra.mxu1 %vm852_vm1, %v9366_v27  ;;  %7830 = vmatprep.subr.mxu0 %v11824_v0 }
 0x22a   : > { %7859 = vmatprep.subr.mxu1 %v11824_v0 }
 0x22c   : > { %7831 = vmatpush3.xpose.msk.msra.mxu0 %vm852_vm1, %v9411_v41 }
 0x22d   : > { %7860 = vmatpush3.xpose.msk.msra.mxu1 %vm852_vm1, %v9378_v35  ;;  %7832 = vmatprep.subr.mxu0 %v11824_v0 }
 0x22e   : > { %7861 = vmatprep.subr.mxu1 %v11824_v0 }
 0x230   : > { %7833 = vmatpush3.xpose.msk.msra.mxu0 %vm852_vm1, %v9433_v51 }
 0x231   : > { %7862 = vmatpush3.xpose.msk.msra.mxu1 %vm852_vm1, %v9390_v38  ;;  %7834 = vmatprep.subr.mxu0 %v11824_v0 }
 0x232   : > { %7863 = vmatprep.subr.mxu1 %v11824_v0 }
 0x235   : > { %7864 = vmatpush3.xpose.msk.msra.mxu1 %vm852_vm1, %v9402_v40 }
 0x236   : > { %7865 = vmatprep.subr.mxu1 %v11824_v0 }
 0x239   : > { %7866 = vmatpush3.xpose.msk.msra.mxu1 %vm852_vm1, %v9414_v42 }
 0x23a   : > { %7867 = vmatprep.subr.mxu1 %v11824_v0 }
 0x23d   : > { %7868 = vmatpush3.xpose.msk.msra.mxu1 %vm852_vm1, %v9436_v52 }
 0x23e   : > { %7869 = vmatprep.subr.mxu1 %v11824_v0 }
 0x299   : > { %v1357_v59 = vpop.permute.xlu1 %1356 }
 0x29a   : > { %v1360_v60 = vpop.permute.xlu0 %1359  ;;  %v1370_v63 = vrot.slane %v1357_v59, %v9174_v56 }
 0x29b   : > { %v1374_v62 = vrot.slane %v1360_v60, %v9171_v54  ;;  %v9450_v60 = vld [vmem:[%s9318_s23 + $0x30] sm:$0xff] }
 0x29c   : > { %7835 = vmatpush3.xpose.msk.msra.mxu0 %vm852_vm1, %v9450_v60 }
 0x29d   : > { %v1363_v61 = vpop.permute.xlu1 %1362  ;;  %v1375_v11 = vsel %vm1310_vm3, %v1374_v62, %v1370_v63  ;;  %7836 = vmatprep.subr.mxu0 %v11824_v0  ;;  %v9466_v62 = vld [vmem:[%s9318_s23 + $0x28] sm:$0xff] }
 0x29e   : > { %v1379_v2 = vrot.slane %v1363_v61, %v9174_v56  ;;  %v9453_v61 = vld [vmem:[%s9324_s19 + $0x30] sm:$0xff]  ;;  %v9469_v63 = vld [vmem:[%s9324_s19 + $0x28] sm:$0xff] }
 0x29f   : > { %7870 = vmatpush3.xpose.msk.msra.mxu1 %vm852_vm1, %v9453_v61 }
 0x2a0   : > { %7871 = vmatprep.subr.mxu1 %v11824_v0  ;;  %7837 = vmatpush3.xpose.msk.msra.mxu0 %vm852_vm1, %v9466_v62 }
 0x2a1   : > { %v1366_v1 = vpop.permute.xlu1 %1365  ;;  %7838 = vmatprep.subr.mxu0 %v11824_v0 }
 0x2a2   : > { %v1383_v10 = vrot.slane %v1366_v1, %v9171_v54  ;;  %v9482_v1 = vld [vmem:[%s9318_s23 + $0x20] sm:$0xff] }
 0x2a3   : > { %7872 = vmatpush3.xpose.msk.msra.mxu1 %vm852_vm1, %v9469_v63 }
 0x2a4   : > { %v1384_v13 = vsel %vm1310_vm3, %v1383_v10, %v1379_v2  ;;  %7873 = vmatprep.subr.mxu1 %v11824_v0  ;;  %v9485_v2 = vld [vmem:[%s9324_s19 + $0x20] sm:$0xff]  ;;  %7839 = vmatpush3.xpose.msk.msra.mxu0 %vm852_vm1, %v9482_v1  ;;  %v9498_v10 = vld [vmem:[%s9324_s19 + $0x18] sm:$0xff] }
 0x2a5   : > { %v1385_v16 = vsel %vm1321_vm4, %v1384_v13, %v1375_v11  ;;  %7840 = vmatprep.subr.mxu0 %v11824_v0  ;;  %v9507_v11 = vld [vmem:[%s9318_s23 + $0x10] sm:$0xff] }
 0x2a6   : > { %v1387_v17 = vsel %vm1324_vm5, %v1385_v16, 0.0  ;;  %v9510_v13 = vld [vmem:[%s9324_s19 + $0x10] sm:$0xff]  ;;  %v9519_v16 = vld [vmem:[%s9318_s23 + $0x8] sm:$0xff] }
 0x2a7   : > { %1388 = vadd.xlane.f32.xlu1 %v1387_v17  ;;  %7874 = vmatpush3.xpose.msk.msra.mxu1 %vm852_vm1, %v9485_v2  ;;  %v9522_v17 = vld [vmem:[%s9324_s19 + $0x8] sm:$0xff] }
 0x2a8   : > { %7875 = vmatprep.subr.mxu1 %v11824_v0  ;;  %11866 = vst [vmem:[#allocation7_spill] sm:$0xff] %v9522_v17 }
 0x2ab   : > { %7876 = vmatpush3.xpose.msk.msra.mxu1 %vm852_vm1, %v9498_v10 }
 0x2ac   : > { %7877 = vmatprep.subr.mxu1 %v11824_v0 }
 0x2af   : > { %7878 = vmatpush3.xpose.msk.msra.mxu1 %vm852_vm1, %v9510_v13 }
 0x2b0   : > { %7879 = vmatprep.subr.mxu1 %v11824_v0 }
 0x2b3   : > { %7880 = vmatpush3.xpose.msk.msra.mxu1 %vm852_vm1, %v9522_v17 }
 0x2b4   : > { %7881 = vmatprep.subr.mxu1 %v11824_v0 }
 0x2dc   : > { %v9426_v46 = vpop.f32.mrf.mxu1 }
 0x2de   : > { %v7815_v47 = vpop.f32.mrf.mxu1 }
 0x2df   : > { %v9534_v47 = vld [vmem:[%s9324_s19] sm:$0xff] }
 0x2e0   : > { %11867 = vst [vmem:[#allocation8_spill] sm:$0xff] %v9534_v47  ;;  %7882 = vmatpush3.xpose.msk.msra.mxu1 %vm852_vm1, %v9534_v47 }
 0x2e1   : > { %7939 = vmatprep.subr.mxu1 %v11824_v0 }
 0x2e3   : > { %7884 = vmatmul.mubr.msk.f32.vlgmr.msra.gmra.mxu1 %vm852_vm1, %v9102_v6  ;;  %v9601_v6 = vld [vmem:[%s9598_s22] ss:$0 sm:$0xff] }
 0x2e4   : > { %7940 = vmatpush3.xpose.msk.msra.mxu1 %vm852_vm1, %v9330_v20  ;;  %7971 = vmatprep.mubr.msk.f32.mxu1 %vm8942_vm0, %v11824_v0  ;;  %v1533_v20 = vadd.f32 %v9601_v6, %v9426_v46 }
 0x2e5   : > { %7941 = vmatprep.subr.mxu1 %v11824_v0 }
 0x2e8   : > { %7942 = vmatpush3.xpose.msk.msra.mxu1 %vm852_vm1, %v9342_v22  ;;  %v6991_v22 = vmul.f32 -1.442695, %v1533_v20 }
 0x2e9   : > { %7943 = vmatprep.subr.mxu1 %v11824_v0 }
 0x2ec   : > { %7944 = vmatpush3.xpose.msk.msra.mxu1 %vm852_vm1, %v9354_v24 }
 0x2ed   : > { %7945 = vmatprep.subr.mxu1 %v11824_v0 }
 0x2f0   : > { %7946 = vmatpush3.xpose.msk.msra.mxu1 %vm852_vm1, %v9366_v27 }
 0x2f1   : > { %7947 = vmatprep.subr.mxu1 %v11824_v0 }
 0x2f4   : > { %7948 = vmatpush3.xpose.msk.msra.mxu1 %vm852_vm1, %v9378_v35 }
 0x2f5   : > { %7949 = vmatprep.subr.mxu1 %v11824_v0 }
 0x2f8   : > { %7950 = vmatpush3.xpose.msk.msra.mxu1 %vm852_vm1, %v9390_v38 }
 0x2f9   : > { %7951 = vmatprep.subr.mxu1 %v11824_v0 }
 0x2fc   : > { %7952 = vmatpush3.xpose.msk.msra.mxu1 %vm852_vm1, %v9402_v40 }
 0x2fd   : > { %7953 = vmatprep.subr.mxu1 %v11824_v0 }
 0x300   : > { %7954 = vmatpush3.xpose.msk.msra.mxu1 %vm852_vm1, %v9414_v42 }
 0x301   : > { %7955 = vmatprep.subr.mxu1 %v11824_v0 }
 0x304   : > { %7956 = vmatpush3.xpose.msk.msra.mxu1 %vm852_vm1, %v9436_v52 }
 0x305   : > { %7957 = vmatprep.subr.mxu1 %v11824_v0 }
 0x308   : > { %7958 = vmatpush3.xpose.msk.msra.mxu1 %vm852_vm1, %v9453_v61 }
 0x309   : > { %7959 = vmatprep.subr.mxu1 %v11824_v0 }
 0x30c   : > { %7960 = vmatpush3.xpose.msk.msra.mxu1 %vm852_vm1, %v9469_v63 }
 0x30d   : > { %7961 = vmatprep.subr.mxu1 %v11824_v0 }
 0x310   : > { %7962 = vmatpush3.xpose.msk.msra.mxu1 %vm852_vm1, %v9485_v2 }
 0x311   : > { %7963 = vmatprep.subr.mxu1 %v11824_v0 }
 0x314   : > { %7964 = vmatpush3.xpose.msk.msra.mxu1 %vm852_vm1, %v9498_v10 }
 0x315   : > { %7965 = vmatprep.subr.mxu1 %v11824_v0 }
 0x318   : > { %7966 = vmatpush3.xpose.msk.msra.mxu1 %vm852_vm1, %v9510_v13 }
 0x319   : > { %7967 = vmatprep.subr.mxu1 %v11824_v0 }
 0x31c   : > { %7968 = vmatpush3.xpose.msk.msra.mxu1 %vm852_vm1, %v9522_v17 }
 0x31d   : > { %7969 = vmatprep.subr.mxu1 %v11824_v0 }
 0x320   : > { %7970 = vmatpush3.xpose.msk.msra.mxu1 %vm852_vm1, %v9534_v47 }
 0x321   : > { %7992 = vmatprep.subr.mxu1 %v11824_v0 }
 0x330   : > { %v1389_v43 = vpop.xlane.xlu1 %1388 }
 0x331   : > { %8561 = vrcp.f32 %v1389_v43  ;;  %v9530_v43 = vld [vmem:[%s9318_s23] sm:$0xff] }
 0x332   : > { %8563 = vpow2.f32 %v6991_v22 }
 0x33e   : > { %v8562_v48 = vpop.eup %8561 }
 0x33f   : > { %v1395_v49 = vrot.slane %v8562_v48, %v9135_v19  ;;  %v1399_v59 = vrot.slane %v8562_v48, %v9185_v12 }
 0x341   : > { %v9430_v50 = vmul.f32 %v9189_v14, %v1395_v49  ;;  %v9446_v14 = vmul.f32 %v9191_v28, %v1395_v49  ;;  %v9462_v28 = vmul.f32 %v9195_v31, %v1399_v59  ;;  %v9478_v31 = vmul.f32 %v9198_v33, %v1399_v59  ;;  %v9495_v33 = vld [vmem:[%s9318_s23 + $0x18] sm:$0xff]  ;;  %v8564_v59 = vpop.eup %8563 }
 0x342   : > { %7841 = vmatpush3.xpose.msk.msra.mxu0 %vm852_vm1, %v9495_v33 }
 0x343   : > { %11862 = vst [vmem:[#allocation3_spill] sm:$0xff] %v9430_v50  ;;  %1408 = vperm.xlu0 %8552, %v9430_v50   ;;  %11863 = vst [vmem:[#allocation4_spill] sm:$0xff] %v9446_v14  ;;  %7842 = vmatprep.subr.mxu0 %v11824_v0 }
 0x344   : > { %11864 = vst [vmem:[#allocation5_spill] sm:$0xff] %v9462_v28  ;;  %11865 = vst [vmem:[#allocation6_spill] sm:$0xff] %v9478_v31 }
 0x346   : > { %7843 = vmatpush3.xpose.msk.msra.mxu0 %vm852_vm1, %v9507_v11 }
 0x347   : > { %1413 = vperm.xlu0 %8552, %v9446_v14   ;;  %7844 = vmatprep.subr.mxu0 %v11824_v0 }
 0x34a   : > { %7845 = vmatpush3.xpose.msk.msra.mxu0 %vm852_vm1, %v9519_v16 }
 0x34b   : > { %1418 = vperm.xlu0 %8552, %v9462_v28   ;;  %7846 = vmatprep.subr.mxu0 %v11824_v0  ;;  %v1539_v28 = vadd.f32 1.0, %v8564_v59 }
 0x34d   : > { %8565 = vrcp.f32 %v1539_v28 }
 0x34e   : > { %7847 = vmatpush3.xpose.msk.msra.mxu0 %vm852_vm1, %v9530_v43 }
 0x34f   : > { %1423 = vperm.xlu0 %8552, %v9478_v31   ;;  %7886 = vmatprep.subr.mxu0 %v11824_v0 }
 0x3be   : > { %v1409_v24 = vpop.permute.xlu0 %1408 }
 0x3bf   : > { %v1426_v27 = vmul.f32 %v1409_v24, %v9090_v5 }
 0x3c1   : > { %v1430_v48 = vsel %vm852_vm1, %v1426_v27, 0.0 }
 0x3c2   : > { %v1414_v35 = vpop.permute.xlu0 %1413 }
 0x3c3   : > { %v1427_v38 = vmul.f32 %v1414_v35, %v9105_v7 }
 0x3c5   : > { %v1431_v49 = vsel %vm852_vm1, %v1427_v38, 0.0 }
 0x3c6   : > { %v1432_v0 = vadd.f32 %v1431_v49, %v1430_v48  ;;  %v1419_v31 = vpop.permute.xlu0 %1418 }
 0x3c7   : > { %v1428_v14 = vmul.f32 %v1419_v31, %v9108_v8  ;;  %v8566_v8 = vpop.eup %8565  ;;  %v1788_v31 = vpop.f32.mrf.mxu1 }
 0x3c8   : > { %v1433_v50 = vrot.slane %v1432_v0, 4 }
 0x3c9   : > { %v1439_v5 = vsel %vm852_vm1, %v1428_v14, 0.0  ;;  %v11868_v14 = vmov 0.0  }
 0x3ca   : > { %v1434_v46 = vadd.f32 %v1433_v50, %v1432_v0  ;;  %v1424_v20 = vpop.permute.xlu0 %1423 }
 0x3cb   : > { %v1429_v22 = vmul.f32 %v1424_v20, %v9118_v9 }
 0x3cc   : > { %v1435_v24 = vrot.slane %v1434_v46, 2 }
 0x3cd   : > { %v1440_v7 = vsel %vm852_vm1, %v1429_v22, 0.0 }
 0x3ce   : > { %v1441_v27 = vadd.f32 %v1440_v7, %v1439_v5  ;;  %v1436_v38 = vadd.f32 %v1435_v24, %v1434_v46  ;;  %v1793_v5 = vrot.slane %v1788_v31, 1 }
 0x3d0   : > { %v1442_v35 = vrot.slane %v1441_v27, 4  ;;  %v1437_v49 = vrot.slane %v1436_v38, 1 }
 0x3d2   : > { %v1443_v47 = vadd.f32 %v1442_v35, %v1441_v27  ;;  %v1438_v0 = vadd.f32 %v1437_v49, %v1436_v38 }
 0x3d4   : > { %v1444_v48 = vrot.slane %v1443_v47, 2 }
 0x3d6   : > { %v1445_v59 = vadd.f32 %v1444_v48, %v1443_v47  ;;  %v6962_v47 = vld [vmem:[%s828_s25] ss:$0 sm:$0xff]  ;;  %s8945_s25 = smov 64  }
 0x3d7   : > { %v9631_v20 = vadd.f32 %v9422_v44, %v6962_v47 }
 0x3d8   : > { %v1446_v17 = vrot.slane %v1445_v59, 1 }
 0x3da   : > { %v1447_v50 = vadd.f32 %v1446_v17, %v1445_v59  ;;  %v7885_v17 = vpop.f32.mrf.mxu1 }
 0x3dc   : > { %v1544_v9 = vsel %vm1321_vm4, %v1447_v50, %v1438_v0 }
 0x3dd   : > { %v1546_v28 = vmul.f32 %v8566_v8, %v1544_v9 }
 0x3df   : > { %7849 = vmatmul.mubr.msk.f32.vlgmr.msra.gmra.mxu0 %vm852_vm1, %v1546_v28 }
 0x3e0   : > { %7887 = vmatpush3.xpose.msk.msra.mxu0 %vm852_vm1, %v9070_v3  ;;  %7890 = vmatprep.mubr.msk.f32.mxu0 %vm8942_vm0, %v11868_v14  ;;  %v9628_v3 = vadd.f32 %v6962_v47, %v9424_v45  ;;  %v1152_v45 = vld [vmem:[%s786_s24] sm:$0x3]  ;;  %s11672_s24 = scalar_lea.vmem %s11822_s18, %s9056_s29 }
 0x3e1   : > { %7888 = vmatprep.subr.mxu0 %v11868_v14  ;;  %v1813_v44 = vrot.slane %v1152_v45, 1 }
 0x3e4   : > { %7889 = vmatpush3.xpose.msk.msra.mxu0 %vm852_vm1, %v9087_v4 }
 0x3e5   : > { %7893 = vmatprep.subr.mxu0 %v11868_v14 }
 0x49f   : > { %v1664_v46 = vpop.f32.mrf.mxu0 }
 0x4a0   : > { %v1669_v22 = vrot.slane %v1664_v46, 1  ;;  %v1672_v4 = vadd.f32 %v1664_v46, %v9628_v3 }
 0x4a1   : > { %v7850_v7 = vpop.f32.mrf.mxu0 }
 0x4a2   : > { %v1673_v24 = vadd.f32 %v1669_v22, %v9631_v20  ;;  %v1796_v27 = vadd.f32 %v1788_v31, %v1672_v4 }
 0x4a4   : > { %v1797_v35 = vadd.f32 %v1793_v5, %v1673_v24  ;;  %8567 = vtanh.f32 %v1796_v27  ;;  %v7026_v49 = vmul.f32 -1.442695, %v1796_v27 }
 0x4a6   : > { %8569 = vtanh.f32 %v1797_v35  ;;  %v7027_v59 = vmul.f32 -1.442695, %v1797_v35 }
 0x4a7   : > { %8571 = vpow2.f32 %v7026_v49 }
 0x4a8   : > { %8573 = vpow2.f32 %v7027_v59 }
 0x4b1   : > { %v8568_v38 = vpop.eup %8567 }
 0x4b2   : > { %1824 = vrot.lane.b32.xlu0 %v8568_v38, %s8945_s25 }
 0x4b3   : > { %v8570_v48 = vpop.eup %8569 }
 0x4b4   : > { %1826 = vrot.lane.b32.xlu1 %v8570_v48, %s8945_s25  ;;  %v8572_v8 = vpop.eup %8571 }
 0x4b5   : > { %v8574_v0 = vpop.eup %8573  ;;  %v1804_v50 = vadd.f32 1.0, %v8572_v8 }
 0x4b6   : > { %1816 = vrot.lane.b32.xlu0 %v1813_v44, %s8946_s3  ;;  %v1805_v9 = vadd.f32 1.0, %v8574_v0 }
 0x4b7   : > { %8575 = vrcp.f32 %v1804_v50 }
 0x4b8   : > { %8577 = vrcp.f32 %v1805_v9 }
 0x4ba   : > { %1814 = vrot.lane.b32.xlu0 %v1152_v45, %s8946_s3 }
 0x4c4   : > { %v8576_v28 = vpop.eup %8575 }
 0x4c5   : > { %v8578_v47 = vpop.eup %8577 }
 0x524   : > { %v1825_v31 = vpop.permute.xlu0 %1824 }
 0x525   : > { %v1830_v17 = vmul.f32 %v8576_v28, %v1825_v31 }
 0x526   : > { %v1827_v46 = vpop.permute.xlu1 %1826 }
 0x527   : > { %1834 = vrot.lane.b32.xlu1 %v1830_v17, %s8946_s3  ;;  %v1831_v22 = vmul.f32 %v8578_v47, %v1827_v46 }
 0x528   : > { %v1817_v4 = vpop.permute.xlu0 %1816 }
 0x529   : > { %1836 = vrot.lane.b32.xlu0 %v1831_v22, %s8946_s3  ;;  %v1821_v35 = vmul.f32 %v8578_v47, %v1817_v4 }
 0x52c   : > { %v1815_v5 = vpop.permute.xlu0 %1814 }
 0x52d   : > { %v1820_v7 = vmul.f32 %v8576_v28, %v1815_v5 }
 0x599   : > { %v1835_v24 = vpop.permute.xlu1 %1834 }
 0x59a   : > { %v9646_v27 = vadd.f32 %v1835_v24, %v1820_v7  ;;  %v9796_v24 = vld [vmem:[%s9144_s30] ss:$0 sm:$0xff] }
 0x59b   : > { %v1837_v45 = vpop.permute.xlu0 %1836 }
 0x59c   : > { %8579 = vtanh.f32 %v9646_v27  ;;  %v9649_v38 = vadd.f32 %v1837_v45, %v1821_v35 }
 0x59e   : > { %8581 = vtanh.f32 %v9649_v38 }
 0x5a9   : > { %v8580_v44 = vpop.eup %8579 }
 0x5aa   : > { %1846 = vrot.lane.b32.xlu1 %v8580_v44, %s8945_s25 }
 0x5ab   : > { %v8582_v48 = vpop.eup %8581 }
 0x5ac   : > { %1848 = vrot.lane.b32.xlu0 %v8582_v48, %s8945_s25 }
 0x61c   : > { %v1847_v49 = vpop.permute.xlu1 %1846 }
 0x61d   : > { %v9656_v0 = vmul.f32 %v8576_v28, %v1847_v49 }
 0x61e   : > { %v1849_v59 = vpop.permute.xlu0 %1848 }
 0x61f   : > { %v9654_v8 = vmul.f32 %v8578_v47, %v1849_v59  ;;  %11871 = vst [vmem:[#allocation10_spill] sm:$0xff] %v9656_v0 }
 0x621   : > { %11870 = vst [vmem:[#allocation9_spill] sm:$0xff] %v9654_v8  ;;  %v1934_v50 = vrot.slane %v9654_v8, 7 }
 0x623   : > { %v1935_v9 = vsel %vm1321_vm4, %v1934_v50, %v9656_v0 }
 0x624   : > { %1936 = vrot.lane.b32.xlu0 %v1935_v9, %s8946_s3 }
 0x696   : > { %v1937_v31 = vpop.permute.xlu0 %1936 }
 0x697   : > { %7891 = vmatmul.mubr.msk.f32.vlgmr.msra.gmra.mxu0 %vm852_vm1, %v1937_v31  ;;  %7972 = vmatmul.mubr.msk.f32.vlgmr.msra.gmra.mxu1 %vm852_vm1, %v1937_v31 }
 0x698   : > { %7894 = vmatpush3.xpose.msk.msra.mxu0 %vm852_vm1, %v9276_v53  ;;  %7901 = vmatprep.mubr.msk.f32.mxu0 %vm8942_vm0, %v11868_v14 }
 0x699   : > { %7895 = vmatprep.subr.mxu0 %v11868_v14  ;;  %7993 = vmatpush3.xpose.msk.msra.mxu1 %vm852_vm1, %v9327_v18 }
 0x69a   : > { %7994 = vmatprep.subr.mxu1 %v11868_v14  ;;  %8024 = vmatprep.mubr.msk.f32.mxu1 %vm8942_vm0, %v11868_v14 }
 0x69c   : > { %7896 = vmatpush3.xpose.msk.msra.mxu0 %vm852_vm1, %v9285_v55 }
 0x69d   : > { %7897 = vmatprep.subr.mxu0 %v11868_v14  ;;  %7995 = vmatpush3.xpose.msk.msra.mxu1 %vm852_vm1, %v9339_v21 }
 0x69e   : > { %7996 = vmatprep.subr.mxu1 %v11868_v14 }
 0x6a0   : > { %7898 = vmatpush3.xpose.msk.msra.mxu0 %vm852_vm1, %v9291_v57 }
 0x6a1   : > { %7899 = vmatprep.subr.mxu0 %v11868_v14  ;;  %7997 = vmatpush3.xpose.msk.msra.mxu1 %vm852_vm1, %v9351_v23 }
 0x6a2   : > { %7998 = vmatprep.subr.mxu1 %v11868_v14 }
 0x6a4   : > { %7900 = vmatpush3.xpose.msk.msra.mxu0 %vm852_vm1, %v9297_v58 }
 0x6a5   : > { %7904 = vmatprep.subr.mxu0 %v11868_v14  ;;  %7999 = vmatpush3.xpose.msk.msra.mxu1 %vm852_vm1, %v9363_v26 }
 0x6a6   : > { %8000 = vmatprep.subr.mxu1 %v11868_v14 }
 0x6a7   : > { %7902 = vmatmul.mubr.msk.f32.vlgmr.msra.gmra.mxu0 %vm852_vm1, %v1937_v31 }
 0x6a8   : > { %7905 = vmatpush3.xpose.msk.msra.mxu0 %vm852_vm1, %v9327_v18  ;;  %7936 = vmatprep.mubr.msk.f32.mxu0 %vm8942_vm0, %v11868_v14 }
 0x6a9   : > { %7906 = vmatprep.subr.mxu0 %v11868_v14  ;;  %8001 = vmatpush3.xpose.msk.msra.mxu1 %vm852_vm1, %v9375_v34 }
 0x6aa   : > { %8002 = vmatprep.subr.mxu1 %v11868_v14 }
 0x6ac   : > { %7907 = vmatpush3.xpose.msk.msra.mxu0 %vm852_vm1, %v9339_v21 }
 0x6ad   : > { %7908 = vmatprep.subr.mxu0 %v11868_v14  ;;  %8003 = vmatpush3.xpose.msk.msra.mxu1 %vm852_vm1, %v9387_v37 }
 0x6ae   : > { %8004 = vmatprep.subr.mxu1 %v11868_v14 }
 0x6b0   : > { %7909 = vmatpush3.xpose.msk.msra.mxu0 %vm852_vm1, %v9351_v23 }
 0x6b1   : > { %7910 = vmatprep.subr.mxu0 %v11868_v14  ;;  %8005 = vmatpush3.xpose.msk.msra.mxu1 %vm852_vm1, %v9399_v39 }
 0x6b2   : > { %8006 = vmatprep.subr.mxu1 %v11868_v14 }
 0x6b4   : > { %7911 = vmatpush3.xpose.msk.msra.mxu0 %vm852_vm1, %v9363_v26 }
 0x6b5   : > { %7912 = vmatprep.subr.mxu0 %v11868_v14  ;;  %8007 = vmatpush3.xpose.msk.msra.mxu1 %vm852_vm1, %v9411_v41 }
 0x6b6   : > { %8008 = vmatprep.subr.mxu1 %v11868_v14 }
 0x6b8   : > { %7913 = vmatpush3.xpose.msk.msra.mxu0 %vm852_vm1, %v9375_v34 }
 0x6b9   : > { %7914 = vmatprep.subr.mxu0 %v11868_v14  ;;  %8009 = vmatpush3.xpose.msk.msra.mxu1 %vm852_vm1, %v9433_v51 }
 0x6ba   : > { %8010 = vmatprep.subr.mxu1 %v11868_v14 }
 0x6bc   : > { %7915 = vmatpush3.xpose.msk.msra.mxu0 %vm852_vm1, %v9387_v37 }
 0x6bd   : > { %7916 = vmatprep.subr.mxu0 %v11868_v14  ;;  %8011 = vmatpush3.xpose.msk.msra.mxu1 %vm852_vm1, %v9450_v60 }
 0x6be   : > { %8012 = vmatprep.subr.mxu1 %v11868_v14 }
 0x6c0   : > { %7917 = vmatpush3.xpose.msk.msra.mxu0 %vm852_vm1, %v9399_v39 }
 0x6c1   : > { %7918 = vmatprep.subr.mxu0 %v11868_v14  ;;  %8013 = vmatpush3.xpose.msk.msra.mxu1 %vm852_vm1, %v9466_v62 }
 0x6c2   : > { %8014 = vmatprep.subr.mxu1 %v11868_v14 }
 0x6c4   : > { %7919 = vmatpush3.xpose.msk.msra.mxu0 %vm852_vm1, %v9411_v41 }
 0x6c5   : > { %7920 = vmatprep.subr.mxu0 %v11868_v14  ;;  %8015 = vmatpush3.xpose.msk.msra.mxu1 %vm852_vm1, %v9482_v1 }
 0x6c6   : > { %8016 = vmatprep.subr.mxu1 %v11868_v14 }
 0x6c8   : > { %7921 = vmatpush3.xpose.msk.msra.mxu0 %vm852_vm1, %v9433_v51 }
 0x6c9   : > { %7922 = vmatprep.subr.mxu0 %v11868_v14  ;;  %8017 = vmatpush3.xpose.msk.msra.mxu1 %vm852_vm1, %v9495_v33 }
 0x6ca   : > { %8018 = vmatprep.subr.mxu1 %v11868_v14 }
 0x6cc   : > { %7923 = vmatpush3.xpose.msk.msra.mxu0 %vm852_vm1, %v9450_v60 }
 0x6cd   : > { %7924 = vmatprep.subr.mxu0 %v11868_v14  ;;  %8019 = vmatpush3.xpose.msk.msra.mxu1 %vm852_vm1, %v9507_v11 }
 0x6ce   : > { %8020 = vmatprep.subr.mxu1 %v11868_v14 }
 0x6d0   : > { %7925 = vmatpush3.xpose.msk.msra.mxu0 %vm852_vm1, %v9466_v62 }
 0x6d1   : > { %7926 = vmatprep.subr.mxu0 %v11868_v14  ;;  %8021 = vmatpush3.xpose.msk.msra.mxu1 %vm852_vm1, %v9519_v16 }
 0x6d2   : > { %8022 = vmatprep.subr.mxu1 %v11868_v14 }
 0x6d4   : > { %7927 = vmatpush3.xpose.msk.msra.mxu0 %vm852_vm1, %v9482_v1 }
 0x6d5   : > { %7928 = vmatprep.subr.mxu0 %v11868_v14  ;;  %8023 = vmatpush3.xpose.msk.msra.mxu1 %vm852_vm1, %v9530_v43 }
 0x6d6   : > { %8062 = vmatprep.subr.mxu1 %v11868_v14 }
 0x6d8   : > { %7929 = vmatpush3.xpose.msk.msra.mxu0 %vm852_vm1, %v9495_v33 }
 0x6d9   : > { %7930 = vmatprep.subr.mxu0 %v11868_v14 }
 0x6dc   : > { %7931 = vmatpush3.xpose.msk.msra.mxu0 %vm852_vm1, %v9507_v11 }
 0x6dd   : > { %7932 = vmatprep.subr.mxu0 %v11868_v14 }
 0x6e0   : > { %7933 = vmatpush3.xpose.msk.msra.mxu0 %vm852_vm1, %v9519_v16 }
 0x6e1   : > { %7934 = vmatprep.subr.mxu0 %v11868_v14 }
 0x6e4   : > { %7935 = vmatpush3.xpose.msk.msra.mxu0 %vm852_vm1, %v9530_v43 }
 0x6e5   : > { %7974 = vmatprep.subr.mxu0 %v11868_v14 }
 0x757   : > { %v2006_v53 = vpop.f32.mrf.mxu0  ;;  %v9779_v55 = vpop.f32.mrf.mxu1 }
 0x758   : > { %v2017_v57 = vrot.slane %v2006_v53, %v9127_v15 }
 0x759   : > { %v7892_v58 = vpop.f32.mrf.mxu0  ;;  %v7973_v18 = vpop.f32.mrf.mxu1 }
 0x75a   : > { %v2018_v21 = vcombine.high %v2017_v57, %v2017_v57  ;;  %v2025_v23 = vrot.slane %v2017_v57, %v9127_v15 }
 0x75c   : > { %v2032_v26 = vrot.slane %v2018_v21, %v9127_v15  ;;  %v2036_v34 = vrot.slane %v2025_v23, %v9135_v19 }
 0x75e   : > { %v2040_v37 = vrot.slane %v2032_v26, %v9135_v19  ;;  %v2044_v39 = vadd.f32 %v2036_v34, %v9148_v29  ;;  %v2043_v41 = vadd.f32 %v2036_v34, %v9138_v25 }
 0x760   : > { %v2048_v51 = vmax.f32 %v2044_v39, 0.0  ;;  %v2047_v60 = vmax.f32 %v2043_v41, 0.0  ;;  %v2046_v62 = vadd.f32 %v2040_v37, %v9150_v30  ;;  %v2045_v28 = vadd.f32 %v2040_v37, %v9152_v32 }
 0x762   : > { %v2052_v17 = vmul.f32 %v9158_v36, %v2048_v51  ;;  %v2051_v47 = vmul.f32 %v9158_v36, %v2047_v60  ;;  %v2050_v46 = vmax.f32 %v2046_v62, 0.0  ;;  %v2049_v22 = vmax.f32 %v2045_v28, 0.0 }
 0x764   : > { %v2058_v4 = vsel %vm981_vm2, %v2052_v17, 0.0  ;;  %v2055_v5 = vsel %vm981_vm2, %v2051_v47, 0.0  ;;  %v2054_v7 = vmul.f32 %v9158_v36, %v2050_v46  ;;  %v2053_v35 = vmul.f32 %v9796_v24, %v2049_v22 }
 0x765   : > { %2059 = vadd.xlane.f32.xlu0 %v2058_v4  ;;  %2056 = vadd.xlane.f32.xlu1 %v2055_v5 }
 0x766   : > { %v2064_v44 = vsel %vm981_vm2, %v2054_v7, 0.0  ;;  %v2061_v48 = vsel %vm981_vm2, %v2053_v35, 0.0 }
 0x767   : > { %v9799_v45 = vpop.f32.mrf.mxu0 }
 0x769   : > { %v7903_v49 = vpop.f32.mrf.mxu0  ;;  %2065 = vadd.xlane.f32.xlu1 %v2064_v44  ;;  %2062 = vadd.xlane.f32.xlu0 %v2061_v48 }
 0x7ee   : > { %v2060_v59 = vpop.xlane.xlu0 %2059  ;;  %v2057_v50 = vpop.xlane.xlu1 %2056 }
 0x7ef   : > { %v2078_v9 = vrot.slane %v2060_v59, %v9171_v54  ;;  %v2074_v36 = vrot.slane %v2057_v50, %v9174_v56 }
 0x7f1   : > { %v2079_v18 = vsel %vm1310_vm3, %v2078_v9, %v2074_v36 }
 0x7f2   : > { %v2066_v31 = vpop.xlane.xlu1 %2065  ;;  %v2063_v53 = vpop.xlane.xlu0 %2062 }
 0x7f3   : > { %v2087_v57 = vrot.slane %v2066_v31, %v9171_v54  ;;  %v2083_v58 = vrot.slane %v2063_v53, %v9174_v56 }
 0x7f5   : > { %v2088_v21 = vsel %vm1310_vm3, %v2087_v57, %v2083_v58 }
 0x7f6   : > { %v2089_v23 = vsel %vm1321_vm4, %v2088_v21, %v2079_v18 }
 0x7f7   : > { %v2091_v26 = vsel %vm1324_vm5, %v2089_v23, -inf }
 0x7f8   : > { %2092 = vmax.xlane.f32.xlu0 %v2091_v26 }
 0x881   : > { %v2093_v34 = vpop.xlane.xlu0 %2092 }
 0x882   : > { %v2098_v37 = vrot.slane %v2093_v34, %v9135_v19  ;;  %v2102_v39 = vrot.slane %v2093_v34, %v9185_v12 }
 0x884   : > { %v2105_v41 = vsub.f32 %v2057_v50, %v2098_v37  ;;  %v2106_v51 = vsub.f32 %v2060_v59, %v2098_v37  ;;  %v2107_v60 = vsub.f32 %v2063_v53, %v2102_v39  ;;  %v2108_v17 = vsub.f32 %v2066_v31, %v2102_v39 }
 0x886   : > { %v2109_v62 = vmul.f32 1.442695, %v2105_v41  ;;  %v2111_v28 = vmul.f32 1.442695, %v2106_v51  ;;  %v2113_v47 = vmul.f32 1.442695, %v2107_v60  ;;  %v2281_v51 = vadd.f32 %v9601_v6, %v9799_v45 }
 0x887   : > { %v2115_v46 = vmul.f32 1.442695, %v2108_v17 }
 0x888   : > { %8583 = vpow2.f32 %v2109_v62  ;;  %v7036_v60 = vmul.f32 -1.442695, %v2281_v51 }
 0x889   : > { %8585 = vpow2.f32 %v2111_v28  ;;  %v9838_v28 = vld [vmem:[%s9082_s26] sm:$0xff] }
 0x88a   : > { %8587 = vpow2.f32 %v2113_v47 }
 0x88b   : > { %8589 = vpow2.f32 %v2115_v46  ;;  %v9842_v46 = vld [vmem:[%s9082_s26 + $0x8] sm:$0xff] }
 0x895   : > { %v8584_v22 = vpop.eup %8583 }
 0x896   : > { %v8586_v4 = vpop.eup %8585  ;;  %2122 = vperm.xlu1 %8551, %v8584_v22  }
 0x897   : > { %2125 = vperm.xlu0 %8552, %v8586_v4   ;;  %v8588_v5 = vpop.eup %8587 }
 0x898   : > { %v8590_v7 = vpop.eup %8589 }
 0x89a   : > { %2128 = vperm.xlu1 %8551, %v8588_v5  }
 0x89e   : > { %2131 = vperm.xlu1 %8551, %v8590_v7  }
 0x911   : > { %v2123_v35 = vpop.permute.xlu1 %2122 }
 0x912   : > { %v2126_v44 = vpop.permute.xlu0 %2125  ;;  %v2136_v59 = vrot.slane %v2123_v35, %v9174_v56 }
 0x913   : > { %v2140_v49 = vrot.slane %v2126_v44, %v9171_v54  ;;  %v9848_v44 = vld [vmem:[%s9082_s26 + $0x10] sm:$0xff] }
 0x915   : > { %v2129_v48 = vpop.permute.xlu1 %2128  ;;  %v2141_v31 = vsel %vm1310_vm3, %v2140_v49, %v2136_v59 }
 0x916   : > { %v2145_v9 = vrot.slane %v2129_v48, %v9174_v56 }
 0x919   : > { %v2132_v50 = vpop.permute.xlu1 %2131 }
 0x91a   : > { %v2149_v36 = vrot.slane %v2132_v50, %v9171_v54 }
 0x91c   : > { %v2150_v53 = vsel %vm1310_vm3, %v2149_v36, %v2145_v9  ;;  %v9852_v9 = vld [vmem:[%s9082_s26 + $0x18] sm:$0xff] }
 0x91d   : > { %v2151_v57 = vsel %vm1321_vm4, %v2150_v53, %v2141_v31 }
 0x91e   : > { %v2153_v58 = vsel %vm1324_vm5, %v2151_v57, 0.0 }
 0x91f   : > { %2154 = vadd.xlane.f32.xlu0 %v2153_v58 }
 0x9a8   : > { %v2155_v18 = vpop.xlane.xlu0 %2154 }
 0x9a9   : > { %8591 = vrcp.f32 %v2155_v18 }
 0x9aa   : > { %8593 = vpow2.f32 %v7036_v60 }
 0x9b6   : > { %v8592_v21 = vpop.eup %8591 }
 0x9b7   : > { %v2161_v23 = vrot.slane %v8592_v21, %v9135_v19  ;;  %v2165_v37 = vrot.slane %v8592_v21, %v9185_v12  ;;  %v8594_v6 = vpop.eup %8593 }
 0x9b8   : > { %v2287_v50 = vadd.f32 1.0, %v8594_v6 }
 0x9b9   : > { %v9822_v26 = vmul.f32 %v8584_v22, %v2161_v23  ;;  %v9825_v34 = vmul.f32 %v8586_v4, %v2161_v23  ;;  %v9829_v39 = vmul.f32 %v8588_v5, %v2165_v37  ;;  %v9832_v41 = vmul.f32 %v8590_v7, %v2165_v37 }
 0x9ba   : > { %8595 = vrcp.f32 %v2287_v50 }
 0x9bb   : > { %11872 = vst [vmem:[#allocation11_spill] sm:$0xff] %v9822_v26  ;;  %2174 = vperm.xlu1 %8551, %v9822_v26   ;;  %11873 = vst [vmem:[#allocation12_spill] sm:$0xff] %v9825_v34 }
 0x9bc   : > { %11874 = vst [vmem:[#allocation13_spill] sm:$0xff] %v9829_v39  ;;  %11875 = vst [vmem:[#allocation14_spill] sm:$0xff] %v9832_v41 }
 0x9bf   : > { %2179 = vperm.xlu1 %8551, %v9825_v34  }
 0x9c3   : > { %2184 = vperm.xlu1 %8551, %v9829_v39  }
 0x9c7   : > { %2189 = vperm.xlu1 %8551, %v9832_v41  }
 0xa36   : > { %v2175_v62 = vpop.permute.xlu1 %2174 }
 0xa37   : > { %v2192_v17 = vmul.f32 %v9838_v28, %v2175_v62 }
 0xa39   : > { %v2196_v4 = vsel %vm852_vm1, %v2192_v17, 0.0 }
 0xa3a   : > { %v2180_v47 = vpop.permute.xlu1 %2179 }
 0xa3b   : > { %v2193_v22 = vmul.f32 %v9842_v46, %v2180_v47 }
 0xa3d   : > { %v2197_v5 = vsel %vm852_vm1, %v2193_v22, 0.0  ;;  %v8596_v22 = vpop.eup %8595 }
 0xa3e   : > { %v2198_v7 = vadd.f32 %v2197_v5, %v2196_v4  ;;  %v2185_v35 = vpop.permute.xlu1 %2184 }
 0xa3f   : > { %v2194_v48 = vmul.f32 %v9848_v44, %v2185_v35  ;;  %v9868_v35 = vld [vmem:[%s9066_s21] sm:$0xff] }
 0xa40   : > { %v2199_v45 = vrot.slane %v2198_v7, 4 }
 0xa41   : > { %v2205_v31 = vsel %vm852_vm1, %v2194_v48, 0.0 }
 0xa42   : > { %v2200_v49 = vadd.f32 %v2199_v45, %v2198_v7  ;;  %v2190_v59 = vpop.permute.xlu1 %2189  ;;  %v9860_v7 = vld [vmem:[%s9066_s21 + $0x8] sm:$0xff] }
 0xa43   : > { %v2195_v36 = vmul.f32 %v9852_v9, %v2190_v59 }
 0xa44   : > { %v2201_v57 = vrot.slane %v2200_v49, 2 }
 0xa45   : > { %v2206_v53 = vsel %vm852_vm1, %v2195_v36, 0.0 }
 0xa46   : > { %v2207_v58 = vadd.f32 %v2206_v53, %v2205_v31  ;;  %v2202_v21 = vadd.f32 %v2201_v57, %v2200_v49  ;;  %v2445_v49 = vrot.slane %v9779_v55, 7 }
 0xa48   : > { %v2208_v18 = vrot.slane %v2207_v58, 4  ;;  %v2203_v51 = vrot.slane %v2202_v21, 1 }
 0xa4a   : > { %v2209_v23 = vadd.f32 %v2208_v18, %v2207_v58  ;;  %v2204_v17 = vadd.f32 %v2203_v51, %v2202_v21 }
 0xa4c   : > { %v2210_v37 = vrot.slane %v2209_v23, 2 }
 0xa4e   : > { %v2211_v60 = vadd.f32 %v2210_v37, %v2209_v23 }
 0xa50   : > { %v2212_v62 = vrot.slane %v2211_v60, 1 }
 0xa52   : > { %v2213_v47 = vadd.f32 %v2212_v62, %v2211_v60 }
 0xa54   : > { %v2292_v4 = vsel %vm1321_vm4, %v2213_v47, %v2204_v17 }
 0xa55   : > { %v2294_v5 = vmul.f32 %v8596_v22, %v2292_v4  ;;  %v2466_v4 = vrot.slane %v9646_v27, 7 }
 0xa57   : > { %7937 = vmatmul.mubr.msk.f32.vlgmr.msra.gmra.mxu0 %vm852_vm1, %v2294_v5 }
 0xa58   : > { %7975 = vmatpush3.xpose.msk.msra.mxu0 %vm852_vm1, %v9860_v7  ;;  %7978 = vmatprep.mubr.msk.f32.mxu0 %vm8942_vm0, %v11868_v14 }
 0xa59   : > { %7976 = vmatprep.subr.mxu0 %v11868_v14 }
 0xa5c   : > { %7977 = vmatpush3.xpose.msk.msra.mxu0 %vm852_vm1, %v9868_v35 }
 0xa5d   : > { %7981 = vmatprep.subr.mxu0 %v11868_v14 }
 0xb17   : > { %v2364_v6 = vpop.f32.mrf.mxu0 }
 0xb18   : > { %v2369_v45 = vrot.slane %v2364_v6, 7  ;;  %v2373_v50 = vadd.f32 %v2364_v6, %v9631_v20 }
 0xb19   : > { %v7938_v48 = vpop.f32.mrf.mxu0 }
 0xb1a   : > { %v2372_v59 = vadd.f32 %v2369_v45, %v9628_v3  ;;  %v2449_v31 = vadd.f32 %v9779_v55, %v2373_v50  ;;  %v2467_v45 = vrot.slane %v9649_v38, 7 }
 0xb1c   : > { %v2448_v36 = vadd.f32 %v2445_v49, %v2372_v59  ;;  %v7072_v18 = vmul.f32 -1.442695, %v2449_v31 }
 0xb1e   : > { %8597 = vtanh.f32 %v2448_v36  ;;  %v7071_v58 = vmul.f32 -1.442695, %v2448_v36 }
 0xb1f   : > { %8599 = vtanh.f32 %v2449_v31 }
 0xb20   : > { %8601 = vpow2.f32 %v7071_v58 }
 0xb21   : > { %8603 = vpow2.f32 %v7072_v18 }
 0xb2b   : > { %v8598_v53 = vpop.eup %8597 }
 0xb2c   : > { %2474 = vrot.lane.b32.xlu1 %v8598_v53, %s8945_s25  ;;  %v8600_v57 = vpop.eup %8599 }
 0xb2d   : > { %v8602_v21 = vpop.eup %8601 }
 0xb2e   : > { %v2456_v23 = vadd.f32 1.0, %v8602_v21  ;;  %v8604_v37 = vpop.eup %8603 }
 0xb2f   : > { %v2457_v51 = vadd.f32 1.0, %v8604_v37  ;;  %v9909_v37 = vld [vmem:[%s9270_s20 + $0x10] sm:$0xff] }
 0xb30   : > { %2476 = vrot.lane.b32.xlu1 %v8600_v57, %s8945_s25  ;;  %8605 = vrcp.f32 %v2456_v23  ;;  %v9901_v23 = vld [vmem:[%s9270_s20 + $0x18] sm:$0xff] }
 0xb31   : > { %8607 = vrcp.f32 %v2457_v51  ;;  %v9915_v51 = vld [vmem:[%s9270_s20 + $0x8] sm:$0xff] }
 0xb3d   : > { %v8606_v60 = vpop.eup %8605 }
 0xb3e   : > { %v8608_v17 = vpop.eup %8607  ;;  %v2470_v5 = vmul.f32 %v8606_v60, %v2466_v4  ;;  %v9960_v4 = vld [vmem:[%s9324_s19 + $0x50] sm:$0xff] }
 0xb3f   : > { %v2471_v49 = vmul.f32 %v8608_v17, %v2467_v45  ;;  %v10047_v45 = vld [vmem:[%s9318_s23 + $0x38] sm:$0xff] }
 0xb9e   : > { %v2475_v55 = vpop.permute.xlu1 %2474 }
 0xb9f   : > { %v2480_v62 = vmul.f32 %v8606_v60, %v2475_v55  ;;  %v9928_v55 = vld [vmem:[%s9324_s19 + $0x78] sm:$0xff] }
 0xba1   : > { %2484 = vrot.lane.b32.xlu1 %v2480_v62, %s8946_s3  ;;  %v9936_v62 = vld [vmem:[%s9324_s19 + $0x70] sm:$0xff] }
 0xba2   : > { %v2477_v47 = vpop.permute.xlu1 %2476 }
 0xba3   : > { %v2481_v22 = vmul.f32 %v8608_v17, %v2477_v47  ;;  %v9948_v47 = vld [vmem:[%s9324_s19 + $0x60] sm:$0xff] }
 0xba5   : > { %2486 = vrot.lane.b32.xlu1 %v2481_v22, %s8946_s3  ;;  %v9954_v22 = vld [vmem:[%s9324_s19 + $0x58] sm:$0xff] }
 0xc13   : > { %v2485_v6 = vpop.permute.xlu1 %2484 }
 0xc14   : > { %v9883_v48 = vadd.f32 %v2485_v6, %v2470_v5  ;;  %v10035_v5 = vld [vmem:[%s9318_s23 + $0x48] sm:$0xff]  ;;  %v10041_v6 = vld [vmem:[%s9318_s23 + $0x40] sm:$0xff] }
 0xc16   : > { %8609 = vtanh.f32 %v9883_v48 }
 0xc17   : > { %v2487_v59 = vpop.permute.xlu1 %2486 }
 0xc18   : > { %v9886_v50 = vadd.f32 %v2487_v59, %v2471_v49  ;;  %v10053_v49 = vld [vmem:[%s9318_s23 + $0x30] sm:$0xff]  ;;  %v10059_v59 = vld [vmem:[%s9318_s23 + $0x28] sm:$0xff] }
 0xc1a   : > { %8611 = vtanh.f32 %v9886_v50 }
 0xc23   : > { %v8610_v36 = vpop.eup %8609 }
 0xc24   : > { %2496 = vrot.lane.b32.xlu0 %v8610_v36, %s8945_s25 }
 0xc27   : > { %v8612_v27 = vpop.eup %8611 }
 0xc28   : > { %2498 = vrot.lane.b32.xlu1 %v8612_v27, %s8945_s25 }
 0xc96   : > { %v2497_v31 = vpop.permute.xlu0 %2496 }
 0xc97   : > { %v9891_v38 = vmul.f32 %v8606_v60, %v2497_v31  ;;  %v9921_v60 = vld [vmem:[%s9270_s20] sm:$0xff] }
 0xc99   : > { %11876 = vst [vmem:[#allocation15_spill] sm:$0xff] %v9891_v38  ;;  %v2585_v57 = vrot.slane %v9891_v38, 1 }
 0xc9a   : > { %v2499_v53 = vpop.permute.xlu1 %2498 }
 0xc9b   : > { %v9894_v58 = vmul.f32 %v8608_v17, %v2499_v53  ;;  %v9942_v17 = vld [vmem:[%s9324_s19 + $0x68] sm:$0xff] }
 0xc9d   : > { %11877 = vst [vmem:[#allocation16_spill] sm:$0xff] %v9894_v58  ;;  %v2586_v18 = vsel %vm1321_vm4, %v9894_v58, %v2585_v57 }
 0xc9e   : > { %2587 = vrot.lane.b32.xlu1 %v2586_v18, %s8946_s3 }
 0xd10   : > { %v2588_v21 = vpop.permute.xlu1 %2587 }
 0xd11   : > { %7979 = vmatmul.mubr.msk.f32.vlgmr.msra.gmra.mxu0 %vm852_vm1, %v2588_v21 }
 0xd12   : > { %7982 = vmatpush3.xpose.msk.msra.mxu0 %vm852_vm1, %v9901_v23  ;;  %7989 = vmatprep.mubr.msk.f32.mxu0 %vm8942_vm0, %v11868_v14 }
 0xd13   : > { %7983 = vmatprep.subr.mxu0 %v11868_v14 }
 0xd16   : > { %7984 = vmatpush3.xpose.msk.msra.mxu0 %vm852_vm1, %v9909_v37 }
 0xd17   : > { %7985 = vmatprep.subr.mxu0 %v11868_v14 }
 0xd1a   : > { %7986 = vmatpush3.xpose.msk.msra.mxu0 %vm852_vm1, %v9915_v51 }
 0xd1b   : > { %7987 = vmatprep.subr.mxu0 %v11868_v14 }
 0xd1e   : > { %7988 = vmatpush3.xpose.msk.msra.mxu0 %vm852_vm1, %v9921_v60 }
 0xd1f   : > { %8027 = vmatprep.subr.mxu0 %v11868_v14 }
 0xd21   : > { %7990 = vmatmul.mubr.msk.f32.vlgmr.msra.gmra.mxu0 %vm852_vm1, %v2588_v21 }
 0xd22   : > { %8028 = vmatpush3.xpose.msk.msra.mxu0 %vm852_vm1, %v9928_v55  ;;  %8059 = vmatprep.mubr.msk.f32.mxu0 %vm8942_vm0, %v11868_v14 }
 0xd23   : > { %8029 = vmatprep.subr.mxu0 %v11868_v14 }
 0xd26   : > { %8030 = vmatpush3.xpose.msk.msra.mxu0 %vm852_vm1, %v9936_v62 }
 0xd27   : > { %8031 = vmatprep.subr.mxu0 %v11868_v14 }
 0xd2a   : > { %8032 = vmatpush3.xpose.msk.msra.mxu0 %vm852_vm1, %v9942_v17 }
 0xd2b   : > { %8033 = vmatprep.subr.mxu0 %v11868_v14 }
 0xd2e   : > { %8034 = vmatpush3.xpose.msk.msra.mxu0 %vm852_vm1, %v9948_v47 }
 0xd2f   : > { %8035 = vmatprep.subr.mxu0 %v11868_v14 }
 0xd32   : > { %8036 = vmatpush3.xpose.msk.msra.mxu0 %vm852_vm1, %v9954_v22 }
 0xd33   : > { %8037 = vmatprep.subr.mxu0 %v11868_v14 }
 0xd36   : > { %8038 = vmatpush3.xpose.msk.msra.mxu0 %vm852_vm1, %v9960_v4 }
 0xd37   : > { %8039 = vmatprep.subr.mxu0 %v11868_v14 }
 0xd3a   : > { %8040 = vmatpush3.xpose.msk.msra.mxu0 %vm852_vm1, %v9402_v40  ;;  %v11878_v40 = vld [vmem:[#allocation7_spill] sm:$0xff] }
 0xd3b   : > { %8041 = vmatprep.subr.mxu0 %v11868_v14 }
 0xd3e   : > { %8042 = vmatpush3.xpose.msk.msra.mxu0 %vm852_vm1, %v9414_v42  ;;  %v11879_v42 = vld [vmem:[#allocation8_spill] sm:$0xff] }
 0xd3f   : > { %8043 = vmatprep.subr.mxu0 %v11868_v14 }
 0xd42   : > { %8044 = vmatpush3.xpose.msk.msra.mxu0 %vm852_vm1, %v9436_v52  ;;  %v9997_v52 = vld [vmem:[%s9318_s23 + $0x78] sm:$0xff] }
 0xd43   : > { %8045 = vmatprep.subr.mxu0 %v11868_v14 }
 0xd46   : > { %8046 = vmatpush3.xpose.msk.msra.mxu0 %vm852_vm1, %v9453_v61  ;;  %v10005_v61 = vld [vmem:[%s9318_s23 + $0x70] sm:$0xff] }
 0xd47   : > { %8047 = vmatprep.subr.mxu0 %v11868_v14 }
 0xd4a   : > { %8048 = vmatpush3.xpose.msk.msra.mxu0 %vm852_vm1, %v9469_v63  ;;  %v10011_v63 = vld [vmem:[%s9318_s23 + $0x68] sm:$0xff] }
 0xd4b   : > { %8049 = vmatprep.subr.mxu0 %v11868_v14 }
 0xd4e   : > { %8050 = vmatpush3.xpose.msk.msra.mxu0 %vm852_vm1, %v9485_v2  ;;  %v10017_v2 = vld [vmem:[%s9318_s23 + $0x60] sm:$0xff] }
 0xd4f   : > { %8051 = vmatprep.subr.mxu0 %v11868_v14 }
 0xd52   : > { %8052 = vmatpush3.xpose.msk.msra.mxu0 %vm852_vm1, %v9498_v10  ;;  %v10023_v10 = vld [vmem:[%s9318_s23 + $0x58] sm:$0xff] }
 0xd53   : > { %8053 = vmatprep.subr.mxu0 %v11868_v14 }
 0xd56   : > { %8054 = vmatpush3.xpose.msk.msra.mxu0 %vm852_vm1, %v9510_v13  ;;  %v10029_v13 = vld [vmem:[%s9318_s23 + $0x50] sm:$0xff] }
 0xd57   : > { %8055 = vmatprep.subr.mxu0 %v11868_v14 }
 0xd5a   : > { %8056 = vmatpush3.xpose.msk.msra.mxu0 %vm852_vm1, %v11878_v40 }
 0xd5b   : > { %8057 = vmatprep.subr.mxu0 %v11868_v14 }
 0xd5e   : > { %8058 = vmatpush3.xpose.msk.msra.mxu0 %vm852_vm1, %v11879_v42 }
 0xd5f   : > { %8080 = vmatprep.subr.mxu0 %v11868_v14 }
 0xd61   : > { %8060 = vmatmul.mubr.msk.f32.vlgmr.msra.gmra.mxu0 %vm852_vm1, %v2588_v21 }
 0xd62   : > { %8081 = vmatpush3.xpose.msk.msra.mxu0 %vm852_vm1, %v9997_v52  ;;  %8112 = vmatprep.mubr.msk.f32.mxu0 %vm8942_vm0, %v11868_v14 }
 0xd63   : > { %8082 = vmatprep.subr.mxu0 %v11868_v14 }
 0xd66   : > { %8083 = vmatpush3.xpose.msk.msra.mxu0 %vm852_vm1, %v10005_v61 }
 0xd67   : > { %8084 = vmatprep.subr.mxu0 %v11868_v14 }
 0xd6a   : > { %8085 = vmatpush3.xpose.msk.msra.mxu0 %vm852_vm1, %v10011_v63 }
 0xd6b   : > { %8086 = vmatprep.subr.mxu0 %v11868_v14 }
 0xd6e   : > { %8087 = vmatpush3.xpose.msk.msra.mxu0 %vm852_vm1, %v10017_v2 }
 0xd6f   : > { %8088 = vmatprep.subr.mxu0 %v11868_v14 }
 0xd72   : > { %8089 = vmatpush3.xpose.msk.msra.mxu0 %vm852_vm1, %v10023_v10 }
 0xd73   : > { %8090 = vmatprep.subr.mxu0 %v11868_v14 }
 0xd76   : > { %8091 = vmatpush3.xpose.msk.msra.mxu0 %vm852_vm1, %v10029_v13 }
 0xd77   : > { %8092 = vmatprep.subr.mxu0 %v11868_v14 }
 0xd7a   : > { %8093 = vmatpush3.xpose.msk.msra.mxu0 %vm852_vm1, %v10035_v5 }
 0xd7b   : > { %8094 = vmatprep.subr.mxu0 %v11868_v14 }
 0xd7e   : > { %8095 = vmatpush3.xpose.msk.msra.mxu0 %vm852_vm1, %v10041_v6 }
 0xd7f   : > { %8096 = vmatprep.subr.mxu0 %v11868_v14 }
 0xd82   : > { %8097 = vmatpush3.xpose.msk.msra.mxu0 %vm852_vm1, %v10047_v45 }
 0xd83   : > { %8098 = vmatprep.subr.mxu0 %v11868_v14 }
 0xd86   : > { %8099 = vmatpush3.xpose.msk.msra.mxu0 %vm852_vm1, %v10053_v49 }
 0xd87   : > { %8100 = vmatprep.subr.mxu0 %v11868_v14 }
 0xd8a   : > { %8101 = vmatpush3.xpose.msk.msra.mxu0 %vm852_vm1, %v10059_v59 }
 0xd8b   : > { %8102 = vmatprep.subr.mxu0 %v11868_v14 }
 0xd8e   : > { %8103 = vmatpush3.xpose.msk.msra.mxu0 %vm852_vm1, %v9482_v1 }
 0xd8f   : > { %8104 = vmatprep.subr.mxu0 %v11868_v14 }
 0xd92   : > { %8105 = vmatpush3.xpose.msk.msra.mxu0 %vm852_vm1, %v9495_v33 }
 0xd93   : > { %8106 = vmatprep.subr.mxu0 %v11868_v14 }
 0xd96   : > { %8107 = vmatpush3.xpose.msk.msra.mxu0 %vm852_vm1, %v9507_v11 }
 0xd97   : > { %8108 = vmatprep.subr.mxu0 %v11868_v14 }
 0xd9a   : > { %8109 = vmatpush3.xpose.msk.msra.mxu0 %vm852_vm1, %v9519_v16 }
 0xd9b   : > { %8110 = vmatprep.subr.mxu0 %v11868_v14 }
 0xd9e   : > { %8111 = vmatpush3.xpose.msk.msra.mxu0 %vm852_vm1, %v9530_v43 }
 0xd9f   : > { %8150 = vmatprep.subr.mxu0 %v11868_v14 }
 0xdd1   : > { %v2657_v1 = vpop.f32.mrf.mxu0 }
 0xdd2   : > { %v2668_v33 = vrot.slane %v2657_v1, %v9127_v15 }
 0xdd3   : > { %v7980_v36 = vpop.f32.mrf.mxu0 }
 0xdd4   : > { %v2669_v27 = vcombine.high %v2668_v33, %v2668_v33  ;;  %v2676_v31 = vrot.slane %v2668_v33, %v9127_v15 }
 0xdd6   : > { %v2683_v11 = vrot.slane %v2669_v27, %v9127_v15  ;;  %v2687_v53 = vrot.slane %v2676_v31, %v9135_v19 }
 0xdd8   : > { %v2691_v16 = vrot.slane %v2683_v11, %v9135_v19  ;;  %v2695_v57 = vadd.f32 %v2687_v53, %v9148_v29  ;;  %v2694_v18 = vadd.f32 %v2687_v53, %v9138_v25 }
 0xdda   : > { %v2699_v43 = vmax.f32 %v2695_v57, 0.0  ;;  %v2698_v21 = vmax.f32 %v2694_v18, 0.0  ;;  %v2696_v40 = vadd.f32 %v2691_v16, %v9152_v32  ;;  %v2697_v42 = vadd.f32 %v2691_v16, %v9150_v30 }
 0xddc   : > { %v2703_v1 = vmul.f32 %v9796_v24, %v2699_v43  ;;  %v2702_v33 = vmul.f32 %v9796_v24, %v2698_v21  ;;  %v2700_v36 = vmax.f32 %v2696_v40, 0.0  ;;  %v2701_v41 = vmax.f32 %v2697_v42, 0.0 }
 0xdde   : > { %v2709_v27 = vsel %vm981_vm2, %v2703_v1, 0.0  ;;  %v2706_v31 = vsel %vm981_vm2, %v2702_v33, 0.0  ;;  %v2704_v11 = vmul.f32 %v9796_v24, %v2700_v36  ;;  %v2705_v16 = vmul.f32 %v9796_v24, %v2701_v41 }
 0xddf   : > { %2710 = vadd.xlane.f32.xlu0 %v2709_v27  ;;  %2707 = vadd.xlane.f32.xlu1 %v2706_v31 }
 0xde0   : > { %v2712_v57 = vsel %vm981_vm2, %v2704_v11, 0.0  ;;  %v2715_v43 = vsel %vm981_vm2, %v2705_v16, 0.0 }
 0xde1   : > { %v10093_v53 = vpop.f32.mrf.mxu0 }
 0xde3   : > { %v7991_v18 = vpop.f32.mrf.mxu0  ;;  %2713 = vadd.xlane.f32.xlu1 %v2712_v57 }
 0xde7   : > { %2716 = vadd.xlane.f32.xlu1 %v2715_v43 }
 0xe21   : > { %v10098_v21 = vpop.f32.mrf.mxu0 }
 0xe23   : > { %v8061_v40 = vpop.f32.mrf.mxu0 }
 0xe68   : > { %v2708_v1 = vpop.xlane.xlu1 %2707  ;;  %v2711_v33 = vpop.xlane.xlu0 %2710 }
 0xe69   : > { %v2729_v42 = vrot.slane %v2711_v33, %v9171_v54  ;;  %v2725_v27 = vrot.slane %v2708_v1, %v9174_v56 }
 0xe6b   : > { %v2730_v41 = vsel %vm1310_vm3, %v2729_v42, %v2725_v27 }
 0xe6c   : > { %v2714_v36 = vpop.xlane.xlu1 %2713 }
 0xe6d   : > { %v2734_v11 = vrot.slane %v2714_v36, %v9174_v56 }
 0xe70   : > { %v2717_v31 = vpop.xlane.xlu1 %2716 }
 0xe71   : > { %v2738_v24 = vrot.slane %v2717_v31, %v9171_v54 }
 0xe73   : > { %v2739_v57 = vsel %vm1310_vm3, %v2738_v24, %v2734_v11 }
 0xe74   : > { %v2740_v16 = vsel %vm1321_vm4, %v2739_v57, %v2730_v41 }
 0xe75   : > { %v2742_v18 = vsel %vm1324_vm5, %v2740_v16, -inf }
 0xe76   : > { %2743 = vmax.xlane.f32.xlu0 %v2742_v18 }
 0xeff   : > { %v2744_v43 = vpop.xlane.xlu0 %2743 }
 0xf00   : > { %v2749_v40 = vrot.slane %v2744_v43, %v9135_v19  ;;  %v2753_v34 = vrot.slane %v2744_v43, %v9185_v12 }
 0xf02   : > { %v2756_v39 = vsub.f32 %v2708_v1, %v2749_v40  ;;  %v2757_v26 = vsub.f32 %v2711_v33, %v2749_v40  ;;  %v2758_v8 = vsub.f32 %v2714_v36, %v2753_v34  ;;  %v2759_v38 = vsub.f32 %v2717_v31, %v2753_v34 }
 0xf04   : > { %v2760_v0 = vmul.f32 1.442695, %v2756_v39  ;;  %v2762_v58 = vmul.f32 1.442695, %v2757_v26  ;;  %v2764_v42 = vmul.f32 1.442695, %v2758_v8 }
 0xf05   : > { %v2766_v27 = vmul.f32 1.442695, %v2759_v38 }
 0xf06   : > { %8613 = vpow2.f32 %v2760_v0 }
 0xf07   : > { %8615 = vpow2.f32 %v2762_v58 }
 0xf08   : > { %8617 = vpow2.f32 %v2764_v42 }
 0xf09   : > { %8619 = vpow2.f32 %v2766_v27 }
 0xf13   : > { %v8614_v11 = vpop.eup %8613 }
 0xf14   : > { %v8616_v24 = vpop.eup %8615  ;;  %2773 = vperm.xlu1 %8551, %v8614_v11  }
 0xf15   : > { %2776 = vperm.xlu0 %8552, %v8616_v24   ;;  %v8618_v41 = vpop.eup %8617 }
 0xf16   : > { %v8620_v57 = vpop.eup %8619 }
 0xf18   : > { %2779 = vperm.xlu1 %8551, %v8618_v41  }
 0xf1c   : > { %2782 = vperm.xlu1 %8551, %v8620_v57  }
 0xf8f   : > { %v2774_v1 = vpop.permute.xlu1 %2773 }
 0xf90   : > { %v2777_v33 = vpop.permute.xlu0 %2776  ;;  %v2787_v0 = vrot.slane %v2774_v1, %v9174_v56 }
 0xf91   : > { %v2791_v26 = vrot.slane %v2777_v33, %v9171_v54 }
 0xf93   : > { %v2780_v36 = vpop.permute.xlu1 %2779  ;;  %v2792_v38 = vsel %vm1310_vm3, %v2791_v26, %v2787_v0  ;;  %v10133_v26 = vld [vmem:[%s9598_s22] ss:$0 sm:$0xff] }
 0xf94   : > { %v2796_v34 = vrot.slane %v2780_v36, %v9174_v56 }
 0xf97   : > { %v2783_v8 = vpop.permute.xlu1 %2782 }
 0xf98   : > { %v2800_v39 = vrot.slane %v2783_v8, %v9171_v54 }
 0xf9a   : > { %v2801_v58 = vsel %vm1310_vm3, %v2800_v39, %v2796_v34 }
 0xf9b   : > { %v2802_v31 = vsel %vm1321_vm4, %v2801_v58, %v2792_v38 }
 0xf9c   : > { %v2804_v16 = vsel %vm1324_vm5, %v2802_v31, 0.0 }
 0xf9d   : > { %2805 = vadd.xlane.f32.xlu0 %v2804_v16 }
0x1026   : > { %v2806_v18 = vpop.xlane.xlu0 %2805 }
0x1027   : > { %8621 = vrcp.f32 %v2806_v18 }
0x1034   : > { %v8622_v43 = vpop.eup %8621 }
0x1035   : > { %v2812_v40 = vrot.slane %v8622_v43, %v9135_v19  ;;  %v2816_v1 = vrot.slane %v8622_v43, %v9185_v12 }
0x1037   : > { %v10119_v42 = vmul.f32 %v8614_v11, %v2812_v40  ;;  %v10122_v27 = vmul.f32 %v8616_v24, %v2812_v40  ;;  %v10126_v33 = vmul.f32 %v8618_v41, %v2816_v1  ;;  %v10129_v36 = vmul.f32 %v8620_v57, %v2816_v1 }
0x1038   : > { %v2932_v11 = vadd.f32 %v10133_v26, %v10093_v53 }
0x1039   : > { %11880 = vst [vmem:[#allocation7_spill] sm:$0xff] %v10119_v42  ;;  %2825 = vperm.xlu1 %8551, %v10119_v42   ;;  %11881 = vst [vmem:[#allocation8_spill] sm:$0xff] %v10122_v27 }
0x103a   : > { %11882 = vst [vmem:[#allocation17_spill] sm:$0xff] %v10126_v33  ;;  %11883 = vst [vmem:[#allocation18_spill] sm:$0xff] %v10129_v36  ;;  %v7081_v0 = vmul.f32 -1.442695, %v2932_v11 }
0x103c   : > { %8623 = vpow2.f32 %v7081_v0 }
0x103d   : > { %2830 = vperm.xlu1 %8551, %v10122_v27  }
0x1041   : > { %2835 = vperm.xlu1 %8551, %v10126_v33  }
0x1045   : > { %2840 = vperm.xlu1 %8551, %v10129_v36  }
0x1049   : > { %v8624_v31 = vpop.eup %8623 }
0x104a   : > { %v2938_v40 = vadd.f32 1.0, %v8624_v31 }
0x104c   : > { %8625 = vrcp.f32 %v2938_v40 }
0x10b4   : > { %v2826_v24 = vpop.permute.xlu1 %2825 }
0x10b5   : > { %v2843_v8 = vmul.f32 %v9838_v28, %v2826_v24 }
0x10b7   : > { %v2847_v39 = vsel %vm852_vm1, %v2843_v8, 0.0 }
0x10b8   : > { %v2831_v34 = vpop.permute.xlu1 %2830 }
0x10b9   : > { %v2844_v41 = vmul.f32 %v9842_v46, %v2831_v34 }
0x10bb   : > { %v2848_v57 = vsel %vm852_vm1, %v2844_v41, 0.0 }
0x10bc   : > { %v2849_v38 = vadd.f32 %v2848_v57, %v2847_v39  ;;  %v2836_v58 = vpop.permute.xlu1 %2835 }
0x10bd   : > { %v2845_v18 = vmul.f32 %v9848_v44, %v2836_v58  ;;  %v8626_v58 = vpop.eup %8625 }
0x10be   : > { %v2850_v16 = vrot.slane %v2849_v38, 4 }
0x10bf   : > { %v2856_v28 = vsel %vm852_vm1, %v2845_v18, 0.0 }
0x10c0   : > { %v2851_v43 = vadd.f32 %v2850_v16, %v2849_v38  ;;  %v2841_v53 = vpop.permute.xlu1 %2840 }
0x10c1   : > { %v2846_v1 = vmul.f32 %v9852_v9, %v2841_v53  ;;  %v3097_v53 = vrot.slane %v10098_v21, 6 }
0x10c2   : > { %v2852_v46 = vrot.slane %v2851_v43, 2 }
0x10c3   : > { %v2857_v11 = vsel %vm852_vm1, %v2846_v1, 0.0  ;;  %v3098_v1 = vrot.slane %v10098_v21, 7 }
0x10c4   : > { %v2858_v0 = vadd.f32 %v2857_v11, %v2856_v28  ;;  %v2853_v8 = vadd.f32 %v2852_v46, %v2851_v43 }
0x10c6   : > { %v2859_v24 = vrot.slane %v2858_v0, 4  ;;  %v2854_v39 = vrot.slane %v2853_v8, 1 }
0x10c8   : > { %v2860_v34 = vadd.f32 %v2859_v24, %v2858_v0  ;;  %v2855_v44 = vadd.f32 %v2854_v39, %v2853_v8 }
0x10ca   : > { %v2861_v41 = vrot.slane %v2860_v34, 2 }
0x10cc   : > { %v2862_v57 = vadd.f32 %v2861_v41, %v2860_v34 }
0x10ce   : > { %v2863_v36 = vrot.slane %v2862_v57, 1 }
0x10d0   : > { %v2864_v38 = vadd.f32 %v2863_v36, %v2862_v57 }
0x10d2   : > { %v2943_v31 = vsel %vm1321_vm4, %v2864_v38, %v2855_v44 }
0x10d3   : > { %v2945_v9 = vmul.f32 %v8626_v58, %v2943_v31 }
0x10d5   : > { %8025 = vmatmul.mubr.msk.f32.vlgmr.msra.gmra.mxu1 %vm852_vm1, %v2945_v9  ;;  %v3119_v9 = vrot.slane %v9883_v48, 7 }
0x10d6   : > { %8063 = vmatpush3.xpose.msk.msra.mxu1 %vm852_vm1, %v9860_v7  ;;  %8066 = vmatprep.mubr.msk.f32.mxu1 %vm8942_vm0, %v11868_v14 }
0x10d7   : > { %8064 = vmatprep.subr.mxu1 %v11868_v14 }
0x10da   : > { %8065 = vmatpush3.xpose.msk.msra.mxu1 %vm852_vm1, %v9868_v35 }
0x10db   : > { %8069 = vmatprep.subr.mxu1 %v11868_v14 }
0x1195   : > { %v3015_v36 = vpop.f32.mrf.mxu1 }
0x1196   : > { %v3020_v16 = vrot.slane %v3015_v36, 6  ;;  %v3021_v18 = vrot.slane %v3015_v36, 7 }
0x1197   : > { %v8026_v43 = vpop.f32.mrf.mxu1 }
0x1198   : > { %v3024_v40 = vadd.f32 %v3020_v16, %v9628_v3  ;;  %v3025_v7 = vadd.f32 %v3021_v18, %v9631_v20  ;;  %v3120_v18 = vrot.slane %v9886_v50, 7 }
0x119a   : > { %v3101_v28 = vadd.f32 %v3097_v53, %v3024_v40  ;;  %v3102_v11 = vadd.f32 %v3098_v1, %v3025_v7 }
0x119c   : > { %8627 = vtanh.f32 %v3101_v28  ;;  %v7116_v0 = vmul.f32 -1.442695, %v3101_v28  ;;  %v7117_v24 = vmul.f32 -1.442695, %v3102_v11 }
0x119d   : > { %8629 = vtanh.f32 %v3102_v11 }
0x119e   : > { %8631 = vpow2.f32 %v7116_v0 }
0x119f   : > { %8633 = vpow2.f32 %v7117_v24 }
0x11a9   : > { %v8628_v46 = vpop.eup %8627 }
0x11aa   : > { %3127 = vrot.lane.b32.xlu1 %v8628_v46, %s8945_s25  ;;  %v8630_v35 = vpop.eup %8629 }
0x11ab   : > { %v8632_v8 = vpop.eup %8631 }
0x11ac   : > { %v3109_v34 = vadd.f32 1.0, %v8632_v8  ;;  %v8634_v41 = vpop.eup %8633 }
0x11ad   : > { %v3110_v39 = vadd.f32 1.0, %v8634_v41 }
0x11ae   : > { %3129 = vrot.lane.b32.xlu1 %v8630_v35, %s8945_s25  ;;  %8635 = vrcp.f32 %v3109_v34 }
0x11af   : > { %8637 = vrcp.f32 %v3110_v39 }
0x11bb   : > { %v8636_v21 = vpop.eup %8635 }
0x11bc   : > { %v8638_v38 = vpop.eup %8637  ;;  %v3123_v36 = vmul.f32 %v8636_v21, %v3119_v9 }
0x11bd   : > { %v3124_v53 = vmul.f32 %v8638_v38, %v3120_v18 }
0x121c   : > { %v3128_v57 = vpop.permute.xlu1 %3127 }
0x121d   : > { %v3133_v44 = vmul.f32 %v8636_v21, %v3128_v57 }
0x121f   : > { %3137 = vrot.lane.b32.xlu1 %v3133_v44, %s8946_s3 }
0x1220   : > { %v3130_v58 = vpop.permute.xlu1 %3129 }
0x1221   : > { %v3134_v31 = vmul.f32 %v8638_v38, %v3130_v58 }
0x1223   : > { %3139 = vrot.lane.b32.xlu1 %v3134_v31, %s8946_s3  ;;  %v10353_v31 = vld [vmem:[%s9144_s30] ss:$0 sm:$0xff] }
0x1291   : > { %v3138_v16 = vpop.permute.xlu1 %3137 }
0x1292   : > { %v10165_v43 = vadd.f32 %v3138_v16, %v3123_v36 }
0x1294   : > { %8639 = vtanh.f32 %v10165_v43 }
0x1295   : > { %v3140_v40 = vpop.permute.xlu1 %3139 }
0x1296   : > { %v10168_v7 = vadd.f32 %v3140_v40, %v3124_v53 }
0x1298   : > { %8641 = vtanh.f32 %v10168_v7 }
0x12a1   : > { %v8640_v1 = vpop.eup %8639 }
0x12a2   : > { %3149 = vrot.lane.b32.xlu0 %v8640_v1, %s8945_s25 }
0x12a5   : > { %v8642_v28 = vpop.eup %8641 }
0x12a6   : > { %3151 = vrot.lane.b32.xlu1 %v8642_v28, %s8945_s25 }
0x1314   : > { %v3150_v48 = vpop.permute.xlu0 %3149 }
0x1315   : > { %v10173_v11 = vmul.f32 %v8636_v21, %v3150_v48 }
0x1317   : > { %11884 = vst [vmem:[#allocation19_spill] sm:$0xff] %v10173_v11  ;;  %v3238_v35 = vrot.slane %v10173_v11, 2 }
0x1318   : > { %v3152_v50 = vpop.permute.xlu1 %3151 }
0x1319   : > { %v10175_v46 = vmul.f32 %v8638_v38, %v3152_v50 }
0x131b   : > { %11885 = vst [vmem:[#allocation20_spill] sm:$0xff] %v10175_v46  ;;  %v3239_v0 = vrot.slane %v10175_v46, 1 }
0x131d   : > { %v3240_v24 = vsel %vm1321_vm4, %v3239_v0, %v3238_v35 }
0x131e   : > { %3241 = vrot.lane.b32.xlu1 %v3240_v24, %s8946_s3 }
0x1390   : > { %v3242_v8 = vpop.permute.xlu1 %3241 }
0x1391   : > { %8067 = vmatmul.mubr.msk.f32.vlgmr.msra.gmra.mxu1 %vm852_vm1, %v3242_v8 }
0x1392   : > { %8070 = vmatpush3.xpose.msk.msra.mxu1 %vm852_vm1, %v9901_v23  ;;  %8077 = vmatprep.mubr.msk.f32.mxu1 %vm8942_vm0, %v11868_v14  ;;  %v10218_v23 = vld [vmem:[%s9324_s19 + $0x48] sm:$0xff] }
0x1393   : > { %8071 = vmatprep.subr.mxu1 %v11868_v14 }
0x1396   : > { %8072 = vmatpush3.xpose.msk.msra.mxu1 %vm852_vm1, %v9909_v37  ;;  %v10224_v37 = vld [vmem:[%s9324_s19 + $0x40] sm:$0xff] }
0x1397   : > { %8073 = vmatprep.subr.mxu1 %v11868_v14 }
0x139a   : > { %8074 = vmatpush3.xpose.msk.msra.mxu1 %vm852_vm1, %v9915_v51  ;;  %v10230_v51 = vld [vmem:[%s9324_s19 + $0x38] sm:$0xff] }
0x139b   : > { %8075 = vmatprep.subr.mxu1 %v11868_v14 }
0x139e   : > { %8076 = vmatpush3.xpose.msk.msra.mxu1 %vm852_vm1, %v9921_v60  ;;  %v10236_v60 = vld [vmem:[%s9324_s19 + $0x30] sm:$0xff] }
0x139f   : > { %8115 = vmatprep.subr.mxu1 %v11868_v14 }
0x13a1   : > { %8078 = vmatmul.mubr.msk.f32.vlgmr.msra.gmra.mxu1 %vm852_vm1, %v3242_v8 }
0x13a2   : > { %8116 = vmatpush3.xpose.msk.msra.mxu1 %vm852_vm1, %v9928_v55  ;;  %8147 = vmatprep.mubr.msk.f32.mxu1 %vm8942_vm0, %v11868_v14  ;;  %v10242_v55 = vld [vmem:[%s9324_s19 + $0x28] sm:$0xff] }
0x13a3   : > { %8117 = vmatprep.subr.mxu1 %v11868_v14 }
0x13a6   : > { %8118 = vmatpush3.xpose.msk.msra.mxu1 %vm852_vm1, %v9936_v62  ;;  %v10248_v62 = vld [vmem:[%s9324_s19 + $0x20] sm:$0xff] }
0x13a7   : > { %8119 = vmatprep.subr.mxu1 %v11868_v14 }
0x13aa   : > { %8120 = vmatpush3.xpose.msk.msra.mxu1 %vm852_vm1, %v9942_v17  ;;  %v10254_v17 = vld [vmem:[%s9324_s19 + $0x18] sm:$0xff] }
0x13ab   : > { %8121 = vmatprep.subr.mxu1 %v11868_v14 }
0x13ae   : > { %8122 = vmatpush3.xpose.msk.msra.mxu1 %vm852_vm1, %v9948_v47  ;;  %v10260_v47 = vld [vmem:[%s9324_s19 + $0x10] sm:$0xff] }
0x13af   : > { %8123 = vmatprep.subr.mxu1 %v11868_v14 }
0x13b2   : > { %8124 = vmatpush3.xpose.msk.msra.mxu1 %vm852_vm1, %v9954_v22  ;;  %v10266_v22 = vld [vmem:[%s9324_s19 + $0x8] sm:$0xff] }
0x13b3   : > { %8125 = vmatprep.subr.mxu1 %v11868_v14 }
0x13b6   : > { %8126 = vmatpush3.xpose.msk.msra.mxu1 %vm852_vm1, %v9960_v4  ;;  %v10272_v4 = vld [vmem:[%s9324_s19] sm:$0xff] }
0x13b7   : > { %8127 = vmatprep.subr.mxu1 %v11868_v14 }
0x13ba   : > { %8128 = vmatpush3.xpose.msk.msra.mxu1 %vm852_vm1, %v10218_v23 }
0x13bb   : > { %8129 = vmatprep.subr.mxu1 %v11868_v14 }
0x13be   : > { %8130 = vmatpush3.xpose.msk.msra.mxu1 %vm852_vm1, %v10224_v37 }
0x13bf   : > { %8131 = vmatprep.subr.mxu1 %v11868_v14 }
0x13c2   : > { %8132 = vmatpush3.xpose.msk.msra.mxu1 %vm852_vm1, %v10230_v51 }
0x13c3   : > { %8133 = vmatprep.subr.mxu1 %v11868_v14 }
0x13c6   : > { %8134 = vmatpush3.xpose.msk.msra.mxu1 %vm852_vm1, %v10236_v60 }
0x13c7   : > { %8135 = vmatprep.subr.mxu1 %v11868_v14 }
0x13ca   : > { %8136 = vmatpush3.xpose.msk.msra.mxu1 %vm852_vm1, %v10242_v55 }
0x13cb   : > { %8137 = vmatprep.subr.mxu1 %v11868_v14 }
0x13ce   : > { %8138 = vmatpush3.xpose.msk.msra.mxu1 %vm852_vm1, %v10248_v62 }
0x13cf   : > { %8139 = vmatprep.subr.mxu1 %v11868_v14 }
0x13d2   : > { %8140 = vmatpush3.xpose.msk.msra.mxu1 %vm852_vm1, %v10254_v17 }
0x13d3   : > { %8141 = vmatprep.subr.mxu1 %v11868_v14 }
0x13d6   : > { %8142 = vmatpush3.xpose.msk.msra.mxu1 %vm852_vm1, %v10260_v47 }
0x13d7   : > { %8143 = vmatprep.subr.mxu1 %v11868_v14 }
0x13da   : > { %8144 = vmatpush3.xpose.msk.msra.mxu1 %vm852_vm1, %v10266_v22 }
0x13db   : > { %8145 = vmatprep.subr.mxu1 %v11868_v14 }
0x13de   : > { %8146 = vmatpush3.xpose.msk.msra.mxu1 %vm852_vm1, %v10272_v4 }
0x13df   : > { %8168 = vmatprep.subr.mxu1 %v11868_v14 }
0x13e1   : > { %8148 = vmatmul.mubr.msk.f32.vlgmr.msra.gmra.mxu1 %vm852_vm1, %v3242_v8 }
0x13e2   : > { %8169 = vmatpush3.xpose.msk.msra.mxu1 %vm852_vm1, %v9997_v52  ;;  %8200 = vmatprep.mubr.msk.f32.mxu1 %vm8942_vm0, %v11868_v14  ;;  %v10314_v52 = vld [vmem:[%s9318_s23 + $0x20] sm:$0xff] }
0x13e3   : > { %8170 = vmatprep.subr.mxu1 %v11868_v14 }
0x13e6   : > { %8171 = vmatpush3.xpose.msk.msra.mxu1 %vm852_vm1, %v10005_v61  ;;  %v10320_v61 = vld [vmem:[%s9318_s23 + $0x18] sm:$0xff] }
0x13e7   : > { %8172 = vmatprep.subr.mxu1 %v11868_v14 }
0x13ea   : > { %8173 = vmatpush3.xpose.msk.msra.mxu1 %vm852_vm1, %v10011_v63  ;;  %v10326_v63 = vld [vmem:[%s9318_s23 + $0x10] sm:$0xff] }
0x13eb   : > { %8174 = vmatprep.subr.mxu1 %v11868_v14 }
0x13ee   : > { %8175 = vmatpush3.xpose.msk.msra.mxu1 %vm852_vm1, %v10017_v2  ;;  %v10332_v2 = vld [vmem:[%s9318_s23 + $0x8] sm:$0xff] }
0x13ef   : > { %8176 = vmatprep.subr.mxu1 %v11868_v14 }
0x13f2   : > { %8177 = vmatpush3.xpose.msk.msra.mxu1 %vm852_vm1, %v10023_v10  ;;  %v10338_v10 = vld [vmem:[%s9318_s23] sm:$0xff] }
0x13f3   : > { %8178 = vmatprep.subr.mxu1 %v11868_v14 }
0x13f6   : > { %8179 = vmatpush3.xpose.msk.msra.mxu1 %vm852_vm1, %v10029_v13 }
0x13f7   : > { %8180 = vmatprep.subr.mxu1 %v11868_v14 }
0x13fa   : > { %8181 = vmatpush3.xpose.msk.msra.mxu1 %vm852_vm1, %v10035_v5 }
0x13fb   : > { %8182 = vmatprep.subr.mxu1 %v11868_v14 }
0x13fe   : > { %8183 = vmatpush3.xpose.msk.msra.mxu1 %vm852_vm1, %v10041_v6 }
0x13ff   : > { %8184 = vmatprep.subr.mxu1 %v11868_v14 }
0x1402   : > { %8185 = vmatpush3.xpose.msk.msra.mxu1 %vm852_vm1, %v10047_v45 }
0x1403   : > { %8186 = vmatprep.subr.mxu1 %v11868_v14 }
0x1406   : > { %8187 = vmatpush3.xpose.msk.msra.mxu1 %vm852_vm1, %v10053_v49 }
0x1407   : > { %8188 = vmatprep.subr.mxu1 %v11868_v14 }
0x140a   : > { %8189 = vmatpush3.xpose.msk.msra.mxu1 %vm852_vm1, %v10059_v59 }
0x140b   : > { %8190 = vmatprep.subr.mxu1 %v11868_v14 }
0x140e   : > { %8191 = vmatpush3.xpose.msk.msra.mxu1 %vm852_vm1, %v10314_v52 }
0x140f   : > { %8192 = vmatprep.subr.mxu1 %v11868_v14 }
0x1412   : > { %8193 = vmatpush3.xpose.msk.msra.mxu1 %vm852_vm1, %v10320_v61 }
0x1413   : > { %8194 = vmatprep.subr.mxu1 %v11868_v14 }
0x1416   : > { %8195 = vmatpush3.xpose.msk.msra.mxu1 %vm852_vm1, %v10326_v63 }
0x1417   : > { %8196 = vmatprep.subr.mxu1 %v11868_v14 }
0x141a   : > { %8197 = vmatpush3.xpose.msk.msra.mxu1 %vm852_vm1, %v10332_v2 }
0x141b   : > { %8198 = vmatprep.subr.mxu1 %v11868_v14 }
0x141e   : > { %8199 = vmatpush3.xpose.msk.msra.mxu1 %vm852_vm1, %v10338_v10 }
0x141f   : > { %8238 = vmatprep.subr.mxu1 %v11868_v14 }
0x1451   : > { %v3311_v13 = vpop.f32.mrf.mxu1 }
0x1452   : > { %v3322_v5 = vrot.slane %v3311_v13, %v9127_v15 }
0x1453   : > { %v8068_v6 = vpop.f32.mrf.mxu1 }
0x1454   : > { %v3323_v45 = vcombine.high %v3322_v5, %v3322_v5  ;;  %v3330_v49 = vrot.slane %v3322_v5, %v9127_v15 }
0x1456   : > { %v3337_v59 = vrot.slane %v3323_v45, %v9127_v15  ;;  %v3341_v34 = vrot.slane %v3330_v49, %v9135_v19 }
0x1458   : > { %v3345_v41 = vrot.slane %v3337_v59, %v9135_v19  ;;  %v3349_v39 = vadd.f32 %v3341_v34, %v9148_v29  ;;  %v3348_v21 = vadd.f32 %v3341_v34, %v9138_v25 }
0x145a   : > { %v3353_v57 = vmax.f32 %v3349_v39, 0.0  ;;  %v3352_v44 = vmax.f32 %v3348_v21, 0.0  ;;  %v3350_v38 = vadd.f32 %v3345_v41, %v9152_v32  ;;  %v3351_v58 = vadd.f32 %v3345_v41, %v9150_v30 }
0x145c   : > { %v3357_v9 = vmul.f32 %v10353_v31, %v3353_v57  ;;  %v3356_v36 = vmul.f32 %v10353_v31, %v3352_v44  ;;  %v3354_v16 = vmax.f32 %v3350_v38, 0.0  ;;  %v3355_v1 = vmax.f32 %v3351_v58, 0.0 }
0x145e   : > { %v3363_v18 = vsel %vm981_vm2, %v3357_v9, 0.0  ;;  %v3360_v53 = vsel %vm981_vm2, %v3356_v36, 0.0  ;;  %v3358_v40 = vmul.f32 %v10353_v31, %v3354_v16  ;;  %v3359_v50 = vmul.f32 %v10353_v31, %v3355_v1 }
0x145f   : > { %3364 = vadd.xlane.f32.xlu0 %v3363_v18  ;;  %3361 = vadd.xlane.f32.xlu1 %v3360_v53 }
0x1460   : > { %v3366_v48 = vsel %vm981_vm2, %v3358_v40, 0.0  ;;  %v3369_v0 = vsel %vm981_vm2, %v3359_v50, 0.0 }
0x1461   : > { %v10360_v28 = vpop.f32.mrf.mxu1 }
0x1463   : > { %v8079_v35 = vpop.f32.mrf.mxu1  ;;  %3367 = vadd.xlane.f32.xlu1 %v3366_v48 }
0x1467   : > { %3370 = vadd.xlane.f32.xlu1 %v3369_v0 }
0x14a1   : > { %v10365_v24 = vpop.f32.mrf.mxu1 }
0x14a3   : > { %v8149_v8 = vpop.f32.mrf.mxu1 }
0x14e8   : > { %v3362_v13 = vpop.xlane.xlu1 %3361  ;;  %v3365_v5 = vpop.xlane.xlu0 %3364 }
0x14e9   : > { %v3383_v45 = vrot.slane %v3365_v5, %v9171_v54  ;;  %v3379_v49 = vrot.slane %v3362_v13, %v9174_v56 }
0x14eb   : > { %v3384_v39 = vsel %vm1310_vm3, %v3383_v45, %v3379_v49 }
0x14ec   : > { %v3368_v6 = vpop.xlane.xlu1 %3367 }
0x14ed   : > { %v3388_v34 = vrot.slane %v3368_v6, %v9174_v56 }
0x14f0   : > { %v3371_v59 = vpop.xlane.xlu1 %3370 }
0x14f1   : > { %v3392_v41 = vrot.slane %v3371_v59, %v9171_v54 }
0x14f3   : > { %v3393_v21 = vsel %vm1310_vm3, %v3392_v41, %v3388_v34 }
0x14f4   : > { %v3394_v57 = vsel %vm1321_vm4, %v3393_v21, %v3384_v39 }
0x14f5   : > { %v3396_v44 = vsel %vm1324_vm5, %v3394_v57, -inf }
0x14f6   : > { %3397 = vmax.xlane.f32.xlu0 %v3396_v44 }
0x157f   : > { %v3398_v38 = vpop.xlane.xlu0 %3397 }
0x1580   : > { %v3403_v58 = vrot.slane %v3398_v38, %v9135_v19  ;;  %v3407_v9 = vrot.slane %v3398_v38, %v9185_v12 }
0x1582   : > { %v3410_v36 = vsub.f32 %v3362_v13, %v3403_v58  ;;  %v3411_v16 = vsub.f32 %v3365_v5, %v3403_v58  ;;  %v3412_v18 = vsub.f32 %v3368_v6, %v3407_v9  ;;  %v3413_v1 = vsub.f32 %v3371_v59, %v3407_v9 }
0x1584   : > { %v3414_v53 = vmul.f32 1.442695, %v3410_v36  ;;  %v3416_v40 = vmul.f32 1.442695, %v3411_v16  ;;  %v3418_v48 = vmul.f32 1.442695, %v3412_v18 }
0x1585   : > { %v3420_v50 = vmul.f32 1.442695, %v3413_v1 }
0x1586   : > { %8643 = vpow2.f32 %v3414_v53 }
0x1587   : > { %8645 = vpow2.f32 %v3416_v40 }
0x1588   : > { %8647 = vpow2.f32 %v3418_v48  ;;  %v3586_v48 = vadd.f32 %v10133_v26, %v10360_v28 }
0x1589   : > { %8649 = vpow2.f32 %v3420_v50 }
0x158a   : > { %v7126_v50 = vmul.f32 -1.442695, %v3586_v48 }
0x1593   : > { %v8644_v35 = vpop.eup %8643 }
0x1594   : > { %v8646_v0 = vpop.eup %8645  ;;  %3427 = vperm.xlu1 %8551, %v8644_v35  }
0x1595   : > { %3430 = vperm.xlu0 %8552, %v8646_v0   ;;  %v8648_v8 = vpop.eup %8647 }
0x1596   : > { %v8650_v45 = vpop.eup %8649 }
0x1598   : > { %3433 = vperm.xlu1 %8551, %v8648_v8  }
0x159c   : > { %3436 = vperm.xlu1 %8551, %v8650_v45  }
0x160f   : > { %v3428_v13 = vpop.permute.xlu1 %3427 }
0x1610   : > { %v3431_v5 = vpop.permute.xlu0 %3430  ;;  %v3441_v59 = vrot.slane %v3428_v13, %v9174_v56 }
0x1611   : > { %v3445_v49 = vrot.slane %v3431_v5, %v9171_v54  ;;  %v10406_v5 = vld [vmem:[%s9082_s26 + $0x8] sm:$0xff] }
0x1613   : > { %v3434_v6 = vpop.permute.xlu1 %3433  ;;  %v3446_v21 = vsel %vm1310_vm3, %v3445_v49, %v3441_v59 }
0x1614   : > { %v3450_v41 = vrot.slane %v3434_v6, %v9174_v56 }
0x1617   : > { %v3437_v34 = vpop.permute.xlu1 %3436 }
0x1618   : > { %v3454_v39 = vrot.slane %v3437_v34, %v9171_v54 }
0x161a   : > { %v3455_v57 = vsel %vm1310_vm3, %v3454_v39, %v3450_v41  ;;  %v10412_v41 = vld [vmem:[%s9082_s26 + $0x10] sm:$0xff] }
0x161b   : > { %v3456_v44 = vsel %vm1321_vm4, %v3455_v57, %v3446_v21 }
0x161c   : > { %v3458_v38 = vsel %vm1324_vm5, %v3456_v44, 0.0 }
0x161d   : > { %3459 = vadd.xlane.f32.xlu0 %v3458_v38  ;;  %v10416_v38 = vld [vmem:[%s9082_s26 + $0x18] sm:$0xff] }
0x16a6   : > { %v3460_v58 = vpop.xlane.xlu0 %3459 }
0x16a7   : > { %8651 = vrcp.f32 %v3460_v58 }
0x16a8   : > { %8653 = vpow2.f32 %v7126_v50 }
0x16b4   : > { %v8652_v9 = vpop.eup %8651 }
0x16b5   : > { %v3466_v36 = vrot.slane %v8652_v9, %v9135_v19  ;;  %v3470_v53 = vrot.slane %v8652_v9, %v9185_v12  ;;  %v8654_v26 = vpop.eup %8653 }
0x16b6   : > { %v3592_v44 = vadd.f32 1.0, %v8654_v26 }
0x16b7   : > { %v10386_v16 = vmul.f32 %v8644_v35, %v3466_v36  ;;  %v10389_v18 = vmul.f32 %v8646_v0, %v3466_v36  ;;  %v10393_v40 = vmul.f32 %v8648_v8, %v3470_v53  ;;  %v10396_v1 = vmul.f32 %v8650_v45, %v3470_v53  ;;  %v10402_v0 = vld [vmem:[%s9082_s26] sm:$0xff] }
0x16b8   : > { %8655 = vrcp.f32 %v3592_v44 }
0x16b9   : > { %11886 = vst [vmem:[#allocation21_spill] sm:$0xff] %v10386_v16  ;;  %3479 = vperm.xlu1 %8551, %v10386_v16   ;;  %11887 = vst [vmem:[#allocation22_spill] sm:$0xff] %v10389_v18 }
0x16ba   : > { %11888 = vst [vmem:[#allocation23_spill] sm:$0xff] %v10393_v40  ;;  %11889 = vst [vmem:[#allocation24_spill] sm:$0xff] %v10396_v1 }
0x16bd   : > { %3484 = vperm.xlu1 %8551, %v10389_v18  }
0x16c1   : > { %3489 = vperm.xlu1 %8551, %v10393_v40  }
0x16c5   : > { %3494 = vperm.xlu1 %8551, %v10396_v1   ;;  %v8656_v26 = vpop.eup %8655 }
0x1734   : > { %v3480_v35 = vpop.permute.xlu1 %3479 }
0x1735   : > { %v3497_v13 = vmul.f32 %v10402_v0, %v3480_v35 }
0x1737   : > { %v3501_v6 = vsel %vm852_vm1, %v3497_v13, 0.0 }
0x1738   : > { %v3485_v8 = vpop.permute.xlu1 %3484 }
0x1739   : > { %v3498_v45 = vmul.f32 %v10406_v5, %v3485_v8 }
0x173b   : > { %v3502_v49 = vsel %vm852_vm1, %v3498_v45, 0.0 }
0x173c   : > { %v3503_v59 = vadd.f32 %v3502_v49, %v3501_v6  ;;  %v3490_v34 = vpop.permute.xlu1 %3489 }
0x173d   : > { %v3499_v39 = vmul.f32 %v10412_v41, %v3490_v34 }
0x173e   : > { %v3504_v28 = vrot.slane %v3503_v59, 4 }
0x173f   : > { %v3510_v9 = vsel %vm852_vm1, %v3499_v39, 0.0 }
0x1740   : > { %v3505_v21 = vadd.f32 %v3504_v28, %v3503_v59  ;;  %v3495_v57 = vpop.permute.xlu1 %3494 }
0x1741   : > { %v3500_v58 = vmul.f32 %v10416_v38, %v3495_v57  ;;  %v10424_v57 = vld [vmem:[%s9066_s21 + $0x8] sm:$0xff] }
0x1742   : > { %v3506_v53 = vrot.slane %v3505_v21, 2 }
0x1743   : > { %v3511_v36 = vsel %vm852_vm1, %v3500_v58, 0.0 }
0x1744   : > { %v3512_v48 = vadd.f32 %v3511_v36, %v3510_v9  ;;  %v3507_v35 = vadd.f32 %v3506_v53, %v3505_v21  ;;  %v10432_v21 = vld [vmem:[%s9066_s21] sm:$0xff]  ;;  %v3751_v53 = vrot.slane %v10365_v24, 5 }
0x1746   : > { %v3513_v50 = vrot.slane %v3512_v48, 4  ;;  %v3508_v45 = vrot.slane %v3507_v35, 1 }
0x1748   : > { %v3514_v13 = vadd.f32 %v3513_v50, %v3512_v48  ;;  %v3509_v59 = vadd.f32 %v3508_v45, %v3507_v35  ;;  %v3752_v35 = vrot.slane %v10365_v24, 6 }
0x174a   : > { %v3515_v8 = vrot.slane %v3514_v13, 2 }
0x174c   : > { %v3516_v6 = vadd.f32 %v3515_v8, %v3514_v13 }
0x174e   : > { %v3517_v49 = vrot.slane %v3516_v6, 1 }
0x1750   : > { %v3518_v34 = vadd.f32 %v3517_v49, %v3516_v6 }
0x1752   : > { %v3597_v28 = vsel %vm1321_vm4, %v3518_v34, %v3509_v59 }
0x1753   : > { %v3599_v39 = vmul.f32 %v8656_v26, %v3597_v28 }
0x1755   : > { %8113 = vmatmul.mubr.msk.f32.vlgmr.msra.gmra.mxu0 %vm852_vm1, %v3599_v39 }
0x1756   : > { %8151 = vmatpush3.xpose.msk.msra.mxu0 %vm852_vm1, %v10424_v57  ;;  %8154 = vmatprep.mubr.msk.f32.mxu0 %vm8942_vm0, %v11868_v14 }
0x1757   : > { %8152 = vmatprep.subr.mxu0 %v11868_v14 }
0x175a   : > { %8153 = vmatpush3.xpose.msk.msra.mxu0 %vm852_vm1, %v10432_v21 }
0x175b   : > { %8157 = vmatprep.subr.mxu0 %v11868_v14 }
0x1815   : > { %v3669_v44 = vpop.f32.mrf.mxu0 }
0x1816   : > { %v3674_v58 = vrot.slane %v3669_v44, 5  ;;  %v3675_v9 = vrot.slane %v3669_v44, 6 }
0x1817   : > { %v8114_v36 = vpop.f32.mrf.mxu0 }
0x1818   : > { %v3678_v48 = vadd.f32 %v3674_v58, %v9628_v3  ;;  %v3679_v50 = vadd.f32 %v3675_v9, %v9631_v20 }
0x181a   : > { %v3755_v13 = vadd.f32 %v3751_v53, %v3678_v48  ;;  %v3756_v8 = vadd.f32 %v3752_v35, %v3679_v50  ;;  %v3773_v48 = vrot.slane %v10165_v43, 7 }
0x181c   : > { %8657 = vtanh.f32 %v3755_v13  ;;  %v7161_v49 = vmul.f32 -1.442695, %v3755_v13  ;;  %v7162_v59 = vmul.f32 -1.442695, %v3756_v8  ;;  %v3774_v13 = vrot.slane %v10168_v7, 7 }
0x181d   : > { %8659 = vtanh.f32 %v3756_v8 }
0x181e   : > { %8661 = vpow2.f32 %v7161_v49 }
0x181f   : > { %8663 = vpow2.f32 %v7162_v59 }
0x1829   : > { %v8658_v45 = vpop.eup %8657 }
0x182a   : > { %3781 = vrot.lane.b32.xlu1 %v8658_v45, %s8945_s25  ;;  %v8660_v6 = vpop.eup %8659 }
0x182b   : > { %v8662_v34 = vpop.eup %8661 }
0x182c   : > { %v3763_v26 = vadd.f32 1.0, %v8662_v34  ;;  %v8664_v28 = vpop.eup %8663 }
0x182d   : > { %v3764_v39 = vadd.f32 1.0, %v8664_v28 }
0x182e   : > { %3783 = vrot.lane.b32.xlu1 %v8660_v6, %s8945_s25  ;;  %8665 = vrcp.f32 %v3763_v26 }
0x182f   : > { %8667 = vrcp.f32 %v3764_v39 }
0x183b   : > { %v8666_v24 = vpop.eup %8665 }
0x183c   : > { %v8668_v9 = vpop.eup %8667  ;;  %v3777_v50 = vmul.f32 %v8666_v24, %v3773_v48  ;;  %v10485_v48 = vld [vmem:[%s9270_s20] sm:$0xff] }
0x183d   : > { %v3778_v45 = vmul.f32 %v8668_v9, %v3774_v13  ;;  %v10506_v13 = vld [vmem:[%s9324_s19 + $0x68] sm:$0xff] }
0x189c   : > { %v3782_v44 = vpop.permute.xlu1 %3781 }
0x189d   : > { %v3787_v58 = vmul.f32 %v8666_v24, %v3782_v44 }
0x189f   : > { %3791 = vrot.lane.b32.xlu1 %v3787_v58, %s8946_s3 }
0x18a0   : > { %v3784_v36 = vpop.permute.xlu1 %3783 }
0x18a1   : > { %v3788_v53 = vmul.f32 %v8668_v9, %v3784_v36 }
0x18a3   : > { %3793 = vrot.lane.b32.xlu1 %v3788_v53, %s8946_s3  ;;  %v10465_v53 = vld [vmem:[%s9270_s20 + $0x18] sm:$0xff] }
0x1911   : > { %v3792_v35 = vpop.permute.xlu1 %3791 }
0x1912   : > { %v10447_v8 = vadd.f32 %v3792_v35, %v3777_v50  ;;  %v10492_v50 = vld [vmem:[%s9324_s19 + $0x78] sm:$0xff]  ;;  %v10500_v35 = vld [vmem:[%s9324_s19 + $0x70] sm:$0xff] }
0x1914   : > { %8669 = vtanh.f32 %v10447_v8 }
0x1915   : > { %v3794_v6 = vpop.permute.xlu1 %3793 }
0x1916   : > { %v10450_v49 = vadd.f32 %v3794_v6, %v3778_v45  ;;  %v10512_v45 = vld [vmem:[%s9324_s19 + $0x60] sm:$0xff]  ;;  %v10518_v6 = vld [vmem:[%s9324_s19 + $0x58] sm:$0xff] }
0x1918   : > { %8671 = vtanh.f32 %v10450_v49 }
0x1921   : > { %v8670_v59 = vpop.eup %8669 }
0x1922   : > { %3803 = vrot.lane.b32.xlu0 %v8670_v59, %s8945_s25  ;;  %v10524_v59 = vld [vmem:[%s9324_s19 + $0x50] sm:$0xff] }
0x1925   : > { %v8672_v34 = vpop.eup %8671 }
0x1926   : > { %3805 = vrot.lane.b32.xlu1 %v8672_v34, %s8945_s25  ;;  %v10623_v34 = vld [vmem:[%s9318_s23 + $0x28] sm:$0xff] }
0x1994   : > { %v3804_v43 = vpop.permute.xlu0 %3803 }
0x1995   : > { %v10455_v7 = vmul.f32 %v8666_v24, %v3804_v43  ;;  %v10473_v24 = vld [vmem:[%s9270_s20 + $0x10] sm:$0xff] }
0x1997   : > { %11890 = vst [vmem:[#allocation25_spill] sm:$0xff] %v10455_v7  ;;  %v3892_v39 = vrot.slane %v10455_v7, 3 }
0x1998   : > { %v3806_v26 = vpop.permute.xlu1 %3805 }
0x1999   : > { %v10457_v28 = vmul.f32 %v8668_v9, %v3806_v26  ;;  %v10479_v9 = vld [vmem:[%s9270_s20 + $0x8] sm:$0xff] }
0x199b   : > { %11891 = vst [vmem:[#allocation26_spill] sm:$0xff] %v10457_v28  ;;  %v3893_v44 = vrot.slane %v10457_v28, 2 }
0x199d   : > { %v3894_v58 = vsel %vm1321_vm4, %v3893_v44, %v3892_v39 }
0x199e   : > { %3895 = vrot.lane.b32.xlu1 %v3894_v58, %s8946_s3 }
0x1a10   : > { %v3896_v36 = vpop.permute.xlu1 %3895 }
0x1a11   : > { %8155 = vmatmul.mubr.msk.f32.vlgmr.msra.gmra.mxu0 %vm852_vm1, %v3896_v36 }
0x1a12   : > { %8158 = vmatpush3.xpose.msk.msra.mxu0 %vm852_vm1, %v10465_v53  ;;  %8165 = vmatprep.mubr.msk.f32.mxu0 %vm8942_vm0, %v11868_v14 }
0x1a13   : > { %8159 = vmatprep.subr.mxu0 %v11868_v14 }
0x1a16   : > { %8160 = vmatpush3.xpose.msk.msra.mxu0 %vm852_vm1, %v10473_v24 }
0x1a17   : > { %8161 = vmatprep.subr.mxu0 %v11868_v14 }
0x1a1a   : > { %8162 = vmatpush3.xpose.msk.msra.mxu0 %vm852_vm1, %v10479_v9 }
0x1a1b   : > { %8163 = vmatprep.subr.mxu0 %v11868_v14 }
0x1a1e   : > { %8164 = vmatpush3.xpose.msk.msra.mxu0 %vm852_vm1, %v10485_v48 }
0x1a1f   : > { %8203 = vmatprep.subr.mxu0 %v11868_v14 }
0x1a21   : > { %8166 = vmatmul.mubr.msk.f32.vlgmr.msra.gmra.mxu0 %vm852_vm1, %v3896_v36 }
0x1a22   : > { %8204 = vmatpush3.xpose.msk.msra.mxu0 %vm852_vm1, %v10492_v50  ;;  %8235 = vmatprep.mubr.msk.f32.mxu0 %vm8942_vm0, %v11868_v14 }
0x1a23   : > { %8205 = vmatprep.subr.mxu0 %v11868_v14 }
0x1a26   : > { %8206 = vmatpush3.xpose.msk.msra.mxu0 %vm852_vm1, %v10500_v35 }
0x1a27   : > { %8207 = vmatprep.subr.mxu0 %v11868_v14 }
0x1a2a   : > { %8208 = vmatpush3.xpose.msk.msra.mxu0 %vm852_vm1, %v10506_v13 }
0x1a2b   : > { %8209 = vmatprep.subr.mxu0 %v11868_v14 }
0x1a2e   : > { %8210 = vmatpush3.xpose.msk.msra.mxu0 %vm852_vm1, %v10512_v45 }
0x1a2f   : > { %8211 = vmatprep.subr.mxu0 %v11868_v14 }
0x1a32   : > { %8212 = vmatpush3.xpose.msk.msra.mxu0 %vm852_vm1, %v10518_v6 }
0x1a33   : > { %8213 = vmatprep.subr.mxu0 %v11868_v14 }
0x1a36   : > { %8214 = vmatpush3.xpose.msk.msra.mxu0 %vm852_vm1, %v10524_v59 }
0x1a37   : > { %8215 = vmatprep.subr.mxu0 %v11868_v14 }
0x1a3a   : > { %8216 = vmatpush3.xpose.msk.msra.mxu0 %vm852_vm1, %v10218_v23  ;;  %v10561_v23 = vld [vmem:[%s9318_s23 + $0x78] sm:$0xff] }
0x1a3b   : > { %8217 = vmatprep.subr.mxu0 %v11868_v14 }
0x1a3e   : > { %8218 = vmatpush3.xpose.msk.msra.mxu0 %vm852_vm1, %v10224_v37  ;;  %v10569_v37 = vld [vmem:[%s9318_s23 + $0x70] sm:$0xff] }
0x1a3f   : > { %8219 = vmatprep.subr.mxu0 %v11868_v14 }
0x1a42   : > { %8220 = vmatpush3.xpose.msk.msra.mxu0 %vm852_vm1, %v10230_v51  ;;  %v10575_v51 = vld [vmem:[%s9318_s23 + $0x68] sm:$0xff] }
0x1a43   : > { %8221 = vmatprep.subr.mxu0 %v11868_v14 }
0x1a46   : > { %8222 = vmatpush3.xpose.msk.msra.mxu0 %vm852_vm1, %v10236_v60  ;;  %v10581_v60 = vld [vmem:[%s9318_s23 + $0x60] sm:$0xff] }
0x1a47   : > { %8223 = vmatprep.subr.mxu0 %v11868_v14 }
0x1a4a   : > { %8224 = vmatpush3.xpose.msk.msra.mxu0 %vm852_vm1, %v10242_v55  ;;  %v10587_v55 = vld [vmem:[%s9318_s23 + $0x58] sm:$0xff] }
0x1a4b   : > { %8225 = vmatprep.subr.mxu0 %v11868_v14 }
0x1a4e   : > { %8226 = vmatpush3.xpose.msk.msra.mxu0 %vm852_vm1, %v10248_v62  ;;  %v10593_v62 = vld [vmem:[%s9318_s23 + $0x50] sm:$0xff] }
0x1a4f   : > { %8227 = vmatprep.subr.mxu0 %v11868_v14 }
0x1a52   : > { %8228 = vmatpush3.xpose.msk.msra.mxu0 %vm852_vm1, %v10254_v17  ;;  %v10599_v17 = vld [vmem:[%s9318_s23 + $0x48] sm:$0xff] }
0x1a53   : > { %8229 = vmatprep.subr.mxu0 %v11868_v14 }
0x1a56   : > { %8230 = vmatpush3.xpose.msk.msra.mxu0 %vm852_vm1, %v10260_v47  ;;  %v10605_v47 = vld [vmem:[%s9318_s23 + $0x40] sm:$0xff] }
0x1a57   : > { %8231 = vmatprep.subr.mxu0 %v11868_v14 }
0x1a5a   : > { %8232 = vmatpush3.xpose.msk.msra.mxu0 %vm852_vm1, %v10266_v22  ;;  %v10611_v22 = vld [vmem:[%s9318_s23 + $0x38] sm:$0xff] }
0x1a5b   : > { %8233 = vmatprep.subr.mxu0 %v11868_v14 }
0x1a5e   : > { %8234 = vmatpush3.xpose.msk.msra.mxu0 %vm852_vm1, %v10272_v4  ;;  %v10617_v4 = vld [vmem:[%s9318_s23 + $0x30] sm:$0xff] }
0x1a5f   : > { %8256 = vmatprep.subr.mxu0 %v11868_v14 }
0x1a61   : > { %8236 = vmatmul.mubr.msk.f32.vlgmr.msra.gmra.mxu0 %vm852_vm1, %v3896_v36 }
0x1a62   : > { %8257 = vmatpush3.xpose.msk.msra.mxu0 %vm852_vm1, %v10561_v23  ;;  %8288 = vmatprep.mubr.msk.f32.mxu0 %vm8942_vm0, %v11868_v14 }
0x1a63   : > { %8258 = vmatprep.subr.mxu0 %v11868_v14 }
0x1a66   : > { %8259 = vmatpush3.xpose.msk.msra.mxu0 %vm852_vm1, %v10569_v37 }
0x1a67   : > { %8260 = vmatprep.subr.mxu0 %v11868_v14 }
0x1a6a   : > { %8261 = vmatpush3.xpose.msk.msra.mxu0 %vm852_vm1, %v10575_v51 }
0x1a6b   : > { %8262 = vmatprep.subr.mxu0 %v11868_v14 }
0x1a6e   : > { %8263 = vmatpush3.xpose.msk.msra.mxu0 %vm852_vm1, %v10581_v60 }
0x1a6f   : > { %8264 = vmatprep.subr.mxu0 %v11868_v14 }
0x1a72   : > { %8265 = vmatpush3.xpose.msk.msra.mxu0 %vm852_vm1, %v10587_v55 }
0x1a73   : > { %8266 = vmatprep.subr.mxu0 %v11868_v14 }
0x1a76   : > { %8267 = vmatpush3.xpose.msk.msra.mxu0 %vm852_vm1, %v10593_v62 }
0x1a77   : > { %8268 = vmatprep.subr.mxu0 %v11868_v14 }
0x1a7a   : > { %8269 = vmatpush3.xpose.msk.msra.mxu0 %vm852_vm1, %v10599_v17 }
0x1a7b   : > { %8270 = vmatprep.subr.mxu0 %v11868_v14 }
0x1a7e   : > { %8271 = vmatpush3.xpose.msk.msra.mxu0 %vm852_vm1, %v10605_v47 }
0x1a7f   : > { %8272 = vmatprep.subr.mxu0 %v11868_v14 }
0x1a82   : > { %8273 = vmatpush3.xpose.msk.msra.mxu0 %vm852_vm1, %v10611_v22 }
0x1a83   : > { %8274 = vmatprep.subr.mxu0 %v11868_v14 }
0x1a86   : > { %8275 = vmatpush3.xpose.msk.msra.mxu0 %vm852_vm1, %v10617_v4 }
0x1a87   : > { %8276 = vmatprep.subr.mxu0 %v11868_v14 }
0x1a8a   : > { %8277 = vmatpush3.xpose.msk.msra.mxu0 %vm852_vm1, %v10623_v34 }
0x1a8b   : > { %8278 = vmatprep.subr.mxu0 %v11868_v14 }
0x1a8e   : > { %8279 = vmatpush3.xpose.msk.msra.mxu0 %vm852_vm1, %v10314_v52 }
0x1a8f   : > { %8280 = vmatprep.subr.mxu0 %v11868_v14 }
0x1a92   : > { %8281 = vmatpush3.xpose.msk.msra.mxu0 %vm852_vm1, %v10320_v61 }
0x1a93   : > { %8282 = vmatprep.subr.mxu0 %v11868_v14 }
0x1a96   : > { %8283 = vmatpush3.xpose.msk.msra.mxu0 %vm852_vm1, %v10326_v63 }
0x1a97   : > { %8284 = vmatprep.subr.mxu0 %v11868_v14 }
0x1a9a   : > { %8285 = vmatpush3.xpose.msk.msra.mxu0 %vm852_vm1, %v10332_v2 }
0x1a9b   : > { %8286 = vmatprep.subr.mxu0 %v11868_v14 }
0x1a9e   : > { %8287 = vmatpush3.xpose.msk.msra.mxu0 %vm852_vm1, %v10338_v10 }
0x1a9f   : > { %8326 = vmatprep.subr.mxu0 %v11868_v14 }
0x1ad1   : > { %v3965_v52 = vpop.f32.mrf.mxu0 }
0x1ad2   : > { %v3976_v61 = vrot.slane %v3965_v52, %v9127_v15 }
0x1ad3   : > { %v8156_v43 = vpop.f32.mrf.mxu0 }
0x1ad4   : > { %v3977_v26 = vcombine.high %v3976_v61, %v3976_v61  ;;  %v3984_v39 = vrot.slane %v3976_v61, %v9127_v15 }
0x1ad6   : > { %v3991_v63 = vrot.slane %v3977_v26, %v9127_v15  ;;  %v3995_v44 = vrot.slane %v3984_v39, %v9135_v19 }
0x1ad8   : > { %v3999_v2 = vrot.slane %v3991_v63, %v9135_v19  ;;  %v4003_v58 = vadd.f32 %v3995_v44, %v9148_v29  ;;  %v4002_v36 = vadd.f32 %v3995_v44, %v9138_v25 }
0x1ada   : > { %v4007_v10 = vmax.f32 %v4003_v58, 0.0  ;;  %v4006_v1 = vmax.f32 %v4002_v36, 0.0  ;;  %v4004_v18 = vadd.f32 %v3999_v2, %v9152_v32  ;;  %v4005_v52 = vadd.f32 %v3999_v2, %v9150_v30 }
0x1adc   : > { %v4011_v43 = vmul.f32 %v10353_v31, %v4007_v10  ;;  %v4010_v61 = vmul.f32 %v10353_v31, %v4006_v1  ;;  %v4008_v27 = vmax.f32 %v4004_v18, 0.0  ;;  %v4009_v40 = vmax.f32 %v4005_v52, 0.0 }
0x1ade   : > { %v4017_v26 = vsel %vm981_vm2, %v4011_v43, 0.0  ;;  %v4014_v39 = vsel %vm981_vm2, %v4010_v61, 0.0  ;;  %v4012_v63 = vmul.f32 %v10353_v31, %v4008_v27  ;;  %v4013_v2 = vmul.f32 %v10353_v31, %v4009_v40 }
0x1adf   : > { %4018 = vadd.xlane.f32.xlu0 %v4017_v26  ;;  %4015 = vadd.xlane.f32.xlu1 %v4014_v39 }
0x1ae0   : > { %v4020_v58 = vsel %vm981_vm2, %v4012_v63, 0.0  ;;  %v4023_v1 = vsel %vm981_vm2, %v4013_v2, 0.0 }
0x1ae1   : > { %v10657_v44 = vpop.f32.mrf.mxu0 }
0x1ae3   : > { %v8167_v36 = vpop.f32.mrf.mxu0  ;;  %4021 = vadd.xlane.f32.xlu1 %v4020_v58 }
0x1ae7   : > { %4024 = vadd.xlane.f32.xlu1 %v4023_v1 }
0x1b21   : > { %v10662_v18 = vpop.f32.mrf.mxu0 }
0x1b23   : > { %v8237_v10 = vpop.f32.mrf.mxu0 }
0x1b68   : > { %v4016_v43 = vpop.xlane.xlu1 %4015  ;;  %v4019_v61 = vpop.xlane.xlu0 %4018 }
0x1b69   : > { %v4037_v52 = vrot.slane %v4019_v61, %v9171_v54  ;;  %v4033_v26 = vrot.slane %v4016_v43, %v9174_v56 }
0x1b6b   : > { %v4038_v40 = vsel %vm1310_vm3, %v4037_v52, %v4033_v26 }
0x1b6c   : > { %v4022_v27 = vpop.xlane.xlu1 %4021 }
0x1b6d   : > { %v4042_v63 = vrot.slane %v4022_v27, %v9174_v56 }
0x1b70   : > { %v4025_v39 = vpop.xlane.xlu1 %4024 }
0x1b71   : > { %v4046_v31 = vrot.slane %v4025_v39, %v9171_v54 }
0x1b73   : > { %v4047_v58 = vsel %vm1310_vm3, %v4046_v31, %v4042_v63 }
0x1b74   : > { %v4048_v2 = vsel %vm1321_vm4, %v4047_v58, %v4038_v40 }
0x1b75   : > { %v4050_v36 = vsel %vm1324_vm5, %v4048_v2, -inf }
0x1b76   : > { %4051 = vmax.xlane.f32.xlu0 %v4050_v36 }
0x1bff   : > { %v4052_v1 = vpop.xlane.xlu0 %4051 }
0x1c00   : > { %v4057_v10 = vrot.slane %v4052_v1, %v9135_v19  ;;  %v4061_v16 = vrot.slane %v4052_v1, %v9185_v12 }
0x1c02   : > { %v4064_v33 = vsub.f32 %v4016_v43, %v4057_v10  ;;  %v4065_v42 = vsub.f32 %v4019_v61, %v4057_v10  ;;  %v4066_v46 = vsub.f32 %v4022_v27, %v4061_v16  ;;  %v4067_v7 = vsub.f32 %v4025_v39, %v4061_v16 }
0x1c04   : > { %v4068_v11 = vmul.f32 1.442695, %v4064_v33  ;;  %v4070_v28 = vmul.f32 1.442695, %v4065_v42  ;;  %v4072_v52 = vmul.f32 1.442695, %v4066_v46 }
0x1c05   : > { %v4074_v26 = vmul.f32 1.442695, %v4067_v7 }
0x1c06   : > { %8673 = vpow2.f32 %v4068_v11 }
0x1c07   : > { %8675 = vpow2.f32 %v4070_v28 }
0x1c08   : > { %8677 = vpow2.f32 %v4072_v52 }
0x1c09   : > { %8679 = vpow2.f32 %v4074_v26 }
0x1c13   : > { %v8674_v63 = vpop.eup %8673 }
0x1c14   : > { %v8676_v31 = vpop.eup %8675  ;;  %4081 = vperm.xlu1 %8551, %v8674_v63  }
0x1c15   : > { %4084 = vperm.xlu0 %8552, %v8676_v31   ;;  %v8678_v40 = vpop.eup %8677 }
0x1c16   : > { %v8680_v58 = vpop.eup %8679 }
0x1c18   : > { %4087 = vperm.xlu1 %8551, %v8678_v40  }
0x1c1c   : > { %4090 = vperm.xlu1 %8551, %v8680_v58  }
0x1c8f   : > { %v4082_v43 = vpop.permute.xlu1 %4081 }
0x1c90   : > { %v4085_v61 = vpop.permute.xlu0 %4084  ;;  %v4095_v33 = vrot.slane %v4082_v43, %v9174_v56 }
0x1c91   : > { %v4099_v42 = vrot.slane %v4085_v61, %v9171_v54 }
0x1c93   : > { %v4088_v27 = vpop.permute.xlu1 %4087  ;;  %v4100_v7 = vsel %vm1310_vm3, %v4099_v42, %v4095_v33  ;;  %v10697_v42 = vld [vmem:[%s9598_s22] ss:$0 sm:$0xff] }
0x1c94   : > { %v4104_v46 = vrot.slane %v4088_v27, %v9174_v56 }
0x1c97   : > { %v4091_v11 = vpop.permute.xlu1 %4090 }
0x1c98   : > { %v4108_v16 = vrot.slane %v4091_v11, %v9171_v54 }
0x1c9a   : > { %v4109_v28 = vsel %vm1310_vm3, %v4108_v16, %v4104_v46 }
0x1c9b   : > { %v4110_v39 = vsel %vm1321_vm4, %v4109_v28, %v4100_v7 }
0x1c9c   : > { %v4112_v2 = vsel %vm1324_vm5, %v4110_v39, 0.0 }
0x1c9d   : > { %4113 = vadd.xlane.f32.xlu1 %v4112_v2 }
0x1d26   : > { %v4114_v36 = vpop.xlane.xlu1 %4113 }
0x1d27   : > { %8681 = vrcp.f32 %v4114_v36 }
0x1d34   : > { %v8682_v1 = vpop.eup %8681 }
0x1d35   : > { %v4120_v10 = vrot.slane %v8682_v1, %v9135_v19  ;;  %v4124_v43 = vrot.slane %v8682_v1, %v9185_v12 }
0x1d37   : > { %v10683_v52 = vmul.f32 %v8674_v63, %v4120_v10  ;;  %v10686_v26 = vmul.f32 %v8676_v31, %v4120_v10  ;;  %v10690_v61 = vmul.f32 %v8678_v40, %v4124_v43  ;;  %v10693_v27 = vmul.f32 %v8680_v58, %v4124_v43 }
0x1d38   : > { %v4240_v63 = vadd.f32 %v10697_v42, %v10657_v44 }
0x1d39   : > { %4133 = vperm.xlu0 %8552, %v10683_v52   ;;  %11892 = vst [vmem:[#allocation27_spill] sm:$0xff] %v10693_v27 }
0x1d3a   : > { %v7171_v33 = vmul.f32 -1.442695, %v4240_v63 }
0x1d3c   : > { %8683 = vpow2.f32 %v7171_v33 }
0x1d3d   : > { %4138 = vperm.xlu0 %8552, %v10686_v26  }
0x1d41   : > { %4143 = vperm.xlu0 %8552, %v10690_v61  }
0x1d45   : > { %4148 = vperm.xlu0 %8552, %v10693_v27  }
0x1d49   : > { %v8684_v39 = vpop.eup %8683 }
0x1d4a   : > { %v4246_v10 = vadd.f32 1.0, %v8684_v39 }
0x1d4c   : > { %8685 = vrcp.f32 %v4246_v10 }
0x1db4   : > { %v4134_v31 = vpop.permute.xlu0 %4133 }
0x1db5   : > { %v4151_v11 = vmul.f32 %v10402_v0, %v4134_v31 }
0x1db7   : > { %v4155_v16 = vsel %vm852_vm1, %v4151_v11, 0.0 }
0x1db8   : > { %v4139_v46 = vpop.permute.xlu0 %4138 }
0x1db9   : > { %v4152_v40 = vmul.f32 %v10406_v5, %v4139_v46 }
0x1dbb   : > { %v4156_v58 = vsel %vm852_vm1, %v4152_v40, 0.0 }
0x1dbc   : > { %v4157_v7 = vadd.f32 %v4156_v58, %v4155_v16  ;;  %v4144_v28 = vpop.permute.xlu0 %4143 }
0x1dbd   : > { %v4153_v36 = vmul.f32 %v10412_v41, %v4144_v28  ;;  %v8686_v28 = vpop.eup %8685 }
0x1dbe   : > { %v4158_v2 = vrot.slane %v4157_v7, 4 }
0x1dbf   : > { %v4164_v0 = vsel %vm852_vm1, %v4153_v36, 0.0 }
0x1dc0   : > { %v4159_v1 = vadd.f32 %v4158_v2, %v4157_v7  ;;  %v4149_v44 = vpop.permute.xlu0 %4148 }
0x1dc1   : > { %v4154_v43 = vmul.f32 %v10416_v38, %v4149_v44  ;;  %v4405_v44 = vrot.slane %v10662_v18, 4 }
0x1dc2   : > { %v4160_v5 = vrot.slane %v4159_v1, 2 }
0x1dc3   : > { %v4165_v63 = vsel %vm852_vm1, %v4154_v43, 0.0  ;;  %v4406_v43 = vrot.slane %v10662_v18, 5 }
0x1dc4   : > { %v4166_v33 = vadd.f32 %v4165_v63, %v4164_v0  ;;  %v4161_v11 = vadd.f32 %v4160_v5, %v4159_v1 }
0x1dc6   : > { %v4167_v31 = vrot.slane %v4166_v33, 4  ;;  %v4162_v16 = vrot.slane %v4161_v11, 1 }
0x1dc8   : > { %v4168_v46 = vadd.f32 %v4167_v31, %v4166_v33  ;;  %v4163_v41 = vadd.f32 %v4162_v16, %v4161_v11 }
0x1dca   : > { %v4169_v40 = vrot.slane %v4168_v46, 2 }
0x1dcc   : > { %v4170_v58 = vadd.f32 %v4169_v40, %v4168_v46 }
0x1dce   : > { %v4171_v27 = vrot.slane %v4170_v58, 1 }
0x1dd0   : > { %v4172_v7 = vadd.f32 %v4171_v27, %v4170_v58 }
0x1dd2   : > { %v4251_v39 = vsel %vm1321_vm4, %v4172_v7, %v4163_v41 }
0x1dd3   : > { %v4253_v38 = vmul.f32 %v8686_v28, %v4251_v39 }
0x1dd5   : > { %8201 = vmatmul.mubr.msk.f32.vlgmr.msra.gmra.mxu1 %vm852_vm1, %v4253_v38  ;;  %v4427_v38 = vrot.slane %v10447_v8, 7 }
0x1dd6   : > { %8239 = vmatpush3.xpose.msk.msra.mxu1 %vm852_vm1, %v10424_v57  ;;  %8242 = vmatprep.mubr.msk.f32.mxu1 %vm8942_vm0, %v11868_v14 }
0x1dd7   : > { %8240 = vmatprep.subr.mxu1 %v11868_v14 }
0x1dda   : > { %8241 = vmatpush3.xpose.msk.msra.mxu1 %vm852_vm1, %v10432_v21 }
0x1ddb   : > { %8245 = vmatprep.subr.mxu1 %v11868_v14 }
0x1e95   : > { %v4323_v27 = vpop.f32.mrf.mxu1 }
0x1e96   : > { %v4328_v2 = vrot.slane %v4323_v27, 4  ;;  %v4329_v36 = vrot.slane %v4323_v27, 5 }
0x1e97   : > { %v8202_v1 = vpop.f32.mrf.mxu1 }
0x1e98   : > { %v4332_v10 = vadd.f32 %v4328_v2, %v9628_v3  ;;  %v4333_v57 = vadd.f32 %v4329_v36, %v9631_v20  ;;  %v4428_v36 = vrot.slane %v10450_v49, 7 }
0x1e9a   : > { %v4409_v0 = vadd.f32 %v4405_v44, %v4332_v10  ;;  %v4410_v63 = vadd.f32 %v4406_v43, %v4333_v57 }
0x1e9c   : > { %8687 = vtanh.f32 %v4409_v0  ;;  %v7206_v33 = vmul.f32 -1.442695, %v4409_v0  ;;  %v7207_v31 = vmul.f32 -1.442695, %v4410_v63 }
0x1e9d   : > { %8689 = vtanh.f32 %v4410_v63 }
0x1e9e   : > { %8691 = vpow2.f32 %v7206_v33 }
0x1e9f   : > { %8693 = vpow2.f32 %v7207_v31 }
0x1ea9   : > { %v8688_v5 = vpop.eup %8687 }
0x1eaa   : > { %4435 = vrot.lane.b32.xlu0 %v8688_v5, %s8945_s25  ;;  %v8690_v21 = vpop.eup %8689 }
0x1eab   : > { %v8692_v11 = vpop.eup %8691 }
0x1eac   : > { %v4417_v46 = vadd.f32 1.0, %v8692_v11  ;;  %v8694_v40 = vpop.eup %8693 }
0x1ead   : > { %v4418_v16 = vadd.f32 1.0, %v8694_v40 }
0x1eae   : > { %4437 = vrot.lane.b32.xlu0 %v8690_v21, %s8945_s25  ;;  %8695 = vrcp.f32 %v4417_v46 }
0x1eaf   : > { %8697 = vrcp.f32 %v4418_v16 }
0x1ebb   : > { %v8696_v18 = vpop.eup %8695 }
0x1ebc   : > { %v8698_v7 = vpop.eup %8697  ;;  %v4431_v27 = vmul.f32 %v8696_v18, %v4427_v38 }
0x1ebd   : > { %v4432_v44 = vmul.f32 %v8698_v7, %v4428_v36 }
0x1f1c   : > { %v4436_v58 = vpop.permute.xlu0 %4435 }
0x1f1d   : > { %v4441_v41 = vmul.f32 %v8696_v18, %v4436_v58 }
0x1f1f   : > { %4445 = vrot.lane.b32.xlu0 %v4441_v41, %s8946_s3 }
0x1f20   : > { %v4438_v28 = vpop.permute.xlu0 %4437 }
0x1f21   : > { %v4442_v39 = vmul.f32 %v8698_v7, %v4438_v28 }
0x1f23   : > { %4447 = vrot.lane.b32.xlu0 %v4442_v39, %s8946_s3  ;;  %v10917_v39 = vld [vmem:[%s9144_s30] ss:$0 sm:$0xff] }
0x1f91   : > { %v4446_v2 = vpop.permute.xlu0 %4445 }
0x1f92   : > { %v10729_v1 = vadd.f32 %v4446_v2, %v4431_v27 }
0x1f94   : > { %8699 = vtanh.f32 %v10729_v1 }
0x1f95   : > { %v4448_v10 = vpop.permute.xlu0 %4447 }
0x1f96   : > { %v10732_v57 = vadd.f32 %v4448_v10, %v4432_v44 }
0x1f98   : > { %8701 = vtanh.f32 %v10732_v57 }
0x1fa1   : > { %v8700_v43 = vpop.eup %8699 }
0x1fa2   : > { %4457 = vrot.lane.b32.xlu0 %v8700_v43, %s8945_s25 }
0x1fa5   : > { %v8702_v0 = vpop.eup %8701 }
0x1fa6   : > { %4459 = vrot.lane.b32.xlu1 %v8702_v0, %s8945_s25 }
0x2014   : > { %v4458_v8 = vpop.permute.xlu0 %4457 }
0x2015   : > { %v10737_v63 = vmul.f32 %v8696_v18, %v4458_v8 }
0x2017   : > { %v4546_v21 = vrot.slane %v10737_v63, 4 }
0x2018   : > { %v4460_v49 = vpop.permute.xlu1 %4459 }
0x2019   : > { %v10739_v5 = vmul.f32 %v8698_v7, %v4460_v49 }
0x201b   : > { %v4547_v33 = vrot.slane %v10739_v5, 3 }
0x201d   : > { %v4548_v31 = vsel %vm1321_vm4, %v4547_v33, %v4546_v21 }
0x201e   : > { %4549 = vrot.lane.b32.xlu0 %v4548_v31, %s8946_s3 }
0x2090   : > { %v4550_v11 = vpop.permute.xlu0 %4549 }
0x2091   : > { %8243 = vmatmul.mubr.msk.f32.vlgmr.msra.gmra.mxu1 %vm852_vm1, %v4550_v11 }
0x2092   : > { %8246 = vmatpush3.xpose.msk.msra.mxu1 %vm852_vm1, %v10465_v53  ;;  %8253 = vmatprep.mubr.msk.f32.mxu1 %vm8942_vm0, %v11868_v14  ;;  %v10782_v53 = vld [vmem:[%s9324_s19 + $0x48] sm:$0xff] }
0x2093   : > { %8247 = vmatprep.subr.mxu1 %v11868_v14 }
0x2096   : > { %8248 = vmatpush3.xpose.msk.msra.mxu1 %vm852_vm1, %v10473_v24  ;;  %v10788_v24 = vld [vmem:[%s9324_s19 + $0x40] sm:$0xff] }
0x2097   : > { %8249 = vmatprep.subr.mxu1 %v11868_v14 }
0x209a   : > { %8250 = vmatpush3.xpose.msk.msra.mxu1 %vm852_vm1, %v10479_v9  ;;  %v10794_v9 = vld [vmem:[%s9324_s19 + $0x38] sm:$0xff] }
0x209b   : > { %8251 = vmatprep.subr.mxu1 %v11868_v14 }
0x209e   : > { %8252 = vmatpush3.xpose.msk.msra.mxu1 %vm852_vm1, %v10485_v48  ;;  %v10800_v48 = vld [vmem:[%s9324_s19 + $0x30] sm:$0xff] }
0x209f   : > { %8291 = vmatprep.subr.mxu1 %v11868_v14 }
0x20a1   : > { %8254 = vmatmul.mubr.msk.f32.vlgmr.msra.gmra.mxu1 %vm852_vm1, %v4550_v11 }
0x20a2   : > { %8292 = vmatpush3.xpose.msk.msra.mxu1 %vm852_vm1, %v10492_v50  ;;  %8323 = vmatprep.mubr.msk.f32.mxu1 %vm8942_vm0, %v11868_v14  ;;  %v10806_v50 = vld [vmem:[%s9324_s19 + $0x28] sm:$0xff] }
0x20a3   : > { %8293 = vmatprep.subr.mxu1 %v11868_v14 }
0x20a6   : > { %8294 = vmatpush3.xpose.msk.msra.mxu1 %vm852_vm1, %v10500_v35  ;;  %v10812_v35 = vld [vmem:[%s9324_s19 + $0x20] sm:$0xff] }
0x20a7   : > { %8295 = vmatprep.subr.mxu1 %v11868_v14 }
0x20aa   : > { %8296 = vmatpush3.xpose.msk.msra.mxu1 %vm852_vm1, %v10506_v13  ;;  %v10818_v13 = vld [vmem:[%s9324_s19 + $0x18] sm:$0xff] }
0x20ab   : > { %8297 = vmatprep.subr.mxu1 %v11868_v14 }
0x20ae   : > { %8298 = vmatpush3.xpose.msk.msra.mxu1 %vm852_vm1, %v10512_v45  ;;  %v10824_v45 = vld [vmem:[%s9324_s19 + $0x10] sm:$0xff] }
0x20af   : > { %8299 = vmatprep.subr.mxu1 %v11868_v14 }
0x20b2   : > { %8300 = vmatpush3.xpose.msk.msra.mxu1 %vm852_vm1, %v10518_v6  ;;  %v10830_v6 = vld [vmem:[%s9324_s19 + $0x8] sm:$0xff] }
0x20b3   : > { %8301 = vmatprep.subr.mxu1 %v11868_v14 }
0x20b6   : > { %8302 = vmatpush3.xpose.msk.msra.mxu1 %vm852_vm1, %v10524_v59  ;;  %v10836_v59 = vld [vmem:[%s9324_s19] sm:$0xff] }
0x20b7   : > { %8303 = vmatprep.subr.mxu1 %v11868_v14 }
0x20ba   : > { %8304 = vmatpush3.xpose.msk.msra.mxu1 %vm852_vm1, %v10782_v53 }
0x20bb   : > { %8305 = vmatprep.subr.mxu1 %v11868_v14 }
0x20be   : > { %8306 = vmatpush3.xpose.msk.msra.mxu1 %vm852_vm1, %v10788_v24 }
0x20bf   : > { %8307 = vmatprep.subr.mxu1 %v11868_v14 }
0x20c2   : > { %8308 = vmatpush3.xpose.msk.msra.mxu1 %vm852_vm1, %v10794_v9 }
0x20c3   : > { %8309 = vmatprep.subr.mxu1 %v11868_v14 }
0x20c6   : > { %8310 = vmatpush3.xpose.msk.msra.mxu1 %vm852_vm1, %v10800_v48 }
0x20c7   : > { %8311 = vmatprep.subr.mxu1 %v11868_v14 }
0x20ca   : > { %8312 = vmatpush3.xpose.msk.msra.mxu1 %vm852_vm1, %v10806_v50 }
0x20cb   : > { %8313 = vmatprep.subr.mxu1 %v11868_v14 }
0x20ce   : > { %8314 = vmatpush3.xpose.msk.msra.mxu1 %vm852_vm1, %v10812_v35 }
0x20cf   : > { %8315 = vmatprep.subr.mxu1 %v11868_v14 }
0x20d2   : > { %8316 = vmatpush3.xpose.msk.msra.mxu1 %vm852_vm1, %v10818_v13 }
0x20d3   : > { %8317 = vmatprep.subr.mxu1 %v11868_v14 }
0x20d6   : > { %8318 = vmatpush3.xpose.msk.msra.mxu1 %vm852_vm1, %v10824_v45 }
0x20d7   : > { %8319 = vmatprep.subr.mxu1 %v11868_v14 }
0x20da   : > { %8320 = vmatpush3.xpose.msk.msra.mxu1 %vm852_vm1, %v10830_v6 }
0x20db   : > { %8321 = vmatprep.subr.mxu1 %v11868_v14 }
0x20de   : > { %8322 = vmatpush3.xpose.msk.msra.mxu1 %vm852_vm1, %v10836_v59 }
0x20df   : > { %8344 = vmatprep.subr.mxu1 %v11868_v14 }
0x20e1   : > { %8324 = vmatmul.mubr.msk.f32.vlgmr.msra.gmra.mxu1 %vm852_vm1, %v4550_v11 }
0x20e2   : > { %8345 = vmatpush3.xpose.msk.msra.mxu1 %vm852_vm1, %v10561_v23  ;;  %8376 = vmatprep.mubr.msk.f32.mxu1 %vm8942_vm0, %v11868_v14  ;;  %v10878_v23 = vld [vmem:[%s9318_s23 + $0x20] sm:$0xff] }
0x20e3   : > { %8346 = vmatprep.subr.mxu1 %v11868_v14 }
0x20e6   : > { %8347 = vmatpush3.xpose.msk.msra.mxu1 %vm852_vm1, %v10569_v37  ;;  %v10884_v37 = vld [vmem:[%s9318_s23 + $0x18] sm:$0xff] }
0x20e7   : > { %8348 = vmatprep.subr.mxu1 %v11868_v14 }
0x20ea   : > { %8349 = vmatpush3.xpose.msk.msra.mxu1 %vm852_vm1, %v10575_v51  ;;  %v10890_v51 = vld [vmem:[%s9318_s23 + $0x10] sm:$0xff] }
0x20eb   : > { %8350 = vmatprep.subr.mxu1 %v11868_v14 }
0x20ee   : > { %8351 = vmatpush3.xpose.msk.msra.mxu1 %vm852_vm1, %v10581_v60  ;;  %v10896_v60 = vld [vmem:[%s9318_s23 + $0x8] sm:$0xff] }
0x20ef   : > { %8352 = vmatprep.subr.mxu1 %v11868_v14 }
0x20f2   : > { %8353 = vmatpush3.xpose.msk.msra.mxu1 %vm852_vm1, %v10587_v55  ;;  %v10902_v55 = vld [vmem:[%s9318_s23] sm:$0xff] }
0x20f3   : > { %8354 = vmatprep.subr.mxu1 %v11868_v14 }
0x20f6   : > { %8355 = vmatpush3.xpose.msk.msra.mxu1 %vm852_vm1, %v10593_v62 }
0x20f7   : > { %8356 = vmatprep.subr.mxu1 %v11868_v14 }
0x20fa   : > { %8357 = vmatpush3.xpose.msk.msra.mxu1 %vm852_vm1, %v10599_v17 }
0x20fb   : > { %8358 = vmatprep.subr.mxu1 %v11868_v14 }
0x20fe   : > { %8359 = vmatpush3.xpose.msk.msra.mxu1 %vm852_vm1, %v10605_v47 }
0x20ff   : > { %8360 = vmatprep.subr.mxu1 %v11868_v14 }
0x2102   : > { %8361 = vmatpush3.xpose.msk.msra.mxu1 %vm852_vm1, %v10611_v22 }
0x2103   : > { %8362 = vmatprep.subr.mxu1 %v11868_v14 }
0x2106   : > { %8363 = vmatpush3.xpose.msk.msra.mxu1 %vm852_vm1, %v10617_v4 }
0x2107   : > { %8364 = vmatprep.subr.mxu1 %v11868_v14 }
0x210a   : > { %8365 = vmatpush3.xpose.msk.msra.mxu1 %vm852_vm1, %v10623_v34 }
0x210b   : > { %8366 = vmatprep.subr.mxu1 %v11868_v14 }
0x210e   : > { %8367 = vmatpush3.xpose.msk.msra.mxu1 %vm852_vm1, %v10878_v23 }
0x210f   : > { %8368 = vmatprep.subr.mxu1 %v11868_v14 }
0x2112   : > { %8369 = vmatpush3.xpose.msk.msra.mxu1 %vm852_vm1, %v10884_v37 }
0x2113   : > { %8370 = vmatprep.subr.mxu1 %v11868_v14 }
0x2116   : > { %8371 = vmatpush3.xpose.msk.msra.mxu1 %vm852_vm1, %v10890_v51 }
0x2117   : > { %8372 = vmatprep.subr.mxu1 %v11868_v14 }
0x211a   : > { %8373 = vmatpush3.xpose.msk.msra.mxu1 %vm852_vm1, %v10896_v60 }
0x211b   : > { %8374 = vmatprep.subr.mxu1 %v11868_v14 }
0x211e   : > { %8375 = vmatpush3.xpose.msk.msra.mxu1 %vm852_vm1, %v10902_v55 }
0x211f   : > { %8414 = vmatprep.subr.mxu1 %v11868_v14 }
0x2151   : > { %v4619_v62 = vpop.f32.mrf.mxu1 }
0x2152   : > { %v4630_v17 = vrot.slane %v4619_v62, %v9127_v15 }
0x2153   : > { %v8244_v47 = vpop.f32.mrf.mxu1 }
0x2154   : > { %v4631_v22 = vcombine.high %v4630_v17, %v4630_v17  ;;  %v4638_v4 = vrot.slane %v4630_v17, %v9127_v15 }
0x2156   : > { %v4645_v34 = vrot.slane %v4631_v22, %v9127_v15  ;;  %v4649_v46 = vrot.slane %v4638_v4, %v9135_v19 }
0x2158   : > { %v4653_v40 = vrot.slane %v4645_v34, %v9135_v19  ;;  %v4657_v16 = vadd.f32 %v4649_v46, %v9148_v29  ;;  %v4656_v18 = vadd.f32 %v4649_v46, %v9138_v25 }
0x215a   : > { %v4661_v58 = vmax.f32 %v4657_v16, 0.0  ;;  %v4660_v41 = vmax.f32 %v4656_v18, 0.0  ;;  %v4658_v7 = vadd.f32 %v4653_v40, %v9152_v32  ;;  %v4659_v28 = vadd.f32 %v4653_v40, %v9150_v30 }
0x215c   : > { %v4665_v38 = vmul.f32 %v10917_v39, %v4661_v58  ;;  %v4664_v27 = vmul.f32 %v10917_v39, %v4660_v41  ;;  %v4662_v2 = vmax.f32 %v4658_v7, 0.0  ;;  %v4663_v43 = vmax.f32 %v4659_v28, 0.0 }
0x215e   : > { %v4671_v36 = vsel %vm981_vm2, %v4665_v38, 0.0  ;;  %v4668_v44 = vsel %vm981_vm2, %v4664_v27, 0.0  ;;  %v4666_v10 = vmul.f32 %v10917_v39, %v4662_v2  ;;  %v4667_v49 = vmul.f32 %v10917_v39, %v4663_v43 }
0x215f   : > { %4672 = vadd.xlane.f32.xlu1 %v4671_v36  ;;  %4669 = vadd.xlane.f32.xlu0 %v4668_v44 }
0x2160   : > { %v4674_v8 = vsel %vm981_vm2, %v4666_v10, 0.0  ;;  %v4677_v33 = vsel %vm981_vm2, %v4667_v49, 0.0 }
0x2161   : > { %v10924_v0 = vpop.f32.mrf.mxu1 }
0x2163   : > { %v8255_v21 = vpop.f32.mrf.mxu1  ;;  %4675 = vadd.xlane.f32.xlu0 %v4674_v8 }
0x2167   : > { %4678 = vadd.xlane.f32.xlu0 %v4677_v33 }
0x21a1   : > { %v10929_v31 = vpop.f32.mrf.mxu1 }
0x21a3   : > { %v8325_v11 = vpop.f32.mrf.mxu1 }
0x21e8   : > { %v4670_v62 = vpop.xlane.xlu0 %4669  ;;  %v4673_v17 = vpop.xlane.xlu1 %4672 }
0x21e9   : > { %v4691_v22 = vrot.slane %v4673_v17, %v9171_v54  ;;  %v4687_v4 = vrot.slane %v4670_v62, %v9174_v56 }
0x21eb   : > { %v4692_v16 = vsel %vm1310_vm3, %v4691_v22, %v4687_v4 }
0x21ec   : > { %v4676_v47 = vpop.xlane.xlu0 %4675 }
0x21ed   : > { %v4696_v46 = vrot.slane %v4676_v47, %v9174_v56 }
0x21f0   : > { %v4679_v34 = vpop.xlane.xlu0 %4678 }
0x21f1   : > { %v4700_v40 = vrot.slane %v4679_v34, %v9171_v54 }
0x21f3   : > { %v4701_v18 = vsel %vm1310_vm3, %v4700_v40, %v4696_v46 }
0x21f4   : > { %v4702_v58 = vsel %vm1321_vm4, %v4701_v18, %v4692_v16 }
0x21f5   : > { %v4704_v41 = vsel %vm1324_vm5, %v4702_v58, -inf }
0x21f6   : > { %4705 = vmax.xlane.f32.xlu0 %v4704_v41 }
0x227f   : > { %v4706_v7 = vpop.xlane.xlu0 %4705 }
0x2280   : > { %v4711_v28 = vrot.slane %v4706_v7, %v9135_v19  ;;  %v4715_v38 = vrot.slane %v4706_v7, %v9185_v12 }
0x2282   : > { %v4718_v27 = vsub.f32 %v4670_v62, %v4711_v28  ;;  %v4719_v2 = vsub.f32 %v4673_v17, %v4711_v28  ;;  %v4720_v36 = vsub.f32 %v4676_v47, %v4715_v38  ;;  %v4721_v44 = vsub.f32 %v4679_v34, %v4715_v38 }
0x2284   : > { %v4722_v10 = vmul.f32 1.442695, %v4718_v27  ;;  %v4724_v43 = vmul.f32 1.442695, %v4719_v2  ;;  %v4726_v8 = vmul.f32 1.442695, %v4720_v36 }
0x2285   : > { %v4728_v49 = vmul.f32 1.442695, %v4721_v44 }
0x2286   : > { %8703 = vpow2.f32 %v4722_v10 }
0x2287   : > { %8705 = vpow2.f32 %v4724_v43 }
0x2288   : > { %8707 = vpow2.f32 %v4726_v8  ;;  %v4894_v8 = vadd.f32 %v10697_v42, %v10924_v0 }
0x2289   : > { %8709 = vpow2.f32 %v4728_v49 }
0x228a   : > { %v7216_v49 = vmul.f32 -1.442695, %v4894_v8 }
0x2293   : > { %v8704_v21 = vpop.eup %8703 }
0x2294   : > { %v8706_v33 = vpop.eup %8705  ;;  %4735 = vperm.xlu0 %8552, %v8704_v21  }
0x2295   : > { %4738 = vperm.xlu1 %8551, %v8706_v33   ;;  %v8708_v11 = vpop.eup %8707 }
0x2296   : > { %v8710_v22 = vpop.eup %8709 }
0x2298   : > { %4741 = vperm.xlu0 %8552, %v8708_v11  }
0x2299   : > { %4744 = vperm.xlu1 %8551, %v8710_v22  }
0x230f   : > { %v4736_v62 = vpop.permute.xlu0 %4735 }
0x2310   : > { %v4739_v17 = vpop.permute.xlu1 %4738  ;;  %v4749_v4 = vrot.slane %v4736_v62, %v9174_v56 }
0x2311   : > { %v4753_v47 = vrot.slane %v4739_v17, %v9171_v54  ;;  %v10970_v17 = vld [vmem:[%s9082_s26 + $0x8] sm:$0xff] }
0x2313   : > { %v4742_v34 = vpop.permute.xlu0 %4741  ;;  %v4754_v18 = vsel %vm1310_vm3, %v4753_v47, %v4749_v4 }
0x2314   : > { %v4745_v46 = vpop.permute.xlu1 %4744  ;;  %v4758_v40 = vrot.slane %v4742_v34, %v9174_v56 }
0x2315   : > { %v4762_v16 = vrot.slane %v4745_v46, %v9171_v54 }
0x2317   : > { %v4763_v58 = vsel %vm1310_vm3, %v4762_v16, %v4758_v40  ;;  %v10976_v40 = vld [vmem:[%s9082_s26 + $0x10] sm:$0xff] }
0x2318   : > { %v4764_v41 = vsel %vm1321_vm4, %v4763_v58, %v4754_v18 }
0x2319   : > { %v4766_v7 = vsel %vm1324_vm5, %v4764_v41, 0.0 }
0x231a   : > { %4767 = vadd.xlane.f32.xlu0 %v4766_v7  ;;  %v10980_v7 = vld [vmem:[%s9082_s26 + $0x18] sm:$0xff] }
0x23a3   : > { %v4768_v28 = vpop.xlane.xlu0 %4767 }
0x23a4   : > { %8711 = vrcp.f32 %v4768_v28 }
0x23a5   : > { %8713 = vpow2.f32 %v7216_v49 }
0x23b1   : > { %v8712_v38 = vpop.eup %8711 }
0x23b2   : > { %v4774_v27 = vrot.slane %v8712_v38, %v9135_v19  ;;  %v4778_v44 = vrot.slane %v8712_v38, %v9185_v12  ;;  %v8714_v42 = vpop.eup %8713 }
0x23b3   : > { %v4900_v41 = vadd.f32 1.0, %v8714_v42 }
0x23b4   : > { %v10950_v2 = vmul.f32 %v8704_v21, %v4774_v27  ;;  %v10953_v36 = vmul.f32 %v8706_v33, %v4774_v27  ;;  %v10957_v10 = vmul.f32 %v8708_v11, %v4778_v44  ;;  %v10960_v43 = vmul.f32 %v8710_v22, %v4778_v44  ;;  %v10966_v33 = vld [vmem:[%s9082_s26] sm:$0xff] }
0x23b5   : > { %8715 = vrcp.f32 %v4900_v41 }
0x23b6   : > { %4787 = vperm.xlu1 %8551, %v10950_v2   ;;  %11893 = vst [vmem:[#allocation28_spill] sm:$0xff] %v10960_v43 }
0x23ba   : > { %4792 = vperm.xlu1 %8551, %v10953_v36  }
0x23be   : > { %4797 = vperm.xlu1 %8551, %v10957_v10  }
0x23c2   : > { %4802 = vperm.xlu1 %8551, %v10960_v43   ;;  %v8716_v42 = vpop.eup %8715 }
0x2431   : > { %v4788_v21 = vpop.permute.xlu1 %4787 }
0x2432   : > { %v4805_v62 = vmul.f32 %v10966_v33, %v4788_v21 }
0x2434   : > { %v4809_v47 = vsel %vm852_vm1, %v4805_v62, 0.0 }
0x2435   : > { %v4793_v11 = vpop.permute.xlu1 %4792 }
0x2436   : > { %v4806_v22 = vmul.f32 %v10970_v17, %v4793_v11 }
0x2438   : > { %v4810_v4 = vsel %vm852_vm1, %v4806_v22, 0.0 }
0x2439   : > { %v4811_v34 = vadd.f32 %v4810_v4, %v4809_v47  ;;  %v4798_v46 = vpop.permute.xlu1 %4797 }
0x243a   : > { %v4807_v16 = vmul.f32 %v10976_v40, %v4798_v46 }
0x243b   : > { %v4812_v0 = vrot.slane %v4811_v34, 4 }
0x243c   : > { %v4818_v38 = vsel %vm852_vm1, %v4807_v16, 0.0 }
0x243d   : > { %v4813_v18 = vadd.f32 %v4812_v0, %v4811_v34  ;;  %v4803_v58 = vpop.permute.xlu1 %4802 }
0x243e   : > { %v4808_v28 = vmul.f32 %v10980_v7, %v4803_v58  ;;  %v10988_v58 = vld [vmem:[%s9066_s21 + $0x8] sm:$0xff] }
0x243f   : > { %v4814_v44 = vrot.slane %v4813_v18, 2 }
0x2440   : > { %v4819_v27 = vsel %vm852_vm1, %v4808_v28, 0.0 }
0x2441   : > { %v4820_v8 = vadd.f32 %v4819_v27, %v4818_v38  ;;  %v4815_v21 = vadd.f32 %v4814_v44, %v4813_v18  ;;  %v10996_v18 = vld [vmem:[%s9066_s21] sm:$0xff]  ;;  %v5059_v44 = vrot.slane %v10929_v31, 3 }
0x2443   : > { %v4821_v49 = vrot.slane %v4820_v8, 4  ;;  %v4816_v22 = vrot.slane %v4815_v21, 1 }
0x2445   : > { %v4822_v62 = vadd.f32 %v4821_v49, %v4820_v8  ;;  %v4817_v34 = vadd.f32 %v4816_v22, %v4815_v21  ;;  %v5060_v21 = vrot.slane %v10929_v31, 4 }
0x2447   : > { %v4823_v11 = vrot.slane %v4822_v62, 2 }
0x2449   : > { %v4824_v47 = vadd.f32 %v4823_v11, %v4822_v62 }
0x244b   : > { %v4825_v4 = vrot.slane %v4824_v47, 1 }
0x244d   : > { %v4826_v46 = vadd.f32 %v4825_v4, %v4824_v47 }
0x244f   : > { %v4905_v0 = vsel %vm1321_vm4, %v4826_v46, %v4817_v34 }
0x2450   : > { %v4907_v16 = vmul.f32 %v8716_v42, %v4905_v0 }
0x2452   : > { %8289 = vmatmul.mubr.msk.f32.vlgmr.msra.gmra.mxu0 %vm852_vm1, %v4907_v16 }
0x2453   : > { %8327 = vmatpush3.xpose.msk.msra.mxu0 %vm852_vm1, %v10988_v58  ;;  %8330 = vmatprep.mubr.msk.f32.mxu0 %vm8942_vm0, %v11868_v14 }
0x2454   : > { %8328 = vmatprep.subr.mxu0 %v11868_v14 }
0x2457   : > { %8329 = vmatpush3.xpose.msk.msra.mxu0 %vm852_vm1, %v10996_v18 }
0x2458   : > { %8333 = vmatprep.subr.mxu0 %v11868_v14 }
0x2512   : > { %v4977_v41 = vpop.f32.mrf.mxu0 }
0x2513   : > { %v4982_v28 = vrot.slane %v4977_v41, 3  ;;  %v4983_v38 = vrot.slane %v4977_v41, 4 }
0x2514   : > { %v8290_v27 = vpop.f32.mrf.mxu0 }
0x2515   : > { %v4986_v8 = vadd.f32 %v4982_v28, %v9628_v3  ;;  %v4987_v49 = vadd.f32 %v4983_v38, %v9631_v20 }
0x2517   : > { %v5063_v62 = vadd.f32 %v5059_v44, %v4986_v8  ;;  %v5064_v11 = vadd.f32 %v5060_v21, %v4987_v49  ;;  %v5081_v8 = vrot.slane %v10729_v1, 7 }
0x2519   : > { %8717 = vtanh.f32 %v5063_v62  ;;  %v7251_v4 = vmul.f32 -1.442695, %v5063_v62  ;;  %v7252_v34 = vmul.f32 -1.442695, %v5064_v11  ;;  %v5082_v62 = vrot.slane %v10732_v57, 7 }
0x251a   : > { %8719 = vtanh.f32 %v5064_v11 }
0x251b   : > { %8721 = vpow2.f32 %v7251_v4 }
0x251c   : > { %8723 = vpow2.f32 %v7252_v34 }
0x2526   : > { %v8718_v22 = vpop.eup %8717 }
0x2527   : > { %5089 = vrot.lane.b32.xlu1 %v8718_v22, %s8945_s25  ;;  %v8720_v47 = vpop.eup %8719 }
0x2528   : > { %v8722_v46 = vpop.eup %8721 }
0x2529   : > { %v5071_v42 = vadd.f32 1.0, %v8722_v46  ;;  %v8724_v0 = vpop.eup %8723 }
0x252a   : > { %v5072_v16 = vadd.f32 1.0, %v8724_v0 }
0x252b   : > { %5091 = vrot.lane.b32.xlu1 %v8720_v47, %s8945_s25  ;;  %8725 = vrcp.f32 %v5071_v42 }
0x252c   : > { %8727 = vrcp.f32 %v5072_v16 }
0x2538   : > { %v8726_v31 = vpop.eup %8725 }
0x2539   : > { %v8728_v38 = vpop.eup %8727  ;;  %v5085_v49 = vmul.f32 %v8726_v31, %v5081_v8  ;;  %v11049_v8 = vld [vmem:[%s9270_s20] sm:$0xff] }
0x253a   : > { %v5086_v22 = vmul.f32 %v8728_v38, %v5082_v62  ;;  %v11070_v62 = vld [vmem:[%s9324_s19 + $0x68] sm:$0xff] }
0x2599   : > { %v5090_v41 = vpop.permute.xlu1 %5089 }
0x259a   : > { %v5095_v28 = vmul.f32 %v8726_v31, %v5090_v41 }
0x259c   : > { %5099 = vrot.lane.b32.xlu1 %v5095_v28, %s8946_s3 }
0x259d   : > { %v5092_v27 = vpop.permute.xlu1 %5091 }
0x259e   : > { %v5096_v44 = vmul.f32 %v8728_v38, %v5092_v27 }
0x25a0   : > { %5101 = vrot.lane.b32.xlu1 %v5096_v44, %s8946_s3  ;;  %v11029_v44 = vld [vmem:[%s9270_s20 + $0x18] sm:$0xff] }
0x260e   : > { %v5100_v21 = vpop.permute.xlu1 %5099 }
0x260f   : > { %v11011_v11 = vadd.f32 %v5100_v21, %v5085_v49  ;;  %v11056_v49 = vld [vmem:[%s9324_s19 + $0x78] sm:$0xff]  ;;  %v11064_v21 = vld [vmem:[%s9324_s19 + $0x70] sm:$0xff] }
0x2611   : > { %8729 = vtanh.f32 %v11011_v11 }
0x2612   : > { %v5102_v47 = vpop.permute.xlu1 %5101 }
0x2613   : > { %v11014_v4 = vadd.f32 %v5102_v47, %v5086_v22  ;;  %v11076_v22 = vld [vmem:[%s9324_s19 + $0x60] sm:$0xff]  ;;  %v11082_v47 = vld [vmem:[%s9324_s19 + $0x58] sm:$0xff] }
0x2615   : > { %8731 = vtanh.f32 %v11014_v4 }
0x261e   : > { %v8730_v34 = vpop.eup %8729 }
0x261f   : > { %5111 = vrot.lane.b32.xlu0 %v8730_v34, %s8945_s25  ;;  %v11088_v34 = vld [vmem:[%s9324_s19 + $0x50] sm:$0xff] }
0x2622   : > { %v8732_v46 = vpop.eup %8731 }
0x2623   : > { %5113 = vrot.lane.b32.xlu1 %v8732_v46, %s8945_s25  ;;  %v8916_v46 = vld [vmem:[%s9318_s23 + $0x28] sm:$0xff] }
0x2691   : > { %v5112_v1 = vpop.permute.xlu0 %5111 }
0x2692   : > { %v11019_v57 = vmul.f32 %v8726_v31, %v5112_v1  ;;  %v11037_v31 = vld [vmem:[%s9270_s20 + $0x10] sm:$0xff] }
0x2694   : > { %v5200_v16 = vrot.slane %v11019_v57, 5 }
0x2695   : > { %v5114_v42 = vpop.permute.xlu1 %5113 }
0x2696   : > { %v11021_v0 = vmul.f32 %v8728_v38, %v5114_v42  ;;  %v11043_v38 = vld [vmem:[%s9270_s20 + $0x8] sm:$0xff] }
0x2698   : > { %v5201_v41 = vrot.slane %v11021_v0, 4 }
0x269a   : > { %v5202_v28 = vsel %vm1321_vm4, %v5201_v41, %v5200_v16 }
0x269b   : > { %5203 = vrot.lane.b32.xlu1 %v5202_v28, %s8946_s3 }
0x270d   : > { %v5204_v27 = vpop.permute.xlu1 %5203 }
0x270e   : > { %8331 = vmatmul.mubr.msk.f32.vlgmr.msra.gmra.mxu0 %vm852_vm1, %v5204_v27 }
0x270f   : > { %8334 = vmatpush3.xpose.msk.msra.mxu0 %vm852_vm1, %v11029_v44  ;;  %8341 = vmatprep.mubr.msk.f32.mxu0 %vm8942_vm0, %v11868_v14 }
0x2710   : > { %8335 = vmatprep.subr.mxu0 %v11868_v14 }
0x2713   : > { %8336 = vmatpush3.xpose.msk.msra.mxu0 %vm852_vm1, %v11037_v31 }
0x2714   : > { %8337 = vmatprep.subr.mxu0 %v11868_v14 }
0x2717   : > { %8338 = vmatpush3.xpose.msk.msra.mxu0 %vm852_vm1, %v11043_v38 }
0x2718   : > { %8339 = vmatprep.subr.mxu0 %v11868_v14 }
0x271b   : > { %8340 = vmatpush3.xpose.msk.msra.mxu0 %vm852_vm1, %v11049_v8 }
0x271c   : > { %8379 = vmatprep.subr.mxu0 %v11868_v14 }
0x271e   : > { %8342 = vmatmul.mubr.msk.f32.vlgmr.msra.gmra.mxu0 %vm852_vm1, %v5204_v27 }
0x271f   : > { %8380 = vmatpush3.xpose.msk.msra.mxu0 %vm852_vm1, %v11056_v49  ;;  %8411 = vmatprep.mubr.msk.f32.mxu0 %vm8942_vm0, %v11868_v14 }
0x2720   : > { %8381 = vmatprep.subr.mxu0 %v11868_v14 }
0x2723   : > { %8382 = vmatpush3.xpose.msk.msra.mxu0 %vm852_vm1, %v11064_v21 }
0x2724   : > { %8383 = vmatprep.subr.mxu0 %v11868_v14 }
0x2727   : > { %8384 = vmatpush3.xpose.msk.msra.mxu0 %vm852_vm1, %v11070_v62 }
0x2728   : > { %8385 = vmatprep.subr.mxu0 %v11868_v14 }
0x272b   : > { %8386 = vmatpush3.xpose.msk.msra.mxu0 %vm852_vm1, %v11076_v22 }
0x272c   : > { %8387 = vmatprep.subr.mxu0 %v11868_v14 }
0x272f   : > { %8388 = vmatpush3.xpose.msk.msra.mxu0 %vm852_vm1, %v11082_v47 }
0x2730   : > { %8389 = vmatprep.subr.mxu0 %v11868_v14 }
0x2733   : > { %8390 = vmatpush3.xpose.msk.msra.mxu0 %vm852_vm1, %v11088_v34 }
0x2734   : > { %8391 = vmatprep.subr.mxu0 %v11868_v14 }
0x2737   : > { %8392 = vmatpush3.xpose.msk.msra.mxu0 %vm852_vm1, %v10782_v53  ;;  %v8906_v53 = vld [vmem:[%s9318_s23 + $0x78] sm:$0xff] }
0x2738   : > { %8393 = vmatprep.subr.mxu0 %v11868_v14 }
0x273b   : > { %8394 = vmatpush3.xpose.msk.msra.mxu0 %vm852_vm1, %v10788_v24  ;;  %v8907_v24 = vld [vmem:[%s9318_s23 + $0x70] sm:$0xff] }
0x273c   : > { %8395 = vmatprep.subr.mxu0 %v11868_v14 }
0x273f   : > { %8396 = vmatpush3.xpose.msk.msra.mxu0 %vm852_vm1, %v10794_v9  ;;  %v8908_v9 = vld [vmem:[%s9318_s23 + $0x68] sm:$0xff] }
0x2740   : > { %8397 = vmatprep.subr.mxu0 %v11868_v14 }
0x2743   : > { %8398 = vmatpush3.xpose.msk.msra.mxu0 %vm852_vm1, %v10800_v48  ;;  %v8909_v48 = vld [vmem:[%s9318_s23 + $0x60] sm:$0xff] }
0x2744   : > { %8399 = vmatprep.subr.mxu0 %v11868_v14 }
0x2747   : > { %8400 = vmatpush3.xpose.msk.msra.mxu0 %vm852_vm1, %v10806_v50  ;;  %v8910_v50 = vld [vmem:[%s9318_s23 + $0x58] sm:$0xff] }
0x2748   : > { %8401 = vmatprep.subr.mxu0 %v11868_v14 }
0x274b   : > { %8402 = vmatpush3.xpose.msk.msra.mxu0 %vm852_vm1, %v10812_v35  ;;  %v8911_v35 = vld [vmem:[%s9318_s23 + $0x50] sm:$0xff] }
0x274c   : > { %8403 = vmatprep.subr.mxu0 %v11868_v14 }
0x274f   : > { %8404 = vmatpush3.xpose.msk.msra.mxu0 %vm852_vm1, %v10818_v13  ;;  %v8912_v13 = vld [vmem:[%s9318_s23 + $0x48] sm:$0xff] }
0x2750   : > { %8405 = vmatprep.subr.mxu0 %v11868_v14 }
0x2753   : > { %8406 = vmatpush3.xpose.msk.msra.mxu0 %vm852_vm1, %v10824_v45  ;;  %v8913_v45 = vld [vmem:[%s9318_s23 + $0x40] sm:$0xff] }
0x2754   : > { %8407 = vmatprep.subr.mxu0 %v11868_v14 }
0x2757   : > { %8408 = vmatpush3.xpose.msk.msra.mxu0 %vm852_vm1, %v10830_v6  ;;  %v8914_v6 = vld [vmem:[%s9318_s23 + $0x38] sm:$0xff] }
0x2758   : > { %8409 = vmatprep.subr.mxu0 %v11868_v14 }
0x275b   : > { %8410 = vmatpush3.xpose.msk.msra.mxu0 %vm852_vm1, %v10836_v59  ;;  %v8915_v59 = vld [vmem:[%s9318_s23 + $0x30] sm:$0xff] }
0x275c   : > { %8432 = vmatprep.subr.mxu0 %v11868_v14 }
0x275e   : > { %8412 = vmatmul.mubr.msk.f32.vlgmr.msra.gmra.mxu0 %vm852_vm1, %v5204_v27 }
0x275f   : > { %8433 = vmatpush3.xpose.msk.msra.mxu0 %vm852_vm1, %v8906_v53  ;;  %8464 = vmatprep.mubr.msk.f32.mxu0 %vm8942_vm0, %v11868_v14 }
0x2760   : > { %8434 = vmatprep.subr.mxu0 %v11868_v14 }
0x2763   : > { %8435 = vmatpush3.xpose.msk.msra.mxu0 %vm852_vm1, %v8907_v24 }
0x2764   : > { %8436 = vmatprep.subr.mxu0 %v11868_v14 }
0x2767   : > { %8437 = vmatpush3.xpose.msk.msra.mxu0 %vm852_vm1, %v8908_v9 }
0x2768   : > { %8438 = vmatprep.subr.mxu0 %v11868_v14 }
0x276b   : > { %8439 = vmatpush3.xpose.msk.msra.mxu0 %vm852_vm1, %v8909_v48 }
0x276c   : > { %8440 = vmatprep.subr.mxu0 %v11868_v14 }
0x276f   : > { %8441 = vmatpush3.xpose.msk.msra.mxu0 %vm852_vm1, %v8910_v50 }
0x2770   : > { %8442 = vmatprep.subr.mxu0 %v11868_v14 }
0x2773   : > { %8443 = vmatpush3.xpose.msk.msra.mxu0 %vm852_vm1, %v8911_v35 }
0x2774   : > { %8444 = vmatprep.subr.mxu0 %v11868_v14 }
0x2777   : > { %8445 = vmatpush3.xpose.msk.msra.mxu0 %vm852_vm1, %v8912_v13 }
0x2778   : > { %8446 = vmatprep.subr.mxu0 %v11868_v14 }
0x277b   : > { %8447 = vmatpush3.xpose.msk.msra.mxu0 %vm852_vm1, %v8913_v45 }
0x277c   : > { %8448 = vmatprep.subr.mxu0 %v11868_v14 }
0x277f   : > { %8449 = vmatpush3.xpose.msk.msra.mxu0 %vm852_vm1, %v8914_v6 }
0x2780   : > { %8450 = vmatprep.subr.mxu0 %v11868_v14 }
0x2783   : > { %8451 = vmatpush3.xpose.msk.msra.mxu0 %vm852_vm1, %v8915_v59 }
0x2784   : > { %8452 = vmatprep.subr.mxu0 %v11868_v14 }
0x2787   : > { %8453 = vmatpush3.xpose.msk.msra.mxu0 %vm852_vm1, %v8916_v46 }
0x2788   : > { %8454 = vmatprep.subr.mxu0 %v11868_v14 }
0x278b   : > { %8455 = vmatpush3.xpose.msk.msra.mxu0 %vm852_vm1, %v10878_v23 }
0x278c   : > { %8456 = vmatprep.subr.mxu0 %v11868_v14 }
0x278f   : > { %8457 = vmatpush3.xpose.msk.msra.mxu0 %vm852_vm1, %v10884_v37 }
0x2790   : > { %8458 = vmatprep.subr.mxu0 %v11868_v14 }
0x2793   : > { %8459 = vmatpush3.xpose.msk.msra.mxu0 %vm852_vm1, %v10890_v51 }
0x2794   : > { %8460 = vmatprep.subr.mxu0 %v11868_v14 }
0x2797   : > { %8461 = vmatpush3.xpose.msk.msra.mxu0 %vm852_vm1, %v10896_v60 }
0x2798   : > { %8462 = vmatprep.subr.mxu0 %v11868_v14 }
0x279b   : > { %8463 = vmatpush3.xpose.msk.msra.mxu0 %vm852_vm1, %v10902_v55 }
0x27ce   : > { %v5273_v23 = vpop.f32.mrf.mxu0 }
0x27cf   : > { %v5284_v1 = vrot.slane %v5273_v23, %v9127_v15 }
0x27d0   : > { %v8332_v42 = vpop.f32.mrf.mxu0 }
0x27d1   : > { %v5285_v37 = vcombine.high %v5284_v1, %v5284_v1  ;;  %v5292_v16 = vrot.slane %v5284_v1, %v9127_v15 }
0x27d3   : > { %v5299_v41 = vrot.slane %v5285_v37, %v9127_v15  ;;  %v5303_v51 = vrot.slane %v5292_v16, %v9135_v19 }
0x27d5   : > { %v5307_v28 = vrot.slane %v5299_v41, %v9135_v19  ;;  %v5311_v60 = vadd.f32 %v5303_v51, %v9148_v29  ;;  %v5310_v27 = vadd.f32 %v5303_v51, %v9138_v25 }
0x27d7   : > { %v5315_v53 = vmax.f32 %v5311_v60, 0.0  ;;  %v5314_v24 = vmax.f32 %v5310_v27, 0.0  ;;  %v5312_v55 = vadd.f32 %v5307_v28, %v9152_v32  ;;  %v5313_v9 = vadd.f32 %v5307_v28, %v9150_v30 }
0x27d9   : > { %v5319_v48 = vmul.f32 %v10917_v39, %v5315_v53  ;;  %v5318_v50 = vmul.f32 %v10917_v39, %v5314_v24  ;;  %v5316_v35 = vmax.f32 %v5312_v55, 0.0  ;;  %v5317_v59 = vmax.f32 %v5313_v9, 0.0 }
0x27db   : > { %v5325_v13 = vsel %vm981_vm2, %v5319_v48, 0.0  ;;  %v5322_v45 = vsel %vm981_vm2, %v5318_v50, 0.0  ;;  %v5320_v6 = vmul.f32 %v10917_v39, %v5316_v35  ;;  %v5321_v1 = vmul.f32 %v10917_v39, %v5317_v59 }
0x27dc   : > { %5326 = vadd.xlane.f32.xlu0 %v5325_v13  ;;  %5323 = vadd.xlane.f32.xlu1 %v5322_v45 }
0x27dd   : > { %v5328_v23 = vsel %vm981_vm2, %v5320_v6, 0.0  ;;  %v5331_v37 = vsel %vm981_vm2, %v5321_v1, 0.0 }
0x27de   : > { %v11187_v46 = vpop.f32.mrf.mxu0 }
0x27e0   : > { %v8343_v42 = vpop.f32.mrf.mxu0  ;;  %5329 = vadd.xlane.f32.xlu1 %v5328_v23 }
0x27e4   : > { %5332 = vadd.xlane.f32.xlu1 %v5331_v37 }
0x281e   : > { %v11192_v16 = vpop.f32.mrf.mxu0 }
0x2820   : > { %v8413_v41 = vpop.f32.mrf.mxu0 }
0x2865   : > { %v5324_v51 = vpop.xlane.xlu1 %5323  ;;  %v5327_v28 = vpop.xlane.xlu0 %5326 }
0x2866   : > { %v5345_v27 = vrot.slane %v5327_v28, %v9171_v54  ;;  %v5341_v53 = vrot.slane %v5324_v51, %v9174_v56 }
0x2868   : > { %v5346_v48 = vsel %vm1310_vm3, %v5345_v27, %v5341_v53 }
0x2869   : > { %v5330_v60 = vpop.xlane.xlu1 %5329 }
0x286a   : > { %v5350_v55 = vrot.slane %v5330_v60, %v9174_v56 }
0x286d   : > { %v5333_v24 = vpop.xlane.xlu1 %5332 }
0x286e   : > { %v5354_v9 = vrot.slane %v5333_v24, %v9171_v54 }
0x2870   : > { %v5355_v50 = vsel %vm1310_vm3, %v5354_v9, %v5350_v55 }
0x2871   : > { %v5356_v35 = vsel %vm1321_vm4, %v5355_v50, %v5346_v48 }
0x2872   : > { %v5358_v13 = vsel %vm1324_vm5, %v5356_v35, -inf }
0x2873   : > { %5359 = vmax.xlane.f32.xlu0 %v5358_v13 }
0x28fc   : > { %v5360_v45 = vpop.xlane.xlu0 %5359 }
0x28fd   : > { %v5365_v6 = vrot.slane %v5360_v45, %v9135_v19  ;;  %v5369_v59 = vrot.slane %v5360_v45, %v9185_v12 }
0x28ff   : > { %v5372_v23 = vsub.f32 %v5324_v51, %v5365_v6  ;;  %v5373_v1 = vsub.f32 %v5327_v28, %v5365_v6  ;;  %v5374_v42 = vsub.f32 %v5330_v60, %v5369_v59  ;;  %v5375_v43 = vsub.f32 %v5333_v24, %v5369_v59 }
0x2901   : > { %v5376_v37 = vmul.f32 1.442695, %v5372_v23  ;;  %v5378_v41 = vmul.f32 1.442695, %v5373_v1  ;;  %v5380_v27 = vmul.f32 1.442695, %v5374_v42 }
0x2902   : > { %v5382_v53 = vmul.f32 1.442695, %v5375_v43 }
0x2903   : > { %8733 = vpow2.f32 %v5376_v37 }
0x2904   : > { %8735 = vpow2.f32 %v5378_v41 }
0x2905   : > { %8737 = vpow2.f32 %v5380_v27 }
0x2906   : > { %8739 = vpow2.f32 %v5382_v53 }
0x2910   : > { %v8734_v55 = vpop.eup %8733 }
0x2911   : > { %v8736_v9 = vpop.eup %8735  ;;  %5389 = vperm.xlu1 %8551, %v8734_v55  }
0x2912   : > { %5392 = vperm.xlu0 %8552, %v8736_v9   ;;  %v8738_v48 = vpop.eup %8737 }
0x2913   : > { %v8740_v50 = vpop.eup %8739 }
0x2915   : > { %5395 = vperm.xlu1 %8551, %v8738_v48  }
0x2919   : > { %5398 = vperm.xlu1 %8551, %v8740_v50  }
0x298c   : > { %v5390_v51 = vpop.permute.xlu1 %5389 }
0x298d   : > { %v5393_v28 = vpop.permute.xlu0 %5392  ;;  %v5403_v24 = vrot.slane %v5390_v51, %v9174_v56 }
0x298e   : > { %v5407_v35 = vrot.slane %v5393_v28, %v9171_v54 }
0x2990   : > { %v5396_v60 = vpop.permute.xlu1 %5395  ;;  %v5408_v6 = vsel %vm1310_vm3, %v5407_v35, %v5403_v24  ;;  %v11227_v35 = vld [vmem:[%s9598_s22] ss:$0 sm:$0xff] }
0x2991   : > { %v5412_v45 = vrot.slane %v5396_v60, %v9174_v56 }
0x2994   : > { %v5399_v13 = vpop.permute.xlu1 %5398 }
0x2995   : > { %v5416_v43 = vrot.slane %v5399_v13, %v9171_v54 }
0x2997   : > { %v5417_v59 = vsel %vm1310_vm3, %v5416_v43, %v5412_v45 }
0x2998   : > { %v5418_v23 = vsel %vm1321_vm4, %v5417_v59, %v5408_v6 }
0x2999   : > { %v5420_v1 = vsel %vm1324_vm5, %v5418_v23, 0.0 }
0x299a   : > { %5421 = vadd.xlane.f32.xlu1 %v5420_v1 }
0x2a23   : > { %v5422_v42 = vpop.xlane.xlu1 %5421 }
0x2a24   : > { %8741 = vrcp.f32 %v5422_v42 }
0x2a31   : > { %v8742_v37 = vpop.eup %8741 }
0x2a32   : > { %v5428_v41 = vrot.slane %v8742_v37, %v9135_v19  ;;  %v5432_v51 = vrot.slane %v8742_v37, %v9185_v12 }
0x2a34   : > { %v11213_v27 = vmul.f32 %v8734_v55, %v5428_v41  ;;  %v11216_v53 = vmul.f32 %v8736_v9, %v5428_v41  ;;  %v11220_v28 = vmul.f32 %v8738_v48, %v5432_v51  ;;  %v11223_v60 = vmul.f32 %v8740_v50, %v5432_v51 }
0x2a35   : > { %v5548_v55 = vadd.f32 %v11227_v35, %v11187_v46 }
0x2a36   : > { %5441 = vperm.xlu0 %8552, %v11213_v27   ;;  %11894 = vst [vmem:[#allocation29_spill] sm:$0xff] %v11223_v60 }
0x2a37   : > { %v7261_v24 = vmul.f32 -1.442695, %v5548_v55 }
0x2a39   : > { %8743 = vpow2.f32 %v7261_v24 }
0x2a3a   : > { %5446 = vperm.xlu0 %8552, %v11216_v53  }
0x2a3e   : > { %5451 = vperm.xlu0 %8552, %v11220_v28  }
0x2a42   : > { %5456 = vperm.xlu0 %8552, %v11223_v60  }
0x2a46   : > { %v8744_v23 = vpop.eup %8743 }
0x2a47   : > { %v5554_v41 = vadd.f32 1.0, %v8744_v23 }
0x2a49   : > { %8745 = vrcp.f32 %v5554_v41 }
0x2ab1   : > { %v5442_v9 = vpop.permute.xlu0 %5441 }
0x2ab2   : > { %v5459_v13 = vmul.f32 %v10966_v33, %v5442_v9 }
0x2ab4   : > { %v5463_v43 = vsel %vm852_vm1, %v5459_v13, 0.0 }
0x2ab5   : > { %v5447_v45 = vpop.permute.xlu0 %5446 }
0x2ab6   : > { %v5460_v48 = vmul.f32 %v10970_v17, %v5447_v45 }
0x2ab8   : > { %v5464_v50 = vsel %vm852_vm1, %v5460_v48, 0.0 }
0x2ab9   : > { %v5465_v6 = vadd.f32 %v5464_v50, %v5463_v43  ;;  %v5452_v59 = vpop.permute.xlu0 %5451 }
0x2aba   : > { %v5461_v42 = vmul.f32 %v10976_v40, %v5452_v59  ;;  %v8746_v59 = vpop.eup %8745 }
0x2abb   : > { %v5466_v1 = vrot.slane %v5465_v6, 4 }
0x2abc   : > { %v5472_v33 = vsel %vm852_vm1, %v5461_v42, 0.0 }
0x2abd   : > { %v5467_v37 = vadd.f32 %v5466_v1, %v5465_v6  ;;  %v5457_v46 = vpop.permute.xlu0 %5456 }
0x2abe   : > { %v5462_v51 = vmul.f32 %v10980_v7, %v5457_v46  ;;  %v5713_v46 = vrot.slane %v11192_v16, 2 }
0x2abf   : > { %v5468_v17 = vrot.slane %v5467_v37, 2 }
0x2ac0   : > { %v5473_v55 = vsel %vm852_vm1, %v5462_v51, 0.0  ;;  %v5714_v51 = vrot.slane %v11192_v16, 3 }
0x2ac1   : > { %v5474_v24 = vadd.f32 %v5473_v55, %v5472_v33  ;;  %v5469_v13 = vadd.f32 %v5468_v17, %v5467_v37 }
0x2ac3   : > { %v5475_v9 = vrot.slane %v5474_v24, 4  ;;  %v5470_v43 = vrot.slane %v5469_v13, 1 }
0x2ac5   : > { %v5476_v45 = vadd.f32 %v5475_v9, %v5474_v24  ;;  %v5471_v40 = vadd.f32 %v5470_v43, %v5469_v13 }
0x2ac7   : > { %v5477_v48 = vrot.slane %v5476_v45, 2 }
0x2ac9   : > { %v5478_v50 = vadd.f32 %v5477_v48, %v5476_v45 }
0x2acb   : > { %v5479_v60 = vrot.slane %v5478_v50, 1 }
0x2acd   : > { %v5480_v6 = vadd.f32 %v5479_v60, %v5478_v50 }
0x2acf   : > { %v5559_v23 = vsel %vm1321_vm4, %v5480_v6, %v5471_v40 }
0x2ad0   : > { %v5561_v7 = vmul.f32 %v8746_v59, %v5559_v23 }
0x2ad2   : > { %8377 = vmatmul.mubr.msk.f32.vlgmr.msra.gmra.mxu1 %vm852_vm1, %v5561_v7  ;;  %v5735_v7 = vrot.slane %v11011_v11, 7 }
0x2ad3   : > { %8415 = vmatpush3.xpose.msk.msra.mxu1 %vm852_vm1, %v10988_v58  ;;  %8418 = vmatprep.mubr.msk.f32.mxu1 %vm8942_vm0, %v11868_v14 }
0x2ad4   : > { %8416 = vmatprep.subr.mxu1 %v11868_v14 }
0x2ad7   : > { %8417 = vmatpush3.xpose.msk.msra.mxu1 %vm852_vm1, %v10996_v18 }
0x2ad8   : > { %8421 = vmatprep.subr.mxu1 %v11868_v14 }
0x2b92   : > { %v5631_v60 = vpop.f32.mrf.mxu1 }
0x2b93   : > { %v5636_v1 = vrot.slane %v5631_v60, 2  ;;  %v5637_v42 = vrot.slane %v5631_v60, 3 }
0x2b94   : > { %v8378_v37 = vpop.f32.mrf.mxu1 }
0x2b95   : > { %v5640_v41 = vadd.f32 %v5636_v1, %v9628_v3  ;;  %v5641_v58 = vadd.f32 %v5637_v42, %v9631_v20  ;;  %v5736_v42 = vrot.slane %v11014_v4, 7 }
0x2b97   : > { %v5717_v33 = vadd.f32 %v5713_v46, %v5640_v41  ;;  %v5718_v55 = vadd.f32 %v5714_v51, %v5641_v58 }
0x2b99   : > { %8747 = vtanh.f32 %v5717_v33  ;;  %v7296_v24 = vmul.f32 -1.442695, %v5717_v33  ;;  %v7297_v9 = vmul.f32 -1.442695, %v5718_v55 }
0x2b9a   : > { %8749 = vtanh.f32 %v5718_v55 }
0x2b9b   : > { %8751 = vpow2.f32 %v7296_v24 }
0x2b9c   : > { %8753 = vpow2.f32 %v7297_v9 }
0x2ba6   : > { %v8748_v17 = vpop.eup %8747 }
0x2ba7   : > { %5743 = vrot.lane.b32.xlu0 %v8748_v17, %s8945_s25  ;;  %v8750_v18 = vpop.eup %8749 }
0x2ba8   : > { %v8752_v13 = vpop.eup %8751 }
0x2ba9   : > { %v5725_v45 = vadd.f32 1.0, %v8752_v13  ;;  %v8754_v48 = vpop.eup %8753 }
0x2baa   : > { %v5726_v43 = vadd.f32 1.0, %v8754_v48 }
0x2bab   : > { %5745 = vrot.lane.b32.xlu0 %v8750_v18, %s8945_s25  ;;  %8755 = vrcp.f32 %v5725_v45 }
0x2bac   : > { %8757 = vrcp.f32 %v5726_v43 }
0x2bb8   : > { %v8756_v16 = vpop.eup %8755 }
0x2bb9   : > { %v8758_v6 = vpop.eup %8757  ;;  %v5739_v60 = vmul.f32 %v8756_v16, %v5735_v7 }
0x2bba   : > { %v5740_v46 = vmul.f32 %v8758_v6, %v5736_v42 }
0x2c19   : > { %v5744_v50 = vpop.permute.xlu0 %5743 }
0x2c1a   : > { %v5749_v40 = vmul.f32 %v8756_v16, %v5744_v50 }
0x2c1c   : > { %5753 = vrot.lane.b32.xlu0 %v5749_v40, %s8946_s3 }
0x2c1d   : > { %v5746_v59 = vpop.permute.xlu0 %5745 }
0x2c1e   : > { %v5750_v23 = vmul.f32 %v8758_v6, %v5746_v59 }
0x2c20   : > { %5755 = vrot.lane.b32.xlu0 %v5750_v23, %s8946_s3 }
0x2c8e   : > { %v5754_v1 = vpop.permute.xlu0 %5753 }
0x2c8f   : > { %v11259_v37 = vadd.f32 %v5754_v1, %v5739_v60 }
0x2c91   : > { %8759 = vtanh.f32 %v11259_v37 }
0x2c92   : > { %v5756_v41 = vpop.permute.xlu0 %5755 }
0x2c93   : > { %v11262_v58 = vadd.f32 %v5756_v41, %v5740_v46 }
0x2c95   : > { %8761 = vtanh.f32 %v11262_v58 }
0x2c9e   : > { %v8760_v51 = vpop.eup %8759 }
0x2c9f   : > { %5765 = vrot.lane.b32.xlu0 %v8760_v51, %s8945_s25 }
0x2ca2   : > { %v8762_v33 = vpop.eup %8761 }
0x2ca3   : > { %5767 = vrot.lane.b32.xlu1 %v8762_v33, %s8945_s25 }
0x2d11   : > { %v5766_v11 = vpop.permute.xlu0 %5765 }
0x2d12   : > { %v11267_v55 = vmul.f32 %v8756_v16, %v5766_v11 }
0x2d14   : > { %v5854_v18 = vrot.slane %v11267_v55, 6 }
0x2d15   : > { %v5768_v4 = vpop.permute.xlu1 %5767 }
0x2d16   : > { %v11269_v17 = vmul.f32 %v8758_v6, %v5768_v4  ;;  %v8928_v4 = vld [vmem:[%s9144_s30] ss:$0 sm:$0xff]  ;;  %s11895_s30 = sld [smem:[#allocation32_spill]] }
0x2d18   : > { %v5855_v24 = vrot.slane %v11269_v17, 5 }
0x2d1a   : > { %v5856_v9 = vsel %vm1321_vm4, %v5855_v24, %v5854_v18 }
0x2d1b   : > { %5857 = vrot.lane.b32.xlu0 %v5856_v9, %s8946_s3 }
0x2d1c   : > { %s11384_s20 = scalar_lea.vmem %s11895_s30, %s9056_s29 }
0x2d8d   : > { %v5858_v13 = vpop.permute.xlu0 %5857 }
0x2d8e   : > { %8419 = vmatmul.mubr.msk.f32.vlgmr.msra.gmra.mxu1 %vm852_vm1, %v5858_v13 }
0x2d8f   : > { %8422 = vmatpush3.xpose.msk.msra.mxu1 %vm852_vm1, %v11029_v44  ;;  %8429 = vmatprep.mubr.msk.f32.mxu1 %vm8942_vm0, %v11868_v14  ;;  %v8918_v44 = vld [vmem:[%s9324_s19 + $0x48] sm:$0xff] }
0x2d90   : > { %8423 = vmatprep.subr.mxu1 %v11868_v14 }
0x2d93   : > { %8424 = vmatpush3.xpose.msk.msra.mxu1 %vm852_vm1, %v11037_v31  ;;  %v8919_v31 = vld [vmem:[%s9324_s19 + $0x40] sm:$0xff] }
0x2d94   : > { %8425 = vmatprep.subr.mxu1 %v11868_v14 }
0x2d97   : > { %8426 = vmatpush3.xpose.msk.msra.mxu1 %vm852_vm1, %v11043_v38  ;;  %v8920_v38 = vld [vmem:[%s9324_s19 + $0x38] sm:$0xff] }
0x2d98   : > { %8427 = vmatprep.subr.mxu1 %v11868_v14 }
0x2d9b   : > { %8428 = vmatpush3.xpose.msk.msra.mxu1 %vm852_vm1, %v11049_v8  ;;  %v8921_v8 = vld [vmem:[%s9324_s19 + $0x30] sm:$0xff] }
0x2d9c   : > { %8467 = vmatprep.subr.mxu1 %v11868_v14 }
0x2d9e   : > { %8430 = vmatmul.mubr.msk.f32.vlgmr.msra.gmra.mxu1 %vm852_vm1, %v5858_v13 }
0x2d9f   : > { %8468 = vmatpush3.xpose.msk.msra.mxu1 %vm852_vm1, %v11056_v49  ;;  %8499 = vmatprep.mubr.msk.f32.mxu1 %vm8942_vm0, %v11868_v14  ;;  %v8922_v49 = vld [vmem:[%s9324_s19 + $0x28] sm:$0xff] }
0x2da0   : > { %8469 = vmatprep.subr.mxu1 %v11868_v14 }
0x2da3   : > { %8470 = vmatpush3.xpose.msk.msra.mxu1 %vm852_vm1, %v11064_v21  ;;  %v8923_v21 = vld [vmem:[%s9324_s19 + $0x20] sm:$0xff] }
0x2da4   : > { %8471 = vmatprep.subr.mxu1 %v11868_v14 }
0x2da7   : > { %8472 = vmatpush3.xpose.msk.msra.mxu1 %vm852_vm1, %v11070_v62  ;;  %v8924_v62 = vld [vmem:[%s9324_s19 + $0x18] sm:$0xff] }
0x2da8   : > { %8473 = vmatprep.subr.mxu1 %v11868_v14 }
0x2dab   : > { %8474 = vmatpush3.xpose.msk.msra.mxu1 %vm852_vm1, %v11076_v22  ;;  %v8925_v22 = vld [vmem:[%s9324_s19 + $0x10] sm:$0xff] }
0x2dac   : > { %8475 = vmatprep.subr.mxu1 %v11868_v14 }
0x2daf   : > { %8476 = vmatpush3.xpose.msk.msra.mxu1 %vm852_vm1, %v11082_v47  ;;  %v8926_v47 = vld [vmem:[%s9324_s19 + $0x8] sm:$0xff] }
0x2db0   : > { %8477 = vmatprep.subr.mxu1 %v11868_v14 }
0x2db3   : > { %8478 = vmatpush3.xpose.msk.msra.mxu1 %vm852_vm1, %v11088_v34  ;;  %v8927_v34 = vld [vmem:[%s9324_s19] sm:$0xff] }
0x2db4   : > { %8479 = vmatprep.subr.mxu1 %v11868_v14 }
0x2db7   : > { %8480 = vmatpush3.xpose.msk.msra.mxu1 %vm852_vm1, %v8918_v44 }
0x2db8   : > { %8481 = vmatprep.subr.mxu1 %v11868_v14 }
0x2dbb   : > { %8482 = vmatpush3.xpose.msk.msra.mxu1 %vm852_vm1, %v8919_v31 }
0x2dbc   : > { %8483 = vmatprep.subr.mxu1 %v11868_v14 }
0x2dbf   : > { %8484 = vmatpush3.xpose.msk.msra.mxu1 %vm852_vm1, %v8920_v38 }
0x2dc0   : > { %8485 = vmatprep.subr.mxu1 %v11868_v14 }
0x2dc3   : > { %8486 = vmatpush3.xpose.msk.msra.mxu1 %vm852_vm1, %v8921_v8 }
0x2dc4   : > { %8487 = vmatprep.subr.mxu1 %v11868_v14 }
0x2dc7   : > { %8488 = vmatpush3.xpose.msk.msra.mxu1 %vm852_vm1, %v8922_v49 }
0x2dc8   : > { %8489 = vmatprep.subr.mxu1 %v11868_v14 }
0x2dcb   : > { %8490 = vmatpush3.xpose.msk.msra.mxu1 %vm852_vm1, %v8923_v21 }
0x2dcc   : > { %8491 = vmatprep.subr.mxu1 %v11868_v14 }
0x2dcf   : > { %8492 = vmatpush3.xpose.msk.msra.mxu1 %vm852_vm1, %v8924_v62 }
0x2dd0   : > { %8493 = vmatprep.subr.mxu1 %v11868_v14 }
0x2dd3   : > { %8494 = vmatpush3.xpose.msk.msra.mxu1 %vm852_vm1, %v8925_v22 }
0x2dd4   : > { %8495 = vmatprep.subr.mxu1 %v11868_v14 }
0x2dd7   : > { %8496 = vmatpush3.xpose.msk.msra.mxu1 %vm852_vm1, %v8926_v47 }
0x2dd8   : > { %8497 = vmatprep.subr.mxu1 %v11868_v14 }
0x2ddb   : > { %8498 = vmatpush3.xpose.msk.msra.mxu1 %vm852_vm1, %v8927_v34 }
0x2dde   : > { %8500 = vmatmul.mubr.msk.f32.vlgmr.msra.gmra.mxu1 %vm852_vm1, %v5858_v13 }
0x2e4e   : > { %v5927_v45 = vpop.f32.mrf.mxu1 }
0x2e4f   : > { %v5938_v48 = vrot.slane %v5927_v45, %v9127_v15 }
0x2e50   : > { %v8420_v43 = vpop.f32.mrf.mxu1 }
0x2e51   : > { %v5939_v16 = vcombine.high %v5938_v48, %v5938_v48  ;;  %v5946_v50 = vrot.slane %v5938_v48, %v9127_v15 }
0x2e53   : > { %v5953_v40 = vrot.slane %v5939_v16, %v9127_v15  ;;  %v5957_v6 = vrot.slane %v5946_v50, %v9135_v19 }
0x2e55   : > { %v5961_v59 = vrot.slane %v5953_v40, %v9135_v19  ;;  %v5965_v14 = vadd.f32 %v5957_v6, %v9148_v29  ;;  %v5964_v23 = vadd.f32 %v5957_v6, %v9138_v25 }
0x2e57   : > { %v5969_v7 = vmax.f32 %v5965_v14, 0.0  ;;  %v5968_v60 = vmax.f32 %v5964_v23, 0.0  ;;  %v5966_v1 = vadd.f32 %v5961_v59, %v9152_v32  ;;  %v5967_v42 = vadd.f32 %v5961_v59, %v9150_v30 }
0x2e59   : > { %v5973_v46 = vmul.f32 %v10917_v39, %v5969_v7  ;;  %v5972_v41 = vmul.f32 %v10917_v39, %v5968_v60  ;;  %v5970_v15 = vmax.f32 %v5966_v1, 0.0  ;;  %v5971_v11 = vmax.f32 %v5967_v42, 0.0 }
0x2e5b   : > { %v5979_v51 = vsel %vm981_vm2, %v5973_v46, 0.0  ;;  %v5976_v33 = vsel %vm981_vm2, %v5972_v41, 0.0  ;;  %v5974_v29 = vmul.f32 %v10917_v39, %v5970_v15  ;;  %v5975_v30 = vmul.f32 %v8928_v4, %v5971_v11 }
0x2e5c   : > { %5980 = vadd.xlane.f32.xlu1 %v5979_v51  ;;  %5977 = vadd.xlane.f32.xlu0 %v5976_v33 }
0x2e5d   : > { %v5982_v32 = vsel %vm981_vm2, %v5974_v29, 0.0  ;;  %v5985_v24 = vsel %vm981_vm2, %v5975_v30, 0.0 }
0x2e5e   : > { %v11355_v25 = vpop.f32.mrf.mxu1 }
0x2e60   : > { %v8431_v18 = vpop.f32.mrf.mxu1  ;;  %5983 = vadd.xlane.f32.xlu0 %v5982_v32 }
0x2e64   : > { %5986 = vadd.xlane.f32.xlu0 %v5985_v24 }
0x2e9e   : > { %v11360_v9 = vpop.f32.mrf.mxu1 }
0x2ea0   : > { %v8501_v13 = vpop.f32.mrf.mxu1 }
0x2ee5   : > { %v5978_v44 = vpop.xlane.xlu0 %5977  ;;  %v5981_v31 = vpop.xlane.xlu1 %5980 }
0x2ee6   : > { %v5999_v38 = vrot.slane %v5981_v31, %v9171_v54  ;;  %v5995_v8 = vrot.slane %v5978_v44, %v9174_v56 }
0x2ee8   : > { %v6000_v22 = vsel %vm1310_vm3, %v5999_v38, %v5995_v8  ;;  %v3812_v38 = vld [vmem:[%s11384_s20 + $0xb] sm:$0x1]  ;;  %v5120_v8 = vld [vmem:[%s11384_s20 + $0xd] sm:$0x1] }
0x2ee9   : > { %v5984_v39 = vpop.xlane.xlu0 %5983 }
0x2eea   : > { %v6004_v21 = vrot.slane %v5984_v39, %v9174_v56 }
0x2eed   : > { %v5987_v49 = vpop.xlane.xlu0 %5986 }
0x2eee   : > { %v6008_v62 = vrot.slane %v5987_v49, %v9171_v54 }
0x2ef0   : > { %v6009_v47 = vsel %vm1310_vm3, %v6008_v62, %v6004_v21  ;;  %v1855_v21 = vld [vmem:[%s11384_s20 + $0x8] sm:$0x1] }
0x2ef1   : > { %v6010_v34 = vsel %vm1321_vm4, %v6009_v47, %v6000_v22 }
0x2ef2   : > { %v6012_v45 = vsel %vm1324_vm5, %v6010_v34, -inf }
0x2ef3   : > { %6013 = vmax.xlane.f32.xlu0 %v6012_v45 }
0x2f7c   : > { %v6014_v48 = vpop.xlane.xlu0 %6013 }
0x2f7d   : > { %v6019_v43 = vrot.slane %v6014_v48, %v9135_v19  ;;  %v6023_v16 = vrot.slane %v6014_v48, %v9185_v12 }
0x2f7f   : > { %v6026_v50 = vsub.f32 %v5978_v44, %v6019_v43  ;;  %v6027_v40 = vsub.f32 %v5981_v31, %v6019_v43  ;;  %v6028_v6 = vsub.f32 %v5984_v39, %v6023_v16  ;;  %v6029_v59 = vsub.f32 %v5987_v49, %v6023_v16  ;;  %v2504_v31 = vld [vmem:[%s11384_s20 + $0x1] sm:$0x1]  ;;  %v2505_v39 = vld [vmem:[%s11384_s20 + $0x9] sm:$0x1]  ;;  %v6428_v49 = vld [vmem:[%s11384_s20 + $0xf] sm:$0x1] }
0x2f81   : > { %v6030_v14 = vmul.f32 1.442695, %v6026_v50  ;;  %v6032_v23 = vmul.f32 1.442695, %v6027_v40  ;;  %v6034_v7 = vmul.f32 1.442695, %v6028_v6 }
0x2f82   : > { %v6036_v60 = vmul.f32 1.442695, %v6029_v59 }
0x2f83   : > { %8763 = vpow2.f32 %v6030_v14 }
0x2f84   : > { %8765 = vpow2.f32 %v6032_v23 }
0x2f85   : > { %8767 = vpow2.f32 %v6034_v7 }
0x2f86   : > { %8769 = vpow2.f32 %v6036_v60 }
0x2f90   : > { %v8764_v1 = vpop.eup %8763 }
0x2f91   : > { %v8766_v42 = vpop.eup %8765  ;;  %6043 = vperm.xlu0 %8552, %v8764_v1  }
0x2f92   : > { %6046 = vperm.xlu1 %8551, %v8766_v42   ;;  %v8768_v46 = vpop.eup %8767 }
0x2f93   : > { %v8770_v41 = vpop.eup %8769 }
0x2f95   : > { %6049 = vperm.xlu0 %8552, %v8768_v46  }
0x2f96   : > { %6052 = vperm.xlu1 %8551, %v8770_v41  }
0x300c   : > { %v6044_v15 = vpop.permute.xlu0 %6043 }
0x300d   : > { %v6047_v51 = vpop.permute.xlu1 %6046  ;;  %v6057_v29 = vrot.slane %v6044_v15, %v9174_v56  ;;  %v8929_v15 = vld [vmem:[%s9082_s26] sm:$0xff] }
0x300e   : > { %v6061_v33 = vrot.slane %v6047_v51, %v9171_v54  ;;  %v8930_v51 = vld [vmem:[%s9082_s26 + $0x8] sm:$0xff] }
0x3010   : > { %v6050_v11 = vpop.permute.xlu0 %6049  ;;  %v6062_v18 = vsel %vm1310_vm3, %v6061_v33, %v6057_v29 }
0x3011   : > { %v6053_v32 = vpop.permute.xlu1 %6052  ;;  %v6066_v4 = vrot.slane %v6050_v11, %v9174_v56 }
0x3012   : > { %v6070_v30 = vrot.slane %v6053_v32, %v9171_v54 }
0x3014   : > { %v6071_v24 = vsel %vm1310_vm3, %v6070_v30, %v6066_v4 }
0x3015   : > { %v6072_v13 = vsel %vm1321_vm4, %v6071_v24, %v6062_v18  ;;  %v8931_v24 = vld [vmem:[%s9082_s26 + $0x10] sm:$0xff] }
0x3016   : > { %v6074_v44 = vsel %vm1324_vm5, %v6072_v13, 0.0 }
0x3017   : > { %6075 = vadd.xlane.f32.xlu0 %v6074_v44 }
0x302d   : > { %2508 = vperm.xlu0 %8552, %v2504_v31   ;;  %v8932_v31 = vld [vmem:[%s9082_s26 + $0x18] sm:$0xff] }
0x3031   : > { %2512 = vperm.xlu0 %8552, %v2505_v39  }
0x3035   : > { %3819 = vperm.xlu0 %8552, %v3812_v38  }
0x3039   : > { %5127 = vperm.xlu0 %8552, %v5120_v8  }
0x303d   : > { %6435 = vperm.xlu0 %8552, %v6428_v49  }
0x3041   : > { %1863 = vperm.xlu0 %8552, %v1855_v21  }
0x30a0   : > { %v6076_v62 = vpop.xlane.xlu0 %6075 }
0x30a1   : > { %8771 = vrcp.f32 %v6076_v62 }
0x30a8   : > { %v11392_v22 = vpop.permute.xlu0 %2508 }
0x30ac   : > { %v11394_v47 = vpop.permute.xlu0 %2512 }
0x30ae   : > { %v8772_v34 = vpop.eup %8771 }
0x30af   : > { %v6082_v45 = vrot.slane %v8772_v34, %v9135_v19  ;;  %v6086_v40 = vrot.slane %v8772_v34, %v9185_v12  ;;  %v6202_v12 = vadd.f32 %v11227_v35, %v11355_v25 }
0x30b0   : > { %v11397_v48 = vpop.permute.xlu0 %3819 }
0x30b1   : > { %v11399_v43 = vmul.f32 %v8764_v1, %v6082_v45  ;;  %v11404_v50 = vmul.f32 %v8766_v42, %v6082_v45  ;;  %v6091_v59 = vmul.f32 %v8768_v46, %v6086_v40  ;;  %v6092_v14 = vmul.f32 %v8770_v41, %v6086_v40 }
0x30b2   : > { %v7306_v1 = vmul.f32 -1.442695, %v6202_v12 }
0x30b3   : > { %6095 = vperm.xlu1 %8551, %v11399_v43  }
0x30b4   : > { %v11402_v16 = vpop.permute.xlu0 %5127  ;;  %8773 = vpow2.f32 %v7306_v1 }
0x30b7   : > { %6100 = vperm.xlu1 %8551, %v11404_v50  }
0x30b8   : > { %v11408_v6 = vpop.permute.xlu0 %6435 }
0x30b9   : > { %v6461_v23 = vrot.slane %v11408_v6, %v9135_v19 }
0x30bb   : > { %v11412_v7 = vmul.f32 %v6461_v23, %v6091_v59  ;;  %v11414_v60 = vmul.f32 %v6461_v23, %v6092_v14  ;;  %6105 = vperm.xlu1 %8551, %v6091_v59  }
0x30bf   : > { %6110 = vperm.xlu1 %8551, %v6092_v14  }
0x30c1   : > { %v8774_v30 = vpop.eup %8773 }
0x30c2   : > { %v6208_v44 = vadd.f32 1.0, %v8774_v30  ;;  %v6368_v30 = vrot.slane %v11360_v9, 2 }
0x30c4   : > { %8775 = vrcp.f32 %v6208_v44 }
0x312e   : > { %v6096_v42 = vpop.permute.xlu1 %6095 }
0x312f   : > { %v6113_v46 = vmul.f32 %v8929_v15, %v6096_v42  ;;  %v8776_v42 = vpop.eup %8775 }
0x3131   : > { %v6117_v29 = vsel %vm852_vm1, %v6113_v46, 0.0 }
0x3132   : > { %v6101_v41 = vpop.permute.xlu1 %6100 }
0x3133   : > { %v6114_v33 = vmul.f32 %v8930_v51, %v6101_v41 }
0x3135   : > { %v6118_v11 = vsel %vm852_vm1, %v6114_v33, 0.0 }
0x3136   : > { %v6119_v32 = vadd.f32 %v6118_v11, %v6117_v29  ;;  %v6106_v4 = vpop.permute.xlu1 %6105  ;;  %v6367_v11 = vrot.slane %v11360_v9, 1 }
0x3137   : > { %v6115_v13 = vmul.f32 %v8931_v24, %v6106_v4 }
0x3138   : > { %v6120_v18 = vrot.slane %v6119_v32, 4 }
0x3139   : > { %v6126_v38 = vsel %vm852_vm1, %v6115_v13, 0.0 }
0x313a   : > { %v6121_v35 = vadd.f32 %v6120_v18, %v6119_v32  ;;  %v6111_v25 = vpop.permute.xlu1 %6110 }
0x313b   : > { %v6116_v39 = vmul.f32 %v8932_v31, %v6111_v25 }
0x313c   : > { %v6122_v49 = vrot.slane %v6121_v35, 2 }
0x313d   : > { %v6127_v8 = vsel %vm852_vm1, %v6116_v39, 0.0 }
0x313e   : > { %v6128_v21 = vadd.f32 %v6127_v8, %v6126_v38  ;;  %v6123_v34 = vadd.f32 %v6122_v49, %v6121_v35 }
0x3140   : > { %v6129_v62 = vrot.slane %v6128_v21, 4  ;;  %v6124_v59 = vrot.slane %v6123_v34, 1 }
0x3142   : > { %v6130_v45 = vadd.f32 %v6129_v62, %v6128_v21  ;;  %v6125_v12 = vadd.f32 %v6124_v59, %v6123_v34  ;;  %v3157_v34 = vld [vmem:[%s11384_s20 + $0x2] sm:$0x1]  ;;  %v5119_v59 = vld [vmem:[%s11384_s20 + $0x5] sm:$0x1] }
0x3144   : > { %v6131_v40 = vrot.slane %v6130_v45, 2 }
0x3146   : > { %v6132_v14 = vadd.f32 %v6131_v40, %v6130_v45  ;;  %v3811_v45 = vld [vmem:[%s11384_s20 + $0x3] sm:$0x1]  ;;  %v4465_v40 = vld [vmem:[%s11384_s20 + $0x4] sm:$0x1] }
0x3148   : > { %v6133_v23 = vrot.slane %v6132_v14, 1 }
0x314a   : > { %v6134_v1 = vadd.f32 %v6133_v23, %v6132_v14  ;;  %v5773_v14 = vld [vmem:[%s11384_s20 + $0x6] sm:$0x1]  ;;  %v6427_v23 = vld [vmem:[%s11384_s20 + $0x7] sm:$0x1] }
0x314c   : > { %v6213_v15 = vsel %vm1321_vm4, %v6134_v1, %v6125_v12  ;;  %v3158_v12 = vld [vmem:[%s11384_s20 + $0xa] sm:$0x1]  ;;  %v4466_v1 = vld [vmem:[%s11384_s20 + $0xc] sm:$0x1] }
0x314d   : > { %v6215_v46 = vmul.f32 %v8776_v42, %v6213_v15  ;;  %v5774_v42 = vld [vmem:[%s11384_s20 + $0xe] sm:$0x1]  ;;  %v1854_v15 = vld [vmem:[%s11384_s20] sm:$0x1]  ;;  %s833_s20 = scalar_lea.vmem %s11821_s17, %s9056_s29 }
0x314f   : > { %8465 = vmatmul.mubr.msk.f32.vlgmr.msra.gmra.mxu0 %vm852_vm1, %v6215_v46  ;;  %v6389_v46 = vrot.slane %v11259_v37, 7 }
0x320f   : > { %v6285_v41 = vpop.f32.mrf.mxu0 }
0x3210   : > { %v6290_v51 = vrot.slane %v6285_v41, 1  ;;  %v6291_v33 = vrot.slane %v6285_v41, 2 }
0x3211   : > { %v8466_v29 = vpop.f32.mrf.mxu0 }
0x3212   : > { %v6294_v32 = vadd.f32 %v6290_v51, %v9628_v3  ;;  %v6295_v4 = vadd.f32 %v6291_v33, %v9631_v20  ;;  %v6390_v33 = vrot.slane %v11262_v58, 7  ;;  %v11896_v58 = vld [vmem:[#allocation15_spill] sm:$0xff] }
0x3214   : > { %v6371_v18 = vadd.f32 %v6367_v11, %v6294_v32  ;;  %v6372_v24 = vadd.f32 %v6368_v30, %v6295_v4 }
0x3216   : > { %8777 = vtanh.f32 %v6371_v18  ;;  %v7341_v25 = vmul.f32 -1.442695, %v6371_v18  ;;  %v7342_v44 = vmul.f32 -1.442695, %v6372_v24 }
0x3217   : > { %8779 = vtanh.f32 %v6372_v24  ;;  %v2514_v24 = vrot.slane %v11392_v22, 7 }
0x3218   : > { %8781 = vpow2.f32 %v7341_v25 }
0x3219   : > { %8783 = vpow2.f32 %v7342_v44 }
0x3223   : > { %v8778_v13 = vpop.eup %8777 }
0x3224   : > { %6397 = vrot.lane.b32.xlu1 %v8778_v13, %s8945_s25  ;;  %v8780_v35 = vpop.eup %8779 }
0x3225   : > { %v8782_v3 = vpop.eup %8781 }
0x3226   : > { %v6379_v20 = vadd.f32 1.0, %v8782_v3  ;;  %v8784_v31 = vpop.eup %8783  ;;  %v11897_v3 = vld [vmem:[#allocation25_spill] sm:$0xff] }
0x3227   : > { %v6380_v9 = vadd.f32 1.0, %v8784_v31 }
0x3228   : > { %6399 = vrot.lane.b32.xlu1 %v8780_v35, %s8945_s25  ;;  %8785 = vrcp.f32 %v6379_v20  ;;  %v2518_v35 = vmul.f32 %v2514_v24, %v11896_v58  ;;  %v11902_v24 = vld [vmem:[#allocation9_spill] sm:$0xff] }
0x3229   : > { %8787 = vrcp.f32 %v6380_v9 }
0x3235   : > { %v11434_v39 = vpop.eup %8785 }
0x3236   : > { %v11438_v49 = vpop.eup %8787  ;;  %v6393_v41 = vmul.f32 %v11434_v39, %v6389_v46 }
0x3237   : > { %v6394_v11 = vmul.f32 %v11438_v49, %v6390_v33  ;;  %v11901_v33 = vld [vmem:[#allocation19_spill] sm:$0xff] }
0x3296   : > { %v6398_v38 = vpop.permute.xlu1 %6397 }
0x3297   : > { %v6403_v8 = vmul.f32 %v11434_v39, %v6398_v38  ;;  %v2515_v38 = vrot.slane %v11394_v47, 7 }
0x3299   : > { %6407 = vrot.lane.b32.xlu1 %v6403_v8, %s8946_s3 }
0x329a   : > { %v6400_v21 = vpop.permute.xlu1 %6399 }
0x329b   : > { %v6404_v62 = vmul.f32 %v11438_v49, %v6400_v21 }
0x329d   : > { %6409 = vrot.lane.b32.xlu1 %v6404_v62, %s8946_s3  ;;  %v11898_v62 = vld [vmem:[#allocation16_spill] sm:$0xff] }
0x32a1   : > { %3161 = vperm.xlu1 %8551, %v3157_v34   ;;  %v2519_v34 = vmul.f32 %v2515_v38, %v11898_v62 }
0x32a5   : > { %3815 = vperm.xlu1 %8551, %v3811_v45   ;;  %v3822_v45 = vrot.slane %v11397_v48, 5 }
0x32a9   : > { %4469 = vperm.xlu1 %8551, %v4465_v40  }
0x32ad   : > { %5123 = vperm.xlu1 %8551, %v5119_v59   ;;  %v11899_v59 = vld [vmem:[#allocation26_spill] sm:$0xff] }
0x32b1   : > { %5777 = vperm.xlu1 %8551, %v5773_v14   ;;  %v3826_v14 = vmul.f32 %v3822_v45, %v11899_v59  ;;  %v11904_v59 = vld [vmem:[#allocation4_spill] sm:$0xff] }
0x32b5   : > { %6431 = vperm.xlu1 %8551, %v6427_v23   ;;  %v5130_v23 = vrot.slane %v11402_v16, 3 }
0x32b9   : > { %3165 = vperm.xlu1 %8551, %v3158_v12  }
0x32bd   : > { %4473 = vperm.xlu1 %8551, %v4466_v1  }
0x32c1   : > { %5781 = vperm.xlu1 %8551, %v5774_v42  }
0x32c5   : > { %1858 = vperm.xlu1 %8551, %v1854_v15  }
0x330b   : > { %v6408_v51 = vpop.permute.xlu1 %6407 }
0x330c   : > { %v6413_v29 = vadd.f32 %v6408_v51, %v6393_v41  ;;  %v11900_v41 = vld [vmem:[#allocation10_spill] sm:$0xff] }
0x330e   : > { %8789 = vtanh.f32 %v6413_v29 }
0x330f   : > { %v6410_v32 = vpop.permute.xlu1 %6409 }
0x3310   : > { %v6414_v4 = vadd.f32 %v6410_v32, %v6394_v11 }
0x3312   : > { %8791 = vtanh.f32 %v6414_v4 }
0x331b   : > { %v8790_v30 = vpop.eup %8789 }
0x331c   : > { %v11456_v18 = vpop.permute.xlu1 %3161  ;;  %6419 = vrot.lane.b32.xlu1 %v8790_v30, %s8945_s25  ;;  %v1864_v30 = vpop.permute.xlu0 %1863 }
0x331d   : > { %v3167_v46 = vrot.slane %v11456_v18, 6  ;;  %v11543_v45 = vrot.slane %v1864_v30, %v9135_v19 }
0x331f   : > { %v8792_v37 = vpop.eup %8791  ;;  %v3171_v29 = vmul.f32 %v3167_v46, %v11901_v33  ;;  %v6517_v46 = vld [vmem:[%s11819_s15 + $0x48] sm:$0xff]  ;;  %v11567_v33 = vrot.slane %v11394_v47, %v9135_v19  ;;  %v6515_v47 = vld [vmem:[%s11819_s15 + $0x38] sm:$0xff] }
0x3320   : > { %6421 = vrot.lane.b32.xlu0 %v8792_v37, %s8945_s25  ;;  %v11461_v13 = vpop.permute.xlu1 %3815  ;;  %v1867_v37 = vmul.f32 %v1864_v30, %v11902_v24 }
0x3321   : > { %v3821_v25 = vrot.slane %v11461_v13, 5  ;;  %v11598_v24 = vrot.slane %v11461_v13, %v9135_v19 }
0x3323   : > { %v3825_v20 = vmul.f32 %v3821_v25, %v11897_v3 }
0x3324   : > { %2522 = vrot.lane.b32.xlu0 %v2518_v35, %s8946_s3  ;;  %v11466_v44 = vpop.permute.xlu1 %4469  ;;  %v6523_v35 = vld [vmem:[%s11819_s15 + $0x78] sm:$0xff] }
0x3325   : > { %v4475_v11 = vrot.slane %v11466_v44, 4  ;;  %8502 = vmatprep.subr.msk.mxu0 %vm852_vm1, %v6523_v35 }
0x3326   : > { %8503 = vmatpush3.xpose.msk.msra.mxu0 %vm852_vm1, %v6523_v35  ;;  %v11609_v35 = vrot.slane %v11397_v48, %v9135_v19  ;;  %v6511_v48 = vld [vmem:[%s11819_s15 + $0x18] sm:$0xff] }
0x3328   : > { %3829 = vrot.lane.b32.xlu0 %v3825_v20, %s8946_s3  ;;  %v11470_v31 = vpop.permute.xlu1 %5123  ;;  %v6521_v20 = vld [vmem:[%s11819_s15 + $0x68] sm:$0xff] }
0x3329   : > { %v5129_v9 = vrot.slane %v11470_v31, 3 }
0x332b   : > { %v5133_v8 = vmul.f32 %v5129_v9, %v11019_v57  ;;  %v5134_v57 = vmul.f32 %v5130_v23, %v11021_v0  ;;  %v4479_v0 = vmul.f32 %v4475_v11, %v10737_v63  ;;  %v6522_v63 = vld [vmem:[%s11819_s15 + $0x70] sm:$0xff]  ;;  %v11554_v23 = vrot.slane %v11392_v22, %v9135_v19  ;;  %v6516_v22 = vld [vmem:[%s11819_s15 + $0x40] sm:$0xff] }
0x332c   : > { %v11475_v21 = vpop.permute.xlu1 %5777  ;;  %8504 = vmatprep.subr.msk.mxu0 %vm852_vm1, %v6522_v63 }
0x332d   : > { %5137 = vrot.lane.b32.xlu0 %v5133_v8, %s8946_s3  ;;  %v5783_v32 = vrot.slane %v11475_v21, 2  ;;  %8505 = vmatpush3.xpose.msk.msra.mxu0 %vm852_vm1, %v6522_v63  ;;  %v6520_v8 = vld [vmem:[%s11819_s15 + $0x60] sm:$0xff] }
0x332e   : > { %8506 = vmatprep.subr.msk.mxu0 %vm852_vm1, %v6521_v20  ;;  %v11910_v63 = vld [vmem:[#allocation21_spill] sm:$0xff] }
0x332f   : > { %v5787_v4 = vmul.f32 %v5783_v32, %v11267_v55  ;;  %v11903_v55 = vld [vmem:[#allocation20_spill] sm:$0xff]  ;;  %v11908_v32 = vld [vmem:[#allocation7_spill] sm:$0xff]  ;;  %v3848_v13 = vmul.f32 %v11598_v24, %v11910_v63 }
0x3330   : > { %v11480_v40 = vpop.permute.xlu1 %6431 }
0x3331   : > { %2524 = vrot.lane.b32.xlu0 %v2519_v34, %s8946_s3  ;;  %8507 = vmatpush3.xpose.msk.msra.mxu0 %vm852_vm1, %v6521_v20  ;;  %v6510_v20 = vld [vmem:[%s11819_s15 + $0x10] sm:$0xff] }
0x3332   : > { %8508 = vmatprep.subr.msk.mxu0 %vm852_vm1, %v6520_v8 }
0x3334   : > { %v11485_v12 = vpop.permute.xlu1 %3165 }
0x3335   : > { %3831 = vrot.lane.b32.xlu0 %v3826_v14, %s8946_s3  ;;  %v3168_v58 = vrot.slane %v11485_v12, 6  ;;  %8509 = vmatpush3.xpose.msk.msra.mxu0 %vm852_vm1, %v6520_v8  ;;  %v11589_v30 = vrot.slane %v11485_v12, %v9135_v19  ;;  %v6513_v12 = vld [vmem:[%s11819_s15 + $0x28] sm:$0xff] }
0x3337   : > { %v3172_v25 = vmul.f32 %v3168_v58, %v11903_v55  ;;  %v6512_v55 = vld [vmem:[%s11819_s15 + $0x20] sm:$0xff] }
0x3338   : > { %v11489_v1 = vpop.permute.xlu1 %4473 }
0x3339   : > { %5139 = vrot.lane.b32.xlu0 %v5134_v57, %s8946_s3  ;;  %v4476_v3 = vrot.slane %v11489_v1, 4  ;;  %v11905_v57 = vld [vmem:[#allocation5_spill] sm:$0xff] }
0x333b   : > { %v4480_v9 = vmul.f32 %v4476_v3, %v10739_v5  ;;  %v6519_v5 = vld [vmem:[%s11819_s15 + $0x58] sm:$0xff] }
0x333c   : > { %v11492_v42 = vpop.permute.xlu1 %5781  ;;  %8510 = vmatprep.subr.msk.mxu0 %vm852_vm1, %v6519_v5 }
0x333d   : > { %v5784_v38 = vrot.slane %v11492_v42, 2  ;;  %8511 = vmatpush3.xpose.msk.msra.mxu0 %vm852_vm1, %v6519_v5 }
0x333f   : > { %v5788_v62 = vmul.f32 %v5784_v38, %v11269_v17  ;;  %v6518_v17 = vld [vmem:[%s11819_s15 + $0x50] sm:$0xff]  ;;  %v6508_v38 = vld [vmem:[%s11819_s15] sm:$0xff] }
0x3340   : > { %v1859_v15 = vpop.permute.xlu1 %1858  ;;  %8512 = vmatprep.subr.msk.mxu0 %vm852_vm1, %v6518_v17 }
0x3341   : > { %v1866_v51 = vmul.f32 %v1859_v15, %v11900_v41  ;;  %v11534_v34 = vrot.slane %v1859_v15, %v9135_v19  ;;  %v1891_v15 = vmul.f32 %v11543_v45, %v11905_v57  ;;  %8513 = vmatpush3.xpose.msk.msra.mxu0 %vm852_vm1, %v6518_v17  ;;  %v11906_v41 = vld [vmem:[#allocation11_spill] sm:$0xff]  ;;  %v6438_v17 = vrot.slane %v11408_v6, 1  ;;  %v11913_v6 = vld [vmem:[#allocation6_spill] sm:$0xff] }
0x3342   : > { %8514 = vmatprep.subr.msk.mxu0 %vm852_vm1, %v6517_v46 }
0x3343   : > { %1870 = vrot.lane.b32.xlu1 %v1866_v51, %s8946_s3  ;;  %v1890_v14 = vmul.f32 %v11534_v34, %v11904_v59  ;;  %v2541_v51 = vmul.f32 %v11554_v23, %v11906_v41  ;;  %v11912_v41 = vld [vmem:[#allocation3_spill] sm:$0xff] }
0x3345   : > { %8515 = vmatpush3.xpose.msk.msra.mxu0 %vm852_vm1, %v6517_v46 }
0x3346   : > { %8516 = vmatprep.subr.msk.mxu0 %vm852_vm1, %v6516_v22 }
0x3347   : > { %3175 = vrot.lane.b32.xlu1 %v3171_v29, %s8946_s3  ;;  %v11907_v29 = vld [vmem:[#allocation13_spill] sm:$0xff] }
0x3348   : > { %v2543_v11 = vmul.f32 %v11567_v33, %v11907_v29  ;;  %v11914_v29 = vld [vmem:[#allocation12_spill] sm:$0xff] }
0x3349   : > { %8517 = vmatpush3.xpose.msk.msra.mxu0 %vm852_vm1, %v6516_v22 }
0x334a   : > { %8518 = vmatprep.subr.msk.mxu0 %vm852_vm1, %v6515_v47 }
0x334b   : > { %4483 = vrot.lane.b32.xlu1 %v4479_v0, %s8946_s3  ;;  %v11578_v0 = vrot.slane %v11456_v18, %v9135_v19  ;;  %v6514_v18 = vld [vmem:[%s11819_s15 + $0x30] sm:$0xff] }
0x334d   : > { %8519 = vmatpush3.xpose.msk.msra.mxu0 %vm852_vm1, %v6515_v47 }
0x334e   : > { %8520 = vmatprep.subr.msk.mxu0 %vm852_vm1, %v6514_v18 }
0x334f   : > { %5791 = vrot.lane.b32.xlu1 %v5787_v4, %s8946_s3  ;;  %v3194_v4 = vmul.f32 %v11578_v0, %v11908_v32  ;;  %v11915_v32 = vld [vmem:[#allocation14_spill] sm:$0xff] }
0x3351   : > { %8521 = vmatpush3.xpose.msk.msra.mxu0 %vm852_vm1, %v6514_v18  ;;  %v11916_v18 = vld [vmem:[#allocation8_spill] sm:$0xff] }
0x3352   : > { %8522 = vmatprep.subr.msk.mxu0 %vm852_vm1, %v6513_v12 }
0x3353   : > { %1872 = vrot.lane.b32.xlu1 %v1867_v37, %s8946_s3  ;;  %v11909_v37 = vld [vmem:[#allocation17_spill] sm:$0xff] }
0x3354   : > { %v3196_v58 = vmul.f32 %v11589_v30, %v11909_v37 }
0x3355   : > { %8523 = vmatpush3.xpose.msk.msra.mxu0 %vm852_vm1, %v6513_v12  ;;  %v11918_v12 = vld [vmem:[#allocation22_spill] sm:$0xff] }
0x3356   : > { %8524 = vmatprep.subr.msk.mxu0 %vm852_vm1, %v6512_v55  ;;  %v3849_v63 = vmul.f32 %v11598_v24, %v11918_v12 }
0x3357   : > { %3177 = vrot.lane.b32.xlu1 %v3172_v25, %s8946_s3  ;;  %v11911_v25 = vld [vmem:[#allocation23_spill] sm:$0xff] }
0x3358   : > { %v3850_v3 = vmul.f32 %v11609_v35, %v11911_v25 }
0x3359   : > { %8525 = vmatpush3.xpose.msk.msra.mxu0 %vm852_vm1, %v6512_v55 }
0x335a   : > { %8526 = vmatprep.subr.msk.mxu0 %vm852_vm1, %v6511_v48 }
0x335b   : > { %4485 = vrot.lane.b32.xlu1 %v4480_v9, %s8946_s3  ;;  %v6509_v9 = vld [vmem:[%s11819_s15 + $0x8] sm:$0xff] }
0x335d   : > { %8527 = vmatpush3.xpose.msk.msra.mxu0 %vm852_vm1, %v6511_v48 }
0x335e   : > { %8528 = vmatprep.subr.msk.mxu0 %vm852_vm1, %v6510_v20 }
0x335f   : > { %5793 = vrot.lane.b32.xlu1 %v5788_v62, %s8946_s3  ;;  %v6437_v62 = vrot.slane %v11480_v40, 1 }
0x3361   : > { %8529 = vmatpush3.xpose.msk.msra.mxu0 %vm852_vm1, %v6510_v20 }
0x3362   : > { %8530 = vmatprep.subr.msk.mxu0 %vm852_vm1, %v6509_v9 }
0x3363   : > { %1901 = vperm.xlu1 %8551, %v1890_v14  }
0x3365   : > { %8531 = vmatpush3.xpose.msk.msra.mxu0 %vm852_vm1, %v6509_v9 }
0x3366   : > { %8532 = vmatprep.subr.msk.mxu0 %vm852_vm1, %v6508_v38 }
0x3367   : > { %1904 = vperm.xlu1 %8551, %v1891_v15  }
0x3369   : > { %8533 = vmatpush3.xpose.msk.msra.mxu0 %vm852_vm1, %v6508_v38 }
0x336b   : > { %2550 = vperm.xlu1 %8551, %v2541_v51  }
0x336f   : > { %2556 = vperm.xlu1 %8551, %v2543_v11   ;;  %v2542_v11 = vmul.f32 %v11554_v23, %v11914_v29 }
0x3373   : > { %3203 = vperm.xlu1 %8551, %v3194_v4  }
0x3377   : > { %3209 = vperm.xlu1 %8551, %v3196_v58   ;;  %v11917_v58 = vld [vmem:[#allocation18_spill] sm:$0xff] }
0x3378   : > { %v3197_v23 = vmul.f32 %v11589_v30, %v11917_v58 }
0x337b   : > { %3857 = vperm.xlu1 %8551, %v3848_v13  }
0x337f   : > { %3863 = vperm.xlu1 %8551, %v3850_v3  }
0x338e   : > { %v6420_v8 = vpop.permute.xlu1 %6419 }
0x338f   : > { %v6425_v5 = vmul.f32 %v11434_v39, %v6420_v8  ;;  %v1889_v39 = vmul.f32 %v11534_v34, %v11912_v41  ;;  %v2544_v34 = vmul.f32 %v11567_v33, %v11915_v32 }
0x3391   : > { %v6441_v59 = vmul.f32 %v6437_v62, %v6425_v5 }
0x3392   : > { %v6422_v14 = vpop.permute.xlu0 %6421 }
0x3393   : > { %v6426_v57 = vmul.f32 %v11438_v49, %v6422_v14  ;;  %6445 = vrot.lane.b32.xlu0 %v6441_v59, %s8946_s3  ;;  %v1892_v49 = vmul.f32 %v11543_v45, %v11913_v6  ;;  %v3195_v45 = vmul.f32 %v11578_v0, %v11916_v18 }
0x3395   : > { %v6442_v15 = vmul.f32 %v6438_v17, %v6426_v57 }
0x3396   : > { %v2523_v46 = vpop.permute.xlu0 %2522 }
0x3397   : > { %2529 = vst.msk [vmem:[#allocation2] sm:$0x2] %vm2528_vm6, %v2523_v46  ;;  %6447 = vrot.lane.b32.xlu0 %v6442_v15, %s8946_s3 }
0x339a   : > { %v3830_v51 = vpop.permute.xlu0 %3829 }
0x339b   : > { %3836 = vst.msk [vmem:[#allocation2] sm:$0x8] %vm3835_vm7, %v3830_v51  ;;  %1898 = vperm.xlu0 %8552, %v1889_v39  }
0x339f   : > { %v5138_v22 = vpop.permute.xlu0 %5137  ;;  %1907 = vperm.xlu0 %8552, %v1892_v49  }
0x33a0   : > { %5144 = vst.msk [vmem:[#allocation2] sm:$0x20] %vm5143_vm8, %v5138_v22 }
0x33a3   : > { %v2525_v47 = vpop.permute.xlu0 %2524  ;;  %2553 = vperm.xlu0 %8552, %v2542_v11  }
0x33a4   : > { %2530 = vst.msk [vmem:[#allocation2 + $0x8] sm:$0x2] %vm2528_vm6, %v2525_v47 }
0x33a7   : > { %v3832_v4 = vpop.permute.xlu0 %3831  ;;  %2559 = vperm.xlu0 %8552, %v2544_v34  }
0x33a8   : > { %3837 = vst.msk [vmem:[#allocation2 + $0x8] sm:$0x8] %vm3835_vm7, %v3832_v4 }
0x33ab   : > { %v5140_v37 = vpop.permute.xlu0 %5139  ;;  %3206 = vperm.xlu0 %8552, %v3195_v45  }
0x33ac   : > { %5145 = vst.msk [vmem:[#allocation2 + $0x8] sm:$0x20] %vm5143_vm8, %v5140_v37 }
0x33af   : > { %3212 = vperm.xlu0 %8552, %v3197_v23  }
0x33b3   : > { %3860 = vperm.xlu0 %8552, %v3849_v63  }
0x33b5   : > { %v1871_v33 = vpop.permute.xlu1 %1870 }
0x33b6   : > { %1877 = vst.msk [vmem:[#allocation2] sm:$0x1] %vm1876_vm9, %v1871_v33 }
0x33b9   : > { %v3176_v13 = vpop.permute.xlu1 %3175 }
0x33ba   : > { %3182 = vst.msk [vmem:[#allocation2] sm:$0x4] %vm3181_vm10, %v3176_v13 }
0x33bd   : > { %v4484_v55 = vpop.permute.xlu1 %4483 }
0x33be   : > { %4490 = vst.msk [vmem:[#allocation2] sm:$0x10] %vm4489_vm11, %v4484_v55 }
0x33c1   : > { %v5792_v0 = vpop.permute.xlu1 %5791 }
0x33c2   : > { %5798 = vst.msk [vmem:[#allocation2] sm:$0x40] %vm5797_vm12, %v5792_v0 }
0x33c5   : > { %v1873_v25 = vpop.permute.xlu1 %1872 }
0x33c6   : > { %1878 = vst.msk [vmem:[#allocation2 + $0x8] sm:$0x1] %vm1876_vm9, %v1873_v25 }
0x33c9   : > { %v3178_v30 = vpop.permute.xlu1 %3177 }
0x33ca   : > { %3183 = vst.msk [vmem:[#allocation2 + $0x8] sm:$0x4] %vm3181_vm10, %v3178_v30 }
0x33cd   : > { %v4486_v3 = vpop.permute.xlu1 %4485 }
0x33ce   : > { %4491 = vst.msk [vmem:[#allocation2 + $0x8] sm:$0x10] %vm4489_vm11, %v4486_v3 }
0x33d1   : > { %v5794_v24 = vpop.permute.xlu1 %5793 }
0x33d2   : > { %5799 = vst.msk [vmem:[#allocation2 + $0x8] sm:$0x40] %vm5797_vm12, %v5794_v24  ;;  %v7343_v24 = vld [vmem:[%s11820_s16] ss:$0 sm:$0xff] }
0x33de   : > { %v1902_v20 = vpop.permute.xlu1 %1901 }
0x33df   : > { %v1916_v14 = vrot.slane %v1902_v20, %v9171_v54 }
0x33e2   : > { %v1905_v8 = vpop.permute.xlu1 %1904 }
0x33e3   : > { %v1921_v41 = vrot.slane %v1905_v8, %v9174_v56  ;;  %v4495_v8 = vrot.slane %v11466_v44, %v9135_v19  ;;  %v5153_v44 = vrot.slane %v11402_v16, %v9135_v19  ;;  %v5807_v16 = vrot.slane %v11492_v42, %v9135_v19 }
0x33e6   : > { %v2551_v5 = vpop.permute.xlu1 %2550 }
0x33e7   : > { %v2564_v49 = vrot.slane %v2551_v5, %v9174_v56  ;;  %v4499_v5 = vrot.slane %v11489_v1, %v9135_v19  ;;  %v11920_v1 = vld [vmem:[#allocation27_spill] sm:$0xff] }
0x33ea   : > { %v2557_v15 = vpop.permute.xlu1 %2556 }
0x33eb   : > { %v2573_v32 = vrot.slane %v2557_v15, %v9174_v56  ;;  %v4503_v15 = vmul.f32 %v4495_v8, %v10686_v26 }
0x33ee   : > { %v3204_v29 = vpop.permute.xlu1 %3203 }
0x33ef   : > { %v3217_v37 = vrot.slane %v3204_v29, %v9174_v56 }
0x33f2   : > { %v3210_v18 = vpop.permute.xlu1 %3209 }
0x33f3   : > { %v3226_v63 = vrot.slane %v3210_v18, %v9174_v56 }
0x33f6   : > { %v3858_v13 = vpop.permute.xlu1 %3857 }
0x33f7   : > { %v3871_v25 = vrot.slane %v3858_v13, %v9174_v56 }
0x3405   : > { %v6446_v48 = vpop.permute.xlu0 %6445 }
0x3406   : > { %6452 = vst.msk [vmem:[#allocation2] sm:$0x80] %vm6451_vm13, %v6446_v48 }
0x3409   : > { %v6448_v9 = vpop.permute.xlu0 %6447 }
0x340a   : > { %6453 = vst.msk [vmem:[#allocation2 + $0x8] sm:$0x80] %vm6451_vm13, %v6448_v9 }
0x340d   : > { %v6506_v38 = vld [vmem:[#allocation2] sm:$0xff] }
0x340e   : > { %8534 = vmatprep.mubr.msk.f32.mxu0 %vm852_vm1, %v6506_v38 }
0x3411   : > { %v6507_v62 = vld [vmem:[#allocation2 + $0x8] sm:$0xff] }
0x3412   : > { %8535 = vmatmul.mubr.msk.f32.vlgmr.msra.gmra.mxu0 %vm852_vm1, %v6507_v62  ;;  %v4502_v62 = vmul.f32 %v4495_v8, %v10683_v52 }
0x3416   : > { %v1899_v59 = vpop.permute.xlu0 %1898 }
0x3417   : > { %v1912_v17 = vrot.slane %v1899_v59, %v9174_v56  ;;  %v11919_v59 = vld [vmem:[#allocation24_spill] sm:$0xff] }
0x3419   : > { %v1917_v57 = vsel %vm1310_vm3, %v1916_v14, %v1912_v17  ;;  %v3851_v14 = vmul.f32 %v11609_v35, %v11919_v59  ;;  %v5149_v17 = vrot.slane %v11470_v31, %v9135_v19  ;;  %v5158_v35 = vmul.f32 %v5153_v44, %v10957_v10 }
0x341a   : > { %1930 = vst.msk [vmem:[%s11672_s24] sm:$0x1] %vm1929_vm14, %v1917_v57  ;;  %v1908_v46 = vpop.permute.xlu0 %1907  ;;  %v4504_v57 = vmul.f32 %v4499_v5, %v10690_v61  ;;  %v5803_v31 = vrot.slane %v11475_v21, %v9135_v19  ;;  %v5812_v10 = vmul.f32 %v5807_v16, %v11220_v28 }
0x341b   : > { %v1925_v39 = vrot.slane %v1908_v46, %v9171_v54  ;;  %v5156_v52 = vmul.f32 %v5149_v17, %v10950_v2  ;;  %v4505_v46 = vmul.f32 %v4499_v5, %v11920_v1  ;;  %v5157_v61 = vmul.f32 %v5149_v17, %v10953_v36  ;;  %v11921_v2 = vld [vmem:[#allocation28_spill] sm:$0xff] }
0x341c   : > { %v5810_v26 = vmul.f32 %v5803_v31, %v11213_v27  ;;  %v5811_v21 = vmul.f32 %v5803_v31, %v11216_v53  ;;  %v11922_v27 = vld [vmem:[#allocation29_spill] sm:$0xff] }
0x341d   : > { %v1926_v51 = vsel %vm1310_vm3, %v1925_v39, %v1921_v41  ;;  %v5159_v41 = vmul.f32 %v5153_v44, %v11921_v2  ;;  %v6457_v39 = vrot.slane %v11480_v40, %v9135_v19 }
0x341e   : > { %1931 = vst.msk [vmem:[%s11672_s24 + $0x8] sm:$0x1] %vm1929_vm14, %v1926_v51  ;;  %v2554_v6 = vpop.permute.xlu0 %2553  ;;  %v5813_v51 = vmul.f32 %v5807_v16, %v11922_v27 }
0x341f   : > { %v2568_v22 = vrot.slane %v2554_v6, %v9171_v54  ;;  %v6464_v36 = vmul.f32 %v6457_v39, %v11399_v43  ;;  %v6465_v42 = vmul.f32 %v6457_v39, %v11404_v50  ;;  %v3864_v6 = vpop.permute.xlu1 %3863 }
0x3420   : > { %v3880_v50 = vrot.slane %v3864_v6, %v9174_v56 }
0x3421   : > { %v2569_v11 = vsel %vm1310_vm3, %v2568_v22, %v2564_v49 }
0x3422   : > { %2581 = vst.msk [vmem:[%s11672_s24 + $0x1] sm:$0x1] %vm1929_vm14, %v2569_v11  ;;  %v2560_v47 = vpop.permute.xlu0 %2559 }
0x3423   : > { %v2577_v34 = vrot.slane %v2560_v47, %v9171_v54 }
0x3425   : > { %v2578_v4 = vsel %vm1310_vm3, %v2577_v34, %v2573_v32 }
0x3426   : > { %2582 = vst.msk [vmem:[%s11672_s24 + $0x9] sm:$0x1] %vm1929_vm14, %v2578_v4  ;;  %v3207_v45 = vpop.permute.xlu0 %3206 }
0x3427   : > { %v3221_v58 = vrot.slane %v3207_v45, %v9171_v54 }
0x3429   : > { %v3222_v23 = vsel %vm1310_vm3, %v3221_v58, %v3217_v37 }
0x342a   : > { %3234 = vst.msk [vmem:[%s11672_s24 + $0x2] sm:$0x1] %vm1929_vm14, %v3222_v23  ;;  %v3213_v12 = vpop.permute.xlu0 %3212 }
0x342b   : > { %v3230_v33 = vrot.slane %v3213_v12, %v9171_v54 }
0x342d   : > { %v3231_v55 = vsel %vm1310_vm3, %v3230_v33, %v3226_v63 }
0x342e   : > { %3235 = vst.msk [vmem:[%s11672_s24 + $0xa] sm:$0x1] %vm1929_vm14, %v3231_v55  ;;  %v3861_v0 = vpop.permute.xlu0 %3860 }
0x342f   : > { %v3875_v30 = vrot.slane %v3861_v0, %v9171_v54 }
0x3431   : > { %v3876_v3 = vsel %vm1310_vm3, %v3875_v30, %v3871_v25 }
0x3432   : > { %3888 = vst.msk [vmem:[%s11672_s24 + $0x3] sm:$0x1] %vm1929_vm14, %v3876_v3 }
0x34d2   : > { %v8536_v48 = vpop.f32.mrf.mxu0 }
0x34d3   : > { %v6657_v20 = vadd.f32 %v8536_v48, %v7343_v24 }
0x34d4   : > { %v6651_v9 = vpop.f32.mrf.mxu0 }
0x34d5   : > { %v6652_v38 = vadd.f32 %v7343_v24, %v6651_v9  ;;  %6662 = vmax.xlane.f32.xlu0 %v6657_v20 }
0x34d7   : > { %6660 = vmax.xlane.f32.xlu1 %v6652_v38 }
0x34e8   : > { %4511 = vperm.xlu1 %8551, %v4502_v62  }
0x34eb   : > { %3866 = vperm.xlu0 %8552, %v3851_v14  }
0x34ec   : > { %4517 = vperm.xlu1 %8551, %v4504_v57  }
0x34ef   : > { %4514 = vperm.xlu0 %8552, %v4503_v15  }
0x34f0   : > { %5165 = vperm.xlu1 %8551, %v5156_v52  }
0x34f3   : > { %4520 = vperm.xlu0 %8552, %v4505_v46  }
0x34f4   : > { %5171 = vperm.xlu1 %8551, %v5158_v35  }
0x34f7   : > { %5168 = vperm.xlu0 %8552, %v5157_v61  }
0x34f8   : > { %5819 = vperm.xlu1 %8551, %v5810_v26  }
0x34fb   : > { %5174 = vperm.xlu0 %8552, %v5159_v41  }
0x34fc   : > { %5825 = vperm.xlu1 %8551, %v5812_v10  }
0x34ff   : > { %5822 = vperm.xlu0 %8552, %v5811_v21  }
0x3500   : > { %6473 = vperm.xlu1 %8551, %v6464_v36  }
0x3503   : > { %5828 = vperm.xlu0 %8552, %v5813_v51  }
0x3507   : > { %6476 = vperm.xlu0 %8552, %v6465_v42  }
0x355e   : > { %v6663_v49 = vpop.xlane.xlu0 %6662 }
0x355f   : > { %v11742_v19 = vsub.f32 %v6657_v20, %v6663_v49 }
0x3560   : > { %v6661_v28 = vpop.xlane.xlu1 %6660 }
0x3561   : > { %v6668_v40 = vmul.f32 1.442695, %v11742_v19  ;;  %v11745_v22 = vsub.f32 %v6652_v38, %v6661_v28 }
0x3563   : > { %8793 = vpow2.f32 %v6668_v40  ;;  %v6666_v53 = vmul.f32 1.442695, %v11745_v22 }
0x3564   : > { %v4512_v43 = vpop.permute.xlu1 %4511 }
0x3565   : > { %8795 = vpow2.f32 %v6666_v53  ;;  %v4525_v4 = vrot.slane %v4512_v43, %v9174_v56 }
0x3566   : > { %v3867_v29 = vpop.permute.xlu0 %3866 }
0x3567   : > { %v3884_v11 = vrot.slane %v3867_v29, %v9171_v54 }
0x3568   : > { %v4518_v47 = vpop.permute.xlu1 %4517 }
0x3569   : > { %v3885_v32 = vsel %vm1310_vm3, %v3884_v11, %v3880_v50  ;;  %v4534_v23 = vrot.slane %v4518_v47, %v9174_v56 }
0x356a   : > { %3889 = vst.msk [vmem:[%s11672_s24 + $0xb] sm:$0x1] %vm1929_vm14, %v3885_v32  ;;  %v4515_v34 = vpop.permute.xlu0 %4514 }
0x356b   : > { %v4529_v18 = vrot.slane %v4515_v34, %v9171_v54 }
0x356c   : > { %v5166_v45 = vpop.permute.xlu1 %5165 }
0x356d   : > { %v4530_v37 = vsel %vm1310_vm3, %v4529_v18, %v4525_v4  ;;  %v5179_v25 = vrot.slane %v5166_v45, %v9174_v56 }
0x356e   : > { %4542 = vst.msk [vmem:[%s11672_s24 + $0x4] sm:$0x1] %vm1929_vm14, %v4530_v37  ;;  %v4521_v58 = vpop.permute.xlu0 %4520 }
0x356f   : > { %v4538_v12 = vrot.slane %v4521_v58, %v9171_v54 }
0x3570   : > { %v8794_v63 = vpop.eup %8793  ;;  %v5172_v33 = vpop.permute.xlu1 %5171 }
0x3571   : > { %v4539_v13 = vsel %vm1310_vm3, %v4538_v12, %v4534_v23  ;;  %6672 = vadd.xlane.f32.xlu1 %v8794_v63  ;;  %v5188_v20 = vrot.slane %v5172_v33, %v9174_v56 }
0x3572   : > { %v8796_v55 = vpop.eup %8795  ;;  %4543 = vst.msk [vmem:[%s11672_s24 + $0xc] sm:$0x1] %vm1929_vm14, %v4539_v13  ;;  %v5169_v0 = vpop.permute.xlu0 %5168 }
0x3573   : > { %v5183_v30 = vrot.slane %v5169_v0, %v9171_v54  ;;  %6670 = vadd.xlane.f32.xlu0 %v8796_v55 }
0x3574   : > { %v5820_v3 = vpop.permute.xlu1 %5819 }
0x3575   : > { %v5184_v24 = vsel %vm1310_vm3, %v5183_v30, %v5179_v25  ;;  %v5833_v5 = vrot.slane %v5820_v3, %v9174_v56 }
0x3576   : > { %5196 = vst.msk [vmem:[%s11672_s24 + $0x5] sm:$0x1] %vm1929_vm14, %v5184_v24  ;;  %v5175_v48 = vpop.permute.xlu0 %5174 }
0x3577   : > { %v5192_v9 = vrot.slane %v5175_v48, %v9171_v54 }
0x3578   : > { %v5826_v8 = vpop.permute.xlu1 %5825 }
0x3579   : > { %v5193_v38 = vsel %vm1310_vm3, %v5192_v9, %v5188_v20  ;;  %v5842_v57 = vrot.slane %v5826_v8, %v9174_v56 }
0x357a   : > { %5197 = vst.msk [vmem:[%s11672_s24 + $0xd] sm:$0x1] %vm1929_vm14, %v5193_v38  ;;  %v5823_v62 = vpop.permute.xlu0 %5822 }
0x357b   : > { %v5837_v59 = vrot.slane %v5823_v62, %v9171_v54 }
0x357c   : > { %v6474_v44 = vpop.permute.xlu1 %6473 }
0x357d   : > { %v5838_v14 = vsel %vm1310_vm3, %v5837_v59, %v5833_v5  ;;  %v6487_v46 = vrot.slane %v6474_v44, %v9174_v56 }
0x357e   : > { %5850 = vst.msk [vmem:[%s11672_s24 + $0x6] sm:$0x1] %vm1929_vm14, %v5838_v14  ;;  %v5829_v17 = vpop.permute.xlu0 %5828 }
0x357f   : > { %v5846_v15 = vrot.slane %v5829_v17, %v9171_v54 }
0x3581   : > { %v5847_v52 = vsel %vm1310_vm3, %v5846_v15, %v5842_v57 }
0x3582   : > { %5851 = vst.msk [vmem:[%s11672_s24 + $0xe] sm:$0x1] %vm1929_vm14, %v5847_v52  ;;  %v6477_v1 = vpop.permute.xlu0 %6476  ;;  %6479 = vperm.xlu1 %8551, %v11412_v7  }
0x3583   : > { %v6491_v35 = vrot.slane %v6477_v1, %v9171_v54 }
0x3585   : > { %v6492_v31 = vsel %vm1310_vm3, %v6491_v35, %v6487_v46 }
0x3586   : > { %6504 = vst.msk [vmem:[%s11672_s24 + $0x7] sm:$0x1] %vm1929_vm14, %v6492_v31 }
0x3589   : > { %6482 = vperm.xlu0 %8552, %v11414_v60  }
0x35fa   : > { %v6673_v61 = vpop.xlane.xlu1 %6672 }
0x35fb   : > { %8797 = vlog2.f32 %v6673_v61 }
0x35fc   : > { %v6671_v26 = vpop.xlane.xlu0 %6670 }
0x35fd   : > { %8799 = vlog2.f32 %v6671_v26 }
0x35fe   : > { %v6480_v16 = vpop.permute.xlu1 %6479 }
0x35ff   : > { %v6496_v7 = vrot.slane %v6480_v16, %v9174_v56 }
0x3604   : > { %v6483_v2 = vpop.permute.xlu0 %6482 }
0x3605   : > { %v6500_v41 = vrot.slane %v6483_v2, %v9171_v54 }
0x3607   : > { %v6501_v39 = vsel %vm1310_vm3, %v6500_v41, %v6496_v7 }
0x3608   : > { %v8798_v10 = vpop.eup %8797  ;;  %6505 = vst.msk [vmem:[%s11672_s24 + $0xf] sm:$0x1] %vm1929_vm14, %v6501_v39 }
0x3609   : > { %v6677_v21 = vmul.f32 0.6931472, %v8798_v10 }
0x360a   : > { %v8800_v36 = vpop.eup %8799 }
0x360b   : > { %v6679_v60 = vsub.f32 %v11742_v19, %v6677_v21  ;;  %v6675_v27 = vmul.f32 0.6931472, %v8800_v36 }
0x360d   : > { %6681 = vst [vmem:[%s833_s20 + $0x8] sm:$0xff] %v6679_v60  ;;  %v6678_v51 = vsub.f32 %v11745_v22, %v6675_v27 }
0x360f   : > { %6680 = vst [vmem:[%s833_s20] sm:$0xff] %v6678_v51 }
0x3610 PF: > { %s29_s27 = sadd.s32 1, %s8939_s27  }
0x3611   : > { %p26_p4 = scmp.ge.s32.totalorder %s29_s27, 4  }
0x3613   :  { %28 = sbr.rel (!%p26_p4) target bundleno = 5 (0x5), region = 172 }

</bundles_post_ra>
